<compile_context>
chip_gen: v7x
topology: tpu7x:2x2x1
jax: 0.10.0
libtpu: 0.0.40
codegen_flags: <defaults>
</compile_context>

<pallas_src>
import math

import jax
import jax.numpy as jnp
from jax import lax
from jax.experimental import pallas as pl
from jax.experimental.pallas import tpu as pltpu

# Configuration mirroring StackedNonInvertibleNSF(inp_dim=4, nodes=32,
# nstack=4, tail_bound=4.0, tails='linear', num_bins=10).
BATCH = 8
INP_DIM = 4             # features
HIDDEN = 32             # nodes / hidden_features
NSTACK = 4
NUM_BINS = 10
MULT = 3 * NUM_BINS - 1  # _output_dim_multiplier() for tails='linear' = 29
MULT_PAD = 32            # per-feature spline-param block padded to 32 lanes
DH = INP_DIM * HIDDEN    # 128 fused hidden width
DM = INP_DIM * MULT_PAD  # 128 fused spline-param width
ROWS = INP_DIM * BATCH   # 32 rows for the feature-vectorized spline pass
TAIL_BOUND = 4.0
MIN_BIN_WIDTH = 1e-3
MIN_BIN_HEIGHT = 1e-3
MIN_DERIVATIVE = 1e-3
DERIV_CONST = math.log(math.exp(1.0 - MIN_DERIVATIVE) - 1.0)


def _softplus(x):
    # torch.nn.functional.softplus with threshold=20
    return jnp.where(x > 20.0, x, jnp.log(1.0 + jnp.exp(jnp.minimum(x, 20.0))))


def _softmax(x):
    m = jnp.max(x, axis=-1, keepdims=True)
    e = jnp.exp(x - m)
    return e / jnp.sum(e, axis=-1, keepdims=True)


# ---------------------------------------------------------------------------
# Pallas kernel
# ---------------------------------------------------------------------------

def _tri2_matrix():
    """(2*NB, 2*(NB+1)) block-diag of two cumsum-and-left-pad matrices.

    [widths | heights] @ tri2 == [pad(cumsum(widths)) | pad(cumsum(heights))].
    """
    nb = NUM_BINS
    r = lax.broadcasted_iota(jnp.int32, (2 * nb, 2 * (nb + 1)), 0)
    c = lax.broadcasted_iota(jnp.int32, (2 * nb, 2 * (nb + 1)), 1)
    blk_w = jnp.logical_and(jnp.logical_and(r < nb, c <= nb), r < c)
    blk_h = jnp.logical_and(jnp.logical_and(r >= nb, c > nb),
                            (r - nb) < (c - (nb + 1)))
    return jnp.logical_or(blk_w, blk_h).astype(jnp.float32)


def _rq_spline_rows(x_col, uw, uh, ud, col11, col10, tri2, cpad):
    """unconstrained_rational_quadratic_spline, forward, tails='linear'.

    Vectorized over all D features at once:
      x_col: (ROWS, 1); uw, uh: (ROWS, NB); ud: (ROWS, NB-1) -> (ROWS, 1).
    """
    nb = NUM_BINS
    left = bottom = -TAIL_BOUND
    right = top = TAIL_BOUND

    inside = jnp.logical_and(x_col >= left, x_col <= right)       # (R, 1)
    x_in = jnp.clip(x_col, left, right)

    # pad derivatives with softplus^{-1}(1 - min_derivative) at both ends
    # (lane concat, no matmul)
    derivatives = MIN_DERIVATIVE + _softplus(
        jnp.concatenate([cpad, ud, cpad], axis=-1))               # (R, nb+1)

    widths = _softmax(uw)
    widths = MIN_BIN_WIDTH + (1.0 - MIN_BIN_WIDTH * nb) * widths
    heights = _softmax(uh)
    heights = MIN_BIN_HEIGHT + (1.0 - MIN_BIN_HEIGHT * nb) * heights

    # single matmul does padded-cumsum for widths and heights together
    cum = jnp.dot(jnp.concatenate([widths, heights], axis=-1), tri2,
                  preferred_element_type=jnp.float32)             # (R, 2*(nb+1))
    cumwidths = (right - left) * cum[:, :nb + 1] + left
    cumwidths = jnp.where(col11 == 0, left,
                          jnp.where(col11 == nb, right, cumwidths))
    cumheights = (top - bottom) * cum[:, nb + 1:] + bottom
    cumheights = jnp.where(col11 == 0, bottom,
                           jnp.where(col11 == nb, top, cumheights))

    widths = cumwidths[:, 1:] - cumwidths[:, :-1]                 # (R, nb)
    heights = cumheights[:, 1:] - cumheights[:, :-1]              # (R, nb)
    delta = heights / widths

    # searchsorted(cumwidths, x) with eps added to the last knot (nflows)
    cw_search = jnp.where(col11 == nb, cumwidths + 1e-6, cumwidths)
    bin_idx = jnp.sum((x_in >= cw_search).astype(jnp.int32),
                      axis=-1, keepdims=True) - 1                 # (R, 1)
    onehot = (col10 == bin_idx).astype(jnp.float32)               # (R, nb)

    # consolidated one-hot gather: one masked reduce over 7 stacked planes
    planes = jnp.stack([cumwidths[:, :nb], widths, cumheights[:, :nb], delta,
                        derivatives[:, :nb], derivatives[:, 1:], heights],
                       axis=0)                                    # (7, R, nb)
    g = jnp.sum(planes * onehot[None, :, :], axis=-1, keepdims=True)  # (7, R, 1)
    input_cumwidths = g[0]
    input_bin_widths = g[1]
    input_cumheights = g[2]
    input_delta = g[3]
    input_derivatives = g[4]
    input_derivatives_p1 = g[5]
    input_heights = g[6]

    theta = (x_in - input_cumwidths) / input_bin_widths
    theta_1m = theta * (1.0 - theta)
    numerator = input_heights * (input_delta * theta * theta
                                 + input_derivatives * theta_1m)
    denominator = input_delta + ((input_derivatives + input_derivatives_p1
                                  - 2.0 * input_delta) * theta_1m)
    y_in = input_cumheights + numerator / denominator

    # tails='linear': identity outside the interval
    return jnp.where(inside, y_in, x_col)


def _stacked_nsf_kernel(x_ref, w1_ref, b1_ref, w2_ref, b2_ref, w3_ref, b3_ref,
                        out_ref):
    # Hoisted constants (JAX does not CSE broadcast/iota; build once).
    col11 = lax.broadcasted_iota(jnp.int32, (ROWS, NUM_BINS + 1), 1)
    col10 = lax.broadcasted_iota(jnp.int32, (ROWS, NUM_BINS), 1)
    tri2 = _tri2_matrix()
    cpad = jnp.full((ROWS, 1), DERIV_CONST, jnp.float32)

    x = x_ref[...]                                       # (B, D) running sample

    for s in range(NSTACK):                              # unrolled flow steps
        # Fused per-feature MLPs (block-diagonal packed weights, 128 lanes).
        h = jnp.maximum(
            jnp.dot(x, w1_ref[s], preferred_element_type=jnp.float32)
            + b1_ref[s], 0.0)                            # (B, 128)
        h = jnp.maximum(
            jnp.dot(h, w2_ref[s], preferred_element_type=jnp.float32)
            + b2_ref[s], 0.0)                            # (B, 128)
        params = (jnp.dot(h, w3_ref[s], preferred_element_type=jnp.float32)
                  + b3_ref[s])                           # (B, 128) padded

        # Repack per-feature spline params to rows -> one spline pass for all
        # D features (rows = D*B).
        uw = jnp.concatenate(
            [params[:, i * MULT_PAD: i * MULT_PAD + NUM_BINS]
             for i in range(INP_DIM)], axis=0)           # (ROWS, 10)
        uh = jnp.concatenate(
            [params[:, i * MULT_PAD + NUM_BINS: i * MULT_PAD + 2 * NUM_BINS]
             for i in range(INP_DIM)], axis=0)           # (ROWS, 10)
        ud = jnp.concatenate(
            [params[:, i * MULT_PAD + 2 * NUM_BINS: i * MULT_PAD + MULT]
             for i in range(INP_DIM)], axis=0)           # (ROWS, 9)
        xr = jnp.concatenate([x[:, i:i + 1] for i in range(INP_DIM)],
                             axis=0)                     # (ROWS, 1)

        yr = _rq_spline_rows(xr, uw, uh, ud, col11, col10, tri2, cpad)

        cols = [yr[i * BATCH:(i + 1) * BATCH, :] for i in range(INP_DIM)]
        if s == NSTACK - 1:
            # trailing ReversePermutation dropped (transform_list[:-1]);
            # single dense store.
            out_ref[...] = jnp.concatenate(cols, axis=1)
        else:
            # transforms.ReversePermutation(inp_dim): flip feature order.
            x = jnp.concatenate(cols[::-1], axis=1)


def _pack_params(w1, b1, w2, b2, w3, b3):
    """Repack per-feature MLP weights into fused block-diagonal matrices."""
    # Layer 1: concat the (already autoregressive-masked) (D, H) blocks along
    # the output axis -> (NSTACK, D, D*H).
    w1p = jnp.concatenate([w1[:, i] for i in range(INP_DIM)], axis=-1)
    b1p = b1.reshape(NSTACK, 1, DH)
    # Layers 2 & 3: block-diagonal placement.
    w2p = jnp.zeros((NSTACK, DH, DH), jnp.float32)
    b2p = b2.reshape(NSTACK, 1, DH)
    w3p = jnp.zeros((NSTACK, DH, DM), jnp.float32)
    b3p = jnp.zeros((NSTACK, 1, DM), jnp.float32)
    for i in range(INP_DIM):
        w2p = w2p.at[:, i * HIDDEN:(i + 1) * HIDDEN,
                     i * HIDDEN:(i + 1) * HIDDEN].set(w2[:, i])
        w3p = w3p.at[:, i * HIDDEN:(i + 1) * HIDDEN,
                     i * MULT_PAD:i * MULT_PAD + MULT].set(w3[:, i])
        b3p = b3p.at[:, 0, i * MULT_PAD:i * MULT_PAD + MULT].set(b3[:, i])
    return w1p, b1p, w2p, b2p, w3p, b3p


def stacked_nsf_pallas(x, w1, b1, w2, b2, w3, b3):
    packed = _pack_params(w1, b1, w2, b2, w3, b3)
    # No grid: all weights (~0.5 MB f32) live in VMEM for the whole call; the
    # NSTACK flow steps are unrolled inside the kernel body.
    return pl.pallas_call(
        _stacked_nsf_kernel,
        out_shape=jax.ShapeDtypeStruct((BATCH, INP_DIM), jnp.float32),
        in_specs=[pl.BlockSpec(memory_space=pltpu.MemorySpace.VMEM)
                  for _ in range(7)],
        out_specs=pl.BlockSpec(memory_space=pltpu.MemorySpace.VMEM),
    )(x, *packed)


# ---------------------------------------------------------------------------
# Pure-JAX reference (same math as the original module, no Pallas)
# ---------------------------------------------------------------------------

def _cumsum_pad_matrix(nb):
    r = lax.broadcasted_iota(jnp.int32, (nb, nb + 1), 0)
    c = lax.broadcasted_iota(jnp.int32, (nb, nb + 1), 1)
    return (r < c).astype(jnp.float32)


def _deriv_pad_matrix(nb):
    r = lax.broadcasted_iota(jnp.int32, (nb - 1, nb + 1), 0)
    c = lax.broadcasted_iota(jnp.int32, (nb - 1, nb + 1), 1)
    return (c == r + 1).astype(jnp.float32)


def _rq_spline_forward_column(x_col, uw, uh, ud, *, precision=None):
    b = x_col.shape[0]
    nb = NUM_BINS
    left = bottom = -TAIL_BOUND
    right = top = TAIL_BOUND

    inside = jnp.logical_and(x_col >= left, x_col <= right)
    x_in = jnp.clip(x_col, left, right)
    col = lax.broadcasted_iota(jnp.int32, (b, nb + 1), 1)

    ud_pad = jnp.dot(ud, _deriv_pad_matrix(nb),
                     preferred_element_type=jnp.float32, precision=precision)
    ud_pad = jnp.where(jnp.logical_or(col == 0, col == nb), DERIV_CONST, ud_pad)
    derivatives = MIN_DERIVATIVE + _softplus(ud_pad)

    tri = _cumsum_pad_matrix(nb)

    widths = _softmax(uw)
    widths = MIN_BIN_WIDTH + (1.0 - MIN_BIN_WIDTH * nb) * widths
    cumwidths = jnp.dot(widths, tri, preferred_element_type=jnp.float32,
                        precision=precision)
    cumwidths = (right - left) * cumwidths + left
    cumwidths = jnp.where(col == 0, left,
                          jnp.where(col == nb, right, cumwidths))
    widths = cumwidths[:, 1:] - cumwidths[:, :-1]

    heights = _softmax(uh)
    heights = MIN_BIN_HEIGHT + (1.0 - MIN_BIN_HEIGHT * nb) * heights
    cumheights = jnp.dot(heights, tri, preferred_element_type=jnp.float32,
                         precision=precision)
    cumheights = (top - bottom) * cumheights + bottom
    cumheights = jnp.where(col == 0, bottom,
                           jnp.where(col == nb, top, cumheights))
    heights = cumheights[:, 1:] - cumheights[:, :-1]

    cw_search = jnp.where(col == nb, cumwidths + 1e-6, cumwidths)
    bin_idx = jnp.sum((x_in >= cw_search).astype(jnp.int32),
                      axis=-1, keepdims=True) - 1
    onehot = (lax.broadcasted_iota(jnp.int32, (b, nb), 1) == bin_idx)
    onehot = onehot.astype(jnp.float32)

    def gather(v):
        return jnp.sum(onehot * v, axis=-1, keepdims=True)

    input_cumwidths = gather(cumwidths[:, :nb])
    input_bin_widths = gather(widths)
    input_cumheights = gather(cumheights[:, :nb])
    delta = heights / widths
    input_delta = gather(delta)
    input_derivatives = gather(derivatives[:, :nb])
    input_derivatives_p1 = gather(derivatives[:, 1:])
    input_heights = gather(heights)

    theta = (x_in - input_cumwidths) / input_bin_widths
    theta_1m = theta * (1.0 - theta)
    numerator = input_heights * (input_delta * theta * theta
                                 + input_derivatives * theta_1m)
    denominator = input_delta + ((input_derivatives + input_derivatives_p1
                                  - 2.0 * input_delta) * theta_1m)
    y_in = input_cumheights + numerator / denominator
    return jnp.where(inside, y_in, x_col)


def _single_nsf_stack(x, w1, b1, w2, b2, w3, b3, *, precision=None):
    cols = []
    for i in range(INP_DIM):
        h = jnp.dot(x, w1[i], preferred_element_type=jnp.float32,
                    precision=precision) + b1[i:i + 1, :]
        h = jnp.maximum(h, 0.0)
        h = jnp.dot(h, w2[i], preferred_element_type=jnp.float32,
                    precision=precision) + b2[i:i + 1, :]
        h = jnp.maximum(h, 0.0)
        params = jnp.dot(h, w3[i], preferred_element_type=jnp.float32,
                         precision=precision) + b3[i:i + 1, :]
        uw = params[:, :NUM_BINS]
        uh = params[:, NUM_BINS:2 * NUM_BINS]
        ud = params[:, 2 * NUM_BINS:]
        cols.append(_rq_spline_forward_column(x[:, i:i + 1], uw, uh, ud,
                                              precision=precision))
    return cols


def reference_forward(x, params):
    w1, b1, w2, b2, w3, b3 = params
    hp = lax.Precision.HIGHEST
    for s in range(NSTACK):
        cols = _single_nsf_stack(x, w1[s], b1[s], w2[s], b2[s], w3[s], b3[s],
                                 precision=hp)
        y = jnp.concatenate(cols, axis=1)
        x = y[:, ::-1] if s < NSTACK - 1 else y
    return x


def init_params(key):
    """Deterministic synthetic parameters (shapes implied by the module)."""
    ks = jax.random.split(key, 6)
    s_in = 1.0 / math.sqrt(INP_DIM)
    s_h = 1.0 / math.sqrt(HIDDEN)
    w1 = s_in * jax.random.normal(ks[0], (NSTACK, INP_DIM, INP_DIM, HIDDEN),
                                  jnp.float32)
    # get_net: maker i is an MLP on data[:, :i+1]; enforce this by zeroing the
    # first-layer weight rows for input features >= i+1 (equivalent function).
    in_feat = jnp.arange(INP_DIM)[None, None, :, None]
    maker = jnp.arange(INP_DIM)[None, :, None, None]
    w1 = w1 * (in_feat <= maker).astype(jnp.float32)
    b1 = 0.1 * jax.random.normal(ks[1], (NSTACK, INP_DIM, HIDDEN), jnp.float32)
    w2 = s_h * jax.random.normal(ks[2], (NSTACK, INP_DIM, HIDDEN, HIDDEN),
                                 jnp.float32)
    b2 = 0.1 * jax.random.normal(ks[3], (NSTACK, INP_DIM, HIDDEN), jnp.float32)
    w3 = s_h * jax.random.normal(ks[4], (NSTACK, INP_DIM, HIDDEN, MULT),
                                 jnp.float32)
    b3 = 0.1 * jax.random.normal(ks[5], (NSTACK, INP_DIM, MULT), jnp.float32)
    return w1, b1, w2, b2, w3, b3


if __name__ == "__main__":
    key = jax.random.PRNGKey(0)
    kx, kp = jax.random.split(key)
    # include values outside [-tail_bound, tail_bound] to exercise linear tails
    x = jax.random.uniform(kx, (BATCH, INP_DIM), jnp.float32,
                           minval=-5.0, maxval=5.0)
    params = init_params(kp)

    out = jax.jit(stacked_nsf_pallas)(x, *params)
    out = jax.block_until_ready(out)
    assert out.shape == (BATCH, INP_DIM) and out.dtype == jnp.float32

    ref = reference_forward(x, params)
    err = float(jnp.max(jnp.abs(out - ref)))
    assert err < 1e-2, f"Pallas output mismatch vs pure-JAX reference: {err}"

    print("KERNEL_OK")
</pallas_src>

<mosaic_0001>
module attributes {stable_mosaic.version = 11 : i64} {
  func.func @_stacked_nsf_kernel(%arg0: memref<8x4xf32, #tpu.memory_space<vmem>>, %arg1: memref<4x4x128xf32, #tpu.memory_space<vmem>>, %arg2: memref<4x1x128xf32, #tpu.memory_space<vmem>>, %arg3: memref<4x128x128xf32, #tpu.memory_space<vmem>>, %arg4: memref<4x1x128xf32, #tpu.memory_space<vmem>>, %arg5: memref<4x128x128xf32, #tpu.memory_space<vmem>>, %arg6: memref<4x1x128xf32, #tpu.memory_space<vmem>>, %arg7: memref<8x4xf32, #tpu.memory_space<vmem>>) attributes {dimension_semantics = [], scalar_prefetch = 0 : i64, scratch_operands = 0 : i64, tpu.core_type = #tpu.core_type<tc>} {
    %0 = tpu.iota {dimensions = array<i32: 1>} : vector<32x11xi32>
    %1 = tpu.iota {dimensions = array<i32: 1>} : vector<32x10xi32>
    %2 = tpu.iota {dimensions = array<i32: 0>} : vector<20x22xi32>
    %3 = tpu.iota {dimensions = array<i32: 1>} : vector<20x22xi32>
    %c10_i32 = arith.constant 10 : i32
    %4 = vector.broadcast %c10_i32 : i32 to vector<20x22xi32>
    %5 = arith.cmpi slt, %2, %4 : vector<20x22xi32>
    %c10_i32_0 = arith.constant 10 : i32
    %6 = vector.broadcast %c10_i32_0 : i32 to vector<20x22xi32>
    %7 = arith.cmpi sle, %3, %6 : vector<20x22xi32>
    %8 = arith.andi %5, %7 : vector<20x22xi1>
    %9 = arith.cmpi slt, %2, %3 : vector<20x22xi32>
    %10 = arith.andi %8, %9 : vector<20x22xi1>
    %c10_i32_1 = arith.constant 10 : i32
    %11 = vector.broadcast %c10_i32_1 : i32 to vector<20x22xi32>
    %12 = arith.cmpi sge, %2, %11 : vector<20x22xi32>
    %c10_i32_2 = arith.constant 10 : i32
    %13 = vector.broadcast %c10_i32_2 : i32 to vector<20x22xi32>
    %14 = arith.cmpi sgt, %3, %13 : vector<20x22xi32>
    %15 = arith.andi %12, %14 : vector<20x22xi1>
    %c10_i32_3 = arith.constant 10 : i32
    %16 = vector.broadcast %c10_i32_3 : i32 to vector<20x22xi32>
    %17 = arith.subi %2, %16 : vector<20x22xi32>
    %c11_i32 = arith.constant 11 : i32
    %18 = vector.broadcast %c11_i32 : i32 to vector<20x22xi32>
    %19 = arith.subi %3, %18 : vector<20x22xi32>
    %20 = arith.cmpi slt, %17, %19 : vector<20x22xi32>
    %21 = arith.andi %15, %20 : vector<20x22xi1>
    %22 = arith.ori %10, %21 : vector<20x22xi1>
    %23 = arith.extui %22 : vector<20x22xi1> to vector<20x22xi32>
    %24 = arith.sitofp %23 : vector<20x22xi32> to vector<20x22xf32>
    %cst = arith.constant 0.53974241 : f32
    %25 = vector.broadcast %cst : f32 to vector<32x1xf32>
    %c0 = arith.constant 0 : index
    %c0_4 = arith.constant 0 : index
    %26 = vector.load %arg0[%c0, %c0_4] : memref<8x4xf32, #tpu.memory_space<vmem>>, vector<8x4xf32>
    %c0_5 = arith.constant 0 : index
    %c0_6 = arith.constant 0 : index
    %c0_7 = arith.constant 0 : index
    %27 = vector.load %arg1[%c0_5, %c0_6, %c0_7] : memref<4x4x128xf32, #tpu.memory_space<vmem>>, vector<1x4x128xf32>
    %28 = vector.shape_cast %27 : vector<1x4x128xf32> to vector<4x128xf32>
    %cst_8 = arith.constant dense<0.000000e+00> : vector<8x128xf32>
    %29 = tpu.matmul %26, %28, %cst_8 {dimension_numbers = #tpu.dot_dimension_numbers<[1], [0], [0], [1], [0, 0, 1, 1], [], []>} : vector<8x4xf32>, vector<4x128xf32>, vector<8x128xf32> -> vector<8x128xf32>
    %c0_9 = arith.constant 0 : index
    %c0_10 = arith.constant 0 : index
    %c0_11 = arith.constant 0 : index
    %30 = vector.load %arg2[%c0_9, %c0_10, %c0_11] : memref<4x1x128xf32, #tpu.memory_space<vmem>>, vector<1x1x128xf32>
    %31 = vector.shape_cast %30 : vector<1x1x128xf32> to vector<1x128xf32>
    %32 = vector.broadcast %31 : vector<1x128xf32> to vector<8x128xf32>
    %33 = arith.addf %29, %32 : vector<8x128xf32>
    %cst_12 = arith.constant 0.000000e+00 : f32
    %34 = vector.broadcast %cst_12 : f32 to vector<8x128xf32>
    %35 = arith.maximumf %33, %34 : vector<8x128xf32>
    %c0_13 = arith.constant 0 : index
    %c0_14 = arith.constant 0 : index
    %c0_15 = arith.constant 0 : index
    %36 = vector.load %arg3[%c0_13, %c0_14, %c0_15] : memref<4x128x128xf32, #tpu.memory_space<vmem>>, vector<1x128x128xf32>
    %37 = vector.shape_cast %36 : vector<1x128x128xf32> to vector<128x128xf32>
    %cst_16 = arith.constant dense<0.000000e+00> : vector<8x128xf32>
    %38 = tpu.matmul %35, %37, %cst_16 {dimension_numbers = #tpu.dot_dimension_numbers<[1], [0], [0], [1], [0, 0, 1, 1], [], []>} : vector<8x128xf32>, vector<128x128xf32>, vector<8x128xf32> -> vector<8x128xf32>
    %c0_17 = arith.constant 0 : index
    %c0_18 = arith.constant 0 : index
    %c0_19 = arith.constant 0 : index
    %39 = vector.load %arg4[%c0_17, %c0_18, %c0_19] : memref<4x1x128xf32, #tpu.memory_space<vmem>>, vector<1x1x128xf32>
    %40 = vector.shape_cast %39 : vector<1x1x128xf32> to vector<1x128xf32>
    %41 = vector.broadcast %40 : vector<1x128xf32> to vector<8x128xf32>
    %42 = arith.addf %38, %41 : vector<8x128xf32>
    %cst_20 = arith.constant 0.000000e+00 : f32
    %43 = vector.broadcast %cst_20 : f32 to vector<8x128xf32>
    %44 = arith.maximumf %42, %43 : vector<8x128xf32>
    %c0_21 = arith.constant 0 : index
    %c0_22 = arith.constant 0 : index
    %c0_23 = arith.constant 0 : index
    %45 = vector.load %arg5[%c0_21, %c0_22, %c0_23] : memref<4x128x128xf32, #tpu.memory_space<vmem>>, vector<1x128x128xf32>
    %46 = vector.shape_cast %45 : vector<1x128x128xf32> to vector<128x128xf32>
    %cst_24 = arith.constant dense<0.000000e+00> : vector<8x128xf32>
    %47 = tpu.matmul %44, %46, %cst_24 {dimension_numbers = #tpu.dot_dimension_numbers<[1], [0], [0], [1], [0, 0, 1, 1], [], []>} : vector<8x128xf32>, vector<128x128xf32>, vector<8x128xf32> -> vector<8x128xf32>
    %c0_25 = arith.constant 0 : index
    %c0_26 = arith.constant 0 : index
    %c0_27 = arith.constant 0 : index
    %48 = vector.load %arg6[%c0_25, %c0_26, %c0_27] : memref<4x1x128xf32, #tpu.memory_space<vmem>>, vector<1x1x128xf32>
    %49 = vector.shape_cast %48 : vector<1x1x128xf32> to vector<1x128xf32>
    %50 = vector.broadcast %49 : vector<1x128xf32> to vector<8x128xf32>
    %51 = arith.addf %47, %50 : vector<8x128xf32>
    %52 = vector.extract_strided_slice %51 {offsets = [0, 0], sizes = [8, 10], strides = [1, 1]} : vector<8x128xf32> to vector<8x10xf32>
    %53 = vector.extract_strided_slice %51 {offsets = [0, 32], sizes = [8, 10], strides = [1, 1]} : vector<8x128xf32> to vector<8x10xf32>
    %54 = vector.extract_strided_slice %51 {offsets = [0, 64], sizes = [8, 10], strides = [1, 1]} : vector<8x128xf32> to vector<8x10xf32>
    %55 = vector.extract_strided_slice %51 {offsets = [0, 96], sizes = [8, 10], strides = [1, 1]} : vector<8x128xf32> to vector<8x10xf32>
    %56 = tpu.concatenate %52, %53, %54, %55 in 0 : vector<8x10xf32>, vector<8x10xf32>, vector<8x10xf32>, vector<8x10xf32> -> vector<32x10xf32>
    %57 = vector.extract_strided_slice %51 {offsets = [0, 10], sizes = [8, 10], strides = [1, 1]} : vector<8x128xf32> to vector<8x10xf32>
    %58 = vector.extract_strided_slice %51 {offsets = [0, 42], sizes = [8, 10], strides = [1, 1]} : vector<8x128xf32> to vector<8x10xf32>
    %59 = vector.extract_strided_slice %51 {offsets = [0, 74], sizes = [8, 10], strides = [1, 1]} : vector<8x128xf32> to vector<8x10xf32>
    %60 = vector.extract_strided_slice %51 {offsets = [0, 106], sizes = [8, 10], strides = [1, 1]} : vector<8x128xf32> to vector<8x10xf32>
    %61 = tpu.concatenate %57, %58, %59, %60 in 0 : vector<8x10xf32>, vector<8x10xf32>, vector<8x10xf32>, vector<8x10xf32> -> vector<32x10xf32>
    %62 = vector.extract_strided_slice %51 {offsets = [0, 20], sizes = [8, 9], strides = [1, 1]} : vector<8x128xf32> to vector<8x9xf32>
    %63 = vector.extract_strided_slice %51 {offsets = [0, 52], sizes = [8, 9], strides = [1, 1]} : vector<8x128xf32> to vector<8x9xf32>
    %64 = vector.extract_strided_slice %51 {offsets = [0, 84], sizes = [8, 9], strides = [1, 1]} : vector<8x128xf32> to vector<8x9xf32>
    %65 = vector.extract_strided_slice %51 {offsets = [0, 116], sizes = [8, 9], strides = [1, 1]} : vector<8x128xf32> to vector<8x9xf32>
    %66 = tpu.concatenate %62, %63, %64, %65 in 0 : vector<8x9xf32>, vector<8x9xf32>, vector<8x9xf32>, vector<8x9xf32> -> vector<32x9xf32>
    %67 = vector.extract_strided_slice %26 {offsets = [0, 0], sizes = [8, 1], strides = [1, 1]} : vector<8x4xf32> to vector<8x1xf32>
    %68 = vector.extract_strided_slice %26 {offsets = [0, 1], sizes = [8, 1], strides = [1, 1]} : vector<8x4xf32> to vector<8x1xf32>
    %69 = vector.extract_strided_slice %26 {offsets = [0, 2], sizes = [8, 1], strides = [1, 1]} : vector<8x4xf32> to vector<8x1xf32>
    %70 = vector.extract_strided_slice %26 {offsets = [0, 3], sizes = [8, 1], strides = [1, 1]} : vector<8x4xf32> to vector<8x1xf32>
    %71 = tpu.concatenate %67, %68, %69, %70 in 0 : vector<8x1xf32>, vector<8x1xf32>, vector<8x1xf32>, vector<8x1xf32> -> vector<32x1xf32>
    %cst_28 = arith.constant -4.000000e+00 : f32
    %72 = vector.broadcast %cst_28 : f32 to vector<32x1xf32>
    %73 = arith.cmpf oge, %71, %72 : vector<32x1xf32>
    %cst_29 = arith.constant 4.000000e+00 : f32
    %74 = vector.broadcast %cst_29 : f32 to vector<32x1xf32>
    %75 = arith.cmpf ole, %71, %74 : vector<32x1xf32>
    %76 = arith.andi %73, %75 : vector<32x1xi1>
    %cst_30 = arith.constant -4.000000e+00 : f32
    %cst_31 = arith.constant 4.000000e+00 : f32
    %77 = vector.broadcast %cst_30 : f32 to vector<32x1xf32>
    %78 = arith.maximumf %77, %71 : vector<32x1xf32>
    %79 = vector.broadcast %cst_31 : f32 to vector<32x1xf32>
    %80 = arith.minimumf %79, %78 : vector<32x1xf32>
    %81 = tpu.concatenate %25, %66, %25 in 1 : vector<32x1xf32>, vector<32x9xf32>, vector<32x1xf32> -> vector<32x11xf32>
    %cst_32 = arith.constant 2.000000e+01 : f32
    %82 = vector.broadcast %cst_32 : f32 to vector<32x11xf32>
    %83 = arith.cmpf ogt, %81, %82 : vector<32x11xf32>
    %cst_33 = arith.constant 2.000000e+01 : f32
    %84 = vector.broadcast %cst_33 : f32 to vector<32x11xf32>
    %85 = arith.minimumf %81, %84 : vector<32x11xf32>
    %86 = math.exp %85 : vector<32x11xf32>
    %cst_34 = arith.constant 1.000000e+00 : f32
    %87 = vector.broadcast %cst_34 : f32 to vector<32x11xf32>
    %88 = arith.addf %87, %86 : vector<32x11xf32>
    %89 = math.log %88 : vector<32x11xf32>
    %90 = arith.select %83, %81, %89 : vector<32x11xi1>, vector<32x11xf32>
    %cst_35 = arith.constant 1.000000e-03 : f32
    %91 = vector.broadcast %cst_35 : f32 to vector<32x11xf32>
    %92 = arith.addf %91, %90 : vector<32x11xf32>
    %cst_36 = arith.constant dense<0xFF800000> : vector<32xf32>
    %93 = vector.multi_reduction <maximumf>, %56, %cst_36 [1] : vector<32x10xf32> to vector<32xf32>
    %94 = vector.shape_cast %93 : vector<32xf32> to vector<32x1xf32>
    %95 = vector.broadcast %94 : vector<32x1xf32> to vector<32x10xf32>
    %96 = arith.subf %56, %95 : vector<32x10xf32>
    %97 = math.exp %96 : vector<32x10xf32>
    %cst_37 = arith.constant dense<0.000000e+00> : vector<32xf32>
    %98 = vector.multi_reduction <add>, %97, %cst_37 [1] : vector<32x10xf32> to vector<32xf32>
    %99 = vector.shape_cast %98 : vector<32xf32> to vector<32x1xf32>
    %100 = vector.broadcast %99 : vector<32x1xf32> to vector<32x10xf32>
    %101 = arith.divf %97, %100 : vector<32x10xf32>
    %cst_38 = arith.constant 9.900000e-01 : f32
    %102 = vector.broadcast %cst_38 : f32 to vector<32x10xf32>
    %103 = arith.mulf %102, %101 : vector<32x10xf32>
    %cst_39 = arith.constant 1.000000e-03 : f32
    %104 = vector.broadcast %cst_39 : f32 to vector<32x10xf32>
    %105 = arith.addf %104, %103 : vector<32x10xf32>
    %cst_40 = arith.constant dense<0xFF800000> : vector<32xf32>
    %106 = vector.multi_reduction <maximumf>, %61, %cst_40 [1] : vector<32x10xf32> to vector<32xf32>
    %107 = vector.shape_cast %106 : vector<32xf32> to vector<32x1xf32>
    %108 = vector.broadcast %107 : vector<32x1xf32> to vector<32x10xf32>
    %109 = arith.subf %61, %108 : vector<32x10xf32>
    %110 = math.exp %109 : vector<32x10xf32>
    %cst_41 = arith.constant dense<0.000000e+00> : vector<32xf32>
    %111 = vector.multi_reduction <add>, %110, %cst_41 [1] : vector<32x10xf32> to vector<32xf32>
    %112 = vector.shape_cast %111 : vector<32xf32> to vector<32x1xf32>
    %113 = vector.broadcast %112 : vector<32x1xf32> to vector<32x10xf32>
    %114 = arith.divf %110, %113 : vector<32x10xf32>
    %cst_42 = arith.constant 9.900000e-01 : f32
    %115 = vector.broadcast %cst_42 : f32 to vector<32x10xf32>
    %116 = arith.mulf %115, %114 : vector<32x10xf32>
    %cst_43 = arith.constant 1.000000e-03 : f32
    %117 = vector.broadcast %cst_43 : f32 to vector<32x10xf32>
    %118 = arith.addf %117, %116 : vector<32x10xf32>
    %119 = tpu.concatenate %105, %118 in 1 : vector<32x10xf32>, vector<32x10xf32> -> vector<32x20xf32>
    %cst_44 = arith.constant dense<0.000000e+00> : vector<32x22xf32>
    %120 = tpu.matmul %119, %24, %cst_44 {dimension_numbers = #tpu.dot_dimension_numbers<[1], [0], [0], [1], [0, 0, 1, 1], [], []>} : vector<32x20xf32>, vector<20x22xf32>, vector<32x22xf32> -> vector<32x22xf32>
    %121 = vector.extract_strided_slice %120 {offsets = [0, 0], sizes = [32, 11], strides = [1, 1]} : vector<32x22xf32> to vector<32x11xf32>
    %cst_45 = arith.constant 8.000000e+00 : f32
    %122 = vector.broadcast %cst_45 : f32 to vector<32x11xf32>
    %123 = arith.mulf %122, %121 : vector<32x11xf32>
    %cst_46 = arith.constant -4.000000e+00 : f32
    %124 = vector.broadcast %cst_46 : f32 to vector<32x11xf32>
    %125 = arith.addf %123, %124 : vector<32x11xf32>
    %c0_i32 = arith.constant 0 : i32
    %126 = vector.broadcast %c0_i32 : i32 to vector<32x11xi32>
    %127 = arith.cmpi eq, %0, %126 : vector<32x11xi32>
    %c10_i32_47 = arith.constant 10 : i32
    %128 = vector.broadcast %c10_i32_47 : i32 to vector<32x11xi32>
    %129 = arith.cmpi eq, %0, %128 : vector<32x11xi32>
    %cst_48 = arith.constant 4.000000e+00 : f32
    %130 = vector.broadcast %cst_48 : f32 to vector<32x11xf32>
    %131 = arith.select %129, %130, %125 : vector<32x11xi1>, vector<32x11xf32>
    %cst_49 = arith.constant -4.000000e+00 : f32
    %132 = vector.broadcast %cst_49 : f32 to vector<32x11xf32>
    %133 = arith.select %127, %132, %131 : vector<32x11xi1>, vector<32x11xf32>
    %134 = vector.extract_strided_slice %120 {offsets = [0, 11], sizes = [32, 11], strides = [1, 1]} : vector<32x22xf32> to vector<32x11xf32>
    %cst_50 = arith.constant 8.000000e+00 : f32
    %135 = vector.broadcast %cst_50 : f32 to vector<32x11xf32>
    %136 = arith.mulf %135, %134 : vector<32x11xf32>
    %cst_51 = arith.constant -4.000000e+00 : f32
    %137 = vector.broadcast %cst_51 : f32 to vector<32x11xf32>
    %138 = arith.addf %136, %137 : vector<32x11xf32>
    %c0_i32_52 = arith.constant 0 : i32
    %139 = vector.broadcast %c0_i32_52 : i32 to vector<32x11xi32>
    %140 = arith.cmpi eq, %0, %139 : vector<32x11xi32>
    %c10_i32_53 = arith.constant 10 : i32
    %141 = vector.broadcast %c10_i32_53 : i32 to vector<32x11xi32>
    %142 = arith.cmpi eq, %0, %141 : vector<32x11xi32>
    %cst_54 = arith.constant 4.000000e+00 : f32
    %143 = vector.broadcast %cst_54 : f32 to vector<32x11xf32>
    %144 = arith.select %142, %143, %138 : vector<32x11xi1>, vector<32x11xf32>
    %cst_55 = arith.constant -4.000000e+00 : f32
    %145 = vector.broadcast %cst_55 : f32 to vector<32x11xf32>
    %146 = arith.select %140, %145, %144 : vector<32x11xi1>, vector<32x11xf32>
    %147 = vector.extract_strided_slice %133 {offsets = [0, 1], sizes = [32, 10], strides = [1, 1]} : vector<32x11xf32> to vector<32x10xf32>
    %148 = vector.extract_strided_slice %133 {offsets = [0, 0], sizes = [32, 10], strides = [1, 1]} : vector<32x11xf32> to vector<32x10xf32>
    %149 = arith.subf %147, %148 : vector<32x10xf32>
    %150 = vector.extract_strided_slice %146 {offsets = [0, 1], sizes = [32, 10], strides = [1, 1]} : vector<32x11xf32> to vector<32x10xf32>
    %151 = vector.extract_strided_slice %146 {offsets = [0, 0], sizes = [32, 10], strides = [1, 1]} : vector<32x11xf32> to vector<32x10xf32>
    %152 = arith.subf %150, %151 : vector<32x10xf32>
    %153 = arith.divf %152, %149 : vector<32x10xf32>
    %c10_i32_56 = arith.constant 10 : i32
    %154 = vector.broadcast %c10_i32_56 : i32 to vector<32x11xi32>
    %155 = arith.cmpi eq, %0, %154 : vector<32x11xi32>
    %cst_57 = arith.constant 9.99999997E-7 : f32
    %156 = vector.broadcast %cst_57 : f32 to vector<32x11xf32>
    %157 = arith.addf %133, %156 : vector<32x11xf32>
    %158 = arith.select %155, %157, %133 : vector<32x11xi1>, vector<32x11xf32>
    %159 = vector.broadcast %80 : vector<32x1xf32> to vector<32x11xf32>
    %160 = arith.cmpf oge, %159, %158 : vector<32x11xf32>
    %161 = arith.extui %160 : vector<32x11xi1> to vector<32x11xi32>
    %cst_58 = arith.constant dense<0> : vector<32xi32>
    %162 = vector.multi_reduction <add>, %161, %cst_58 [1] : vector<32x11xi32> to vector<32xi32>
    %163 = vector.shape_cast %162 : vector<32xi32> to vector<32x1xi32>
    %c1_i32 = arith.constant 1 : i32
    %164 = vector.broadcast %c1_i32 : i32 to vector<32x1xi32>
    %165 = arith.subi %163, %164 : vector<32x1xi32>
    %166 = vector.broadcast %165 : vector<32x1xi32> to vector<32x10xi32>
    %167 = arith.cmpi eq, %1, %166 : vector<32x10xi32>
    %168 = arith.extui %167 : vector<32x10xi1> to vector<32x10xi32>
    %169 = arith.sitofp %168 : vector<32x10xi32> to vector<32x10xf32>
    %170 = vector.extract_strided_slice %133 {offsets = [0, 0], sizes = [32, 10], strides = [1, 1]} : vector<32x11xf32> to vector<32x10xf32>
    %171 = vector.extract_strided_slice %146 {offsets = [0, 0], sizes = [32, 10], strides = [1, 1]} : vector<32x11xf32> to vector<32x10xf32>
    %172 = vector.extract_strided_slice %92 {offsets = [0, 0], sizes = [32, 10], strides = [1, 1]} : vector<32x11xf32> to vector<32x10xf32>
    %173 = vector.extract_strided_slice %92 {offsets = [0, 1], sizes = [32, 10], strides = [1, 1]} : vector<32x11xf32> to vector<32x10xf32>
    %174 = vector.shape_cast %170 : vector<32x10xf32> to vector<1x32x10xf32>
    %175 = vector.shape_cast %149 : vector<32x10xf32> to vector<1x32x10xf32>
    %176 = vector.shape_cast %171 : vector<32x10xf32> to vector<1x32x10xf32>
    %177 = vector.shape_cast %153 : vector<32x10xf32> to vector<1x32x10xf32>
    %178 = vector.shape_cast %172 : vector<32x10xf32> to vector<1x32x10xf32>
    %179 = vector.shape_cast %173 : vector<32x10xf32> to vector<1x32x10xf32>
    %180 = vector.shape_cast %152 : vector<32x10xf32> to vector<1x32x10xf32>
    %181 = tpu.concatenate %174, %175, %176, %177, %178, %179, %180 in 0 : vector<1x32x10xf32>, vector<1x32x10xf32>, vector<1x32x10xf32>, vector<1x32x10xf32>, vector<1x32x10xf32>, vector<1x32x10xf32>, vector<1x32x10xf32> -> vector<7x32x10xf32>
    %182 = vector.shape_cast %169 : vector<32x10xf32> to vector<1x32x10xf32>
    %183 = vector.broadcast %182 : vector<1x32x10xf32> to vector<7x32x10xf32>
    %184 = arith.mulf %181, %183 : vector<7x32x10xf32>
    %cst_59 = arith.constant dense<0.000000e+00> : vector<7x32xf32>
    %185 = vector.multi_reduction <add>, %184, %cst_59 [2] : vector<7x32x10xf32> to vector<7x32xf32>
    %186 = vector.shape_cast %185 : vector<7x32xf32> to vector<7x32x1xf32>
    %187 = vector.extract_strided_slice %186 {offsets = [0, 0, 0], sizes = [1, 32, 1], strides = [1, 1, 1]} : vector<7x32x1xf32> to vector<1x32x1xf32>
    %188 = vector.shape_cast %187 : vector<1x32x1xf32> to vector<32x1xf32>
    %189 = vector.extract_strided_slice %186 {offsets = [1, 0, 0], sizes = [1, 32, 1], strides = [1, 1, 1]} : vector<7x32x1xf32> to vector<1x32x1xf32>
    %190 = vector.shape_cast %189 : vector<1x32x1xf32> to vector<32x1xf32>
    %191 = vector.extract_strided_slice %186 {offsets = [2, 0, 0], sizes = [1, 32, 1], strides = [1, 1, 1]} : vector<7x32x1xf32> to vector<1x32x1xf32>
    %192 = vector.shape_cast %191 : vector<1x32x1xf32> to vector<32x1xf32>
    %193 = vector.extract_strided_slice %186 {offsets = [3, 0, 0], sizes = [1, 32, 1], strides = [1, 1, 1]} : vector<7x32x1xf32> to vector<1x32x1xf32>
    %194 = vector.shape_cast %193 : vector<1x32x1xf32> to vector<32x1xf32>
    %195 = vector.extract_strided_slice %186 {offsets = [4, 0, 0], sizes = [1, 32, 1], strides = [1, 1, 1]} : vector<7x32x1xf32> to vector<1x32x1xf32>
    %196 = vector.shape_cast %195 : vector<1x32x1xf32> to vector<32x1xf32>
    %197 = vector.extract_strided_slice %186 {offsets = [5, 0, 0], sizes = [1, 32, 1], strides = [1, 1, 1]} : vector<7x32x1xf32> to vector<1x32x1xf32>
    %198 = vector.shape_cast %197 : vector<1x32x1xf32> to vector<32x1xf32>
    %199 = vector.extract_strided_slice %186 {offsets = [6, 0, 0], sizes = [1, 32, 1], strides = [1, 1, 1]} : vector<7x32x1xf32> to vector<1x32x1xf32>
    %200 = vector.shape_cast %199 : vector<1x32x1xf32> to vector<32x1xf32>
    %201 = arith.subf %80, %188 : vector<32x1xf32>
    %202 = arith.divf %201, %190 : vector<32x1xf32>
    %cst_60 = arith.constant 1.000000e+00 : f32
    %203 = vector.broadcast %cst_60 : f32 to vector<32x1xf32>
    %204 = arith.subf %203, %202 : vector<32x1xf32>
    %205 = arith.mulf %202, %204 : vector<32x1xf32>
    %206 = arith.mulf %194, %202 : vector<32x1xf32>
    %207 = arith.mulf %206, %202 : vector<32x1xf32>
    %208 = arith.mulf %196, %205 : vector<32x1xf32>
    %209 = arith.addf %207, %208 : vector<32x1xf32>
    %210 = arith.mulf %200, %209 : vector<32x1xf32>
    %211 = arith.addf %196, %198 : vector<32x1xf32>
    %cst_61 = arith.constant 2.000000e+00 : f32
    %212 = vector.broadcast %cst_61 : f32 to vector<32x1xf32>
    %213 = arith.mulf %212, %194 : vector<32x1xf32>
    %214 = arith.subf %211, %213 : vector<32x1xf32>
    %215 = arith.mulf %214, %205 : vector<32x1xf32>
    %216 = arith.addf %194, %215 : vector<32x1xf32>
    %217 = arith.divf %210, %216 : vector<32x1xf32>
    %218 = arith.addf %192, %217 : vector<32x1xf32>
    %219 = arith.select %76, %218, %71 : vector<32x1xi1>, vector<32x1xf32>
    %220 = vector.extract_strided_slice %219 {offsets = [0, 0], sizes = [8, 1], strides = [1, 1]} : vector<32x1xf32> to vector<8x1xf32>
    %221 = vector.extract_strided_slice %219 {offsets = [8, 0], sizes = [8, 1], strides = [1, 1]} : vector<32x1xf32> to vector<8x1xf32>
    %222 = vector.extract_strided_slice %219 {offsets = [16, 0], sizes = [8, 1], strides = [1, 1]} : vector<32x1xf32> to vector<8x1xf32>
    %223 = vector.extract_strided_slice %219 {offsets = [24, 0], sizes = [8, 1], strides = [1, 1]} : vector<32x1xf32> to vector<8x1xf32>
    %224 = tpu.concatenate %223, %222, %221, %220 in 1 : vector<8x1xf32>, vector<8x1xf32>, vector<8x1xf32>, vector<8x1xf32> -> vector<8x4xf32>
    %c1 = arith.constant 1 : index
    %c0_62 = arith.constant 0 : index
    %c0_63 = arith.constant 0 : index
    %225 = vector.load %arg1[%c1, %c0_62, %c0_63] : memref<4x4x128xf32, #tpu.memory_space<vmem>>, vector<1x4x128xf32>
    %226 = vector.shape_cast %225 : vector<1x4x128xf32> to vector<4x128xf32>
    %cst_64 = arith.constant dense<0.000000e+00> : vector<8x128xf32>
    %227 = tpu.matmul %224, %226, %cst_64 {dimension_numbers = #tpu.dot_dimension_numbers<[1], [0], [0], [1], [0, 0, 1, 1], [], []>} : vector<8x4xf32>, vector<4x128xf32>, vector<8x128xf32> -> vector<8x128xf32>
    %c1_65 = arith.constant 1 : index
    %c0_66 = arith.constant 0 : index
    %c0_67 = arith.constant 0 : index
    %228 = vector.load %arg2[%c1_65, %c0_66, %c0_67] : memref<4x1x128xf32, #tpu.memory_space<vmem>>, vector<1x1x128xf32>
    %229 = vector.shape_cast %228 : vector<1x1x128xf32> to vector<1x128xf32>
    %230 = vector.broadcast %229 : vector<1x128xf32> to vector<8x128xf32>
    %231 = arith.addf %227, %230 : vector<8x128xf32>
    %cst_68 = arith.constant 0.000000e+00 : f32
    %232 = vector.broadcast %cst_68 : f32 to vector<8x128xf32>
    %233 = arith.maximumf %231, %232 : vector<8x128xf32>
    %c1_69 = arith.constant 1 : index
    %c0_70 = arith.constant 0 : index
    %c0_71 = arith.constant 0 : index
    %234 = vector.load %arg3[%c1_69, %c0_70, %c0_71] : memref<4x128x128xf32, #tpu.memory_space<vmem>>, vector<1x128x128xf32>
    %235 = vector.shape_cast %234 : vector<1x128x128xf32> to vector<128x128xf32>
    %cst_72 = arith.constant dense<0.000000e+00> : vector<8x128xf32>
    %236 = tpu.matmul %233, %235, %cst_72 {dimension_numbers = #tpu.dot_dimension_numbers<[1], [0], [0], [1], [0, 0, 1, 1], [], []>} : vector<8x128xf32>, vector<128x128xf32>, vector<8x128xf32> -> vector<8x128xf32>
    %c1_73 = arith.constant 1 : index
    %c0_74 = arith.constant 0 : index
    %c0_75 = arith.constant 0 : index
    %237 = vector.load %arg4[%c1_73, %c0_74, %c0_75] : memref<4x1x128xf32, #tpu.memory_space<vmem>>, vector<1x1x128xf32>
    %238 = vector.shape_cast %237 : vector<1x1x128xf32> to vector<1x128xf32>
    %239 = vector.broadcast %238 : vector<1x128xf32> to vector<8x128xf32>
    %240 = arith.addf %236, %239 : vector<8x128xf32>
    %cst_76 = arith.constant 0.000000e+00 : f32
    %241 = vector.broadcast %cst_76 : f32 to vector<8x128xf32>
    %242 = arith.maximumf %240, %241 : vector<8x128xf32>
    %c1_77 = arith.constant 1 : index
    %c0_78 = arith.constant 0 : index
    %c0_79 = arith.constant 0 : index
    %243 = vector.load %arg5[%c1_77, %c0_78, %c0_79] : memref<4x128x128xf32, #tpu.memory_space<vmem>>, vector<1x128x128xf32>
    %244 = vector.shape_cast %243 : vector<1x128x128xf32> to vector<128x128xf32>
    %cst_80 = arith.constant dense<0.000000e+00> : vector<8x128xf32>
    %245 = tpu.matmul %242, %244, %cst_80 {dimension_numbers = #tpu.dot_dimension_numbers<[1], [0], [0], [1], [0, 0, 1, 1], [], []>} : vector<8x128xf32>, vector<128x128xf32>, vector<8x128xf32> -> vector<8x128xf32>
    %c1_81 = arith.constant 1 : index
    %c0_82 = arith.constant 0 : index
    %c0_83 = arith.constant 0 : index
    %246 = vector.load %arg6[%c1_81, %c0_82, %c0_83] : memref<4x1x128xf32, #tpu.memory_space<vmem>>, vector<1x1x128xf32>
    %247 = vector.shape_cast %246 : vector<1x1x128xf32> to vector<1x128xf32>
    %248 = vector.broadcast %247 : vector<1x128xf32> to vector<8x128xf32>
    %249 = arith.addf %245, %248 : vector<8x128xf32>
    %250 = vector.extract_strided_slice %249 {offsets = [0, 0], sizes = [8, 10], strides = [1, 1]} : vector<8x128xf32> to vector<8x10xf32>
    %251 = vector.extract_strided_slice %249 {offsets = [0, 32], sizes = [8, 10], strides = [1, 1]} : vector<8x128xf32> to vector<8x10xf32>
    %252 = vector.extract_strided_slice %249 {offsets = [0, 64], sizes = [8, 10], strides = [1, 1]} : vector<8x128xf32> to vector<8x10xf32>
    %253 = vector.extract_strided_slice %249 {offsets = [0, 96], sizes = [8, 10], strides = [1, 1]} : vector<8x128xf32> to vector<8x10xf32>
    %254 = tpu.concatenate %250, %251, %252, %253 in 0 : vector<8x10xf32>, vector<8x10xf32>, vector<8x10xf32>, vector<8x10xf32> -> vector<32x10xf32>
    %255 = vector.extract_strided_slice %249 {offsets = [0, 10], sizes = [8, 10], strides = [1, 1]} : vector<8x128xf32> to vector<8x10xf32>
    %256 = vector.extract_strided_slice %249 {offsets = [0, 42], sizes = [8, 10], strides = [1, 1]} : vector<8x128xf32> to vector<8x10xf32>
    %257 = vector.extract_strided_slice %249 {offsets = [0, 74], sizes = [8, 10], strides = [1, 1]} : vector<8x128xf32> to vector<8x10xf32>
    %258 = vector.extract_strided_slice %249 {offsets = [0, 106], sizes = [8, 10], strides = [1, 1]} : vector<8x128xf32> to vector<8x10xf32>
    %259 = tpu.concatenate %255, %256, %257, %258 in 0 : vector<8x10xf32>, vector<8x10xf32>, vector<8x10xf32>, vector<8x10xf32> -> vector<32x10xf32>
    %260 = vector.extract_strided_slice %249 {offsets = [0, 20], sizes = [8, 9], strides = [1, 1]} : vector<8x128xf32> to vector<8x9xf32>
    %261 = vector.extract_strided_slice %249 {offsets = [0, 52], sizes = [8, 9], strides = [1, 1]} : vector<8x128xf32> to vector<8x9xf32>
    %262 = vector.extract_strided_slice %249 {offsets = [0, 84], sizes = [8, 9], strides = [1, 1]} : vector<8x128xf32> to vector<8x9xf32>
    %263 = vector.extract_strided_slice %249 {offsets = [0, 116], sizes = [8, 9], strides = [1, 1]} : vector<8x128xf32> to vector<8x9xf32>
    %264 = tpu.concatenate %260, %261, %262, %263 in 0 : vector<8x9xf32>, vector<8x9xf32>, vector<8x9xf32>, vector<8x9xf32> -> vector<32x9xf32>
    %265 = vector.extract_strided_slice %224 {offsets = [0, 0], sizes = [8, 1], strides = [1, 1]} : vector<8x4xf32> to vector<8x1xf32>
    %266 = vector.extract_strided_slice %224 {offsets = [0, 1], sizes = [8, 1], strides = [1, 1]} : vector<8x4xf32> to vector<8x1xf32>
    %267 = vector.extract_strided_slice %224 {offsets = [0, 2], sizes = [8, 1], strides = [1, 1]} : vector<8x4xf32> to vector<8x1xf32>
    %268 = vector.extract_strided_slice %224 {offsets = [0, 3], sizes = [8, 1], strides = [1, 1]} : vector<8x4xf32> to vector<8x1xf32>
    %269 = tpu.concatenate %265, %266, %267, %268 in 0 : vector<8x1xf32>, vector<8x1xf32>, vector<8x1xf32>, vector<8x1xf32> -> vector<32x1xf32>
    %cst_84 = arith.constant -4.000000e+00 : f32
    %270 = vector.broadcast %cst_84 : f32 to vector<32x1xf32>
    %271 = arith.cmpf oge, %269, %270 : vector<32x1xf32>
    %cst_85 = arith.constant 4.000000e+00 : f32
    %272 = vector.broadcast %cst_85 : f32 to vector<32x1xf32>
    %273 = arith.cmpf ole, %269, %272 : vector<32x1xf32>
    %274 = arith.andi %271, %273 : vector<32x1xi1>
    %cst_86 = arith.constant -4.000000e+00 : f32
    %cst_87 = arith.constant 4.000000e+00 : f32
    %275 = vector.broadcast %cst_86 : f32 to vector<32x1xf32>
    %276 = arith.maximumf %275, %269 : vector<32x1xf32>
    %277 = vector.broadcast %cst_87 : f32 to vector<32x1xf32>
    %278 = arith.minimumf %277, %276 : vector<32x1xf32>
    %279 = tpu.concatenate %25, %264, %25 in 1 : vector<32x1xf32>, vector<32x9xf32>, vector<32x1xf32> -> vector<32x11xf32>
    %cst_88 = arith.constant 2.000000e+01 : f32
    %280 = vector.broadcast %cst_88 : f32 to vector<32x11xf32>
    %281 = arith.cmpf ogt, %279, %280 : vector<32x11xf32>
    %cst_89 = arith.constant 2.000000e+01 : f32
    %282 = vector.broadcast %cst_89 : f32 to vector<32x11xf32>
    %283 = arith.minimumf %279, %282 : vector<32x11xf32>
    %284 = math.exp %283 : vector<32x11xf32>
    %cst_90 = arith.constant 1.000000e+00 : f32
    %285 = vector.broadcast %cst_90 : f32 to vector<32x11xf32>
    %286 = arith.addf %285, %284 : vector<32x11xf32>
    %287 = math.log %286 : vector<32x11xf32>
    %288 = arith.select %281, %279, %287 : vector<32x11xi1>, vector<32x11xf32>
    %cst_91 = arith.constant 1.000000e-03 : f32
    %289 = vector.broadcast %cst_91 : f32 to vector<32x11xf32>
    %290 = arith.addf %289, %288 : vector<32x11xf32>
    %cst_92 = arith.constant dense<0xFF800000> : vector<32xf32>
    %291 = vector.multi_reduction <maximumf>, %254, %cst_92 [1] : vector<32x10xf32> to vector<32xf32>
    %292 = vector.shape_cast %291 : vector<32xf32> to vector<32x1xf32>
    %293 = vector.broadcast %292 : vector<32x1xf32> to vector<32x10xf32>
    %294 = arith.subf %254, %293 : vector<32x10xf32>
    %295 = math.exp %294 : vector<32x10xf32>
    %cst_93 = arith.constant dense<0.000000e+00> : vector<32xf32>
    %296 = vector.multi_reduction <add>, %295, %cst_93 [1] : vector<32x10xf32> to vector<32xf32>
    %297 = vector.shape_cast %296 : vector<32xf32> to vector<32x1xf32>
    %298 = vector.broadcast %297 : vector<32x1xf32> to vector<32x10xf32>
    %299 = arith.divf %295, %298 : vector<32x10xf32>
    %cst_94 = arith.constant 9.900000e-01 : f32
    %300 = vector.broadcast %cst_94 : f32 to vector<32x10xf32>
    %301 = arith.mulf %300, %299 : vector<32x10xf32>
    %cst_95 = arith.constant 1.000000e-03 : f32
    %302 = vector.broadcast %cst_95 : f32 to vector<32x10xf32>
    %303 = arith.addf %302, %301 : vector<32x10xf32>
    %cst_96 = arith.constant dense<0xFF800000> : vector<32xf32>
    %304 = vector.multi_reduction <maximumf>, %259, %cst_96 [1] : vector<32x10xf32> to vector<32xf32>
    %305 = vector.shape_cast %304 : vector<32xf32> to vector<32x1xf32>
    %306 = vector.broadcast %305 : vector<32x1xf32> to vector<32x10xf32>
    %307 = arith.subf %259, %306 : vector<32x10xf32>
    %308 = math.exp %307 : vector<32x10xf32>
    %cst_97 = arith.constant dense<0.000000e+00> : vector<32xf32>
    %309 = vector.multi_reduction <add>, %308, %cst_97 [1] : vector<32x10xf32> to vector<32xf32>
    %310 = vector.shape_cast %309 : vector<32xf32> to vector<32x1xf32>
    %311 = vector.broadcast %310 : vector<32x1xf32> to vector<32x10xf32>
    %312 = arith.divf %308, %311 : vector<32x10xf32>
    %cst_98 = arith.constant 9.900000e-01 : f32
    %313 = vector.broadcast %cst_98 : f32 to vector<32x10xf32>
    %314 = arith.mulf %313, %312 : vector<32x10xf32>
    %cst_99 = arith.constant 1.000000e-03 : f32
    %315 = vector.broadcast %cst_99 : f32 to vector<32x10xf32>
    %316 = arith.addf %315, %314 : vector<32x10xf32>
    %317 = tpu.concatenate %303, %316 in 1 : vector<32x10xf32>, vector<32x10xf32> -> vector<32x20xf32>
    %cst_100 = arith.constant dense<0.000000e+00> : vector<32x22xf32>
    %318 = tpu.matmul %317, %24, %cst_100 {dimension_numbers = #tpu.dot_dimension_numbers<[1], [0], [0], [1], [0, 0, 1, 1], [], []>} : vector<32x20xf32>, vector<20x22xf32>, vector<32x22xf32> -> vector<32x22xf32>
    %319 = vector.extract_strided_slice %318 {offsets = [0, 0], sizes = [32, 11], strides = [1, 1]} : vector<32x22xf32> to vector<32x11xf32>
    %cst_101 = arith.constant 8.000000e+00 : f32
    %320 = vector.broadcast %cst_101 : f32 to vector<32x11xf32>
    %321 = arith.mulf %320, %319 : vector<32x11xf32>
    %cst_102 = arith.constant -4.000000e+00 : f32
    %322 = vector.broadcast %cst_102 : f32 to vector<32x11xf32>
    %323 = arith.addf %321, %322 : vector<32x11xf32>
    %c0_i32_103 = arith.constant 0 : i32
    %324 = vector.broadcast %c0_i32_103 : i32 to vector<32x11xi32>
    %325 = arith.cmpi eq, %0, %324 : vector<32x11xi32>
    %c10_i32_104 = arith.constant 10 : i32
    %326 = vector.broadcast %c10_i32_104 : i32 to vector<32x11xi32>
    %327 = arith.cmpi eq, %0, %326 : vector<32x11xi32>
    %cst_105 = arith.constant 4.000000e+00 : f32
    %328 = vector.broadcast %cst_105 : f32 to vector<32x11xf32>
    %329 = arith.select %327, %328, %323 : vector<32x11xi1>, vector<32x11xf32>
    %cst_106 = arith.constant -4.000000e+00 : f32
    %330 = vector.broadcast %cst_106 : f32 to vector<32x11xf32>
    %331 = arith.select %325, %330, %329 : vector<32x11xi1>, vector<32x11xf32>
    %332 = vector.extract_strided_slice %318 {offsets = [0, 11], sizes = [32, 11], strides = [1, 1]} : vector<32x22xf32> to vector<32x11xf32>
    %cst_107 = arith.constant 8.000000e+00 : f32
    %333 = vector.broadcast %cst_107 : f32 to vector<32x11xf32>
    %334 = arith.mulf %333, %332 : vector<32x11xf32>
    %cst_108 = arith.constant -4.000000e+00 : f32
    %335 = vector.broadcast %cst_108 : f32 to vector<32x11xf32>
    %336 = arith.addf %334, %335 : vector<32x11xf32>
    %c0_i32_109 = arith.constant 0 : i32
    %337 = vector.broadcast %c0_i32_109 : i32 to vector<32x11xi32>
    %338 = arith.cmpi eq, %0, %337 : vector<32x11xi32>
    %c10_i32_110 = arith.constant 10 : i32
    %339 = vector.broadcast %c10_i32_110 : i32 to vector<32x11xi32>
    %340 = arith.cmpi eq, %0, %339 : vector<32x11xi32>
    %cst_111 = arith.constant 4.000000e+00 : f32
    %341 = vector.broadcast %cst_111 : f32 to vector<32x11xf32>
    %342 = arith.select %340, %341, %336 : vector<32x11xi1>, vector<32x11xf32>
    %cst_112 = arith.constant -4.000000e+00 : f32
    %343 = vector.broadcast %cst_112 : f32 to vector<32x11xf32>
    %344 = arith.select %338, %343, %342 : vector<32x11xi1>, vector<32x11xf32>
    %345 = vector.extract_strided_slice %331 {offsets = [0, 1], sizes = [32, 10], strides = [1, 1]} : vector<32x11xf32> to vector<32x10xf32>
    %346 = vector.extract_strided_slice %331 {offsets = [0, 0], sizes = [32, 10], strides = [1, 1]} : vector<32x11xf32> to vector<32x10xf32>
    %347 = arith.subf %345, %346 : vector<32x10xf32>
    %348 = vector.extract_strided_slice %344 {offsets = [0, 1], sizes = [32, 10], strides = [1, 1]} : vector<32x11xf32> to vector<32x10xf32>
    %349 = vector.extract_strided_slice %344 {offsets = [0, 0], sizes = [32, 10], strides = [1, 1]} : vector<32x11xf32> to vector<32x10xf32>
    %350 = arith.subf %348, %349 : vector<32x10xf32>
    %351 = arith.divf %350, %347 : vector<32x10xf32>
    %c10_i32_113 = arith.constant 10 : i32
    %352 = vector.broadcast %c10_i32_113 : i32 to vector<32x11xi32>
    %353 = arith.cmpi eq, %0, %352 : vector<32x11xi32>
    %cst_114 = arith.constant 9.99999997E-7 : f32
    %354 = vector.broadcast %cst_114 : f32 to vector<32x11xf32>
    %355 = arith.addf %331, %354 : vector<32x11xf32>
    %356 = arith.select %353, %355, %331 : vector<32x11xi1>, vector<32x11xf32>
    %357 = vector.broadcast %278 : vector<32x1xf32> to vector<32x11xf32>
    %358 = arith.cmpf oge, %357, %356 : vector<32x11xf32>
    %359 = arith.extui %358 : vector<32x11xi1> to vector<32x11xi32>
    %cst_115 = arith.constant dense<0> : vector<32xi32>
    %360 = vector.multi_reduction <add>, %359, %cst_115 [1] : vector<32x11xi32> to vector<32xi32>
    %361 = vector.shape_cast %360 : vector<32xi32> to vector<32x1xi32>
    %c1_i32_116 = arith.constant 1 : i32
    %362 = vector.broadcast %c1_i32_116 : i32 to vector<32x1xi32>
    %363 = arith.subi %361, %362 : vector<32x1xi32>
    %364 = vector.broadcast %363 : vector<32x1xi32> to vector<32x10xi32>
    %365 = arith.cmpi eq, %1, %364 : vector<32x10xi32>
    %366 = arith.extui %365 : vector<32x10xi1> to vector<32x10xi32>
    %367 = arith.sitofp %366 : vector<32x10xi32> to vector<32x10xf32>
    %368 = vector.extract_strided_slice %331 {offsets = [0, 0], sizes = [32, 10], strides = [1, 1]} : vector<32x11xf32> to vector<32x10xf32>
    %369 = vector.extract_strided_slice %344 {offsets = [0, 0], sizes = [32, 10], strides = [1, 1]} : vector<32x11xf32> to vector<32x10xf32>
    %370 = vector.extract_strided_slice %290 {offsets = [0, 0], sizes = [32, 10], strides = [1, 1]} : vector<32x11xf32> to vector<32x10xf32>
    %371 = vector.extract_strided_slice %290 {offsets = [0, 1], sizes = [32, 10], strides = [1, 1]} : vector<32x11xf32> to vector<32x10xf32>
    %372 = vector.shape_cast %368 : vector<32x10xf32> to vector<1x32x10xf32>
    %373 = vector.shape_cast %347 : vector<32x10xf32> to vector<1x32x10xf32>
    %374 = vector.shape_cast %369 : vector<32x10xf32> to vector<1x32x10xf32>
    %375 = vector.shape_cast %351 : vector<32x10xf32> to vector<1x32x10xf32>
    %376 = vector.shape_cast %370 : vector<32x10xf32> to vector<1x32x10xf32>
    %377 = vector.shape_cast %371 : vector<32x10xf32> to vector<1x32x10xf32>
    %378 = vector.shape_cast %350 : vector<32x10xf32> to vector<1x32x10xf32>
    %379 = tpu.concatenate %372, %373, %374, %375, %376, %377, %378 in 0 : vector<1x32x10xf32>, vector<1x32x10xf32>, vector<1x32x10xf32>, vector<1x32x10xf32>, vector<1x32x10xf32>, vector<1x32x10xf32>, vector<1x32x10xf32> -> vector<7x32x10xf32>
    %380 = vector.shape_cast %367 : vector<32x10xf32> to vector<1x32x10xf32>
    %381 = vector.broadcast %380 : vector<1x32x10xf32> to vector<7x32x10xf32>
    %382 = arith.mulf %379, %381 : vector<7x32x10xf32>
    %cst_117 = arith.constant dense<0.000000e+00> : vector<7x32xf32>
    %383 = vector.multi_reduction <add>, %382, %cst_117 [2] : vector<7x32x10xf32> to vector<7x32xf32>
    %384 = vector.shape_cast %383 : vector<7x32xf32> to vector<7x32x1xf32>
    %385 = vector.extract_strided_slice %384 {offsets = [0, 0, 0], sizes = [1, 32, 1], strides = [1, 1, 1]} : vector<7x32x1xf32> to vector<1x32x1xf32>
    %386 = vector.shape_cast %385 : vector<1x32x1xf32> to vector<32x1xf32>
    %387 = vector.extract_strided_slice %384 {offsets = [1, 0, 0], sizes = [1, 32, 1], strides = [1, 1, 1]} : vector<7x32x1xf32> to vector<1x32x1xf32>
    %388 = vector.shape_cast %387 : vector<1x32x1xf32> to vector<32x1xf32>
    %389 = vector.extract_strided_slice %384 {offsets = [2, 0, 0], sizes = [1, 32, 1], strides = [1, 1, 1]} : vector<7x32x1xf32> to vector<1x32x1xf32>
    %390 = vector.shape_cast %389 : vector<1x32x1xf32> to vector<32x1xf32>
    %391 = vector.extract_strided_slice %384 {offsets = [3, 0, 0], sizes = [1, 32, 1], strides = [1, 1, 1]} : vector<7x32x1xf32> to vector<1x32x1xf32>
    %392 = vector.shape_cast %391 : vector<1x32x1xf32> to vector<32x1xf32>
    %393 = vector.extract_strided_slice %384 {offsets = [4, 0, 0], sizes = [1, 32, 1], strides = [1, 1, 1]} : vector<7x32x1xf32> to vector<1x32x1xf32>
    %394 = vector.shape_cast %393 : vector<1x32x1xf32> to vector<32x1xf32>
    %395 = vector.extract_strided_slice %384 {offsets = [5, 0, 0], sizes = [1, 32, 1], strides = [1, 1, 1]} : vector<7x32x1xf32> to vector<1x32x1xf32>
    %396 = vector.shape_cast %395 : vector<1x32x1xf32> to vector<32x1xf32>
    %397 = vector.extract_strided_slice %384 {offsets = [6, 0, 0], sizes = [1, 32, 1], strides = [1, 1, 1]} : vector<7x32x1xf32> to vector<1x32x1xf32>
    %398 = vector.shape_cast %397 : vector<1x32x1xf32> to vector<32x1xf32>
    %399 = arith.subf %278, %386 : vector<32x1xf32>
    %400 = arith.divf %399, %388 : vector<32x1xf32>
    %cst_118 = arith.constant 1.000000e+00 : f32
    %401 = vector.broadcast %cst_118 : f32 to vector<32x1xf32>
    %402 = arith.subf %401, %400 : vector<32x1xf32>
    %403 = arith.mulf %400, %402 : vector<32x1xf32>
    %404 = arith.mulf %392, %400 : vector<32x1xf32>
    %405 = arith.mulf %404, %400 : vector<32x1xf32>
    %406 = arith.mulf %394, %403 : vector<32x1xf32>
    %407 = arith.addf %405, %406 : vector<32x1xf32>
    %408 = arith.mulf %398, %407 : vector<32x1xf32>
    %409 = arith.addf %394, %396 : vector<32x1xf32>
    %cst_119 = arith.constant 2.000000e+00 : f32
    %410 = vector.broadcast %cst_119 : f32 to vector<32x1xf32>
    %411 = arith.mulf %410, %392 : vector<32x1xf32>
    %412 = arith.subf %409, %411 : vector<32x1xf32>
    %413 = arith.mulf %412, %403 : vector<32x1xf32>
    %414 = arith.addf %392, %413 : vector<32x1xf32>
    %415 = arith.divf %408, %414 : vector<32x1xf32>
    %416 = arith.addf %390, %415 : vector<32x1xf32>
    %417 = arith.select %274, %416, %269 : vector<32x1xi1>, vector<32x1xf32>
    %418 = vector.extract_strided_slice %417 {offsets = [0, 0], sizes = [8, 1], strides = [1, 1]} : vector<32x1xf32> to vector<8x1xf32>
    %419 = vector.extract_strided_slice %417 {offsets = [8, 0], sizes = [8, 1], strides = [1, 1]} : vector<32x1xf32> to vector<8x1xf32>
    %420 = vector.extract_strided_slice %417 {offsets = [16, 0], sizes = [8, 1], strides = [1, 1]} : vector<32x1xf32> to vector<8x1xf32>
    %421 = vector.extract_strided_slice %417 {offsets = [24, 0], sizes = [8, 1], strides = [1, 1]} : vector<32x1xf32> to vector<8x1xf32>
    %422 = tpu.concatenate %421, %420, %419, %418 in 1 : vector<8x1xf32>, vector<8x1xf32>, vector<8x1xf32>, vector<8x1xf32> -> vector<8x4xf32>
    %c2 = arith.constant 2 : index
    %c0_120 = arith.constant 0 : index
    %c0_121 = arith.constant 0 : index
    %423 = vector.load %arg1[%c2, %c0_120, %c0_121] : memref<4x4x128xf32, #tpu.memory_space<vmem>>, vector<1x4x128xf32>
    %424 = vector.shape_cast %423 : vector<1x4x128xf32> to vector<4x128xf32>
    %cst_122 = arith.constant dense<0.000000e+00> : vector<8x128xf32>
    %425 = tpu.matmul %422, %424, %cst_122 {dimension_numbers = #tpu.dot_dimension_numbers<[1], [0], [0], [1], [0, 0, 1, 1], [], []>} : vector<8x4xf32>, vector<4x128xf32>, vector<8x128xf32> -> vector<8x128xf32>
    %c2_123 = arith.constant 2 : index
    %c0_124 = arith.constant 0 : index
    %c0_125 = arith.constant 0 : index
    %426 = vector.load %arg2[%c2_123, %c0_124, %c0_125] : memref<4x1x128xf32, #tpu.memory_space<vmem>>, vector<1x1x128xf32>
    %427 = vector.shape_cast %426 : vector<1x1x128xf32> to vector<1x128xf32>
    %428 = vector.broadcast %427 : vector<1x128xf32> to vector<8x128xf32>
    %429 = arith.addf %425, %428 : vector<8x128xf32>
    %cst_126 = arith.constant 0.000000e+00 : f32
    %430 = vector.broadcast %cst_126 : f32 to vector<8x128xf32>
    %431 = arith.maximumf %429, %430 : vector<8x128xf32>
    %c2_127 = arith.constant 2 : index
    %c0_128 = arith.constant 0 : index
    %c0_129 = arith.constant 0 : index
    %432 = vector.load %arg3[%c2_127, %c0_128, %c0_129] : memref<4x128x128xf32, #tpu.memory_space<vmem>>, vector<1x128x128xf32>
    %433 = vector.shape_cast %432 : vector<1x128x128xf32> to vector<128x128xf32>
    %cst_130 = arith.constant dense<0.000000e+00> : vector<8x128xf32>
    %434 = tpu.matmul %431, %433, %cst_130 {dimension_numbers = #tpu.dot_dimension_numbers<[1], [0], [0], [1], [0, 0, 1, 1], [], []>} : vector<8x128xf32>, vector<128x128xf32>, vector<8x128xf32> -> vector<8x128xf32>
    %c2_131 = arith.constant 2 : index
    %c0_132 = arith.constant 0 : index
    %c0_133 = arith.constant 0 : index
    %435 = vector.load %arg4[%c2_131, %c0_132, %c0_133] : memref<4x1x128xf32, #tpu.memory_space<vmem>>, vector<1x1x128xf32>
    %436 = vector.shape_cast %435 : vector<1x1x128xf32> to vector<1x128xf32>
    %437 = vector.broadcast %436 : vector<1x128xf32> to vector<8x128xf32>
    %438 = arith.addf %434, %437 : vector<8x128xf32>
    %cst_134 = arith.constant 0.000000e+00 : f32
    %439 = vector.broadcast %cst_134 : f32 to vector<8x128xf32>
    %440 = arith.maximumf %438, %439 : vector<8x128xf32>
    %c2_135 = arith.constant 2 : index
    %c0_136 = arith.constant 0 : index
    %c0_137 = arith.constant 0 : index
    %441 = vector.load %arg5[%c2_135, %c0_136, %c0_137] : memref<4x128x128xf32, #tpu.memory_space<vmem>>, vector<1x128x128xf32>
    %442 = vector.shape_cast %441 : vector<1x128x128xf32> to vector<128x128xf32>
    %cst_138 = arith.constant dense<0.000000e+00> : vector<8x128xf32>
    %443 = tpu.matmul %440, %442, %cst_138 {dimension_numbers = #tpu.dot_dimension_numbers<[1], [0], [0], [1], [0, 0, 1, 1], [], []>} : vector<8x128xf32>, vector<128x128xf32>, vector<8x128xf32> -> vector<8x128xf32>
    %c2_139 = arith.constant 2 : index
    %c0_140 = arith.constant 0 : index
    %c0_141 = arith.constant 0 : index
    %444 = vector.load %arg6[%c2_139, %c0_140, %c0_141] : memref<4x1x128xf32, #tpu.memory_space<vmem>>, vector<1x1x128xf32>
    %445 = vector.shape_cast %444 : vector<1x1x128xf32> to vector<1x128xf32>
    %446 = vector.broadcast %445 : vector<1x128xf32> to vector<8x128xf32>
    %447 = arith.addf %443, %446 : vector<8x128xf32>
    %448 = vector.extract_strided_slice %447 {offsets = [0, 0], sizes = [8, 10], strides = [1, 1]} : vector<8x128xf32> to vector<8x10xf32>
    %449 = vector.extract_strided_slice %447 {offsets = [0, 32], sizes = [8, 10], strides = [1, 1]} : vector<8x128xf32> to vector<8x10xf32>
    %450 = vector.extract_strided_slice %447 {offsets = [0, 64], sizes = [8, 10], strides = [1, 1]} : vector<8x128xf32> to vector<8x10xf32>
    %451 = vector.extract_strided_slice %447 {offsets = [0, 96], sizes = [8, 10], strides = [1, 1]} : vector<8x128xf32> to vector<8x10xf32>
    %452 = tpu.concatenate %448, %449, %450, %451 in 0 : vector<8x10xf32>, vector<8x10xf32>, vector<8x10xf32>, vector<8x10xf32> -> vector<32x10xf32>
    %453 = vector.extract_strided_slice %447 {offsets = [0, 10], sizes = [8, 10], strides = [1, 1]} : vector<8x128xf32> to vector<8x10xf32>
    %454 = vector.extract_strided_slice %447 {offsets = [0, 42], sizes = [8, 10], strides = [1, 1]} : vector<8x128xf32> to vector<8x10xf32>
    %455 = vector.extract_strided_slice %447 {offsets = [0, 74], sizes = [8, 10], strides = [1, 1]} : vector<8x128xf32> to vector<8x10xf32>
    %456 = vector.extract_strided_slice %447 {offsets = [0, 106], sizes = [8, 10], strides = [1, 1]} : vector<8x128xf32> to vector<8x10xf32>
    %457 = tpu.concatenate %453, %454, %455, %456 in 0 : vector<8x10xf32>, vector<8x10xf32>, vector<8x10xf32>, vector<8x10xf32> -> vector<32x10xf32>
    %458 = vector.extract_strided_slice %447 {offsets = [0, 20], sizes = [8, 9], strides = [1, 1]} : vector<8x128xf32> to vector<8x9xf32>
    %459 = vector.extract_strided_slice %447 {offsets = [0, 52], sizes = [8, 9], strides = [1, 1]} : vector<8x128xf32> to vector<8x9xf32>
    %460 = vector.extract_strided_slice %447 {offsets = [0, 84], sizes = [8, 9], strides = [1, 1]} : vector<8x128xf32> to vector<8x9xf32>
    %461 = vector.extract_strided_slice %447 {offsets = [0, 116], sizes = [8, 9], strides = [1, 1]} : vector<8x128xf32> to vector<8x9xf32>
    %462 = tpu.concatenate %458, %459, %460, %461 in 0 : vector<8x9xf32>, vector<8x9xf32>, vector<8x9xf32>, vector<8x9xf32> -> vector<32x9xf32>
    %463 = vector.extract_strided_slice %422 {offsets = [0, 0], sizes = [8, 1], strides = [1, 1]} : vector<8x4xf32> to vector<8x1xf32>
    %464 = vector.extract_strided_slice %422 {offsets = [0, 1], sizes = [8, 1], strides = [1, 1]} : vector<8x4xf32> to vector<8x1xf32>
    %465 = vector.extract_strided_slice %422 {offsets = [0, 2], sizes = [8, 1], strides = [1, 1]} : vector<8x4xf32> to vector<8x1xf32>
    %466 = vector.extract_strided_slice %422 {offsets = [0, 3], sizes = [8, 1], strides = [1, 1]} : vector<8x4xf32> to vector<8x1xf32>
    %467 = tpu.concatenate %463, %464, %465, %466 in 0 : vector<8x1xf32>, vector<8x1xf32>, vector<8x1xf32>, vector<8x1xf32> -> vector<32x1xf32>
    %cst_142 = arith.constant -4.000000e+00 : f32
    %468 = vector.broadcast %cst_142 : f32 to vector<32x1xf32>
    %469 = arith.cmpf oge, %467, %468 : vector<32x1xf32>
    %cst_143 = arith.constant 4.000000e+00 : f32
    %470 = vector.broadcast %cst_143 : f32 to vector<32x1xf32>
    %471 = arith.cmpf ole, %467, %470 : vector<32x1xf32>
    %472 = arith.andi %469, %471 : vector<32x1xi1>
    %cst_144 = arith.constant -4.000000e+00 : f32
    %cst_145 = arith.constant 4.000000e+00 : f32
    %473 = vector.broadcast %cst_144 : f32 to vector<32x1xf32>
    %474 = arith.maximumf %473, %467 : vector<32x1xf32>
    %475 = vector.broadcast %cst_145 : f32 to vector<32x1xf32>
    %476 = arith.minimumf %475, %474 : vector<32x1xf32>
    %477 = tpu.concatenate %25, %462, %25 in 1 : vector<32x1xf32>, vector<32x9xf32>, vector<32x1xf32> -> vector<32x11xf32>
    %cst_146 = arith.constant 2.000000e+01 : f32
    %478 = vector.broadcast %cst_146 : f32 to vector<32x11xf32>
    %479 = arith.cmpf ogt, %477, %478 : vector<32x11xf32>
    %cst_147 = arith.constant 2.000000e+01 : f32
    %480 = vector.broadcast %cst_147 : f32 to vector<32x11xf32>
    %481 = arith.minimumf %477, %480 : vector<32x11xf32>
    %482 = math.exp %481 : vector<32x11xf32>
    %cst_148 = arith.constant 1.000000e+00 : f32
    %483 = vector.broadcast %cst_148 : f32 to vector<32x11xf32>
    %484 = arith.addf %483, %482 : vector<32x11xf32>
    %485 = math.log %484 : vector<32x11xf32>
    %486 = arith.select %479, %477, %485 : vector<32x11xi1>, vector<32x11xf32>
    %cst_149 = arith.constant 1.000000e-03 : f32
    %487 = vector.broadcast %cst_149 : f32 to vector<32x11xf32>
    %488 = arith.addf %487, %486 : vector<32x11xf32>
    %cst_150 = arith.constant dense<0xFF800000> : vector<32xf32>
    %489 = vector.multi_reduction <maximumf>, %452, %cst_150 [1] : vector<32x10xf32> to vector<32xf32>
    %490 = vector.shape_cast %489 : vector<32xf32> to vector<32x1xf32>
    %491 = vector.broadcast %490 : vector<32x1xf32> to vector<32x10xf32>
    %492 = arith.subf %452, %491 : vector<32x10xf32>
    %493 = math.exp %492 : vector<32x10xf32>
    %cst_151 = arith.constant dense<0.000000e+00> : vector<32xf32>
    %494 = vector.multi_reduction <add>, %493, %cst_151 [1] : vector<32x10xf32> to vector<32xf32>
    %495 = vector.shape_cast %494 : vector<32xf32> to vector<32x1xf32>
    %496 = vector.broadcast %495 : vector<32x1xf32> to vector<32x10xf32>
    %497 = arith.divf %493, %496 : vector<32x10xf32>
    %cst_152 = arith.constant 9.900000e-01 : f32
    %498 = vector.broadcast %cst_152 : f32 to vector<32x10xf32>
    %499 = arith.mulf %498, %497 : vector<32x10xf32>
    %cst_153 = arith.constant 1.000000e-03 : f32
    %500 = vector.broadcast %cst_153 : f32 to vector<32x10xf32>
    %501 = arith.addf %500, %499 : vector<32x10xf32>
    %cst_154 = arith.constant dense<0xFF800000> : vector<32xf32>
    %502 = vector.multi_reduction <maximumf>, %457, %cst_154 [1] : vector<32x10xf32> to vector<32xf32>
    %503 = vector.shape_cast %502 : vector<32xf32> to vector<32x1xf32>
    %504 = vector.broadcast %503 : vector<32x1xf32> to vector<32x10xf32>
    %505 = arith.subf %457, %504 : vector<32x10xf32>
    %506 = math.exp %505 : vector<32x10xf32>
    %cst_155 = arith.constant dense<0.000000e+00> : vector<32xf32>
    %507 = vector.multi_reduction <add>, %506, %cst_155 [1] : vector<32x10xf32> to vector<32xf32>
    %508 = vector.shape_cast %507 : vector<32xf32> to vector<32x1xf32>
    %509 = vector.broadcast %508 : vector<32x1xf32> to vector<32x10xf32>
    %510 = arith.divf %506, %509 : vector<32x10xf32>
    %cst_156 = arith.constant 9.900000e-01 : f32
    %511 = vector.broadcast %cst_156 : f32 to vector<32x10xf32>
    %512 = arith.mulf %511, %510 : vector<32x10xf32>
    %cst_157 = arith.constant 1.000000e-03 : f32
    %513 = vector.broadcast %cst_157 : f32 to vector<32x10xf32>
    %514 = arith.addf %513, %512 : vector<32x10xf32>
    %515 = tpu.concatenate %501, %514 in 1 : vector<32x10xf32>, vector<32x10xf32> -> vector<32x20xf32>
    %cst_158 = arith.constant dense<0.000000e+00> : vector<32x22xf32>
    %516 = tpu.matmul %515, %24, %cst_158 {dimension_numbers = #tpu.dot_dimension_numbers<[1], [0], [0], [1], [0, 0, 1, 1], [], []>} : vector<32x20xf32>, vector<20x22xf32>, vector<32x22xf32> -> vector<32x22xf32>
    %517 = vector.extract_strided_slice %516 {offsets = [0, 0], sizes = [32, 11], strides = [1, 1]} : vector<32x22xf32> to vector<32x11xf32>
    %cst_159 = arith.constant 8.000000e+00 : f32
    %518 = vector.broadcast %cst_159 : f32 to vector<32x11xf32>
    %519 = arith.mulf %518, %517 : vector<32x11xf32>
    %cst_160 = arith.constant -4.000000e+00 : f32
    %520 = vector.broadcast %cst_160 : f32 to vector<32x11xf32>
    %521 = arith.addf %519, %520 : vector<32x11xf32>
    %c0_i32_161 = arith.constant 0 : i32
    %522 = vector.broadcast %c0_i32_161 : i32 to vector<32x11xi32>
    %523 = arith.cmpi eq, %0, %522 : vector<32x11xi32>
    %c10_i32_162 = arith.constant 10 : i32
    %524 = vector.broadcast %c10_i32_162 : i32 to vector<32x11xi32>
    %525 = arith.cmpi eq, %0, %524 : vector<32x11xi32>
    %cst_163 = arith.constant 4.000000e+00 : f32
    %526 = vector.broadcast %cst_163 : f32 to vector<32x11xf32>
    %527 = arith.select %525, %526, %521 : vector<32x11xi1>, vector<32x11xf32>
    %cst_164 = arith.constant -4.000000e+00 : f32
    %528 = vector.broadcast %cst_164 : f32 to vector<32x11xf32>
    %529 = arith.select %523, %528, %527 : vector<32x11xi1>, vector<32x11xf32>
    %530 = vector.extract_strided_slice %516 {offsets = [0, 11], sizes = [32, 11], strides = [1, 1]} : vector<32x22xf32> to vector<32x11xf32>
    %cst_165 = arith.constant 8.000000e+00 : f32
    %531 = vector.broadcast %cst_165 : f32 to vector<32x11xf32>
    %532 = arith.mulf %531, %530 : vector<32x11xf32>
    %cst_166 = arith.constant -4.000000e+00 : f32
    %533 = vector.broadcast %cst_166 : f32 to vector<32x11xf32>
    %534 = arith.addf %532, %533 : vector<32x11xf32>
    %c0_i32_167 = arith.constant 0 : i32
    %535 = vector.broadcast %c0_i32_167 : i32 to vector<32x11xi32>
    %536 = arith.cmpi eq, %0, %535 : vector<32x11xi32>
    %c10_i32_168 = arith.constant 10 : i32
    %537 = vector.broadcast %c10_i32_168 : i32 to vector<32x11xi32>
    %538 = arith.cmpi eq, %0, %537 : vector<32x11xi32>
    %cst_169 = arith.constant 4.000000e+00 : f32
    %539 = vector.broadcast %cst_169 : f32 to vector<32x11xf32>
    %540 = arith.select %538, %539, %534 : vector<32x11xi1>, vector<32x11xf32>
    %cst_170 = arith.constant -4.000000e+00 : f32
    %541 = vector.broadcast %cst_170 : f32 to vector<32x11xf32>
    %542 = arith.select %536, %541, %540 : vector<32x11xi1>, vector<32x11xf32>
    %543 = vector.extract_strided_slice %529 {offsets = [0, 1], sizes = [32, 10], strides = [1, 1]} : vector<32x11xf32> to vector<32x10xf32>
    %544 = vector.extract_strided_slice %529 {offsets = [0, 0], sizes = [32, 10], strides = [1, 1]} : vector<32x11xf32> to vector<32x10xf32>
    %545 = arith.subf %543, %544 : vector<32x10xf32>
    %546 = vector.extract_strided_slice %542 {offsets = [0, 1], sizes = [32, 10], strides = [1, 1]} : vector<32x11xf32> to vector<32x10xf32>
    %547 = vector.extract_strided_slice %542 {offsets = [0, 0], sizes = [32, 10], strides = [1, 1]} : vector<32x11xf32> to vector<32x10xf32>
    %548 = arith.subf %546, %547 : vector<32x10xf32>
    %549 = arith.divf %548, %545 : vector<32x10xf32>
    %c10_i32_171 = arith.constant 10 : i32
    %550 = vector.broadcast %c10_i32_171 : i32 to vector<32x11xi32>
    %551 = arith.cmpi eq, %0, %550 : vector<32x11xi32>
    %cst_172 = arith.constant 9.99999997E-7 : f32
    %552 = vector.broadcast %cst_172 : f32 to vector<32x11xf32>
    %553 = arith.addf %529, %552 : vector<32x11xf32>
    %554 = arith.select %551, %553, %529 : vector<32x11xi1>, vector<32x11xf32>
    %555 = vector.broadcast %476 : vector<32x1xf32> to vector<32x11xf32>
    %556 = arith.cmpf oge, %555, %554 : vector<32x11xf32>
    %557 = arith.extui %556 : vector<32x11xi1> to vector<32x11xi32>
    %cst_173 = arith.constant dense<0> : vector<32xi32>
    %558 = vector.multi_reduction <add>, %557, %cst_173 [1] : vector<32x11xi32> to vector<32xi32>
    %559 = vector.shape_cast %558 : vector<32xi32> to vector<32x1xi32>
    %c1_i32_174 = arith.constant 1 : i32
    %560 = vector.broadcast %c1_i32_174 : i32 to vector<32x1xi32>
    %561 = arith.subi %559, %560 : vector<32x1xi32>
    %562 = vector.broadcast %561 : vector<32x1xi32> to vector<32x10xi32>
    %563 = arith.cmpi eq, %1, %562 : vector<32x10xi32>
    %564 = arith.extui %563 : vector<32x10xi1> to vector<32x10xi32>
    %565 = arith.sitofp %564 : vector<32x10xi32> to vector<32x10xf32>
    %566 = vector.extract_strided_slice %529 {offsets = [0, 0], sizes = [32, 10], strides = [1, 1]} : vector<32x11xf32> to vector<32x10xf32>
    %567 = vector.extract_strided_slice %542 {offsets = [0, 0], sizes = [32, 10], strides = [1, 1]} : vector<32x11xf32> to vector<32x10xf32>
    %568 = vector.extract_strided_slice %488 {offsets = [0, 0], sizes = [32, 10], strides = [1, 1]} : vector<32x11xf32> to vector<32x10xf32>
    %569 = vector.extract_strided_slice %488 {offsets = [0, 1], sizes = [32, 10], strides = [1, 1]} : vector<32x11xf32> to vector<32x10xf32>
    %570 = vector.shape_cast %566 : vector<32x10xf32> to vector<1x32x10xf32>
    %571 = vector.shape_cast %545 : vector<32x10xf32> to vector<1x32x10xf32>
    %572 = vector.shape_cast %567 : vector<32x10xf32> to vector<1x32x10xf32>
    %573 = vector.shape_cast %549 : vector<32x10xf32> to vector<1x32x10xf32>
    %574 = vector.shape_cast %568 : vector<32x10xf32> to vector<1x32x10xf32>
    %575 = vector.shape_cast %569 : vector<32x10xf32> to vector<1x32x10xf32>
    %576 = vector.shape_cast %548 : vector<32x10xf32> to vector<1x32x10xf32>
    %577 = tpu.concatenate %570, %571, %572, %573, %574, %575, %576 in 0 : vector<1x32x10xf32>, vector<1x32x10xf32>, vector<1x32x10xf32>, vector<1x32x10xf32>, vector<1x32x10xf32>, vector<1x32x10xf32>, vector<1x32x10xf32> -> vector<7x32x10xf32>
    %578 = vector.shape_cast %565 : vector<32x10xf32> to vector<1x32x10xf32>
    %579 = vector.broadcast %578 : vector<1x32x10xf32> to vector<7x32x10xf32>
    %580 = arith.mulf %577, %579 : vector<7x32x10xf32>
    %cst_175 = arith.constant dense<0.000000e+00> : vector<7x32xf32>
    %581 = vector.multi_reduction <add>, %580, %cst_175 [2] : vector<7x32x10xf32> to vector<7x32xf32>
    %582 = vector.shape_cast %581 : vector<7x32xf32> to vector<7x32x1xf32>
    %583 = vector.extract_strided_slice %582 {offsets = [0, 0, 0], sizes = [1, 32, 1], strides = [1, 1, 1]} : vector<7x32x1xf32> to vector<1x32x1xf32>
    %584 = vector.shape_cast %583 : vector<1x32x1xf32> to vector<32x1xf32>
    %585 = vector.extract_strided_slice %582 {offsets = [1, 0, 0], sizes = [1, 32, 1], strides = [1, 1, 1]} : vector<7x32x1xf32> to vector<1x32x1xf32>
    %586 = vector.shape_cast %585 : vector<1x32x1xf32> to vector<32x1xf32>
    %587 = vector.extract_strided_slice %582 {offsets = [2, 0, 0], sizes = [1, 32, 1], strides = [1, 1, 1]} : vector<7x32x1xf32> to vector<1x32x1xf32>
    %588 = vector.shape_cast %587 : vector<1x32x1xf32> to vector<32x1xf32>
    %589 = vector.extract_strided_slice %582 {offsets = [3, 0, 0], sizes = [1, 32, 1], strides = [1, 1, 1]} : vector<7x32x1xf32> to vector<1x32x1xf32>
    %590 = vector.shape_cast %589 : vector<1x32x1xf32> to vector<32x1xf32>
    %591 = vector.extract_strided_slice %582 {offsets = [4, 0, 0], sizes = [1, 32, 1], strides = [1, 1, 1]} : vector<7x32x1xf32> to vector<1x32x1xf32>
    %592 = vector.shape_cast %591 : vector<1x32x1xf32> to vector<32x1xf32>
    %593 = vector.extract_strided_slice %582 {offsets = [5, 0, 0], sizes = [1, 32, 1], strides = [1, 1, 1]} : vector<7x32x1xf32> to vector<1x32x1xf32>
    %594 = vector.shape_cast %593 : vector<1x32x1xf32> to vector<32x1xf32>
    %595 = vector.extract_strided_slice %582 {offsets = [6, 0, 0], sizes = [1, 32, 1], strides = [1, 1, 1]} : vector<7x32x1xf32> to vector<1x32x1xf32>
    %596 = vector.shape_cast %595 : vector<1x32x1xf32> to vector<32x1xf32>
    %597 = arith.subf %476, %584 : vector<32x1xf32>
    %598 = arith.divf %597, %586 : vector<32x1xf32>
    %cst_176 = arith.constant 1.000000e+00 : f32
    %599 = vector.broadcast %cst_176 : f32 to vector<32x1xf32>
    %600 = arith.subf %599, %598 : vector<32x1xf32>
    %601 = arith.mulf %598, %600 : vector<32x1xf32>
    %602 = arith.mulf %590, %598 : vector<32x1xf32>
    %603 = arith.mulf %602, %598 : vector<32x1xf32>
    %604 = arith.mulf %592, %601 : vector<32x1xf32>
    %605 = arith.addf %603, %604 : vector<32x1xf32>
    %606 = arith.mulf %596, %605 : vector<32x1xf32>
    %607 = arith.addf %592, %594 : vector<32x1xf32>
    %cst_177 = arith.constant 2.000000e+00 : f32
    %608 = vector.broadcast %cst_177 : f32 to vector<32x1xf32>
    %609 = arith.mulf %608, %590 : vector<32x1xf32>
    %610 = arith.subf %607, %609 : vector<32x1xf32>
    %611 = arith.mulf %610, %601 : vector<32x1xf32>
    %612 = arith.addf %590, %611 : vector<32x1xf32>
    %613 = arith.divf %606, %612 : vector<32x1xf32>
    %614 = arith.addf %588, %613 : vector<32x1xf32>
    %615 = arith.select %472, %614, %467 : vector<32x1xi1>, vector<32x1xf32>
    %616 = vector.extract_strided_slice %615 {offsets = [0, 0], sizes = [8, 1], strides = [1, 1]} : vector<32x1xf32> to vector<8x1xf32>
    %617 = vector.extract_strided_slice %615 {offsets = [8, 0], sizes = [8, 1], strides = [1, 1]} : vector<32x1xf32> to vector<8x1xf32>
    %618 = vector.extract_strided_slice %615 {offsets = [16, 0], sizes = [8, 1], strides = [1, 1]} : vector<32x1xf32> to vector<8x1xf32>
    %619 = vector.extract_strided_slice %615 {offsets = [24, 0], sizes = [8, 1], strides = [1, 1]} : vector<32x1xf32> to vector<8x1xf32>
    %620 = tpu.concatenate %619, %618, %617, %616 in 1 : vector<8x1xf32>, vector<8x1xf32>, vector<8x1xf32>, vector<8x1xf32> -> vector<8x4xf32>
    %c3 = arith.constant 3 : index
    %c0_178 = arith.constant 0 : index
    %c0_179 = arith.constant 0 : index
    %621 = vector.load %arg1[%c3, %c0_178, %c0_179] : memref<4x4x128xf32, #tpu.memory_space<vmem>>, vector<1x4x128xf32>
    %622 = vector.shape_cast %621 : vector<1x4x128xf32> to vector<4x128xf32>
    %cst_180 = arith.constant dense<0.000000e+00> : vector<8x128xf32>
    %623 = tpu.matmul %620, %622, %cst_180 {dimension_numbers = #tpu.dot_dimension_numbers<[1], [0], [0], [1], [0, 0, 1, 1], [], []>} : vector<8x4xf32>, vector<4x128xf32>, vector<8x128xf32> -> vector<8x128xf32>
    %c3_181 = arith.constant 3 : index
    %c0_182 = arith.constant 0 : index
    %c0_183 = arith.constant 0 : index
    %624 = vector.load %arg2[%c3_181, %c0_182, %c0_183] : memref<4x1x128xf32, #tpu.memory_space<vmem>>, vector<1x1x128xf32>
    %625 = vector.shape_cast %624 : vector<1x1x128xf32> to vector<1x128xf32>
    %626 = vector.broadcast %625 : vector<1x128xf32> to vector<8x128xf32>
    %627 = arith.addf %623, %626 : vector<8x128xf32>
    %cst_184 = arith.constant 0.000000e+00 : f32
    %628 = vector.broadcast %cst_184 : f32 to vector<8x128xf32>
    %629 = arith.maximumf %627, %628 : vector<8x128xf32>
    %c3_185 = arith.constant 3 : index
    %c0_186 = arith.constant 0 : index
    %c0_187 = arith.constant 0 : index
    %630 = vector.load %arg3[%c3_185, %c0_186, %c0_187] : memref<4x128x128xf32, #tpu.memory_space<vmem>>, vector<1x128x128xf32>
    %631 = vector.shape_cast %630 : vector<1x128x128xf32> to vector<128x128xf32>
    %cst_188 = arith.constant dense<0.000000e+00> : vector<8x128xf32>
    %632 = tpu.matmul %629, %631, %cst_188 {dimension_numbers = #tpu.dot_dimension_numbers<[1], [0], [0], [1], [0, 0, 1, 1], [], []>} : vector<8x128xf32>, vector<128x128xf32>, vector<8x128xf32> -> vector<8x128xf32>
    %c3_189 = arith.constant 3 : index
    %c0_190 = arith.constant 0 : index
    %c0_191 = arith.constant 0 : index
    %633 = vector.load %arg4[%c3_189, %c0_190, %c0_191] : memref<4x1x128xf32, #tpu.memory_space<vmem>>, vector<1x1x128xf32>
    %634 = vector.shape_cast %633 : vector<1x1x128xf32> to vector<1x128xf32>
    %635 = vector.broadcast %634 : vector<1x128xf32> to vector<8x128xf32>
    %636 = arith.addf %632, %635 : vector<8x128xf32>
    %cst_192 = arith.constant 0.000000e+00 : f32
    %637 = vector.broadcast %cst_192 : f32 to vector<8x128xf32>
    %638 = arith.maximumf %636, %637 : vector<8x128xf32>
    %c3_193 = arith.constant 3 : index
    %c0_194 = arith.constant 0 : index
    %c0_195 = arith.constant 0 : index
    %639 = vector.load %arg5[%c3_193, %c0_194, %c0_195] : memref<4x128x128xf32, #tpu.memory_space<vmem>>, vector<1x128x128xf32>
    %640 = vector.shape_cast %639 : vector<1x128x128xf32> to vector<128x128xf32>
    %cst_196 = arith.constant dense<0.000000e+00> : vector<8x128xf32>
    %641 = tpu.matmul %638, %640, %cst_196 {dimension_numbers = #tpu.dot_dimension_numbers<[1], [0], [0], [1], [0, 0, 1, 1], [], []>} : vector<8x128xf32>, vector<128x128xf32>, vector<8x128xf32> -> vector<8x128xf32>
    %c3_197 = arith.constant 3 : index
    %c0_198 = arith.constant 0 : index
    %c0_199 = arith.constant 0 : index
    %642 = vector.load %arg6[%c3_197, %c0_198, %c0_199] : memref<4x1x128xf32, #tpu.memory_space<vmem>>, vector<1x1x128xf32>
    %643 = vector.shape_cast %642 : vector<1x1x128xf32> to vector<1x128xf32>
    %644 = vector.broadcast %643 : vector<1x128xf32> to vector<8x128xf32>
    %645 = arith.addf %641, %644 : vector<8x128xf32>
    %646 = vector.extract_strided_slice %645 {offsets = [0, 0], sizes = [8, 10], strides = [1, 1]} : vector<8x128xf32> to vector<8x10xf32>
    %647 = vector.extract_strided_slice %645 {offsets = [0, 32], sizes = [8, 10], strides = [1, 1]} : vector<8x128xf32> to vector<8x10xf32>
    %648 = vector.extract_strided_slice %645 {offsets = [0, 64], sizes = [8, 10], strides = [1, 1]} : vector<8x128xf32> to vector<8x10xf32>
    %649 = vector.extract_strided_slice %645 {offsets = [0, 96], sizes = [8, 10], strides = [1, 1]} : vector<8x128xf32> to vector<8x10xf32>
    %650 = tpu.concatenate %646, %647, %648, %649 in 0 : vector<8x10xf32>, vector<8x10xf32>, vector<8x10xf32>, vector<8x10xf32> -> vector<32x10xf32>
    %651 = vector.extract_strided_slice %645 {offsets = [0, 10], sizes = [8, 10], strides = [1, 1]} : vector<8x128xf32> to vector<8x10xf32>
    %652 = vector.extract_strided_slice %645 {offsets = [0, 42], sizes = [8, 10], strides = [1, 1]} : vector<8x128xf32> to vector<8x10xf32>
    %653 = vector.extract_strided_slice %645 {offsets = [0, 74], sizes = [8, 10], strides = [1, 1]} : vector<8x128xf32> to vector<8x10xf32>
    %654 = vector.extract_strided_slice %645 {offsets = [0, 106], sizes = [8, 10], strides = [1, 1]} : vector<8x128xf32> to vector<8x10xf32>
    %655 = tpu.concatenate %651, %652, %653, %654 in 0 : vector<8x10xf32>, vector<8x10xf32>, vector<8x10xf32>, vector<8x10xf32> -> vector<32x10xf32>
    %656 = vector.extract_strided_slice %645 {offsets = [0, 20], sizes = [8, 9], strides = [1, 1]} : vector<8x128xf32> to vector<8x9xf32>
    %657 = vector.extract_strided_slice %645 {offsets = [0, 52], sizes = [8, 9], strides = [1, 1]} : vector<8x128xf32> to vector<8x9xf32>
    %658 = vector.extract_strided_slice %645 {offsets = [0, 84], sizes = [8, 9], strides = [1, 1]} : vector<8x128xf32> to vector<8x9xf32>
    %659 = vector.extract_strided_slice %645 {offsets = [0, 116], sizes = [8, 9], strides = [1, 1]} : vector<8x128xf32> to vector<8x9xf32>
    %660 = tpu.concatenate %656, %657, %658, %659 in 0 : vector<8x9xf32>, vector<8x9xf32>, vector<8x9xf32>, vector<8x9xf32> -> vector<32x9xf32>
    %661 = vector.extract_strided_slice %620 {offsets = [0, 0], sizes = [8, 1], strides = [1, 1]} : vector<8x4xf32> to vector<8x1xf32>
    %662 = vector.extract_strided_slice %620 {offsets = [0, 1], sizes = [8, 1], strides = [1, 1]} : vector<8x4xf32> to vector<8x1xf32>
    %663 = vector.extract_strided_slice %620 {offsets = [0, 2], sizes = [8, 1], strides = [1, 1]} : vector<8x4xf32> to vector<8x1xf32>
    %664 = vector.extract_strided_slice %620 {offsets = [0, 3], sizes = [8, 1], strides = [1, 1]} : vector<8x4xf32> to vector<8x1xf32>
    %665 = tpu.concatenate %661, %662, %663, %664 in 0 : vector<8x1xf32>, vector<8x1xf32>, vector<8x1xf32>, vector<8x1xf32> -> vector<32x1xf32>
    %cst_200 = arith.constant -4.000000e+00 : f32
    %666 = vector.broadcast %cst_200 : f32 to vector<32x1xf32>
    %667 = arith.cmpf oge, %665, %666 : vector<32x1xf32>
    %cst_201 = arith.constant 4.000000e+00 : f32
    %668 = vector.broadcast %cst_201 : f32 to vector<32x1xf32>
    %669 = arith.cmpf ole, %665, %668 : vector<32x1xf32>
    %670 = arith.andi %667, %669 : vector<32x1xi1>
    %cst_202 = arith.constant -4.000000e+00 : f32
    %cst_203 = arith.constant 4.000000e+00 : f32
    %671 = vector.broadcast %cst_202 : f32 to vector<32x1xf32>
    %672 = arith.maximumf %671, %665 : vector<32x1xf32>
    %673 = vector.broadcast %cst_203 : f32 to vector<32x1xf32>
    %674 = arith.minimumf %673, %672 : vector<32x1xf32>
    %675 = tpu.concatenate %25, %660, %25 in 1 : vector<32x1xf32>, vector<32x9xf32>, vector<32x1xf32> -> vector<32x11xf32>
    %cst_204 = arith.constant 2.000000e+01 : f32
    %676 = vector.broadcast %cst_204 : f32 to vector<32x11xf32>
    %677 = arith.cmpf ogt, %675, %676 : vector<32x11xf32>
    %cst_205 = arith.constant 2.000000e+01 : f32
    %678 = vector.broadcast %cst_205 : f32 to vector<32x11xf32>
    %679 = arith.minimumf %675, %678 : vector<32x11xf32>
    %680 = math.exp %679 : vector<32x11xf32>
    %cst_206 = arith.constant 1.000000e+00 : f32
    %681 = vector.broadcast %cst_206 : f32 to vector<32x11xf32>
    %682 = arith.addf %681, %680 : vector<32x11xf32>
    %683 = math.log %682 : vector<32x11xf32>
    %684 = arith.select %677, %675, %683 : vector<32x11xi1>, vector<32x11xf32>
    %cst_207 = arith.constant 1.000000e-03 : f32
    %685 = vector.broadcast %cst_207 : f32 to vector<32x11xf32>
    %686 = arith.addf %685, %684 : vector<32x11xf32>
    %cst_208 = arith.constant dense<0xFF800000> : vector<32xf32>
    %687 = vector.multi_reduction <maximumf>, %650, %cst_208 [1] : vector<32x10xf32> to vector<32xf32>
    %688 = vector.shape_cast %687 : vector<32xf32> to vector<32x1xf32>
    %689 = vector.broadcast %688 : vector<32x1xf32> to vector<32x10xf32>
    %690 = arith.subf %650, %689 : vector<32x10xf32>
    %691 = math.exp %690 : vector<32x10xf32>
    %cst_209 = arith.constant dense<0.000000e+00> : vector<32xf32>
    %692 = vector.multi_reduction <add>, %691, %cst_209 [1] : vector<32x10xf32> to vector<32xf32>
    %693 = vector.shape_cast %692 : vector<32xf32> to vector<32x1xf32>
    %694 = vector.broadcast %693 : vector<32x1xf32> to vector<32x10xf32>
    %695 = arith.divf %691, %694 : vector<32x10xf32>
    %cst_210 = arith.constant 9.900000e-01 : f32
    %696 = vector.broadcast %cst_210 : f32 to vector<32x10xf32>
    %697 = arith.mulf %696, %695 : vector<32x10xf32>
    %cst_211 = arith.constant 1.000000e-03 : f32
    %698 = vector.broadcast %cst_211 : f32 to vector<32x10xf32>
    %699 = arith.addf %698, %697 : vector<32x10xf32>
    %cst_212 = arith.constant dense<0xFF800000> : vector<32xf32>
    %700 = vector.multi_reduction <maximumf>, %655, %cst_212 [1] : vector<32x10xf32> to vector<32xf32>
    %701 = vector.shape_cast %700 : vector<32xf32> to vector<32x1xf32>
    %702 = vector.broadcast %701 : vector<32x1xf32> to vector<32x10xf32>
    %703 = arith.subf %655, %702 : vector<32x10xf32>
    %704 = math.exp %703 : vector<32x10xf32>
    %cst_213 = arith.constant dense<0.000000e+00> : vector<32xf32>
    %705 = vector.multi_reduction <add>, %704, %cst_213 [1] : vector<32x10xf32> to vector<32xf32>
    %706 = vector.shape_cast %705 : vector<32xf32> to vector<32x1xf32>
    %707 = vector.broadcast %706 : vector<32x1xf32> to vector<32x10xf32>
    %708 = arith.divf %704, %707 : vector<32x10xf32>
    %cst_214 = arith.constant 9.900000e-01 : f32
    %709 = vector.broadcast %cst_214 : f32 to vector<32x10xf32>
    %710 = arith.mulf %709, %708 : vector<32x10xf32>
    %cst_215 = arith.constant 1.000000e-03 : f32
    %711 = vector.broadcast %cst_215 : f32 to vector<32x10xf32>
    %712 = arith.addf %711, %710 : vector<32x10xf32>
    %713 = tpu.concatenate %699, %712 in 1 : vector<32x10xf32>, vector<32x10xf32> -> vector<32x20xf32>
    %cst_216 = arith.constant dense<0.000000e+00> : vector<32x22xf32>
    %714 = tpu.matmul %713, %24, %cst_216 {dimension_numbers = #tpu.dot_dimension_numbers<[1], [0], [0], [1], [0, 0, 1, 1], [], []>} : vector<32x20xf32>, vector<20x22xf32>, vector<32x22xf32> -> vector<32x22xf32>
    %715 = vector.extract_strided_slice %714 {offsets = [0, 0], sizes = [32, 11], strides = [1, 1]} : vector<32x22xf32> to vector<32x11xf32>
    %cst_217 = arith.constant 8.000000e+00 : f32
    %716 = vector.broadcast %cst_217 : f32 to vector<32x11xf32>
    %717 = arith.mulf %716, %715 : vector<32x11xf32>
    %cst_218 = arith.constant -4.000000e+00 : f32
    %718 = vector.broadcast %cst_218 : f32 to vector<32x11xf32>
    %719 = arith.addf %717, %718 : vector<32x11xf32>
    %c0_i32_219 = arith.constant 0 : i32
    %720 = vector.broadcast %c0_i32_219 : i32 to vector<32x11xi32>
    %721 = arith.cmpi eq, %0, %720 : vector<32x11xi32>
    %c10_i32_220 = arith.constant 10 : i32
    %722 = vector.broadcast %c10_i32_220 : i32 to vector<32x11xi32>
    %723 = arith.cmpi eq, %0, %722 : vector<32x11xi32>
    %cst_221 = arith.constant 4.000000e+00 : f32
    %724 = vector.broadcast %cst_221 : f32 to vector<32x11xf32>
    %725 = arith.select %723, %724, %719 : vector<32x11xi1>, vector<32x11xf32>
    %cst_222 = arith.constant -4.000000e+00 : f32
    %726 = vector.broadcast %cst_222 : f32 to vector<32x11xf32>
    %727 = arith.select %721, %726, %725 : vector<32x11xi1>, vector<32x11xf32>
    %728 = vector.extract_strided_slice %714 {offsets = [0, 11], sizes = [32, 11], strides = [1, 1]} : vector<32x22xf32> to vector<32x11xf32>
    %cst_223 = arith.constant 8.000000e+00 : f32
    %729 = vector.broadcast %cst_223 : f32 to vector<32x11xf32>
    %730 = arith.mulf %729, %728 : vector<32x11xf32>
    %cst_224 = arith.constant -4.000000e+00 : f32
    %731 = vector.broadcast %cst_224 : f32 to vector<32x11xf32>
    %732 = arith.addf %730, %731 : vector<32x11xf32>
    %c0_i32_225 = arith.constant 0 : i32
    %733 = vector.broadcast %c0_i32_225 : i32 to vector<32x11xi32>
    %734 = arith.cmpi eq, %0, %733 : vector<32x11xi32>
    %c10_i32_226 = arith.constant 10 : i32
    %735 = vector.broadcast %c10_i32_226 : i32 to vector<32x11xi32>
    %736 = arith.cmpi eq, %0, %735 : vector<32x11xi32>
    %cst_227 = arith.constant 4.000000e+00 : f32
    %737 = vector.broadcast %cst_227 : f32 to vector<32x11xf32>
    %738 = arith.select %736, %737, %732 : vector<32x11xi1>, vector<32x11xf32>
    %cst_228 = arith.constant -4.000000e+00 : f32
    %739 = vector.broadcast %cst_228 : f32 to vector<32x11xf32>
    %740 = arith.select %734, %739, %738 : vector<32x11xi1>, vector<32x11xf32>
    %741 = vector.extract_strided_slice %727 {offsets = [0, 1], sizes = [32, 10], strides = [1, 1]} : vector<32x11xf32> to vector<32x10xf32>
    %742 = vector.extract_strided_slice %727 {offsets = [0, 0], sizes = [32, 10], strides = [1, 1]} : vector<32x11xf32> to vector<32x10xf32>
    %743 = arith.subf %741, %742 : vector<32x10xf32>
    %744 = vector.extract_strided_slice %740 {offsets = [0, 1], sizes = [32, 10], strides = [1, 1]} : vector<32x11xf32> to vector<32x10xf32>
    %745 = vector.extract_strided_slice %740 {offsets = [0, 0], sizes = [32, 10], strides = [1, 1]} : vector<32x11xf32> to vector<32x10xf32>
    %746 = arith.subf %744, %745 : vector<32x10xf32>
    %747 = arith.divf %746, %743 : vector<32x10xf32>
    %c10_i32_229 = arith.constant 10 : i32
    %748 = vector.broadcast %c10_i32_229 : i32 to vector<32x11xi32>
    %749 = arith.cmpi eq, %0, %748 : vector<32x11xi32>
    %cst_230 = arith.constant 9.99999997E-7 : f32
    %750 = vector.broadcast %cst_230 : f32 to vector<32x11xf32>
    %751 = arith.addf %727, %750 : vector<32x11xf32>
    %752 = arith.select %749, %751, %727 : vector<32x11xi1>, vector<32x11xf32>
    %753 = vector.broadcast %674 : vector<32x1xf32> to vector<32x11xf32>
    %754 = arith.cmpf oge, %753, %752 : vector<32x11xf32>
    %755 = arith.extui %754 : vector<32x11xi1> to vector<32x11xi32>
    %cst_231 = arith.constant dense<0> : vector<32xi32>
    %756 = vector.multi_reduction <add>, %755, %cst_231 [1] : vector<32x11xi32> to vector<32xi32>
    %757 = vector.shape_cast %756 : vector<32xi32> to vector<32x1xi32>
    %c1_i32_232 = arith.constant 1 : i32
    %758 = vector.broadcast %c1_i32_232 : i32 to vector<32x1xi32>
    %759 = arith.subi %757, %758 : vector<32x1xi32>
    %760 = vector.broadcast %759 : vector<32x1xi32> to vector<32x10xi32>
    %761 = arith.cmpi eq, %1, %760 : vector<32x10xi32>
    %762 = arith.extui %761 : vector<32x10xi1> to vector<32x10xi32>
    %763 = arith.sitofp %762 : vector<32x10xi32> to vector<32x10xf32>
    %764 = vector.extract_strided_slice %727 {offsets = [0, 0], sizes = [32, 10], strides = [1, 1]} : vector<32x11xf32> to vector<32x10xf32>
    %765 = vector.extract_strided_slice %740 {offsets = [0, 0], sizes = [32, 10], strides = [1, 1]} : vector<32x11xf32> to vector<32x10xf32>
    %766 = vector.extract_strided_slice %686 {offsets = [0, 0], sizes = [32, 10], strides = [1, 1]} : vector<32x11xf32> to vector<32x10xf32>
    %767 = vector.extract_strided_slice %686 {offsets = [0, 1], sizes = [32, 10], strides = [1, 1]} : vector<32x11xf32> to vector<32x10xf32>
    %768 = vector.shape_cast %764 : vector<32x10xf32> to vector<1x32x10xf32>
    %769 = vector.shape_cast %743 : vector<32x10xf32> to vector<1x32x10xf32>
    %770 = vector.shape_cast %765 : vector<32x10xf32> to vector<1x32x10xf32>
    %771 = vector.shape_cast %747 : vector<32x10xf32> to vector<1x32x10xf32>
    %772 = vector.shape_cast %766 : vector<32x10xf32> to vector<1x32x10xf32>
    %773 = vector.shape_cast %767 : vector<32x10xf32> to vector<1x32x10xf32>
    %774 = vector.shape_cast %746 : vector<32x10xf32> to vector<1x32x10xf32>
    %775 = tpu.concatenate %768, %769, %770, %771, %772, %773, %774 in 0 : vector<1x32x10xf32>, vector<1x32x10xf32>, vector<1x32x10xf32>, vector<1x32x10xf32>, vector<1x32x10xf32>, vector<1x32x10xf32>, vector<1x32x10xf32> -> vector<7x32x10xf32>
    %776 = vector.shape_cast %763 : vector<32x10xf32> to vector<1x32x10xf32>
    %777 = vector.broadcast %776 : vector<1x32x10xf32> to vector<7x32x10xf32>
    %778 = arith.mulf %775, %777 : vector<7x32x10xf32>
    %cst_233 = arith.constant dense<0.000000e+00> : vector<7x32xf32>
    %779 = vector.multi_reduction <add>, %778, %cst_233 [2] : vector<7x32x10xf32> to vector<7x32xf32>
    %780 = vector.shape_cast %779 : vector<7x32xf32> to vector<7x32x1xf32>
    %781 = vector.extract_strided_slice %780 {offsets = [0, 0, 0], sizes = [1, 32, 1], strides = [1, 1, 1]} : vector<7x32x1xf32> to vector<1x32x1xf32>
    %782 = vector.shape_cast %781 : vector<1x32x1xf32> to vector<32x1xf32>
    %783 = vector.extract_strided_slice %780 {offsets = [1, 0, 0], sizes = [1, 32, 1], strides = [1, 1, 1]} : vector<7x32x1xf32> to vector<1x32x1xf32>
    %784 = vector.shape_cast %783 : vector<1x32x1xf32> to vector<32x1xf32>
    %785 = vector.extract_strided_slice %780 {offsets = [2, 0, 0], sizes = [1, 32, 1], strides = [1, 1, 1]} : vector<7x32x1xf32> to vector<1x32x1xf32>
    %786 = vector.shape_cast %785 : vector<1x32x1xf32> to vector<32x1xf32>
    %787 = vector.extract_strided_slice %780 {offsets = [3, 0, 0], sizes = [1, 32, 1], strides = [1, 1, 1]} : vector<7x32x1xf32> to vector<1x32x1xf32>
    %788 = vector.shape_cast %787 : vector<1x32x1xf32> to vector<32x1xf32>
    %789 = vector.extract_strided_slice %780 {offsets = [4, 0, 0], sizes = [1, 32, 1], strides = [1, 1, 1]} : vector<7x32x1xf32> to vector<1x32x1xf32>
    %790 = vector.shape_cast %789 : vector<1x32x1xf32> to vector<32x1xf32>
    %791 = vector.extract_strided_slice %780 {offsets = [5, 0, 0], sizes = [1, 32, 1], strides = [1, 1, 1]} : vector<7x32x1xf32> to vector<1x32x1xf32>
    %792 = vector.shape_cast %791 : vector<1x32x1xf32> to vector<32x1xf32>
    %793 = vector.extract_strided_slice %780 {offsets = [6, 0, 0], sizes = [1, 32, 1], strides = [1, 1, 1]} : vector<7x32x1xf32> to vector<1x32x1xf32>
    %794 = vector.shape_cast %793 : vector<1x32x1xf32> to vector<32x1xf32>
    %795 = arith.subf %674, %782 : vector<32x1xf32>
    %796 = arith.divf %795, %784 : vector<32x1xf32>
    %cst_234 = arith.constant 1.000000e+00 : f32
    %797 = vector.broadcast %cst_234 : f32 to vector<32x1xf32>
    %798 = arith.subf %797, %796 : vector<32x1xf32>
    %799 = arith.mulf %796, %798 : vector<32x1xf32>
    %800 = arith.mulf %788, %796 : vector<32x1xf32>
    %801 = arith.mulf %800, %796 : vector<32x1xf32>
    %802 = arith.mulf %790, %799 : vector<32x1xf32>
    %803 = arith.addf %801, %802 : vector<32x1xf32>
    %804 = arith.mulf %794, %803 : vector<32x1xf32>
    %805 = arith.addf %790, %792 : vector<32x1xf32>
    %cst_235 = arith.constant 2.000000e+00 : f32
    %806 = vector.broadcast %cst_235 : f32 to vector<32x1xf32>
    %807 = arith.mulf %806, %788 : vector<32x1xf32>
    %808 = arith.subf %805, %807 : vector<32x1xf32>
    %809 = arith.mulf %808, %799 : vector<32x1xf32>
    %810 = arith.addf %788, %809 : vector<32x1xf32>
    %811 = arith.divf %804, %810 : vector<32x1xf32>
    %812 = arith.addf %786, %811 : vector<32x1xf32>
    %813 = arith.select %670, %812, %665 : vector<32x1xi1>, vector<32x1xf32>
    %814 = vector.extract_strided_slice %813 {offsets = [0, 0], sizes = [8, 1], strides = [1, 1]} : vector<32x1xf32> to vector<8x1xf32>
    %815 = vector.extract_strided_slice %813 {offsets = [8, 0], sizes = [8, 1], strides = [1, 1]} : vector<32x1xf32> to vector<8x1xf32>
    %816 = vector.extract_strided_slice %813 {offsets = [16, 0], sizes = [8, 1], strides = [1, 1]} : vector<32x1xf32> to vector<8x1xf32>
    %817 = vector.extract_strided_slice %813 {offsets = [24, 0], sizes = [8, 1], strides = [1, 1]} : vector<32x1xf32> to vector<8x1xf32>
    %818 = tpu.concatenate %814, %815, %816, %817 in 1 : vector<8x1xf32>, vector<8x1xf32>, vector<8x1xf32>, vector<8x1xf32> -> vector<8x4xf32>
    %c0_236 = arith.constant 0 : index
    %c0_237 = arith.constant 0 : index
    %819 = vector.load %arg7[%c0_236, %c0_237] : memref<8x4xf32, #tpu.memory_space<vmem>>, vector<8x4xf32>
    tpu.vector_store %arg7[%c0_236, %c0_237], %818 {strides = array<i32>} : memref<8x4xf32, #tpu.memory_space<vmem>>, vector<8x4xf32>,
    return
  }
}

</mosaic_0001>

<bundles_post_ra>
// kernel: stacked_nsf_pallas.1
= control target key start
LH: loop header
LB: loop body
LE: loop exit
PB: predicated region body
PF: predicated region fallthrough
CT: control target
= control target key end

     0   :  { %vm84_vm0 = vcmask 1043456   ;;  %vm7818_vm1 = vcmask 31744   ;;  %v5548_v0 = vmov 0.0   ;;  %vm7819_vm2 = vmmov 0   ;;  %s5551_s29 = smov 32   ;;  %s5552_s30 = smov 96   ;;  %s7809_s1 = inlined_call_operand.vmem [shape: f32[4,4,128], index: 1, kind: input, shape index: {}]   ;;  %s7810_s0 = inlined_call_operand.vmem [shape: f32[8,4], index: 0, kind: input, shape index: {}]   ;;  %s7811_s3 = inlined_call_operand.vmem [shape: f32[4,128,128], index: 3, kind: input, shape index: {}]   ;;  %s7812_s5 = inlined_call_operand.vmem [shape: f32[4,128,128], index: 5, kind: input, shape index: {}]   ;;  %s7813_s2 = inlined_call_operand.vmem [shape: f32[4,1,128], index: 2, kind: input, shape index: {}]   ;;  %s7814_s4 = inlined_call_operand.vmem [shape: f32[4,1,128], index: 4, kind: input, shape index: {}]   ;;  %s7815_s6 = inlined_call_operand.vmem [shape: f32[4,1,128], index: 6, kind: input, shape index: {}]   ;;  %s7816_s7 = inlined_call_operand.vmem [shape: f32[8,4], index: 7, kind: output, shape index: {}]  }
   0x1   :  { %4680 = vmatprep.subr.mxu0 %v5548_v0  ;;  %v72_v1 = vld [vmem:[%s7809_s1] sm:$0xf]  ;;  %4682 = vmatprep.mubr.msk.f32.mxu0 %vm7819_vm2, %v5548_v0  ;;  %v5550_v4 = vmov 0.0|0.0   ;;  %v160_v5 = vld [vmem:[%s7811_s3 + $0x8] sm:$0xff]  ;;  %v161_v6 = vld [vmem:[%s7811_s3 + $0x10] sm:$0xff]  ;;  %s5553_s8 = smov 64  }
   0x2   :  { %v5614_v2 = vld [vmem:[%s7810_s0] sm:$0xff]  ;;  %4681 = vmatpush3.msk.msra.mxu0 %vm84_vm0, %v72_v1  ;;  %5028 = vmatprep.subr.bf16.mxu1 %v5550_v4  ;;  %v162_v7 = vld [vmem:[%s7811_s3 + $0x18] sm:$0xff]  ;;  %v164_v11 = vld [vmem:[%s7811_s3 + $0x28] sm:$0xff]  ;;  %vm7817_vm3 = vcmask 162896   ;;  %vm7821_vm4 = vcmask 80896   ;;  %s5554_s9 = smov 118  }
   0x3   :  { %v159_v3 = vld [vmem:[%s7811_s3] sm:$0xff]  ;;  %4683 = vmatmul.mubr.msk.f32.vlgmr.msra.gmra.mrb[0].mxu0 %vm7818_vm1, %v5614_v2  ;;  %4717 = vmatprep.mubr.msk.f32.mxu1 %vm7819_vm2, %v5548_v0  ;;  %v5032_v9 = vpack.c.bf16 %v162_v7, %v161_v6  ;;  %v165_v13 = vld [vmem:[%s7811_s3 + $0x30] sm:$0xff]  ;;  %v166_v14 = vld [vmem:[%s7811_s3 + $0x38] sm:$0xff]  ;;  %s5556_s10 = smov 126   ;;  %s5557_s11 = smov 125  }
   0x4   :  { %v5029_v8 = vpack.c.bf16 %v160_v5, %v159_v3  ;;  %5052 = vmatprep.subr.bf16.mxu0 %v5550_v4  ;;  %4752 = vmatprep.mubr.msk.f32.mxu0 %vm7819_vm2, %v5548_v0  ;;  %v163_v10 = vld [vmem:[%s7811_s3 + $0x20] sm:$0xff]  ;;  %v5038_v15 = vpack.c.bf16 %v166_v14, %v165_v13  ;;  %v168_v17 = vld [vmem:[%s7811_s3 + $0x48] sm:$0xff]  ;;  %v169_v19 = vld [vmem:[%s7811_s3 + $0x50] sm:$0xff]  ;;  %s5558_s12 = smov 127   ;;  %s5560_s13 = smov 109  }
   0x5   :  { %v5035_v12 = vpack.c.bf16 %v164_v11, %v163_v10  ;;  %v167_v16 = vld [vmem:[%s7811_s3 + $0x40] sm:$0xff]  ;;  %v170_v20 = vld [vmem:[%s7811_s3 + $0x58] sm:$0xff]  ;;  %v172_v23 = vld [vmem:[%s7811_s3 + $0x68] sm:$0xff]  ;;  %s5561_s14 = smov 117   ;;  %s5562_s15 = smov 1  }
   0x6   :  { %5030 = vmatpush3.bf16.msra.mxu1 %v5029_v8  ;;  %v5041_v18 = vpack.c.bf16 %v168_v17, %v167_v16  ;;  %v5044_v21 = vpack.c.bf16 %v170_v20, %v169_v19  ;;  %v171_v22 = vld [vmem:[%s7811_s3 + $0x60] sm:$0xff]  ;;  %v173_v25 = vld [vmem:[%s7811_s3 + $0x70] sm:$0xff]  ;;  %v174_v26 = vld [vmem:[%s7811_s3 + $0x78] sm:$0xff]  ;;  %s5563_s16 = smov 2   ;;  %s5564_s21 = smov 3  }
   0x7   :  { %5031 = vmatprep.subr.bf16.mxu1 %v5550_v4  ;;  %v5047_v24 = vpack.c.bf16 %v172_v23, %v171_v22  ;;  %v5050_v27 = vpack.c.bf16 %v174_v26, %v173_v25  ;;  %v253_v28 = vld [vmem:[%s7812_s5] sm:$0xff]  ;;  %v254_v29 = vld [vmem:[%s7812_s5 + $0x8] sm:$0xff]  ;;  %v255_v30 = vld [vmem:[%s7812_s5 + $0x10] sm:$0xff] }
   0x8   :  { %v5053_v31 = vpack.c.bf16 %v254_v29, %v253_v28  ;;  %v256_v32 = vld [vmem:[%s7812_s5 + $0x18] sm:$0xff]  ;;  %v257_v34 = vld [vmem:[%s7812_s5 + $0x20] sm:$0xff]  ;;  %v258_v35 = vld [vmem:[%s7812_s5 + $0x28] sm:$0xff] }
   0x9   :  { %v5056_v33 = vpack.c.bf16 %v256_v32, %v255_v30  ;;  %v5059_v36 = vpack.c.bf16 %v258_v35, %v257_v34  ;;  %v259_v37 = vld [vmem:[%s7812_s5 + $0x30] sm:$0xff]  ;;  %v260_v38 = vld [vmem:[%s7812_s5 + $0x38] sm:$0xff]  ;;  %v261_v40 = vld [vmem:[%s7812_s5 + $0x40] sm:$0xff] }
   0xa   :  { %5033 = vmatpush3.bf16.msra.mxu1 %v5032_v9  ;;  %5054 = vmatpush3.bf16.msra.mxu0 %v5053_v31  ;;  %v5062_v39 = vpack.c.bf16 %v260_v38, %v259_v37  ;;  %v262_v41 = vld [vmem:[%s7812_s5 + $0x48] sm:$0xff]  ;;  %v263_v43 = vld [vmem:[%s7812_s5 + $0x50] sm:$0xff]  ;;  %v264_v44 = vld [vmem:[%s7812_s5 + $0x58] sm:$0xff] }
   0xb   :  { %5034 = vmatprep.subr.bf16.mxu1 %v5550_v4  ;;  %5055 = vmatprep.subr.bf16.mxu0 %v5550_v4  ;;  %v5065_v42 = vpack.c.bf16 %v262_v41, %v261_v40  ;;  %v5068_v45 = vpack.c.bf16 %v264_v44, %v263_v43  ;;  %v265_v46 = vld [vmem:[%s7812_s5 + $0x60] sm:$0xff]  ;;  %v266_v47 = vld [vmem:[%s7812_s5 + $0x68] sm:$0xff]  ;;  %v267_v54 = vld [vmem:[%s7812_s5 + $0x70] sm:$0xff] }
   0xc   :  { %v5071_v48 = vpack.c.bf16 %v266_v47, %v265_v46  ;;  %v4304_v49 = vld [vmem:[%s7813_s2] ss:$0 sm:$0xff]  ;;  %v268_v55 = vld [vmem:[%s7812_s5 + $0x78] sm:$0xff] }
   0xd   :  { %v5074_v56 = vpack.c.bf16 %v268_v55, %v267_v54  ;;  %v4307_v57 = vld [vmem:[%s7814_s4] ss:$0 sm:$0xff]  ;;  %v5555_v54 = vmov 0  }
   0xe   :  { %5036 = vmatpush3.bf16.msra.mxu1 %v5035_v12  ;;  %5057 = vmatpush3.bf16.msra.mxu0 %v5056_v33  ;;  %v4308_v62 = vld [vmem:[%s7815_s6] ss:$0 sm:$0xff] }
   0xf   :  { %5037 = vmatprep.subr.bf16.mxu1 %v5550_v4  ;;  %5058 = vmatprep.subr.bf16.mxu0 %v5550_v4 }
  0x10   :  { %5257 = vset.pattern.permute.xlu1 %v5555_v54  ;;  %5258 = vset.pattern.permute.xlu0 %v5555_v54 }
  0x12   :  { %5039 = vmatpush3.bf16.msra.mxu1 %v5038_v15  ;;  %5060 = vmatpush3.bf16.msra.mxu0 %v5059_v36 }
  0x13   :  { %5040 = vmatprep.subr.bf16.mxu1 %v5550_v4  ;;  %5061 = vmatprep.subr.bf16.mxu0 %v5550_v4 }
  0x16   :  { %5042 = vmatpush3.bf16.msra.mxu1 %v5041_v18  ;;  %5063 = vmatpush3.bf16.msra.mxu0 %v5062_v39 }
  0x17   :  { %5043 = vmatprep.subr.bf16.mxu1 %v5550_v4  ;;  %5064 = vmatprep.subr.bf16.mxu0 %v5550_v4 }
  0x1a   :  { %5045 = vmatpush3.bf16.msra.mxu1 %v5044_v21  ;;  %5066 = vmatpush3.bf16.msra.mxu0 %v5065_v42 }
  0x1b   :  { %5046 = vmatprep.subr.bf16.mxu1 %v5550_v4  ;;  %5067 = vmatprep.subr.bf16.mxu0 %v5550_v4 }
  0x1e   :  { %5048 = vmatpush3.bf16.msra.mxu1 %v5047_v24  ;;  %5069 = vmatpush3.bf16.msra.mxu0 %v5068_v45 }
  0x1f   :  { %5049 = vmatprep.subr.bf16.mxu1 %v5550_v4  ;;  %5070 = vmatprep.subr.bf16.mxu0 %v5550_v4 }
  0x22   :  { %5051 = vmatpush3.bf16.msra.mxu1 %v5050_v27  ;;  %5072 = vmatpush3.bf16.msra.mxu0 %v5071_v48 }
  0x23   :  { %5073 = vmatprep.subr.bf16.mxu0 %v5550_v4 }
  0x26   :  { %5075 = vmatpush3.bf16.msra.mxu0 %v5074_v56 }
  0x27   :  { %4767 = vmatprep.subr.mxu0 %v5548_v0 }
  0xd6   :  { %v154_v50 = vpop.f32.mrb[0].mxu0 }
  0xd7   :  { %v155_v51 = vadd.f32 %v4304_v49, %v154_v50  ;;  %v4684_v52 = vpop.f32.mrb[1].mxu0 }
  0xd9   :  { %v158_v53 = vmax.f32 %v155_v51, 0.0 }
  0xdb   :  { %4718 = vmatmul.mubr.f32.vlgmr.msra.gmra.mrb[0].mxu1 %v158_v53 }
 0x1ae   :  { %v248_v58 = vpop.f32.mrb[0].mxu1 }
 0x1af   :  { %v249_v59 = vadd.f32 %v4307_v57, %v248_v58  ;;  %v4719_v60 = vpop.f32.mrb[1].mxu1 }
 0x1b1   :  { %v252_v61 = vmax.f32 %v249_v59, 0.0 }
 0x1b3   :  { %4753 = vmatmul.mubr.f32.vlgmr.msra.gmra.mrb[2].mxu0 %v252_v61  ;;  %v26_v61 = vlaneseq }
 0x1b4   :  { %4769 = vmatprep.mubr.msk.f32.mxu0 %vm7819_vm2, %v5548_v0 }
 0x286   :  { %v342_v63 = vpop.f32.mrb[2].mxu0 }
 0x287   :  { %v5747_v1 = vadd.f32 %v4308_v62, %v342_v63  ;;  %v4754_v3 = vpop.f32.mrb[3].mxu0  ;;  %v29_v62 = vshrl.u32 %v26_v61, 7  ;;  %v5827_v63 = vand.u32 127, %v26_v61 }
 0x289   :  { %353 = vrot.lane.b32.xlu1 %v5747_v1, %s5551_s29  ;;  %347 = vrot.lane.b32.xlu0 %v5747_v1, %s5552_s30  ;;  %v496_v5 = vsel %vm7817_vm3, %v5747_v1, -inf  ;;  %v443_v14 = vsel %vm7821_vm4, %v5747_v1, -inf  ;;  %v30_v3 = vadd.s32 8, %v29_v62  ;;  %vm35_vm6 = vcmp.le.s32.totalorder %v5827_v63, 10 }
 0x28a   :  { %vm39_vm7 = vcmp.lt.s32.totalorder %v29_v62, %v5827_v63  ;;  %vm48_vm11 = vcmp.gt.s32.totalorder %v5827_v63, 10 }
 0x28b   :  { %vm33_vm5 = vcmp.lt.s32.totalorder %v30_v3, 10  ;;  %vm40_vm8 = vcmp.lt.s32.totalorder %v30_v3, %v5827_v63  ;;  %vm46_vm10 = vcmp.ge.s32.totalorder %v30_v3, 10  ;;  %vm42_vm12 = vmand %vm35_vm6, %vm39_vm7 }
 0x28c   :  { %vm37_vm9 = vmand %vm33_vm5, %vm35_vm6 }
 0x28d   :  { %350 = vrot.lane.b32.xlu0 %v5747_v1, %s5553_s8  ;;  %vm43_vm14 = vmand %vm37_vm9, %vm40_vm8  ;;  %vm7829_vm8 = vmmov 0   ;;  %vm397_vm9 = vcmask 7168  }
 0x28e   :  { %vm50_vm15 = vmand %vm46_vm10, %vm48_vm11 }
 0x2ad   :  { %497 = vmax.xlane.f32.xlu1 %v496_v5  ;;  %v4298_v5 = vadd.s32 4294967286, %v30_v3 }
 0x2fb   :  { %v5757_v6 = vpop.permute.xlu1 %353  ;;  %v5759_v7 = vpop.permute.xlu0 %347 }
 0x2fc   :  { %v499_v8 = vsel %vm7817_vm3, %v5759_v7, -inf  ;;  %v505_v9 = vsel %vm7817_vm3, %v5757_v6, -inf  ;;  %v446_v12 = vsel %vm7821_vm4, %v5759_v7, -inf  ;;  %v452_v13 = vsel %vm7821_vm4, %v5757_v6, -inf }
 0x2fd   :  { %500 = vmax.xlane.f32.xlu0 %v499_v8  ;;  %506 = vmax.xlane.f32.xlu1 %v505_v9  ;;  %v4300_v8 = vadd.s32 4294967285, %v5827_v63  ;;  %v31_v9 = vadd.s32 16, %v29_v62 }
 0x2ff   :  { %v5765_v10 = vpop.permute.xlu0 %350  ;;  %vm57_vm13 = vcmp.lt.s32.totalorder %v4298_v5, %v4300_v8 }
 0x300   :  { %v502_v11 = vsel %vm7817_vm3, %v5765_v10, -inf  ;;  %v449_v15 = vsel %vm7821_vm4, %v5765_v10, -inf  ;;  %vm60_vm3 = vmand %vm50_vm15, %vm57_vm13 }
 0x301   :  { %503 = vmax.xlane.f32.xlu0 %v502_v11  ;;  %447 = vmax.xlane.f32.xlu1 %v446_v12  ;;  %v4299_v11 = vadd.s32 4294967286, %v31_v9  ;;  %vm63_vm1 = vmor %vm43_vm14, %vm60_vm3 }
 0x303   :  { %vm58_vm2 = vcmp.lt.s32.totalorder %v4299_v11, %v4300_v8 }
 0x304   :  { %vm61_vm5 = vmand %vm48_vm11, %vm58_vm2  ;;  %vm7825_vm2 = vcmask 80896  }
 0x305   :  { %453 = vmax.xlane.f32.xlu1 %v452_v13  ;;  %444 = vmax.xlane.f32.xlu0 %v443_v14  ;;  %v5559_v13 = vmov 1.0|1.0   ;;  %v5851_v14 = vsel %vm61_vm5, 1.0, %v5548_v0  ;;  %vm7826_vm3 = vmmov %vm7825_vm2  ;;  %vm678_vm5 = vcmp.eq.s32.totalorder %v5827_v63, 10 }
 0x306   :  { %vm7827_vm6 = vmmov %vm7825_vm2 }
 0x307   :  { %vm7828_vm7 = vmmov %vm7825_vm2 }
 0x308   :  { %vm7830_vm10 = vmmov %vm7825_vm2 }
 0x309   :  { %450 = vmax.xlane.f32.xlu0 %v449_v15  ;;  %vm7832_vm13 = vmmov %vm7825_vm2 }
 0x33a   :  { %v498_v16 = vpop.xlane.xlu1 %497 }
 0x33b   :  { %v508_v17 = vsub.f32 %v5747_v1, %v498_v16 }
 0x33d   :  { %v512_v18 = vmul.f32 1.442695, %v508_v17 }
 0x33f   :  { %5259 = vpow2.f32 %v512_v18 }
 0x349   :  { %v5778_v19 = vpop.eup %5259 }
 0x34a   :  { %524 = vrot.lane.b32.xlu0 %v5778_v19, %s5554_s9 }
 0x38a   :  { %v501_v20 = vpop.xlane.xlu0 %500  ;;  %v507_v21 = vpop.xlane.xlu1 %506 }
 0x38b   :  { %v509_v22 = vsub.f32 %v5759_v7, %v501_v20  ;;  %v511_v23 = vsub.f32 %v5757_v6, %v507_v21 }
 0x38d   :  { %v514_v24 = vmul.f32 1.442695, %v509_v22  ;;  %v518_v25 = vmul.f32 1.442695, %v511_v23 }
 0x38e   :  { %v504_v26 = vpop.xlane.xlu0 %503  ;;  %v448_v33 = vpop.xlane.xlu1 %447 }
 0x38f   :  { %5261 = vpow2.f32 %v514_v24  ;;  %v510_v27 = vsub.f32 %v5765_v10, %v504_v26  ;;  %v456_v34 = vsub.f32 %v5759_v7, %v448_v33 }
 0x390   :  { %5263 = vpow2.f32 %v518_v25 }
 0x391   :  { %v516_v28 = vmul.f32 1.442695, %v510_v27  ;;  %v461_v37 = vmul.f32 1.442695, %v456_v34 }
 0x392   :  { %v445_v32 = vpop.xlane.xlu0 %444  ;;  %v454_v40 = vpop.xlane.xlu1 %453 }
 0x393   :  { %5265 = vpow2.f32 %v516_v28  ;;  %v455_v35 = vsub.f32 %v5747_v1, %v445_v32  ;;  %v458_v41 = vsub.f32 %v5757_v6, %v454_v40  ;;  %v4309_v32 = vclamps-f32 %v5614_v2, 4.0 }
 0x394   :  { %5267 = vpow2.f32 %v461_v37 }
 0x395   :  { %v459_v38 = vmul.f32 1.442695, %v455_v35  ;;  %v465_v43 = vmul.f32 1.442695, %v458_v41 }
 0x396   :  { %v451_v36 = vpop.xlane.xlu0 %450 }
 0x397   :  { %v457_v39 = vsub.f32 %v5765_v10, %v451_v36  ;;  %5269 = vpow2.f32 %v459_v38 }
 0x399   :  { %v5785_v29 = vpop.eup %5261  ;;  %v463_v42 = vmul.f32 1.442695, %v457_v39 }
 0x39a   :  { %v5787_v30 = vpop.eup %5263  ;;  %526 = vrot.lane.b32.xlu1 %v5785_v29, %s5554_s9 }
 0x39b   :  { %530 = vrot.lane.b32.xlu0 %v5787_v30, %s5554_s9  ;;  %5271 = vpow2.f32 %v463_v42 }
 0x39c   :  { %5273 = vpow2.f32 %v465_v43 }
 0x39d   :  { %v5793_v31 = vpop.eup %5265 }
 0x39e   :  { %528 = vrot.lane.b32.xlu1 %v5793_v31, %s5554_s9  ;;  %v5801_v45 = vpop.eup %5267 }
 0x39f   :  { %v470_v49 = vsel %vm7821_vm4, %v5801_v45, 0.0 }
 0x3a1   :  { %v5804_v47 = vpop.eup %5269 }
 0x3a2   :  { %v467_v48 = vsel %vm7821_vm4, %v5804_v47, 0.0 }
 0x3a5   :  { %v5810_v50 = vpop.eup %5271 }
 0x3a6   :  { %v473_v51 = vsel %vm7821_vm4, %v5810_v50, 0.0  ;;  %v5814_v52 = vpop.eup %5273 }
 0x3a7   :  { %v476_v53 = vsel %vm7821_vm4, %v5814_v52, 0.0 }
 0x3bc   :  { %v525_v44 = vpop.permute.xlu0 %524 }
 0x3bd   :  { %v536_v46 = vsel %vm7821_vm4, %v525_v44, 0.0 }
 0x3be   :  { %537 = vadd.xlane.f32.xlu0 %v536_v46 }
 0x3c2   :  { %468 = vadd.xlane.f32.xlu1 %v467_v48  ;;  %471 = vadd.xlane.f32.xlu0 %v470_v49 }
 0x3c6   :  { %474 = vadd.xlane.f32.xlu0 %v473_v51 }
 0x3ca   :  { %477 = vadd.xlane.f32.xlu0 %v476_v53 }
 0x3e0   :  { %359 = vrot.lane.b32.xlu0 %v5614_v2, %s5556_s10 }
 0x3e4   :  { %362 = vrot.lane.b32.xlu0 %v5614_v2, %s5557_s11 }
 0x40c   :  { %v527_v55 = vpop.permute.xlu1 %526 }
 0x40d   :  { %v539_v56 = vsel %vm7821_vm4, %v527_v55, 0.0  ;;  %v531_v59 = vpop.permute.xlu0 %530 }
 0x40e   :  { %540 = vadd.xlane.f32.xlu1 %v539_v56  ;;  %v545_v60 = vsel %vm7821_vm4, %v531_v59, 0.0 }
 0x410   :  { %v529_v57 = vpop.permute.xlu1 %528 }
 0x411   :  { %v542_v58 = vsel %vm7821_vm4, %v529_v57, 0.0  ;;  %vm5838_vm4 = vmpackc.low %vm63_vm1, %vm42_vm12  ;;  %vm568_vm1 = vcmask 162816  }
 0x412   :  { %543 = vadd.xlane.f32.xlu1 %v542_v58  ;;  %5077 = vmatprep.subr.msk.bf16.mxu1 %vm5838_vm4, %v5559_v13  ;;  %vm7831_vm12 = vmmov %vm7825_vm2 }
 0x413   :  { %5079 = vmatpush3.bf16.msk.msra.mxu1 %vm5838_vm4, %v5559_v13 }
 0x414   :  { %4759 = vmatprep.subr.msk.mxu1 %vm84_vm0, %v5851_v14 }
 0x416   :  { %546 = vadd.xlane.f32.xlu1 %v545_v60 }
 0x417   :  { %4760 = vmatpush3.msk.msra.mxu1 %vm84_vm0, %v5851_v14 }
 0x418   :  { %5104 = vmatprep.subr.bf16.mxu1 %v5550_v4 }
 0x427   :  { %356 = vrot.lane.b32.xlu1 %v5614_v2, %s5558_s12 }
 0x44b   :  { %v538_v15 = vpop.xlane.xlu0 %537 }
 0x44c   :  { %5275 = vrcp.f32 %v538_v15 }
 0x44f   :  { %v469_v16 = vpop.xlane.xlu1 %468  ;;  %v472_v17 = vpop.xlane.xlu0 %471 }
 0x450   :  { %5277 = vrcp.f32 %v469_v16 }
 0x451   :  { %5279 = vrcp.f32 %v472_v17 }
 0x453   :  { %v475_v18 = vpop.xlane.xlu0 %474 }
 0x454   :  { %5281 = vrcp.f32 %v475_v18 }
 0x456   :  { %v5276_v20 = vpop.eup %5275 }
 0x457   :  { %v478_v21 = vpop.xlane.xlu0 %477  ;;  %v549_v22 = vmul.f32 %v5276_v20, %v5778_v19 }
 0x459   :  { %v556_v26 = vmul.f32 0.99, %v549_v22 }
 0x45a   :  { %v5278_v23 = vpop.eup %5277 }
 0x45b   :  { %v5859_v24 = vpop.permute.xlu0 %359  ;;  %v480_v25 = vmul.f32 %v5278_v23, %v5804_v47  ;;  %v560_v34 = vadd.f32 0.001, %v556_v26  ;;  %v5280_v38 = vpop.eup %5279 }
 0x45c   :  { %v4311_v27 = vclamps-f32 %v5859_v24, 4.0 }
 0x45d   :  { %v487_v28 = vmul.f32 0.99, %v480_v25 }
 0x45e   :  { %779 = vperm.xlu1 %5257, %v4311_v27   ;;  %v5282_v41 = vpop.eup %5281 }
 0x45f   :  { %v491_v33 = vadd.f32 0.001, %v487_v28  ;;  %v5872_v19 = vpop.permute.xlu0 %362  ;;  %v484_v46 = vmul.f32 %v5282_v41, %v5810_v50 }
 0x460   :  { %v4312_v36 = vclamps-f32 %v5872_v19, 4.0 }
 0x461   :  { %v564_v35 = vsel %vm7825_vm2, %v491_v33, %v560_v34  ;;  %v489_v55 = vmul.f32 0.99, %v484_v46  ;;  %vm677_vm2 = vcmp.eq.s32.totalorder %v5827_v63, 0 }
 0x462   :  { %4761 = vmatprep.mubr.msk.f32.mxu1 %vm568_vm1, %v564_v35  ;;  %769 = vperm.xlu1 %5257, %v4309_v32  }
 0x463   :  { %v493_v50 = vadd.f32 0.001, %v489_v55 }
 0x466   :  { %389 = vrot.lane.b32.xlu1 %v5765_v10, %s5560_s13  ;;  %v482_v10 = vmul.f32 %v5280_v38, %v5801_v45 }
 0x46a   :  { %385 = vrot.lane.b32.xlu1 %v5747_v1, %s5560_s13  ;;  %v488_v1 = vmul.f32 0.99, %v482_v10 }
 0x46c   :  { %v492_v45 = vadd.f32 0.001, %v488_v1 }
 0x46e   :  { %784 = vperm.xlu1 %5257, %v4312_v36  }
 0x49b   :  { %v541_v37 = vpop.xlane.xlu1 %540 }
 0x49c   :  { %5283 = vrcp.f32 %v541_v37 }
 0x49d   :  { %5285 = vrcp.f32 %v478_v21 }
 0x49f   :  { %v544_v39 = vpop.xlane.xlu1 %543 }
 0x4a0   :  { %5287 = vrcp.f32 %v544_v39 }
 0x4a3   :  { %v547_v40 = vpop.xlane.xlu1 %546 }
 0x4a4   :  { %5289 = vrcp.f32 %v547_v40 }
 0x4a6   :  { %v5284_v42 = vpop.eup %5283 }
 0x4a7   :  { %v5880_v43 = vpop.permute.xlu1 %356  ;;  %v551_v44 = vmul.f32 %v5284_v42, %v5785_v29  ;;  %v5286_v47 = vpop.eup %5285 }
 0x4a8   :  { %v4310_v48 = vclamps-f32 %v5880_v43, 4.0  ;;  %v486_v57 = vmul.f32 %v5286_v47, %v5814_v52 }
 0x4a9   :  { %v557_v49 = vmul.f32 0.99, %v551_v44 }
 0x4aa   :  { %v5288_v51 = vpop.eup %5287  ;;  %774 = vperm.xlu0 %5258, %v4310_v48   ;;  %v490_v61 = vmul.f32 0.99, %v486_v57 }
 0x4ab   :  { %v561_v53 = vadd.f32 0.001, %v557_v49  ;;  %v553_v56 = vmul.f32 %v5288_v51, %v5793_v31 }
 0x4ac   :  { %v494_v31 = vadd.f32 0.001, %v490_v61 }
 0x4ad   :  { %v565_v58 = vsel %vm7826_vm3, %v492_v45, %v561_v53  ;;  %v558_v29 = vmul.f32 0.99, %v553_v56 }
 0x4ae   :  { %v5290_v59 = vpop.eup %5289  ;;  %387 = vrot.lane.b32.xlu0 %v5759_v7, %s5560_s13  ;;  %4762 = vmatmul.mubr.msk.f32.vlgmr.msra.gmra.mrb[2].mxu1 %vm568_vm1, %v565_v58 }
 0x4af   :  { %v562_v60 = vadd.f32 0.001, %v558_v29  ;;  %v555_v62 = vmul.f32 %v5290_v59, %v5787_v30 }
 0x4b1   :  { %v566_v3 = vsel %vm7827_vm6, %v493_v50, %v562_v60  ;;  %v559_v5 = vmul.f32 0.99, %v555_v62  ;;  %vm7822_vm6 = vcmask 89088  }
 0x4b2   :  { %391 = vrot.lane.b32.xlu0 %v5757_v6, %s5560_s13  ;;  %4764 = vmatprep.mubr.msk.f32.mxu1 %vm568_vm1, %v566_v3 }
 0x4b3   :  { %v563_v52 = vadd.f32 0.001, %v559_v5 }
 0x4b5   :  { %v567_v8 = vsel %vm7828_vm7, %v494_v31, %v563_v52 }
 0x4b6   :  { %4765 = vmatmul.mubr.msk.f32.gmra.mrb[4].mxu1 %vm568_vm1, %v567_v8 }
 0x4b7   :  { %4839 = vmatprep.mubr.msk.f32.mxu1 %vm7829_vm8, %v5548_v0 }
 0x4dd   :  { %v5902_v7 = vpop.permute.xlu1 %779 }
 0x4e1   :  { %v5904_v30 = vpop.permute.xlu1 %769 }
 0x4e5   :  { %v390_v9 = vpop.permute.xlu1 %389 }
 0x4e6   :  { %v400_v11 = vsel %vm397_vm9, 0.5397424, %v390_v9 }
 0x4e7   :  { %v405_v6 = vsel %vm7830_vm10, %v400_v11, 0.5397424 }
 0x4e8   :  { %v413_v15 = vmin.f32 %v405_v6, 20.0  ;;  %vm409_vm11 = vcmp.gt.f32.partialorder %v405_v6, 20.0 }
 0x4e9   :  { %v386_v25 = vpop.permute.xlu1 %385 }
 0x4ea   :  { %v419_v16 = vmul.f32 1.442695, %v413_v15  ;;  %v398_v26 = vsel %vm397_vm9, 0.5397424, %v386_v25 }
 0x4eb   :  { %v403_v28 = vsel %vm7831_vm12, %v398_v26, 0.5397424 }
 0x4ec   :  { %5291 = vpow2.f32 %v419_v16  ;;  %v411_v33 = vmin.f32 %v403_v28, 20.0  ;;  %vm407_vm15 = vcmp.gt.f32.partialorder %v403_v28, 20.0 }
 0x4ee   :  { %v415_v35 = vmul.f32 1.442695, %v411_v33 }
 0x4f6   :  { %v5292_v17 = vpop.eup %5291 }
 0x4f7   :  { %v425_v18 = vadd.f32 1.0, %v5292_v17 }
 0x4f9   :  { %5293 = vlog2.f32 %v425_v18 }
 0x4fa   :  { %5295 = vpow2.f32 %v415_v35 }
 0x503   :  { %v5294_v20 = vpop.eup %5293 }
 0x504   :  { %v432_v21 = vmul.f32 0.6931472, %v5294_v20  ;;  %v5296_v41 = vpop.eup %5295 }
 0x505   :  { %v423_v42 = vadd.f32 1.0, %v5296_v41 }
 0x506   :  { %v437_v22 = vsel %vm409_vm11, %v405_v6, %v432_v21 }
 0x507   :  { %v5908_v23 = vadd.f32 0.001, %v437_v22 }
 0x509   :  { %904 = vrot.lane.b32.xlu1 %v5908_v23, %s5558_s12 }
 0x529   :  { %v5914_v34 = vpop.permute.xlu0 %774 }
 0x52d   :  { %v388_v37 = vpop.permute.xlu0 %387 }
 0x52e   :  { %v399_v38 = vsel %vm397_vm9, 0.5397424, %v388_v37 }
 0x52f   :  { %v404_v39 = vsel %vm7832_vm13, %v399_v38, 0.5397424 }
 0x530   :  { %v412_v10 = vmin.f32 %v404_v39, 20.0  ;;  %vm408_vm14 = vcmp.gt.f32.partialorder %v404_v39, 20.0 }
 0x532   :  { %v417_v40 = vmul.f32 1.442695, %v412_v10 }
 0x534   :  { %5297 = vpow2.f32 %v417_v40 }
 0x535   :  { %5299 = vlog2.f32 %v423_v42 }
 0x53e   :  { %v5298_v1 = vpop.eup %5297 }
 0x53f   :  { %v424_v44 = vadd.f32 1.0, %v5298_v1  ;;  %v5300_v46 = vpop.eup %5299 }
 0x540   :  { %v428_v51 = vmul.f32 0.6931472, %v5300_v46  ;;  %v785_v46 = vpop.permute.xlu1 %784 }
 0x541   :  { %5301 = vlog2.f32 %v424_v44 }
 0x542   :  { %v435_v55 = vsel %vm407_vm15, %v403_v28, %v428_v51  ;;  %vm7833_vm15 = vmmov %vm7831_vm12 }
 0x543   :  { %v5922_v56 = vadd.f32 0.001, %v435_v55 }
 0x54b   :  { %v5302_v47 = vpop.eup %5301 }
 0x54c   :  { %v430_v49 = vmul.f32 0.6931472, %v5302_v47 }
 0x54e   :  { %v436_v45 = vsel %vm408_vm14, %v404_v39, %v430_v49 }
 0x54f   :  { %v5918_v53 = vadd.f32 0.001, %v436_v45 }
 0x551   :  { %902 = vrot.lane.b32.xlu1 %v5918_v53, %s5558_s12 }
 0x555   :  { %900 = vrot.lane.b32.xlu1 %v5922_v56, %s5558_s12 }
 0x581   :  { %v4763_v57 = vpop.f32.mrb[2].mxu1 }
 0x582   :  { %v670_v58 = vmul.f32 8.0, %v4763_v57  ;;  %v650_v29 = vpop.f32.mrb[3].mxu1 }
 0x583   :  { %v669_v59 = vmul.f32 8.0, %v650_v29 }
 0x584   :  { %v674_v50 = vadd.f32 -4.0, %v670_v58 }
 0x585   :  { %v673_v60 = vadd.f32 -4.0, %v669_v59 }
 0x586   :  { %693 = vrot.lane.b32.xlu0 %v674_v50, %s5561_s14  ;;  %v680_v61 = vsel %vm678_vm5, 4.0, %v674_v50 }
 0x587   :  { %v679_v62 = vsel %vm678_vm5, 4.0, %v673_v60  ;;  %691 = vrot.lane.b32.xlu1 %v673_v60, %s5561_s14  ;;  %v5940_v31 = vsel %vm677_vm2, -4.0, %v680_v61  ;;  %v5991_v60 = vpop.permute.xlu1 %904 }
 0x588   :  { %v5936_v3 = vsel %vm677_vm2, -4.0, %v679_v62  ;;  %v760_v25 = vadd.f32 1e-06, %v5940_v31  ;;  %v392_v62 = vpop.permute.xlu0 %391 }
 0x589   :  { %v4766_v5 = vpop.f32.mrb[4].mxu1  ;;  %v759_v35 = vadd.f32 1e-06, %v5936_v3 }
 0x58a   :  { %v672_v52 = vmul.f32 8.0, %v4766_v5  ;;  %715 = vrot.lane.b32.xlu0 %v5936_v3, %s5562_s15  ;;  %v660_v8 = vpop.f32.mrb[5].mxu1  ;;  %v764_v28 = vsel %vm678_vm5, %v760_v25, %v5940_v31 }
 0x58b   :  { %v671_v9 = vmul.f32 8.0, %v660_v8  ;;  %717 = vrot.lane.b32.xlu1 %v5940_v31, %s5562_s15  ;;  %vm788_vm7 = vcmp.ge.f32.partialorder %v5914_v34, %v764_v28 }
 0x58c   :  { %v676_v11 = vadd.f32 -4.0, %v672_v52  ;;  %v792_v38 = vsel %vm788_vm7, 1, %v5555_v54 }
 0x58d   :  { %v675_v6 = vadd.f32 -4.0, %v671_v9  ;;  %v809_v39 = vsel %vm7822_vm6, %v792_v38, 0  ;;  %v401_v38 = vsel %vm397_vm9, 0.5397424, %v392_v62 }
 0x58e   :  { %v682_v17 = vsel %vm678_vm5, 4.0, %v676_v11  ;;  %v811_v40 = vshrl.u32 %v809_v39, 16  ;;  %v810_v42 = vand.u32 65535, %v809_v39 }
 0x58f   :  { %v681_v15 = vsel %vm678_vm5, 4.0, %v675_v6  ;;  %697 = vrot.lane.b32.xlu1 %v676_v11, %s5561_s14  ;;  %v5960_v18 = vsel %vm677_vm2, -4.0, %v682_v17 }
 0x590   :  { %v5951_v16 = vsel %vm677_vm2, -4.0, %v681_v15  ;;  %v762_v10 = vadd.f32 1e-06, %v5960_v18  ;;  %v813_v34 = vcvt.s32.f32 %v811_v40  ;;  %v812_v47 = vcvt.s32.f32 %v810_v42 }
 0x591   :  { %719 = vrot.lane.b32.xlu0 %v5951_v16, %s5562_s15  ;;  %v761_v20 = vadd.f32 1e-06, %v5951_v16 }
 0x592   :  { %v766_v1 = vsel %vm678_vm5, %v762_v10, %v5960_v18 }
 0x593   :  { %695 = vrot.lane.b32.xlu1 %v675_v6, %s5561_s14  ;;  %v765_v21 = vsel %vm678_vm5, %v761_v20, %v5951_v16  ;;  %vm790_vm11 = vcmp.ge.f32.partialorder %v785_v46, %v766_v1 }
 0x594   :  { %vm789_vm3 = vcmp.ge.f32.partialorder %v5902_v7, %v765_v21  ;;  %v763_v7 = vsel %vm678_vm5, %v759_v35, %v5936_v3 }
 0x595   :  { %v793_v22 = vsel %vm789_vm3, 1, %v5555_v54  ;;  %vm787_vm10 = vcmp.ge.f32.partialorder %v5904_v30, %v763_v7  ;;  %v794_v30 = vsel %vm790_vm11, 1, %v5555_v54  ;;  %v406_v7 = vsel %vm7831_vm12, %v401_v38, 0.5397424 }
 0x596   :  { %v822_v26 = vsel %vm7822_vm6, %v793_v22, 0  ;;  %v791_v41 = vsel %vm787_vm10, 1, %v5555_v54  ;;  %v835_v55 = vsel %vm7822_vm6, %v794_v30, 0  ;;  %v414_v39 = vmin.f32 %v406_v7, 20.0  ;;  %vm7834_vm10 = vmmov %vm7831_vm12 }
 0x597   :  { %721 = vrot.lane.b32.xlu1 %v5960_v18, %s5562_s15  ;;  %v824_v33 = vshrl.u32 %v822_v26, 16  ;;  %v796_v44 = vsel %vm7822_vm6, %v791_v41, 0  ;;  %v837_v58 = vshrl.u32 %v835_v55, 16  ;;  %v823_v59 = vand.u32 65535, %v822_v26  ;;  %vm7835_vm11 = vmmov %vm7834_vm10 }
 0x598   :  { %v798_v49 = vshrl.u32 %v796_v44, 16  ;;  %v797_v45 = vand.u32 65535, %v796_v44  ;;  %v421_v10 = vmul.f32 1.442695, %v414_v39  ;;  %v836_v41 = vand.u32 65535, %v835_v55  ;;  %vm7836_vm12 = vmmov %vm7834_vm10 }
 0x599   :  { %v826_v37 = vcvt.s32.f32 %v824_v33  ;;  %v839_v29 = vcvt.s32.f32 %v837_v58  ;;  %v825_v50 = vcvt.s32.f32 %v823_v59  ;;  %vm410_vm13 = vcmp.gt.f32.partialorder %v406_v7, 20.0 }
 0x59a   :  { %v800_v51 = vcvt.s32.f32 %v798_v49  ;;  %v799_v57 = vcvt.s32.f32 %v797_v45  ;;  %5303 = vpow2.f32 %v421_v10  ;;  %v838_v42 = vcvt.s32.f32 %v836_v41 }
 0x5a4   :  { %v5304_v40 = vpop.eup %5303 }
 0x5b0   :  { %829 = vadd.xlane.f32.xlu0 %v826_v37 }
 0x5bb   :  { %816 = vadd.xlane.f32.xlu1 %v813_v34  ;;  %v426_v34 = vadd.f32 1.0, %v5304_v40 }
 0x5bd   :  { %5305 = vlog2.f32 %v426_v34 }
 0x5bf   :  { %814 = vadd.xlane.f32.xlu1 %v812_v47 }
 0x5c3   :  { %803 = vadd.xlane.f32.xlu1 %v800_v51  ;;  %v5993_v61 = vpop.permute.xlu1 %902 }
 0x5c7   :  { %801 = vadd.xlane.f32.xlu1 %v799_v57  ;;  %v5995_v5 = vpop.permute.xlu1 %900  ;;  %v5306_v1 = vpop.eup %5305 }
 0x5c8   :  { %v434_v44 = vmul.f32 0.6931472, %v5306_v1 }
 0x5ca   :  { %v438_v46 = vsel %vm410_vm13, %v406_v7, %v434_v44  ;;  %vm7837_vm13 = vmmov %vm7834_vm10 }
 0x5cb   :  { %842 = vadd.xlane.f32.xlu1 %v839_v29  ;;  %v6035_v47 = vadd.f32 0.001, %v438_v46 }
 0x5cf   :  { %827 = vadd.xlane.f32.xlu1 %v825_v50 }
 0x5f8   :  { %v694_v52 = vpop.permute.xlu0 %693 }
 0x5f9   :  { %v704_v8 = vsel %vm678_vm5, 4.0, %v694_v52  ;;  %v692_v9 = vpop.permute.xlu1 %691 }
 0x5fa   :  { %v703_v11 = vsel %vm678_vm5, 4.0, %v692_v9  ;;  %v6003_v6 = vsel %vm677_vm2, -4.0, %v704_v8 }
 0x5fb   :  { %737 = vrot.lane.b32.xlu1 %v6003_v6, %s5562_s15  ;;  %v6009_v15 = vsel %vm677_vm2, -4.0, %v703_v11 }
 0x5fc   :  { %735 = vrot.lane.b32.xlu0 %v6009_v15, %s5562_s15  ;;  %v716_v21 = vpop.permute.xlu0 %715 }
 0x5fd   :  { %v718_v17 = vpop.permute.xlu1 %717  ;;  %v727_v25 = vsub.f32 %v5936_v3, %v716_v21 }
 0x5fe   :  { %v728_v20 = vsub.f32 %v5940_v31, %v718_v17 }
 0x600   :  { %870 = vrot.lane.b32.xlu0 %v728_v20, %s5558_s12  ;;  %5307 = vrcp.f32 %v728_v20 }
 0x601   :  { %v698_v22 = vpop.permute.xlu1 %697  ;;  %5309 = vrcp.f32 %v727_v25 }
 0x602   :  { %v706_v26 = vsel %vm678_vm5, 4.0, %v698_v22 }
 0x603   :  { %v6021_v33 = vsel %vm677_vm2, -4.0, %v706_v26  ;;  %v720_v51 = vpop.permute.xlu0 %719 }
 0x604   :  { %868 = vrot.lane.b32.xlu0 %v727_v25, %s5558_s12  ;;  %v729_v45 = vsub.f32 %v5951_v16, %v720_v51 }
 0x605   :  { %v696_v28 = vpop.permute.xlu1 %695 }
 0x606   :  { %v705_v35 = vsel %vm678_vm5, 4.0, %v696_v28  ;;  %5311 = vrcp.f32 %v729_v45 }
 0x607   :  { %v6029_v37 = vsel %vm677_vm2, -4.0, %v705_v35 }
 0x608   :  { %741 = vrot.lane.b32.xlu0 %v6021_v33, %s5562_s15 }
 0x609   :  { %v722_v49 = vpop.permute.xlu1 %721 }
 0x60a   :  { %v6040_v30 = vsub.f32 %v5960_v18, %v722_v49  ;;  %v5308_v39 = vpop.eup %5307 }
 0x60b   :  { %v5310_v41 = vpop.eup %5309 }
 0x60c   :  { %739 = vrot.lane.b32.xlu0 %v6029_v37, %s5562_s15  ;;  %5313 = vrcp.f32 %v6040_v30 }
 0x610   :  { %v5312_v1 = vpop.eup %5311 }
 0x62b   :  { %840 = vadd.xlane.f32.xlu0 %v838_v42 }
 0x63d   :  { %v830_v59 = vpop.xlane.xlu0 %829 }
 0x63e   :  { %v832_v62 = vcvt.f32.s32 %v830_v59 }
 0x640   :  { %v833_v8 = vshll.u32 %v832_v62, 16 }
 0x641   :  { %906 = vrot.lane.b32.xlu0 %v6035_v47, %s5558_s12 }
 0x645   :  { %874 = vrot.lane.b32.xlu0 %v6040_v30, %s5558_s12 }
 0x648   :  { %v817_v55 = vpop.xlane.xlu1 %816 }
 0x649   :  { %872 = vrot.lane.b32.xlu0 %v729_v45, %s5558_s12  ;;  %v819_v46 = vcvt.f32.s32 %v817_v55 }
 0x64b   :  { %v820_v51 = vshll.u32 %v819_v46, 16 }
 0x64c   :  { %v815_v57 = vpop.xlane.xlu1 %814 }
 0x64d   :  { %v818_v49 = vcvt.f32.s32 %v815_v57 }
 0x64f   :  { %v821_v62 = vadd.s32 %v820_v51, %v818_v49 }
 0x650   :  { %v804_v58 = vpop.xlane.xlu1 %803 }
 0x651   :  { %v806_v59 = vcvt.f32.s32 %v804_v58 }
 0x654   :  { %v802_v29 = vpop.xlane.xlu1 %801 }
 0x655   :  { %v805_v45 = vcvt.f32.s32 %v802_v29 }
 0x658   :  { %v6046_v50 = vpop.xlane.xlu1 %842 }
 0x65c   :  { %v828_v52 = vpop.xlane.xlu1 %827 }
 0x65d   :  { %v831_v9 = vcvt.f32.s32 %v828_v52  ;;  %v807_v52 = vshll.u32 %v806_v59, 16 }
 0x65f   :  { %v834_v11 = vadd.s32 %v833_v8, %v831_v9  ;;  %v4321_v8 = vadd.s32 4294967295, %v821_v62  ;;  %v808_v9 = vadd.s32 %v807_v52, %v805_v45 }
 0x661   :  { %v4322_v17 = vadd.s32 4294967295, %v834_v11  ;;  %vm853_vm3 = vcmp.eq.s32.totalorder %v5827_v63, %v4321_v8  ;;  %v4320_v11 = vadd.s32 4294967295, %v808_v9 }
 0x663   :  { %vm854_vm14 = vcmp.eq.s32.totalorder %v5827_v63, %v4322_v17  ;;  %v6066_v17 = vsel %vm853_vm3, 1.0, %v5548_v0  ;;  %vm852_vm7 = vcmp.eq.s32.totalorder %v5827_v63, %v4320_v11  ;;  %vm7840_vm3 = vmmov %vm7834_vm10 }
 0x664   :  { %v6050_v21 = vsel %vm854_vm14, 1.0, %v5548_v0  ;;  %v6071_v55 = vsel %vm852_vm7, 1.0, %v5548_v0  ;;  %v929_v29 = vmul.f32 %v6066_v17, %v5940_v31  ;;  %vm7838_vm14 = vmmov %vm7834_vm10  ;;  %v949_v31 = vmul.f32 %v6066_v17, %v5993_v61 }
 0x665   :  { %v930_v22 = vmul.f32 %v6050_v21, %v5951_v16  ;;  %v944_v30 = vmul.f32 %v6071_v55, %v5922_v56  ;;  %vm7841_vm7 = vmmov %vm7840_vm3  ;;  %v948_v49 = vmul.f32 %v6071_v55, %v5995_v5 }
 0x667   :  { %v962_v26 = vsel %vm7833_vm15, %v930_v22, 0.0  ;;  %vm7839_vm15 = vmmov %vm7834_vm10 }
 0x668   :  { %963 = vadd.xlane.f32.xlu1 %v962_v26 }
 0x66d   :  { %v738_v28 = vpop.permute.xlu1 %737 }
 0x66e   :  { %v736_v35 = vpop.permute.xlu0 %735  ;;  %v748_v38 = vsub.f32 %v6003_v6, %v738_v28  ;;  %v959_v28 = vsel %vm7836_vm12, %v929_v29, 0.0  ;;  %vm7844_vm12 = vmmov %vm7840_vm3 }
 0x66f   :  { %v747_v7 = vsub.f32 %v6009_v15, %v736_v35  ;;  %v946_v35 = vmul.f32 %v6050_v21, %v5908_v23  ;;  %v1019_v23 = vsel %vm7839_vm15, %v949_v31, 0.0  ;;  %vm7847_vm15 = vmmov %vm7840_vm3 }
 0x670   :  { %v754_v40 = vmul.f32 %v5308_v39, %v748_v38 }
 0x671   :  { %916 = vrot.lane.b32.xlu0 %v747_v7, %s5558_s12  ;;  %v752_v34 = vmul.f32 %v5310_v41, %v747_v7  ;;  %v950_v7 = vmul.f32 %v6050_v21, %v5991_v60  ;;  %v1004_v60 = vsel %vm7840_vm3, %v944_v30, 0.0 }
 0x672   :  { %v871_v10 = vpop.permute.xlu0 %870 }
 0x673   :  { %v933_v22 = vmul.f32 %v6066_v17, %v871_v10  ;;  %v1022_v39 = vsel %vm7838_vm14, %v950_v7, 0.0  ;;  %vm7846_vm14 = vmmov %vm7840_vm3 }
 0x675   :  { %886 = vrot.lane.b32.xlu0 %v754_v40, %s5558_s12  ;;  %v971_v58 = vsel %vm7834_vm10, %v933_v22, 0.0  ;;  %v5314_v40 = vpop.eup %5313  ;;  %vm7842_vm10 = vmmov %vm7840_vm3 }
 0x676   :  { %v869_v16 = vpop.permute.xlu0 %868 }
 0x677   :  { %v932_v57 = vmul.f32 %v6071_v55, %v869_v16 }
 0x679   :  { %918 = vrot.lane.b32.xlu1 %v748_v38, %s5558_s12  ;;  %884 = vrot.lane.b32.xlu0 %v752_v34, %s5558_s12  ;;  %v968_v26 = vsel %vm7835_vm11, %v932_v57, 0.0  ;;  %v1010_v38 = vsel %vm7837_vm13, %v946_v35, 0.0  ;;  %vm7843_vm11 = vmmov %vm7840_vm3 }
 0x67a   :  { %v742_v20 = vpop.permute.xlu0 %741  ;;  %vm7845_vm13 = vmmov %vm7840_vm3 }
 0x67b   :  { %v6089_v10 = vsub.f32 %v6021_v33, %v742_v20  ;;  %v928_v20 = vmul.f32 %v6071_v55, %v5936_v3  ;;  %v1016_v3 = vsel %vm7844_vm12, %v948_v49, 0.0 }
 0x67d   :  { %v758_v41 = vmul.f32 %v5314_v40, %v6089_v10  ;;  %v956_v56 = vsel %vm7841_vm7, %v928_v20, 0.0  ;;  %vm7848_vm7 = vmmov %vm7840_vm3  ;;  %v936_v20 = vmul.f32 %v6071_v55, %v6009_v15 }
 0x67e   :  { %v740_v25 = vpop.permute.xlu0 %739 }
 0x67f   :  { %v749_v42 = vsub.f32 %v6029_v37, %v740_v25 }
 0x681   :  { %920 = vrot.lane.b32.xlu0 %v749_v42, %s5558_s12  ;;  %v756_v44 = vmul.f32 %v5312_v1, %v749_v42 }
 0x685   :  { %888 = vrot.lane.b32.xlu0 %v756_v44, %s5558_s12  ;;  %v945_v44 = vmul.f32 %v6066_v17, %v5918_v53 }
 0x687   :  { %v1007_v46 = vsel %vm7843_vm11, %v945_v44, 0.0  ;;  %vm7850_vm11 = vmmov %vm7840_vm3 }
 0x69d   :  { %972 = vadd.xlane.f32.xlu1 %v971_v58  ;;  %v845_v58 = vcvt.f32.s32 %v6046_v50  ;;  %v938_v50 = vmul.f32 %v6050_v21, %v6029_v37 }
 0x69f   :  { %v846_v7 = vshll.u32 %v845_v58, 16 }
 0x6a1   :  { %969 = vadd.xlane.f32.xlu1 %v968_v26 }
 0x6a4   :  { %960 = vadd.xlane.f32.xlu0 %v959_v28 }
 0x6a8   :  { %1011 = vadd.xlane.f32.xlu0 %v1010_v38 }
 0x6ac   :  { %1023 = vadd.xlane.f32.xlu0 %v1022_v39 }
 0x6b0   :  { %1020 = vadd.xlane.f32.xlu0 %v1019_v23 }
 0x6b2   :  { %890 = vrot.lane.b32.xlu1 %v758_v41, %s5558_s12  ;;  %v986_v41 = vsel %vm7850_vm11, %v938_v50, 0.0  ;;  %vm7856_vm11 = vmmov %vm7840_vm3 }
 0x6b4   :  { %1005 = vadd.xlane.f32.xlu0 %v1004_v60  ;;  %v937_v60 = vmul.f32 %v6066_v17, %v6003_v6 }
 0x6b8   :  { %v841_v16 = vpop.xlane.xlu0 %840 }
 0x6b9   :  { %v844_v28 = vcvt.f32.s32 %v841_v16 }
 0x6bb   :  { %v847_v40 = vadd.s32 %v846_v7, %v844_v28 }
 0x6bc   :  { %v6097_v61 = vpop.permute.xlu0 %906 }
 0x6bd   :  { %v4323_v30 = vadd.s32 4294967295, %v847_v40 }
 0x6bf   :  { %vm855_vm12 = vcmp.eq.s32.totalorder %v5827_v63, %v4323_v30 }
 0x6c0   :  { %v875_v34 = vpop.permute.xlu0 %874 }
 0x6c4   :  { %v873_v25 = vpop.permute.xlu0 %872 }
 0x6c5   :  { %v934_v42 = vmul.f32 %v6050_v21, %v873_v25  ;;  %v6135_v25 = vsel %vm855_vm12, 1.0, %v5548_v0  ;;  %vm7857_vm12 = vmmov %vm7840_vm3 }
 0x6c7   :  { %v974_v1 = vsel %vm7842_vm10, %v934_v42, 0.0  ;;  %vm7849_vm10 = vmmov %vm7840_vm3  ;;  %v935_v42 = vmul.f32 %v6135_v25, %v875_v34 }
 0x6d6   :  { %957 = vadd.xlane.f32.xlu1 %v956_v56 }
 0x6da   :  { %975 = vadd.xlane.f32.xlu1 %v974_v1 }
 0x6de   :  { %1008 = vadd.xlane.f32.xlu1 %v1007_v46  ;;  %v951_v46 = vmul.f32 %v6135_v25, %v6097_v61 }
 0x6e0   :  { %v1025_v34 = vsel %vm7856_vm11, %v951_v46, 0.0 }
 0x6e2   :  { %1017 = vadd.xlane.f32.xlu1 %v1016_v3 }
 0x6e3   :  { %v917_v51 = vpop.permute.xlu0 %916 }
 0x6e4   :  { %v952_v39 = vmul.f32 %v6071_v55, %v917_v51 }
 0x6e6   :  { %v1028_v23 = vsel %vm7849_vm10, %v952_v39, 0.0  ;;  %vm7855_vm10 = vmmov %vm7840_vm3 }
 0x6e7   :  { %v887_v59 = vpop.permute.xlu0 %886 }
 0x6e8   :  { %v941_v62 = vmul.f32 %v6066_v17, %v887_v59 }
 0x6ea   :  { %v995_v45 = vsel %vm7845_vm13, %v941_v62, 0.0  ;;  %vm7851_vm13 = vmmov %vm7840_vm3 }
 0x6eb   :  { %996 = vadd.xlane.f32.xlu0 %v995_v45  ;;  %v885_v52 = vpop.permute.xlu0 %884  ;;  %v983_v16 = vsel %vm7851_vm13, %v937_v60, 0.0  ;;  %vm7858_vm13 = vmmov %vm7840_vm3 }
 0x6ec   :  { %v940_v53 = vmul.f32 %v6071_v55, %v885_v52  ;;  %v977_v55 = vsel %vm7840_vm3, %v935_v42, 0.0 }
 0x6ee   :  { %v992_v8 = vsel %vm7846_vm14, %v940_v53, 0.0  ;;  %vm7852_vm14 = vmmov %vm7840_vm3 }
 0x6ef   :  { %993 = vadd.xlane.f32.xlu1 %v992_v8  ;;  %v980_v37 = vsel %vm7852_vm14, %v936_v20, 0.0  ;;  %vm366_vm14 = vcmp.ge.f32.partialorder %v5880_v43, -4.0 }
 0x6f3   :  { %v921_v9 = vpop.permute.xlu0 %920 }
 0x6f4   :  { %v954_v5 = vmul.f32 %v6050_v21, %v921_v9 }
 0x6f5   :  { %v6115_v11 = vpop.xlane.xlu1 %963 }
 0x6f6   :  { %v1034_v22 = vsel %vm7847_vm15, %v954_v5, 0.0  ;;  %vm7853_vm15 = vmmov %vm7840_vm3 }
 0x6f7   :  { %1035 = vadd.xlane.f32.xlu1 %v1034_v22  ;;  %v889_v57 = vpop.permute.xlu0 %888 }
 0x6f8   :  { %v942_v29 = vmul.f32 %v6050_v21, %v889_v57  ;;  %v931_v21 = vmul.f32 %v6135_v25, %v5960_v18  ;;  %v947_v18 = vmul.f32 %v6135_v25, %v6035_v47 }
 0x6f9   :  { %v919_v26 = vpop.permute.xlu1 %918 }
 0x6fa   :  { %v953_v35 = vmul.f32 %v6066_v17, %v919_v26  ;;  %v998_v38 = vsel %vm7840_vm3, %v942_v29, 0.0  ;;  %v965_v6 = vsel %vm7853_vm15, %v931_v21, 0.0  ;;  %vm370_vm15 = vcmp.le.f32.partialorder %v5880_v43, 4.0 }
 0x6fb   :  { %999 = vadd.xlane.f32.xlu0 %v998_v38 }
 0x6fc   :  { %v1031_v31 = vsel %vm7848_vm7, %v953_v35, 0.0  ;;  %vm7854_vm7 = vmmov %vm7840_vm3 }
 0x6fd   :  { %1032 = vadd.xlane.f32.xlu1 %v1031_v31  ;;  %vm374_vm3 = vmand %vm366_vm14, %vm370_vm15  ;;  %vm368_vm15 = vcmp.ge.f32.partialorder %v5872_v19, -4.0 }
 0x701   :  { %1029 = vadd.xlane.f32.xlu1 %v1028_v23 }
 0x705   :  { %987 = vadd.xlane.f32.xlu1 %v986_v41 }
 0x709   :  { %984 = vadd.xlane.f32.xlu1 %v983_v16 }
 0x70d   :  { %981 = vadd.xlane.f32.xlu1 %v980_v37 }
 0x711   :  { %966 = vadd.xlane.f32.xlu1 %v965_v6  ;;  %922 = vrot.lane.b32.xlu0 %v6089_v10, %s5558_s12  ;;  %v1013_v10 = vsel %vm7855_vm10, %v947_v18, 0.0  ;;  %vm371_vm10 = vcmp.le.f32.partialorder %v5859_v24, 4.0 }
 0x72a   :  { %v973_v17 = vpop.xlane.xlu1 %972 }
 0x72b   :  { %5315 = vrcp.f32 %v973_v17 }
 0x72e   :  { %v970_v15 = vpop.xlane.xlu1 %969 }
 0x730   :  { %978 = vadd.xlane.f32.xlu0 %v977_v55 }
 0x731   :  { %v961_v49 = vpop.xlane.xlu0 %960 }
 0x732   :  { %v891_v56 = vpop.permute.xlu1 %890  ;;  %v1041_v47 = vsub.f32 %v4310_v48, %v961_v49  ;;  %v1042_v48 = vsub.f32 %v4311_v27, %v6115_v11 }
 0x733   :  { %v943_v1 = vmul.f32 %v6135_v25, %v891_v56 }
 0x735   :  { %v1001_v44 = vsel %vm7854_vm7, %v943_v1, 0.0  ;;  %v6153_v3 = vpop.xlane.xlu0 %1011  ;;  %v5316_v52 = vpop.eup %5315  ;;  %vm367_vm7 = vcmp.ge.f32.partialorder %v5859_v24, -4.0 }
 0x736   :  { %1002 = vadd.xlane.f32.xlu1 %v1001_v44  ;;  %v1047_v61 = vmul.f32 %v5316_v52, %v1041_v47 }
 0x738   :  { %v1053_v22 = vsub.f32 1.0, %v1047_v61 }
 0x739   :  { %v1024_v51 = vpop.xlane.xlu0 %1023 }
 0x73a   :  { %1014 = vadd.xlane.f32.xlu1 %v1013_v10  ;;  %v1057_v29 = vmul.f32 %v1053_v22, %v1047_v61 }
 0x73d   :  { %v1021_v62 = vpop.xlane.xlu0 %1020 }
 0x73e   :  { %1026 = vadd.xlane.f32.xlu1 %v1025_v34 }
 0x741   :  { %v6157_v53 = vpop.xlane.xlu0 %1005 }
 0x763   :  { %v958_v59 = vpop.xlane.xlu1 %957 }
 0x764   :  { %v1040_v28 = vsub.f32 %v4309_v32, %v958_v59  ;;  %v1082_v32 = vadd.f32 %v1024_v51, %v6153_v3  ;;  %v939_v51 = vmul.f32 %v6135_v25, %v6021_v33 }
 0x767   :  { %v976_v45 = vpop.xlane.xlu1 %975 }
 0x768   :  { %5317 = vrcp.f32 %v976_v45 }
 0x769   :  { %5319 = vrcp.f32 %v970_v15 }
 0x76b   :  { %v1009_v8 = vpop.xlane.xlu1 %1008 }
 0x76c   :  { %v1081_v57 = vadd.f32 %v1021_v62, %v1009_v8  ;;  %v1069_v55 = vmul.f32 %v1057_v29, %v1009_v8 }
 0x76f   :  { %v1018_v26 = vpop.xlane.xlu1 %1017 }
 0x770   :  { %v1080_v41 = vadd.f32 %v1018_v26, %v6157_v53 }
 0x772   :  { %v5318_v35 = vpop.eup %5317 }
 0x773   :  { %v5320_v7 = vpop.eup %5319  ;;  %v1049_v40 = vmul.f32 %v5318_v35, %v1042_v48 }
 0x774   :  { %v1045_v31 = vmul.f32 %v5320_v7, %v1040_v28 }
 0x775   :  { %v1054_v20 = vsub.f32 1.0, %v1049_v40 }
 0x776   :  { %v1052_v16 = vsub.f32 1.0, %v1045_v31 }
 0x777   :  { %v1058_v11 = vmul.f32 %v1054_v20, %v1049_v40 }
 0x778   :  { %v997_v9 = vpop.xlane.xlu0 %996  ;;  %v1056_v27 = vmul.f32 %v1052_v16, %v1045_v31 }
 0x779   :  { %v1085_v5 = vmul.f32 2.0, %v997_v9  ;;  %v1061_v60 = vmul.f32 %v1047_v61, %v997_v9 }
 0x77b   :  { %v1089_v58 = vsub.f32 %v1081_v57, %v1085_v5  ;;  %v1065_v42 = vmul.f32 %v1061_v60, %v1047_v61  ;;  %v989_v61 = vsel %vm7858_vm13, %v939_v51, 0.0  ;;  %vm375_vm13 = vmand %vm367_vm7, %vm371_vm10  ;;  %vm1129_vm10 = vcmask 15360  }
 0x77c   :  { %v994_v39 = vpop.xlane.xlu1 %993 }
 0x77d   :  { %v1093_v38 = vmul.f32 %v1089_v58, %v1057_v29  ;;  %v1084_v50 = vmul.f32 2.0, %v994_v39  ;;  %v1073_v34 = vadd.f32 %v1069_v55, %v1065_v42  ;;  %v1060_v8 = vmul.f32 %v1045_v31, %v994_v39 }
 0x77e   :  { %v1068_v29 = vmul.f32 %v1056_v27, %v6157_v53 }
 0x77f   :  { %v1097_v23 = vadd.f32 %v1093_v38, %v997_v9  ;;  %v1088_v37 = vsub.f32 %v1080_v41, %v1084_v50  ;;  %v1070_v9 = vmul.f32 %v1058_v11, %v6153_v3  ;;  %v1064_v57 = vmul.f32 %v1060_v8, %v1045_v31 }
 0x781   :  { %5321 = vrcp.f32 %v1097_v23  ;;  %v1092_v56 = vmul.f32 %v1088_v37, %v1056_v27  ;;  %v1072_v28 = vadd.f32 %v1068_v29, %v1064_v57  ;;  %v4328_v23 = vld [vmem:[%s7809_s1 + $0x4] sm:$0xf]  ;;  %v4340_v29 = vld [vmem:[%s7811_s3 + $0xb8] sm:$0xff] }
 0x782   :  { %4768 = vmatpush3.msk.msra.mxu0 %vm84_vm0, %v4328_v23 }
 0x783   :  { %v1096_v59 = vadd.f32 %v1092_v56, %v994_v39  ;;  %5080 = vmatprep.subr.bf16.mxu0 %v5550_v4 }
 0x784   :  { %v1036_v30 = vpop.xlane.xlu1 %1035 }
 0x788   :  { %v1000_v2 = vpop.xlane.xlu0 %999 }
 0x789   :  { %v1086_v21 = vmul.f32 2.0, %v1000_v2  ;;  %v1062_v18 = vmul.f32 %v1049_v40, %v1000_v2 }
 0x78a   :  { %v1033_v6 = vpop.xlane.xlu1 %1032 }
 0x78b   :  { %v1090_v17 = vsub.f32 %v1082_v32, %v1086_v21  ;;  %v1077_v62 = vmul.f32 %v1073_v34, %v1033_v6  ;;  %v5322_v45 = vpop.eup %5321  ;;  %v1066_v52 = vmul.f32 %v1062_v18, %v1049_v40 }
 0x78c   :  { %v923_v15 = vpop.permute.xlu0 %922 }
 0x78d   :  { %v1094_v1 = vmul.f32 %v1090_v17, %v1058_v11  ;;  %v955_v44 = vmul.f32 %v6135_v25, %v923_v15  ;;  %v1103_v5 = vmul.f32 %v5322_v45, %v1077_v62  ;;  %v1074_v33 = vadd.f32 %v1070_v9, %v1066_v52  ;;  %v4334_v62 = vld [vmem:[%s7811_s3 + $0x88] sm:$0xff]  ;;  %v4336_v9 = vld [vmem:[%s7811_s3 + $0x98] sm:$0xff] }
 0x78e   :  { %v1030_v46 = vpop.xlane.xlu1 %1029 }
 0x78f   :  { %v1098_v10 = vadd.f32 %v1094_v1, %v1000_v2  ;;  %v1037_v49 = vsel %vm7857_vm12, %v955_v44, 0.0  ;;  %v1078_v26 = vmul.f32 %v1074_v33, %v1036_v30  ;;  %v1076_v38 = vmul.f32 %v1072_v28, %v1030_v46  ;;  %v4342_v28 = vld [vmem:[%s7811_s3 + $0xc8] sm:$0xff] }
 0x790   :  { %1038 = vadd.xlane.f32.xlu1 %v1037_v49 }
 0x791   :  { %5323 = vrcp.f32 %v1098_v10 }
 0x792   :  { %v988_v47 = vpop.xlane.xlu1 %987  ;;  %5325 = vrcp.f32 %v1096_v59  ;;  %v4333_v59 = vld [vmem:[%s7811_s3 + $0x80] sm:$0xff] }
 0x794   :  { %990 = vadd.xlane.f32.xlu1 %v989_v61 }
 0x796   :  { %v985_v25 = vpop.xlane.xlu1 %984 }
 0x797   :  { %v1109_v22 = vadd.f32 %v1103_v5, %v985_v25  ;;  %v4337_v25 = vld [vmem:[%s7811_s3 + $0xa0] sm:$0xff] }
 0x799   :  { %v1113_v58 = vsel %vm374_vm3, %v1109_v22, %v5880_v43  ;;  %v5547_v43 = vld [vmem:[%s7810_s0] sm:$0xff]  ;;  %vm372_vm3 = vcmp.le.f32.partialorder %v5872_v19, 4.0  ;;  %v4338_v22 = vld [vmem:[%s7811_s3 + $0xa8] sm:$0xff] }
 0x79a   :  { %1121 = vrot.lane.b32.xlu0 %v1113_v58, %s5563_s16  ;;  %v982_v39 = vpop.xlane.xlu1 %981  ;;  %vm365_vm11 = vcmp.ge.f32.partialorder %v5547_v43, -4.0  ;;  %vm369_vm12 = vcmp.le.f32.partialorder %v5547_v43, 4.0  ;;  %vm376_vm7 = vmand %vm368_vm15, %vm372_vm3  ;;  %v5087_v57 = vpack.c.bf16 %v4338_v22, %v4337_v25  ;;  %v4339_v58 = vld [vmem:[%s7811_s3 + $0xb0] sm:$0xff] }
 0x79b   :  { %v5324_v3 = vpop.eup %5323  ;;  %vm373_vm14 = vmand %vm365_vm11, %vm369_vm12  ;;  %vm1131_vm11 = vcmask 23552   ;;  %vm7859_vm12 = vcmask 31744  }
 0x79c   :  { %v1105_v35 = vmul.f32 %v5324_v3, %v1078_v26  ;;  %v5326_v48 = vpop.eup %5325  ;;  %v5090_v26 = vpack.c.bf16 %v4340_v29, %v4339_v58  ;;  %v4341_v3 = vld [vmem:[%s7811_s3 + $0xc0] sm:$0xff] }
 0x79d   :  { %v1101_v31 = vmul.f32 %v5326_v48, %v1076_v38  ;;  %v4343_v38 = vld [vmem:[%s7811_s3 + $0xd0] sm:$0xff]  ;;  %v4344_v48 = vld [vmem:[%s7811_s3 + $0xd8] sm:$0xff] }
 0x79e   :  { %v1110_v7 = vadd.f32 %v1105_v35, %v988_v47  ;;  %v967_v41 = vpop.xlane.xlu1 %966  ;;  %v5081_v47 = vpack.c.bf16 %v4334_v62, %v4333_v59  ;;  %v5093_v35 = vpack.c.bf16 %v4342_v28, %v4341_v3  ;;  %v4350_v62 = vld [vmem:[%s7814_s4 + $0x1] ss:$0 sm:$0xff] }
 0x79f   :  { %v1108_v53 = vadd.f32 %v1101_v31, %v982_v39  ;;  %v1043_v20 = vsub.f32 %v4312_v36, %v967_v41  ;;  %v4345_v39 = vld [vmem:[%s7811_s3 + $0xe0] sm:$0xff]  ;;  %v4346_v31 = vld [vmem:[%s7811_s3 + $0xe8] sm:$0xff]  ;;  %v4353_v41 = vld [vmem:[%s7812_s5 + $0x90] sm:$0xff] }
 0x7a0   :  { %v1114_v40 = vsel %vm375_vm13, %v1110_v7, %v5859_v24  ;;  %v5096_v7 = vpack.c.bf16 %v4344_v48, %v4343_v38  ;;  %vm7860_vm13 = vcmask 162896  }
 0x7a1   :  { %v1112_v50 = vsel %vm373_vm14, %v1108_v53, %v5547_v43  ;;  %v5099_v43 = vpack.c.bf16 %v4346_v31, %v4345_v39  ;;  %v4347_v53 = vld [vmem:[%s7811_s3 + $0xf0] sm:$0xff]  ;;  %vm7861_vm14 = vcmask 80896   ;;  %vm7862_vm15 = vmmov %vm7860_vm13 }
 0x7a2   :  { %vm7863_vm3 = vmmov %vm7860_vm13 }
 0x7a5   :  { %1117 = vrot.lane.b32.xlu1 %v1114_v40, %s5562_s15  ;;  %v4348_v40 = vld [vmem:[%s7811_s3 + $0xf8] sm:$0xff] }
 0x7a6   :  { %v5102_v23 = vpack.c.bf16 %v4348_v40, %v4347_v53 }
 0x7a9   :  { %1125 = vrot.lane.b32.xlu1 %v1112_v50, %s5564_s21  ;;  %v4351_v50 = vld [vmem:[%s7812_s5 + $0x80] sm:$0xff] }
 0x7bd   :  { %v979_v30 = vpop.xlane.xlu0 %978 }
 0x7be   :  { %5327 = vrcp.f32 %v979_v30  ;;  %v4352_v30 = vld [vmem:[%s7812_s5 + $0x88] sm:$0xff] }
 0x7c3   :  { %v1003_v60 = vpop.xlane.xlu1 %1002 }
 0x7c4   :  { %v1087_v6 = vmul.f32 2.0, %v1003_v60 }
 0x7c7   :  { %v1015_v24 = vpop.xlane.xlu1 %1014 }
 0x7c8   :  { %v5328_v16 = vpop.eup %5327 }
 0x7c9   :  { %v1051_v2 = vmul.f32 %v5328_v16, %v1043_v20  ;;  %v4355_v20 = vld [vmem:[%s7812_s5 + $0xa0] sm:$0xff] }
 0x7cb   :  { %v1027_v32 = vpop.xlane.xlu1 %1026  ;;  %v1055_v37 = vsub.f32 1.0, %v1051_v2  ;;  %v1063_v15 = vmul.f32 %v1051_v2, %v1003_v60 }
 0x7cc   :  { %v1083_v21 = vadd.f32 %v1027_v32, %v1015_v24 }
 0x7cd   :  { %v1059_v27 = vmul.f32 %v1055_v37, %v1051_v2  ;;  %v1067_v56 = vmul.f32 %v1063_v15, %v1051_v2  ;;  %v4356_v2 = vld [vmem:[%s7812_s5 + $0xa8] sm:$0xff]  ;;  %v4357_v37 = vld [vmem:[%s7812_s5 + $0xb0] sm:$0xff]  ;;  %v4362_v15 = vld [vmem:[%s7812_s5 + $0xd8] sm:$0xff] }
 0x7ce   :  { %v1091_v11 = vsub.f32 %v1083_v21, %v1087_v6  ;;  %v5111_v32 = vpack.c.bf16 %v4356_v2, %v4355_v20  ;;  %v4358_v21 = vld [vmem:[%s7812_s5 + $0xb8] sm:$0xff] }
 0x7cf   :  { %v1071_v55 = vmul.f32 %v1059_v27, %v1015_v24  ;;  %v4354_v24 = vld [vmem:[%s7812_s5 + $0x98] sm:$0xff]  ;;  %v5114_v6 = vpack.c.bf16 %v4358_v21, %v4357_v37 }
 0x7d0   :  { %v1095_v17 = vmul.f32 %v1091_v11, %v1059_v27  ;;  %v5108_v16 = vpack.c.bf16 %v4354_v24, %v4353_v41  ;;  %v4359_v27 = vld [vmem:[%s7812_s5 + $0xc0] sm:$0xff]  ;;  %v4360_v11 = vld [vmem:[%s7812_s5 + $0xc8] sm:$0xff] }
 0x7d1   :  { %v1075_v1 = vadd.f32 %v1071_v55, %v1067_v56  ;;  %v4363_v56 = vld [vmem:[%s7812_s5 + $0xe0] sm:$0xff] }
 0x7d2   :  { %v1099_v42 = vadd.f32 %v1095_v17, %v1003_v60  ;;  %v5105_v60 = vpack.c.bf16 %v4352_v30, %v4351_v50  ;;  %v5117_v17 = vpack.c.bf16 %v4360_v11, %v4359_v27 }
 0x7d4   :  { %5329 = vrcp.f32 %v1099_v42  ;;  %5106 = vmatpush3.bf16.msra.mxu1 %v5105_v60  ;;  %v4361_v42 = vld [vmem:[%s7812_s5 + $0xd0] sm:$0xff] }
 0x7d5   :  { %5107 = vmatprep.subr.bf16.mxu1 %v5550_v4  ;;  %v5120_v55 = vpack.c.bf16 %v4362_v15, %v4361_v42 }
 0x7d8   :  { %5109 = vmatpush3.bf16.msra.mxu1 %v5108_v16 }
 0x7d9   :  { %5110 = vmatprep.subr.bf16.mxu1 %v5550_v4 }
 0x7dc   :  { %5112 = vmatpush3.bf16.msra.mxu1 %v5111_v32 }
 0x7dd   :  { %5113 = vmatprep.subr.bf16.mxu1 %v5550_v4 }
 0x7de   :  { %v5330_v46 = vpop.eup %5329 }
 0x7e0   :  { %5115 = vmatpush3.bf16.msra.mxu1 %v5114_v6 }
 0x7e1   :  { %5116 = vmatprep.subr.bf16.mxu1 %v5550_v4 }
 0x7e4   :  { %5118 = vmatpush3.bf16.msra.mxu1 %v5117_v17 }
 0x7e5   :  { %5119 = vmatprep.subr.bf16.mxu1 %v5550_v4 }
 0x7e8   :  { %5121 = vmatpush3.bf16.msra.mxu1 %v5120_v55 }
 0x7e9   :  { %5122 = vmatprep.subr.bf16.mxu1 %v5550_v4 }
 0x80c   :  { %v1122_v52 = vpop.permute.xlu0 %1121 }
 0x81d   :  { %v1039_v44 = vpop.xlane.xlu1 %1038 }
 0x81e   :  { %v1079_v18 = vmul.f32 %v1075_v1, %v1039_v44  ;;  %v4364_v1 = vld [vmem:[%s7812_s5 + $0xe8] sm:$0xff] }
 0x81f   :  { %v5123_v44 = vpack.c.bf16 %v4364_v1, %v4363_v56 }
 0x820   :  { %v1107_v10 = vmul.f32 %v5330_v46, %v1079_v18  ;;  %v4330_v18 = vld [vmem:[%s7813_s2 + $0x1] ss:$0 sm:$0xff] }
 0x821   :  { %v991_v36 = vpop.xlane.xlu1 %990  ;;  %5124 = vmatpush3.bf16.msra.mxu1 %v5123_v44 }
 0x822   :  { %v1111_v34 = vadd.f32 %v1107_v10, %v991_v36  ;;  %5125 = vmatprep.subr.bf16.mxu1 %v5550_v4 }
 0x824   :  { %v1115_v49 = vsel %vm376_vm7, %v1111_v34, %v5872_v19  ;;  %v4335_v19 = vld [vmem:[%s7811_s3 + $0x90] sm:$0xff]  ;;  %vm7864_vm7 = vmmov %vm7861_vm14 }
 0x825   :  { %v1118_v51 = vpop.permute.xlu1 %1117  ;;  %v5084_v33 = vpack.c.bf16 %v4336_v9, %v4335_v19 }
 0x826   :  { %v1128_v45 = vsel %vm397_vm9, %v1115_v49, %v1118_v51  ;;  %v4365_v49 = vld [vmem:[%s7812_s5 + $0xf0] sm:$0xff]  ;;  %v4366_v51 = vld [vmem:[%s7812_s5 + $0xf8] sm:$0xff] }
 0x827   :  { %v1130_v8 = vsel %vm1129_vm10, %v1128_v45, %v1122_v52  ;;  %v5126_v59 = vpack.c.bf16 %v4366_v51, %v4365_v49 }
 0x829   :  { %v1126_v61 = vpop.permute.xlu1 %1125  ;;  %5127 = vmatpush3.bf16.msra.mxu1 %v5126_v59 }
 0x82a   :  { %v6210_v5 = vsel %vm1131_vm11, %v1130_v8, %v1126_v61  ;;  %4854 = vmatprep.subr.mxu1 %v5548_v0  ;;  %v4368_v8 = vld [vmem:[%s7815_s6 + $0x1] ss:$0 sm:$0xff] }
 0x82b   :  { %4770 = vmatmul.mubr.msk.f32.vlgmr.msra.gmra.mrb[4].mxu0 %vm7859_vm12, %v6210_v5  ;;  %vm7865_vm12 = vmmov %vm7863_vm3 }
 0x82c   :  { %5082 = vmatpush3.bf16.msra.mxu0 %v5081_v47  ;;  %4804 = vmatprep.mubr.msk.f32.mxu0 %vm7829_vm8, %v5548_v0 }
 0x82d   :  { %5083 = vmatprep.subr.bf16.mxu0 %v5550_v4 }
 0x830   :  { %5085 = vmatpush3.bf16.msra.mxu0 %v5084_v33 }
 0x831   :  { %5086 = vmatprep.subr.bf16.mxu0 %v5550_v4 }
 0x834   :  { %5088 = vmatpush3.bf16.msra.mxu0 %v5087_v57 }
 0x835   :  { %5089 = vmatprep.subr.bf16.mxu0 %v5550_v4 }
 0x838   :  { %5091 = vmatpush3.bf16.msra.mxu0 %v5090_v26 }
 0x839   :  { %5092 = vmatprep.subr.bf16.mxu0 %v5550_v4 }
 0x83c   :  { %5094 = vmatpush3.bf16.msra.mxu0 %v5093_v35 }
 0x83d   :  { %5095 = vmatprep.subr.bf16.mxu0 %v5550_v4 }
 0x840   :  { %5097 = vmatpush3.bf16.msra.mxu0 %v5096_v7 }
 0x841   :  { %5098 = vmatprep.subr.bf16.mxu0 %v5550_v4 }
 0x844   :  { %5100 = vmatpush3.bf16.msra.mxu0 %v5099_v43 }
 0x845   :  { %5101 = vmatprep.subr.bf16.mxu0 %v5550_v4 }
 0x848   :  { %5103 = vmatpush3.bf16.msra.mxu0 %v5102_v23 }
 0x849   :  { %5129 = vmatprep.subr.msk.bf16.mxu0 %vm5838_vm4, %v5559_v13 }
 0x8fe   :  { %v1215_v46 = vpop.f32.mrb[4].mxu0 }
 0x8ff   :  { %v1216_v10 = vadd.f32 %v4330_v18, %v1215_v46  ;;  %v4771_v36 = vpop.f32.mrb[5].mxu0 }
 0x901   :  { %v1219_v34 = vmax.f32 %v1216_v10, 0.0 }
 0x903   :  { %4805 = vmatmul.mubr.f32.vlgmr.msra.gmra.mrb[6].mxu0 %v1219_v34 }
 0x904   :  { %5131 = vmatpush3.bf16.msk.msra.mxu0 %vm5838_vm4, %v5559_v13 }
 0x905   :  { %4846 = vmatprep.subr.msk.mxu0 %vm84_vm0, %v5851_v14 }
 0x908   :  { %4847 = vmatpush3.msk.msra.mxu0 %vm84_vm0, %v5851_v14 }
 0x909   :  { %5156 = vmatprep.subr.bf16.mxu0 %v5550_v4 }
 0x9d6   :  { %v1311_v45 = vpop.f32.mrb[6].mxu0 }
 0x9d7   :  { %v1312_v52 = vadd.f32 %v4350_v62, %v1311_v45  ;;  %v4806_v47 = vpop.f32.mrb[7].mxu0 }
 0x9d9   :  { %v1315_v61 = vmax.f32 %v1312_v52, 0.0 }
 0x9db   :  { %4840 = vmatmul.mubr.f32.vlgmr.msra.gmra.mrb[6].mxu1 %v1315_v61 }
 0x9dc   :  { %4856 = vmatprep.mubr.msk.f32.mxu1 %vm7829_vm8, %v5548_v0 }
 0xaae   :  { %v1407_v19 = vpop.f32.mrb[6].mxu1 }
 0xaaf   :  { %v6337_v9 = vadd.f32 %v4368_v8, %v1407_v19  ;;  %v4841_v33 = vpop.f32.mrb[7].mxu1 }
 0xab1   :  { %1418 = vrot.lane.b32.xlu0 %v6337_v9, %s5551_s29  ;;  %1412 = vrot.lane.b32.xlu1 %v6337_v9, %s5552_s30  ;;  %v1558_v25 = vsel %vm7860_vm13, %v6337_v9, -inf  ;;  %v1506_v22 = vsel %vm7861_vm14, %v6337_v9, -inf  ;;  %vm7866_vm13 = vmmov %vm7864_vm7 }
 0xab2   :  { %vm7867_vm14 = vmmov %vm7864_vm7 }
 0xab5   :  { %1415 = vrot.lane.b32.xlu1 %v6337_v9, %s5553_s8 }
 0xad9   :  { %1559 = vmax.xlane.f32.xlu1 %v1558_v25 }
 0xadd   :  { %1507 = vmax.xlane.f32.xlu1 %v1506_v22 }
 0xb23   :  { %v6349_v57 = vpop.permute.xlu1 %1412  ;;  %v6359_v28 = vpop.permute.xlu0 %1418 }
 0xb24   :  { %v1561_v58 = vsel %vm7862_vm15, %v6349_v57, -inf  ;;  %v1567_v35 = vsel %vm7865_vm12, %v6359_v28, -inf  ;;  %v1509_v38 = vsel %vm7866_vm13, %v6349_v57, -inf  ;;  %v1515_v48 = vsel %vm7867_vm14, %v6359_v28, -inf  ;;  %vm7868_vm15 = vmmov %vm7864_vm7 }
 0xb25   :  { %1562 = vmax.xlane.f32.xlu0 %v1561_v58 }
 0xb27   :  { %v6353_v29 = vpop.permute.xlu1 %1415 }
 0xb28   :  { %v1564_v26 = vsel %vm7863_vm3, %v6353_v29, -inf  ;;  %v1512_v3 = vsel %vm7864_vm7, %v6353_v29, -inf  ;;  %vm7869_vm3 = vmmov %vm7864_vm7 }
 0xb29   :  { %1565 = vmax.xlane.f32.xlu0 %v1564_v26  ;;  %1513 = vmax.xlane.f32.xlu1 %v1512_v3  ;;  %vm7870_vm7 = vmmov %vm7869_vm3 }
 0xb2a   :  { %vm7871_vm12 = vmmov %vm7869_vm3 }
 0xb2b   :  { %vm7872_vm13 = vmmov %vm7869_vm3 }
 0xb2c   :  { %vm7873_vm14 = vmmov %vm7869_vm3 }
 0xb2d   :  { %1568 = vmax.xlane.f32.xlu0 %v1567_v35 }
 0xb31   :  { %1510 = vmax.xlane.f32.xlu0 %v1509_v38 }
 0xb35   :  { %1516 = vmax.xlane.f32.xlu0 %v1515_v48 }
 0xb66   :  { %v1560_v7 = vpop.xlane.xlu1 %1559 }
 0xb67   :  { %v1570_v39 = vsub.f32 %v6337_v9, %v1560_v7 }
 0xb69   :  { %v1574_v31 = vmul.f32 1.442695, %v1570_v39 }
 0xb6a   :  { %v1508_v37 = vpop.xlane.xlu1 %1507 }
 0xb6b   :  { %5331 = vpow2.f32 %v1574_v31  ;;  %v1518_v6 = vsub.f32 %v6337_v9, %v1508_v37 }
 0xb6d   :  { %v1522_v17 = vmul.f32 1.442695, %v1518_v6 }
 0xb75   :  { %v6368_v43 = vpop.eup %5331 }
 0xb76   :  { %1586 = vrot.lane.b32.xlu1 %v6368_v43, %s5554_s9 }
 0xbb2   :  { %v1563_v53 = vpop.xlane.xlu0 %1562 }
 0xbb3   :  { %v1571_v40 = vsub.f32 %v6349_v57, %v1563_v53 }
 0xbb5   :  { %v1576_v23 = vmul.f32 1.442695, %v1571_v40 }
 0xbb6   :  { %v1566_v50 = vpop.xlane.xlu0 %1565  ;;  %v1514_v11 = vpop.xlane.xlu1 %1513 }
 0xbb7   :  { %5333 = vpow2.f32 %v1576_v23  ;;  %v1572_v30 = vsub.f32 %v6353_v29, %v1566_v50  ;;  %v1520_v42 = vsub.f32 %v6353_v29, %v1514_v11  ;;  %v4369_v50 = vclamps-f32 %v6210_v5, 4.0 }
 0xbb9   :  { %v1578_v41 = vmul.f32 1.442695, %v1572_v30  ;;  %v1526_v56 = vmul.f32 1.442695, %v1520_v42 }
 0xbba   :  { %v1569_v60 = vpop.xlane.xlu0 %1568 }
 0xbbb   :  { %5335 = vpow2.f32 %v1578_v41  ;;  %v1573_v24 = vsub.f32 %v6359_v28, %v1569_v60 }
 0xbbd   :  { %v1580_v16 = vmul.f32 1.442695, %v1573_v24 }
 0xbbe   :  { %v1511_v21 = vpop.xlane.xlu0 %1510 }
 0xbbf   :  { %5337 = vpow2.f32 %v1580_v16  ;;  %v1519_v27 = vsub.f32 %v6349_v57, %v1511_v21 }
 0xbc0   :  { %5339 = vpow2.f32 %v1522_v17 }
 0xbc1   :  { %v6375_v20 = vpop.eup %5333  ;;  %v1524_v15 = vmul.f32 1.442695, %v1519_v27 }
 0xbc2   :  { %1588 = vrot.lane.b32.xlu0 %v6375_v20, %s5554_s9  ;;  %v1517_v55 = vpop.xlane.xlu0 %1516 }
 0xbc3   :  { %5341 = vpow2.f32 %v1524_v15  ;;  %v1521_v1 = vsub.f32 %v6359_v28, %v1517_v55 }
 0xbc4   :  { %5343 = vpow2.f32 %v1526_v56 }
 0xbc5   :  { %v6379_v2 = vpop.eup %5335  ;;  %v1528_v44 = vmul.f32 1.442695, %v1521_v1 }
 0xbc6   :  { %1590 = vrot.lane.b32.xlu1 %v6379_v2, %s5554_s9 }
 0xbc7   :  { %5345 = vpow2.f32 %v1528_v44 }
 0xbc9   :  { %v6383_v32 = vpop.eup %5337 }
 0xbca   :  { %1592 = vrot.lane.b32.xlu1 %v6383_v32, %s5554_s9  ;;  %v5340_v46 = vpop.eup %5339 }
 0xbcb   :  { %v1530_v34 = vsel %vm7869_vm3, %v5340_v46, 0.0 }
 0xbcd   :  { %v5342_v36 = vpop.eup %5341 }
 0xbce   :  { %v1533_v49 = vsel %vm7870_vm7, %v5342_v36, 0.0  ;;  %v5344_v51 = vpop.eup %5343  ;;  %vm7875_vm7 = vmmov %vm7869_vm3 }
 0xbcf   :  { %v1536_v59 = vsel %vm7871_vm12, %v5344_v51, 0.0  ;;  %vm7876_vm12 = vmmov %vm7869_vm3 }
 0xbd1   :  { %v6395_v62 = vpop.eup %5345 }
 0xbd2   :  { %v1539_v45 = vsel %vm7872_vm13, %v6395_v62, 0.0  ;;  %vm7877_vm13 = vmmov %vm7869_vm3 }
 0xbe8   :  { %v1587_v18 = vpop.permute.xlu1 %1586 }
 0xbe9   :  { %v1598_v10 = vsel %vm7868_vm15, %v1587_v18, 0.0  ;;  %vm7874_vm15 = vmmov %vm7869_vm3 }
 0xbea   :  { %1599 = vadd.xlane.f32.xlu0 %v1598_v10 }
 0xbee   :  { %1531 = vadd.xlane.f32.xlu1 %v1530_v34  ;;  %1534 = vadd.xlane.f32.xlu0 %v1533_v49 }
 0xbf2   :  { %1537 = vadd.xlane.f32.xlu1 %v1536_v59 }
 0xbf6   :  { %1540 = vadd.xlane.f32.xlu1 %v1539_v45 }
 0xc07   :  { %1424 = vrot.lane.b32.xlu1 %v6210_v5, %s5556_s10 }
 0xc34   :  { %v1589_v52 = vpop.permute.xlu0 %1588 }
 0xc35   :  { %v1601_v47 = vsel %vm7873_vm14, %v1589_v52, 0.0  ;;  %vm7878_vm14 = vmmov %vm7869_vm3 }
 0xc36   :  { %1602 = vadd.xlane.f32.xlu0 %v1601_v47 }
 0xc38   :  { %v1591_v61 = vpop.permute.xlu1 %1590 }
 0xc39   :  { %v1604_v8 = vsel %vm7874_vm15, %v1591_v61, 0.0  ;;  %vm7879_vm15 = vmmov %vm7869_vm3 }
 0xc3a   :  { %1605 = vadd.xlane.f32.xlu0 %v1604_v8 }
 0xc3c   :  { %v1593_v19 = vpop.permute.xlu1 %1592 }
 0xc3d   :  { %v1607_v33 = vsel %vm7869_vm3, %v1593_v19, 0.0 }
 0xc3e   :  { %1608 = vadd.xlane.f32.xlu0 %v1607_v33 }
 0xc54   :  { %1421 = vrot.lane.b32.xlu0 %v6210_v5, %s5558_s12 }
 0xc58   :  { %1427 = vrot.lane.b32.xlu0 %v6210_v5, %s5557_s11 }
 0xc77   :  { %v1600_v25 = vpop.xlane.xlu0 %1599 }
 0xc78   :  { %5347 = vrcp.f32 %v1600_v25 }
 0xc7b   :  { %v1532_v22 = vpop.xlane.xlu1 %1531 }
 0xc7c   :  { %5349 = vrcp.f32 %v1532_v22 }
 0xc7f   :  { %v1538_v58 = vpop.xlane.xlu1 %1537 }
 0xc82   :  { %v5348_v26 = vpop.eup %5347 }
 0xc83   :  { %v1541_v3 = vpop.xlane.xlu1 %1540  ;;  %v1611_v35 = vmul.f32 %v5348_v26, %v6368_v43  ;;  %v1535_v43 = vpop.xlane.xlu0 %1534 }
 0xc84   :  { %5351 = vrcp.f32 %v1535_v43 }
 0xc85   :  { %v1618_v31 = vmul.f32 0.99, %v1611_v35  ;;  %5353 = vrcp.f32 %v1538_v58 }
 0xc86   :  { %v5350_v38 = vpop.eup %5349 }
 0xc87   :  { %v6409_v48 = vpop.permute.xlu1 %1424  ;;  %v1543_v39 = vmul.f32 %v5350_v38, %v5340_v46  ;;  %v1622_v23 = vadd.f32 0.001, %v1618_v31 }
 0xc88   :  { %v4371_v7 = vclamps-f32 %v6409_v48, 4.0 }
 0xc89   :  { %v1550_v53 = vmul.f32 0.99, %v1543_v39 }
 0xc8a   :  { %1835 = vperm.xlu1 %5257, %v4371_v7  }
 0xc8b   :  { %v1554_v40 = vadd.f32 0.001, %v1550_v53 }
 0xc8d   :  { %v1626_v30 = vsel %vm7875_vm7, %v1554_v40, %v1622_v23  ;;  %vm7880_vm7 = vmmov %vm7869_vm3 }
 0xc8e   :  { %1825 = vperm.xlu1 %5257, %v4369_v50   ;;  %4848 = vmatprep.mubr.msk.f32.mxu0 %vm568_vm1, %v1626_v30  ;;  %v5352_v60 = vpop.eup %5351 }
 0xc8f   :  { %v1545_v16 = vmul.f32 %v5352_v60, %v5342_v36  ;;  %v5354_v21 = vpop.eup %5353 }
 0xc91   :  { %v1551_v27 = vmul.f32 0.99, %v1545_v16 }
 0xc92   :  { %1452 = vrot.lane.b32.xlu1 %v6349_v57, %s5560_s13  ;;  %v1547_v57 = vmul.f32 %v5354_v21, %v5344_v51 }
 0xc93   :  { %v1555_v1 = vadd.f32 0.001, %v1551_v27 }
 0xc94   :  { %v1552_v18 = vmul.f32 0.99, %v1547_v57 }
 0xc96   :  { %v1556_v49 = vadd.f32 0.001, %v1552_v18 }
 0xcc3   :  { %v1603_v41 = vpop.xlane.xlu0 %1602 }
 0xcc4   :  { %5355 = vrcp.f32 %v1603_v41 }
 0xcc5   :  { %5357 = vrcp.f32 %v1541_v3 }
 0xcc7   :  { %v1606_v24 = vpop.xlane.xlu0 %1605 }
 0xcc8   :  { %5359 = vrcp.f32 %v1606_v24 }
 0xccb   :  { %v1609_v37 = vpop.xlane.xlu0 %1608 }
 0xccc   :  { %5361 = vrcp.f32 %v1609_v37 }
 0xcce   :  { %v5356_v6 = vpop.eup %5355 }
 0xccf   :  { %v6421_v11 = vpop.permute.xlu0 %1421  ;;  %v1613_v17 = vmul.f32 %v5356_v6, %v6375_v20  ;;  %v5358_v42 = vpop.eup %5357 }
 0xcd0   :  { %v4370_v15 = vclamps-f32 %v6421_v11, 4.0  ;;  %v1549_v10 = vmul.f32 %v5358_v42, %v6395_v62 }
 0xcd1   :  { %v1619_v55 = vmul.f32 0.99, %v1613_v17 }
 0xcd2   :  { %v5360_v56 = vpop.eup %5359  ;;  %1830 = vperm.xlu0 %5258, %v4370_v15   ;;  %v1553_v59 = vmul.f32 0.99, %v1549_v10 }
 0xcd3   :  { %v1623_v44 = vadd.f32 0.001, %v1619_v55  ;;  %v1615_v46 = vmul.f32 %v5360_v56, %v6379_v2  ;;  %v6434_v52 = vpop.permute.xlu0 %1427 }
 0xcd4   :  { %v1557_v62 = vadd.f32 0.001, %v1553_v59 }
 0xcd5   :  { %v1627_v36 = vsel %vm7876_vm12, %v1555_v1, %v1623_v44  ;;  %v1620_v34 = vmul.f32 0.99, %v1615_v46 }
 0xcd6   :  { %v5362_v20 = vpop.eup %5361  ;;  %1454 = vrot.lane.b32.xlu0 %v6353_v29, %s5560_s13  ;;  %4849 = vmatmul.mubr.msk.f32.vlgmr.msra.gmra.mrb[8].mxu0 %vm568_vm1, %v1627_v36  ;;  %v4372_v29 = vclamps-f32 %v6434_v52, 4.0 }
 0xcd7   :  { %v1624_v51 = vadd.f32 0.001, %v1620_v34  ;;  %v1617_v45 = vmul.f32 %v5362_v20, %v6383_v32 }
 0xcd9   :  { %v1628_v2 = vsel %vm7877_vm13, %v1556_v49, %v1624_v51  ;;  %v1621_v47 = vmul.f32 0.99, %v1617_v45 }
 0xcda   :  { %1450 = vrot.lane.b32.xlu0 %v6337_v9, %s5560_s13  ;;  %4851 = vmatprep.mubr.msk.f32.mxu0 %vm568_vm1, %v1628_v2 }
 0xcdb   :  { %v1625_v61 = vadd.f32 0.001, %v1621_v47 }
 0xcdd   :  { %v1629_v8 = vsel %vm7878_vm14, %v1557_v62, %v1625_v61 }
 0xcde   :  { %1840 = vperm.xlu0 %5258, %v4372_v29   ;;  %4852 = vmatmul.mubr.msk.f32.gmra.mrb[10].mxu0 %vm568_vm1, %v1629_v8 }
 0xcdf   :  { %4926 = vmatprep.mubr.msk.f32.mxu0 %vm7829_vm8, %v5548_v0 }
 0xce2   :  { %1456 = vrot.lane.b32.xlu0 %v6359_v28, %s5560_s13 }
 0xd09   :  { %v6449_v9 = vpop.permute.xlu1 %1835 }
 0xd0d   :  { %v6451_v32 = vpop.permute.xlu1 %1825 }
 0xd11   :  { %v1453_v19 = vpop.permute.xlu1 %1452 }
 0xd12   :  { %v1463_v33 = vsel %vm397_vm9, 0.5397424, %v1453_v19 }
 0xd13   :  { %v1467_v25 = vsel %vm7879_vm15, %v1463_v33, 0.5397424 }
 0xd14   :  { %v1475_v22 = vmin.f32 %v1467_v25, 20.0  ;;  %vm1471_vm13 = vcmp.gt.f32.partialorder %v1467_v25, 20.0 }
 0xd16   :  { %v1480_v26 = vmul.f32 1.442695, %v1475_v22 }
 0xd18   :  { %5363 = vpow2.f32 %v1480_v26 }
 0xd22   :  { %v5364_v43 = vpop.eup %5363 }
 0xd23   :  { %v1487_v41 = vadd.f32 1.0, %v5364_v43 }
 0xd51   :  { %v6455_v58 = vpop.permute.xlu0 %1830 }
 0xd55   :  { %v1455_v3 = vpop.permute.xlu0 %1454 }
 0xd56   :  { %v1464_v35 = vsel %vm397_vm9, 0.5397424, %v1455_v3 }
 0xd57   :  { %v1468_v38 = vsel %vm7869_vm3, %v1464_v35, 0.5397424 }
 0xd58   :  { %v1476_v28 = vmin.f32 %v1468_v38, 20.0  ;;  %vm1472_vm12 = vcmp.gt.f32.partialorder %v1468_v38, 20.0 }
 0xd59   :  { %v1451_v39 = vpop.permute.xlu0 %1450 }
 0xd5a   :  { %v1482_v31 = vmul.f32 1.442695, %v1476_v28  ;;  %v1462_v53 = vsel %vm397_vm9, 0.5397424, %v1451_v39 }
 0xd5b   :  { %v1466_v40 = vsel %vm7880_vm7, %v1462_v53, 0.5397424 }
 0xd5c   :  { %5365 = vpow2.f32 %v1482_v31  ;;  %v1474_v23 = vmin.f32 %v1466_v40, 20.0  ;;  %vm1470_vm14 = vcmp.gt.f32.partialorder %v1466_v40, 20.0 }
 0xd5e   :  { %v1478_v30 = vmul.f32 1.442695, %v1474_v23 }
 0xd60   :  { %5367 = vpow2.f32 %v1478_v30 }
 0xd61   :  { %5369 = vlog2.f32 %v1487_v41 }
 0xd66   :  { %v5366_v60 = vpop.eup %5365 }
 0xd67   :  { %v1488_v24 = vadd.f32 1.0, %v5366_v60 }
 0xd69   :  { %5371 = vlog2.f32 %v1488_v24 }
 0xd6a   :  { %v5368_v16 = vpop.eup %5367 }
 0xd6b   :  { %v1486_v37 = vadd.f32 1.0, %v5368_v16  ;;  %v5370_v21 = vpop.eup %5369 }
 0xd6c   :  { %v1493_v27 = vmul.f32 0.6931472, %v5370_v21 }
 0xd6d   :  { %5373 = vlog2.f32 %v1486_v37 }
 0xd6e   :  { %v1499_v56 = vsel %vm1471_vm13, %v1467_v25, %v1493_v27 }
 0xd6f   :  { %v6465_v44 = vadd.f32 0.001, %v1499_v56 }
 0xd73   :  { %v5372_v6 = vpop.eup %5371 }
 0xd74   :  { %v1495_v17 = vmul.f32 0.6931472, %v5372_v6 }
 0xd76   :  { %v1500_v57 = vsel %vm1472_vm12, %v1468_v38, %v1495_v17 }
 0xd77   :  { %v5374_v42 = vpop.eup %5373  ;;  %v6461_v55 = vadd.f32 0.001, %v1500_v57 }
 0xd78   :  { %v1491_v1 = vmul.f32 0.6931472, %v5374_v42  ;;  %v1841_v42 = vpop.permute.xlu0 %1840 }
 0xd79   :  { %1959 = vrot.lane.b32.xlu0 %v6461_v55, %s5558_s12 }
 0xd7a   :  { %v1498_v18 = vsel %vm1470_vm14, %v1466_v40, %v1491_v1 }
 0xd7b   :  { %v6469_v46 = vadd.f32 0.001, %v1498_v18 }
 0xd7d   :  { %1957 = vrot.lane.b32.xlu0 %v6465_v44, %s5558_s12 }
 0xd81   :  { %1955 = vrot.lane.b32.xlu0 %v6469_v46, %s5558_s12 }
 0xda9   :  { %v4850_v10 = vpop.f32.mrb[8].mxu0 }
 0xdaa   :  { %v1728_v36 = vmul.f32 8.0, %v4850_v10  ;;  %v1708_v34 = vpop.f32.mrb[9].mxu0 }
 0xdab   :  { %v1727_v20 = vmul.f32 8.0, %v1708_v34 }
 0xdac   :  { %v1732_v49 = vadd.f32 -4.0, %v1728_v36 }
 0xdad   :  { %v1731_v59 = vadd.f32 -4.0, %v1727_v20 }
 0xdae   :  { %v1736_v51 = vsel %vm678_vm5, 4.0, %v1732_v49  ;;  %1749 = vrot.lane.b32.xlu1 %v1732_v49, %s5561_s14 }
 0xdaf   :  { %v6478_v45 = vsel %vm677_vm2, -4.0, %v1736_v51  ;;  %v1735_v47 = vsel %vm678_vm5, 4.0, %v1731_v59 }
 0xdb0   :  { %1773 = vrot.lane.b32.xlu0 %v6478_v45, %s5562_s15  ;;  %v6487_v33 = vsel %vm677_vm2, -4.0, %v1735_v47  ;;  %v1816_v35 = vadd.f32 1e-06, %v6478_v45 }
 0xdb1   :  { %v4853_v2 = vpop.f32.mrb[10].mxu0  ;;  %v1815_v23 = vadd.f32 1e-06, %v6487_v33 }
 0xdb2   :  { %v1730_v62 = vmul.f32 8.0, %v4853_v2  ;;  %1747 = vrot.lane.b32.xlu1 %v1731_v59, %s5561_s14  ;;  %v1718_v61 = vpop.f32.mrb[11].mxu0  ;;  %v1820_v28 = vsel %vm678_vm5, %v1816_v35, %v6478_v45  ;;  %v6560_v35 = vpop.permute.xlu0 %1456 }
 0xdb3   :  { %v1729_v19 = vmul.f32 8.0, %v1718_v61  ;;  %vm1844_vm15 = vcmp.ge.f32.partialorder %v6455_v58, %v1820_v28  ;;  %v1819_v30 = vsel %vm678_vm5, %v1815_v23, %v6487_v33 }
 0xdb4   :  { %v1734_v8 = vadd.f32 -4.0, %v1730_v62  ;;  %v1848_v39 = vsel %vm1844_vm15, 1, %v5555_v54  ;;  %vm1843_vm3 = vcmp.ge.f32.partialorder %v6451_v32, %v1819_v30  ;;  %vm7881_vm15 = vcmask 80896  }
 0xdb5   :  { %v1733_v25 = vadd.f32 -4.0, %v1729_v19  ;;  %v1864_v31 = vsel %vm7822_vm6, %v1848_v39, 0  ;;  %v1847_v41 = vsel %vm1843_vm3, 1, %v5555_v54  ;;  %vm7882_vm3 = vmmov %vm7881_vm15 }
 0xdb6   :  { %1771 = vrot.lane.b32.xlu1 %v6487_v33, %s5562_s15  ;;  %1753 = vrot.lane.b32.xlu0 %v1734_v8, %s5561_s14  ;;  %v1738_v22 = vsel %vm678_vm5, 4.0, %v1734_v8  ;;  %v1866_v53 = vshrl.u32 %v1864_v31, 16  ;;  %v1865_v58 = vand.u32 65535, %v1864_v31  ;;  %v1851_v24 = vsel %vm7822_vm6, %v1847_v41, 0 }
 0xdb7   :  { %v6497_v26 = vsel %vm677_vm2, -4.0, %v1738_v22  ;;  %v1737_v3 = vsel %vm678_vm5, 4.0, %v1733_v25  ;;  %v1853_v21 = vshrl.u32 %v1851_v24, 16  ;;  %v1852_v27 = vand.u32 65535, %v1851_v24 }
 0xdb8   :  { %v6506_v38 = vsel %vm677_vm2, -4.0, %v1737_v3  ;;  %v1868_v40 = vcvt.s32.f32 %v1866_v53  ;;  %v1818_v16 = vadd.f32 1e-06, %v6497_v26  ;;  %v1867_v37 = vcvt.s32.f32 %v1865_v58 }
 0xdb9   :  { %v1817_v43 = vadd.f32 1e-06, %v6506_v38  ;;  %v1855_v6 = vcvt.s32.f32 %v1853_v21  ;;  %v1854_v56 = vcvt.s32.f32 %v1852_v27 }
 0xdba   :  { %1751 = vrot.lane.b32.xlu1 %v1733_v25, %s5561_s14  ;;  %v1822_v17 = vsel %vm678_vm5, %v1818_v16, %v6497_v26 }
 0xdbb   :  { %v1821_v60 = vsel %vm678_vm5, %v1817_v43, %v6506_v38  ;;  %vm1846_vm12 = vcmp.ge.f32.partialorder %v1841_v42, %v1822_v17 }
 0xdbc   :  { %vm1845_vm7 = vcmp.ge.f32.partialorder %v6449_v9, %v1821_v60  ;;  %v1850_v1 = vsel %vm1846_vm12, 1, %v5555_v54 }
 0xdbd   :  { %v1849_v32 = vsel %vm1845_vm7, 1, %v5555_v54  ;;  %v1890_v36 = vsel %vm7822_vm6, %v1850_v1, 0  ;;  %vm7883_vm7 = vmmov %vm7882_vm3 }
 0xdbe   :  { %1777 = vrot.lane.b32.xlu1 %v6497_v26, %s5562_s15  ;;  %v1877_v57 = vsel %vm7822_vm6, %v1849_v32, 0  ;;  %v1891_v20 = vand.u32 65535, %v1890_v36  ;;  %v1892_v3 = vshrl.u32 %v1890_v36, 16 }
 0xdbf   :  { %v1879_v9 = vshrl.u32 %v1877_v57, 16  ;;  %v1878_v10 = vand.u32 65535, %v1877_v57 }
 0xdc0   :  { %v1893_v49 = vcvt.s32.f32 %v1891_v20  ;;  %v1894_v28 = vcvt.s32.f32 %v1892_v3 }
 0xdc1   :  { %v1881_v18 = vcvt.s32.f32 %v1879_v9  ;;  %v1880_v34 = vcvt.s32.f32 %v1878_v10 }
 0xdc2   :  { %1775 = vrot.lane.b32.xlu1 %v6506_v38, %s5562_s15 }
 0xdd5   :  { %1871 = vadd.xlane.f32.xlu0 %v1868_v40 }
 0xde6   :  { %1869 = vadd.xlane.f32.xlu1 %v1867_v37 }
 0xdea   :  { %1858 = vadd.xlane.f32.xlu1 %v1855_v6 }
 0xdeb   :  { %v6562_v39 = vpop.permute.xlu0 %1959 }
 0xdee   :  { %1856 = vadd.xlane.f32.xlu1 %v1854_v56 }
 0xdef   :  { %v6564_v31 = vpop.permute.xlu0 %1957 }
 0xdf2   :  { %1884 = vadd.xlane.f32.xlu1 %v1881_v18 }
 0xdf3   :  { %v6566_v53 = vpop.permute.xlu0 %1955 }
 0xdf6   :  { %1882 = vadd.xlane.f32.xlu1 %v1880_v34 }
 0xdfa   :  { %1895 = vadd.xlane.f32.xlu1 %v1893_v49 }
 0xe20   :  { %v1750_v51 = vpop.permute.xlu1 %1749 }
 0xe21   :  { %v1760_v59 = vsel %vm678_vm5, 4.0, %v1750_v51 }
 0xe22   :  { %v6540_v2 = vsel %vm677_vm2, -4.0, %v1760_v59  ;;  %v1774_v40 = vpop.permute.xlu0 %1773 }
 0xe23   :  { %1793 = vrot.lane.b32.xlu0 %v6540_v2, %s5562_s15  ;;  %v1784_v23 = vsub.f32 %v6478_v45, %v1774_v40 }
 0xe24   :  { %v1748_v47 = vpop.permute.xlu1 %1747 }
 0xe25   :  { %v1759_v62 = vsel %vm678_vm5, 4.0, %v1748_v47  ;;  %5375 = vrcp.f32 %v1784_v23 }
 0xe26   :  { %v6548_v61 = vsel %vm677_vm2, -4.0, %v1759_v62 }
 0xe27   :  { %1791 = vrot.lane.b32.xlu1 %v6548_v61, %s5562_s15 }
 0xe28   :  { %v1772_v8 = vpop.permute.xlu1 %1771  ;;  %v1754_v30 = vpop.permute.xlu0 %1753 }
 0xe29   :  { %v1783_v43 = vsub.f32 %v6487_v33, %v1772_v8  ;;  %v1762_v41 = vsel %vm678_vm5, 4.0, %v1754_v30 }
 0xe2a   :  { %v6576_v60 = vsel %vm677_vm2, -4.0, %v1762_v41 }
 0xe2b   :  { %5377 = vrcp.f32 %v1783_v43 }
 0xe2c   :  { %v1752_v19 = vpop.permute.xlu1 %1751 }
 0xe2d   :  { %v1761_v25 = vsel %vm678_vm5, 4.0, %v1752_v19 }
 0xe2e   :  { %v6556_v22 = vsel %vm677_vm2, -4.0, %v1761_v25 }
 0xe2f   :  { %1795 = vrot.lane.b32.xlu1 %v6556_v22, %s5562_s15  ;;  %v5376_v10 = vpop.eup %5375 }
 0xe30   :  { %v1778_v58 = vpop.permute.xlu1 %1777 }
 0xe31   :  { %v1786_v24 = vsub.f32 %v6497_v26, %v1778_v58 }
 0xe33   :  { %5379 = vrcp.f32 %v1786_v24 }
 0xe34   :  { %v1776_v16 = vpop.permute.xlu1 %1775 }
 0xe35   :  { %v1785_v37 = vsub.f32 %v6506_v38, %v1776_v16  ;;  %v5378_v34 = vpop.eup %5377 }
 0xe37   :  { %5381 = vrcp.f32 %v1785_v37 }
 0xe42   :  { %1897 = vadd.xlane.f32.xlu0 %v1894_v28 }
 0xe58   :  { %1925 = vrot.lane.b32.xlu0 %v1784_v23, %s5558_s12 }
 0xe5c   :  { %1923 = vrot.lane.b32.xlu0 %v1783_v43, %s5558_s12 }
 0xe60   :  { %1797 = vrot.lane.b32.xlu0 %v6576_v60, %s5562_s15 }
 0xe62   :  { %v1872_v57 = vpop.xlane.xlu0 %1871 }
 0xe63   :  { %v1874_v49 = vcvt.f32.s32 %v1872_v57  ;;  %v5380_v57 = vpop.eup %5379 }
 0xe64   :  { %1929 = vrot.lane.b32.xlu0 %v1786_v24, %s5558_s12 }
 0xe65   :  { %v1875_v59 = vshll.u32 %v1874_v49, 16  ;;  %v1465_v49 = vsel %vm397_vm9, 0.5397424, %v6560_v35 }
 0xe68   :  { %1927 = vrot.lane.b32.xlu0 %v1785_v37, %s5558_s12 }
 0xe73   :  { %v1870_v21 = vpop.xlane.xlu1 %1869 }
 0xe74   :  { %v1873_v51 = vcvt.f32.s32 %v1870_v21 }
 0xe76   :  { %v1876_v62 = vadd.s32 %v1875_v59, %v1873_v51  ;;  %v1469_v59 = vsel %vm7883_vm7, %v1465_v49, 0.5397424  ;;  %vm7887_vm7 = vmmov %vm7882_vm3 }
 0xe77   :  { %v1859_v32 = vpop.xlane.xlu1 %1858  ;;  %v1477_v37 = vmin.f32 %v1469_v59, 20.0 }
 0xe78   :  { %v1861_v47 = vcvt.f32.s32 %v1859_v32  ;;  %v4381_v25 = vadd.s32 4294967295, %v1876_v62 }
 0xe7a   :  { %v1862_v19 = vshll.u32 %v1861_v47, 16  ;;  %vm1908_vm13 = vcmp.eq.s32.totalorder %v5827_v63, %v4381_v25 }
 0xe7b   :  { %v1857_v6 = vpop.xlane.xlu1 %1856  ;;  %v6596_v23 = vsel %vm1908_vm13, 1.0, %v5548_v0  ;;  %vm7884_vm13 = vmmov %vm7882_vm3 }
 0xe7c   :  { %v1860_v8 = vcvt.f32.s32 %v1857_v6 }
 0xe7e   :  { %v1863_v3 = vadd.s32 %v1862_v19, %v1860_v8 }
 0xe7f   :  { %v1885_v27 = vpop.xlane.xlu1 %1884 }
 0xe80   :  { %v4380_v40 = vadd.s32 4294967295, %v1863_v3 }
 0xe82   :  { %vm1907_vm14 = vcmp.eq.s32.totalorder %v5827_v63, %v4380_v40 }
 0xe83   :  { %v1883_v17 = vpop.xlane.xlu1 %1882  ;;  %v6602_v58 = vsel %vm1907_vm14, 1.0, %v5548_v0  ;;  %vm7885_vm14 = vmmov %vm7882_vm3 }
 0xe84   :  { %v2003_v49 = vmul.f32 %v6602_v58, %v6566_v53 }
 0xe87   :  { %v6584_v42 = vpop.xlane.xlu1 %1895 }
 0xe95   :  { %v1794_v56 = vpop.permute.xlu0 %1793 }
 0xe96   :  { %v1804_v9 = vsub.f32 %v6540_v2, %v1794_v56 }
 0xe98   :  { %1973 = vrot.lane.b32.xlu0 %v1804_v9, %s5558_s12  ;;  %v1810_v36 = vmul.f32 %v5376_v10, %v1804_v9  ;;  %v1886_v10 = vcvt.f32.s32 %v1883_v17  ;;  %v1984_v17 = vmul.f32 %v6596_v23, %v6478_v45  ;;  %v2000_v45 = vmul.f32 %v6596_v23, %v6465_v44 }
 0xe99   :  { %v1792_v1 = vpop.permute.xlu1 %1791 }
 0xe9a   :  { %v1803_v18 = vsub.f32 %v6548_v61, %v1792_v1  ;;  %v1887_v1 = vcvt.f32.s32 %v1885_v27  ;;  %v1484_v27 = vmul.f32 1.442695, %v1477_v37  ;;  %v2014_v8 = vsel %vm7884_vm13, %v1984_v17, 0.0  ;;  %vm7889_vm13 = vmmov %vm7882_vm3 }
 0xe9c   :  { %1971 = vrot.lane.b32.xlu1 %v1803_v18, %s5558_s12  ;;  %v1808_v20 = vmul.f32 %v5378_v34, %v1803_v18  ;;  %v1888_v34 = vshll.u32 %v1887_v1, 16  ;;  %5383 = vpow2.f32 %v1484_v27 }
 0xe9e   :  { %v1889_v51 = vadd.s32 %v1888_v34, %v1886_v10  ;;  %v1983_v34 = vmul.f32 %v6602_v58, %v6487_v33 }
 0xea0   :  { %1941 = vrot.lane.b32.xlu1 %v1810_v36, %s5558_s12  ;;  %v5382_v36 = vpop.eup %5381  ;;  %v4382_v47 = vadd.s32 4294967295, %v1889_v51 }
 0xea1   :  { %v1796_v9 = vpop.permute.xlu1 %1795 }
 0xea2   :  { %v1805_v18 = vsub.f32 %v6556_v22, %v1796_v9  ;;  %vm1909_vm12 = vcmp.eq.s32.totalorder %v5827_v63, %v4382_v47 }
 0xea3   :  { %v6621_v62 = vsel %vm1909_vm12, 1.0, %v5548_v0  ;;  %vm7888_vm12 = vmmov %vm7882_vm3 }
 0xea4   :  { %1939 = vrot.lane.b32.xlu1 %v1808_v20, %s5558_s12  ;;  %v1812_v20 = vmul.f32 %v5382_v36, %v1805_v18  ;;  %v2001_v35 = vmul.f32 %v6621_v62, %v6461_v55  ;;  %v2005_v25 = vmul.f32 %v6621_v62, %v6562_v39  ;;  %v1999_v39 = vmul.f32 %v6602_v58, %v6469_v46 }
 0xea5   :  { %v1985_v44 = vmul.f32 %v6621_v62, %v6506_v38 }
 0xea6   :  { %v2065_v19 = vsel %vm7885_vm14, %v2001_v35, 0.0  ;;  %v5384_v40 = vpop.eup %5383  ;;  %vm7890_vm14 = vmmov %vm7882_vm3 }
 0xea7   :  { %v1489_v55 = vadd.f32 1.0, %v5384_v40 }
 0xea9   :  { %5385 = vlog2.f32 %v1489_v55 }
 0xecf   :  { %v6592_v28 = vpop.xlane.xlu0 %1897 }
 0xed0   :  { %v1900_v35 = vcvt.f32.s32 %v6592_v28 }
 0xed3   :  { %v1926_v30 = vpop.permute.xlu0 %1925 }
 0xed4   :  { %v1988_v43 = vmul.f32 %v6596_v23, %v1926_v30  ;;  %v2062_v30 = vsel %vm7882_vm3, %v2000_v45, 0.0  ;;  %v1901_v45 = vshll.u32 %v1900_v35, 16 }
 0xed6   :  { %v2026_v41 = vsel %vm7881_vm15, %v1988_v43, 0.0  ;;  %vm7886_vm15 = vmmov %vm7882_vm3  ;;  %v2004_v43 = vmul.f32 %v6596_v23, %v6564_v31  ;;  %v2017_v31 = vsel %vm7889_vm13, %v1985_v44, 0.0  ;;  %v1993_v44 = vmul.f32 %v6621_v62, %v6556_v22 }
 0xed7   :  { %v1924_v16 = vpop.permute.xlu0 %1923  ;;  %2027 = vadd.xlane.f32.xlu1 %v2026_v41  ;;  %v2077_v3 = vsel %vm7886_vm15, %v2005_v25, 0.0  ;;  %vm1473_vm15 = vcmp.gt.f32.partialorder %v1469_v59, 20.0  ;;  %vm7893_vm13 = vmmov %vm7882_vm3 }
 0xed8   :  { %v1987_v21 = vmul.f32 %v6602_v58, %v1924_v16  ;;  %v2074_v16 = vsel %vm7887_vm7, %v2004_v43, 0.0  ;;  %vm7891_vm7 = vmmov %vm7882_vm3 }
 0xeda   :  { %v2023_v32 = vsel %vm7882_vm3, %v1987_v21, 0.0 }
 0xedb   :  { %v1798_v24 = vpop.permute.xlu0 %1797  ;;  %2024 = vadd.xlane.f32.xlu1 %v2023_v32  ;;  %v2059_v32 = vsel %vm7888_vm12, %v1999_v39, 0.0  ;;  %vm7892_vm12 = vmmov %vm7882_vm3 }
 0xedc   :  { %v6607_v6 = vsub.f32 %v6576_v60, %v1798_v24  ;;  %v2071_v47 = vsel %vm7892_vm12, %v2003_v49, 0.0  ;;  %vm7897_vm12 = vmmov %vm7882_vm3 }
 0xede   :  { %v1814_v56 = vmul.f32 %v5380_v57, %v6607_v6 }
 0xedf   :  { %v1930_v38 = vpop.permute.xlu0 %1929 }
 0xee0   :  { %1945 = vrot.lane.b32.xlu0 %v1814_v56, %s5558_s12  ;;  %v5386_v56 = vpop.eup %5385 }
 0xee1   :  { %v1497_v9 = vmul.f32 0.6931472, %v5386_v56 }
 0xee3   :  { %v1501_v46 = vsel %vm1473_vm15, %v1469_v59, %v1497_v9  ;;  %vm7895_vm15 = vmmov %vm7882_vm3 }
 0xee4   :  { %v1505_v1 = vadd.f32 0.001, %v1501_v46 }
 0xeec   :  { %1975 = vrot.lane.b32.xlu1 %v1805_v18, %s5558_s12  ;;  %v1928_v18 = vpop.permute.xlu0 %1927 }
 0xeed   :  { %v1989_v10 = vmul.f32 %v6621_v62, %v1928_v18 }
 0xeef   :  { %v2029_v36 = vsel %vm7882_vm3, %v1989_v10, 0.0 }
 0xef0   :  { %1943 = vrot.lane.b32.xlu1 %v1812_v20, %s5558_s12  ;;  %v2011_v20 = vsel %vm7891_vm7, %v1983_v34, 0.0  ;;  %vm7896_vm7 = vmmov %vm7882_vm3 }
 0xeff   :  { %2015 = vadd.xlane.f32.xlu0 %v2014_v8 }
 0xf03   :  { %2066 = vadd.xlane.f32.xlu0 %v2065_v19 }
 0xf07   :  { %2078 = vadd.xlane.f32.xlu0 %v2077_v3 }
 0xf0a   :  { %v1974_v33 = vpop.permute.xlu0 %1973 }
 0xf0b   :  { %2063 = vadd.xlane.f32.xlu0 %v2062_v30  ;;  %v2008_v53 = vmul.f32 %v6596_v23, %v1974_v33  ;;  %v1899_v30 = vcvt.f32.s32 %v6584_v42  ;;  %v1992_v42 = vmul.f32 %v6596_v23, %v6540_v2 }
 0xf0d   :  { %v2086_v55 = vsel %vm7895_vm15, %v2008_v53, 0.0  ;;  %v1902_v28 = vadd.s32 %v1901_v45, %v1899_v30  ;;  %vm7899_vm15 = vmmov %vm7882_vm3 }
 0xf0e   :  { %v1972_v41 = vpop.permute.xlu1 %1971 }
 0xf0f   :  { %2075 = vadd.xlane.f32.xlu0 %v2074_v16  ;;  %v2007_v43 = vmul.f32 %v6602_v58, %v1972_v41 }
 0xf11   :  { %v2083_v39 = vsel %vm7896_vm7, %v2007_v43, 0.0  ;;  %vm7900_vm7 = vmmov %vm7882_vm3 }
 0xf12   :  { %v1942_v21 = vpop.permute.xlu1 %1941 }
 0xf13   :  { %v1996_v24 = vmul.f32 %v6596_v23, %v1942_v21  ;;  %2060 = vadd.xlane.f32.xlu0 %v2059_v32  ;;  %v4383_v21 = vadd.s32 4294967295, %v1902_v28  ;;  %v2041_v32 = vsel %vm7897_vm12, %v1993_v44, 0.0  ;;  %vm7901_vm12 = vmmov %vm7882_vm3 }
 0xf14   :  { %2018 = vadd.xlane.f32.xlu1 %v2017_v31 }
 0xf15   :  { %v2050_v57 = vsel %vm7890_vm14, %v1996_v24, 0.0  ;;  %vm7894_vm14 = vmmov %vm7882_vm3  ;;  %v1991_v24 = vmul.f32 %v6602_v58, %v6548_v61 }
 0xf16   :  { %v1940_v51 = vpop.permute.xlu1 %1939 }
 0xf17   :  { %2051 = vadd.xlane.f32.xlu0 %v2050_v57  ;;  %v1995_v59 = vmul.f32 %v6602_v58, %v1940_v51  ;;  %v2035_v22 = vsel %vm7899_vm15, %v1991_v24, 0.0  ;;  %vm7904_vm15 = vmmov %vm7882_vm3 }
 0xf19   :  { %v2047_v37 = vsel %vm7893_vm13, %v1995_v59, 0.0  ;;  %vm1910_vm13 = vcmp.eq.s32.totalorder %v5827_v63, %v4383_v21 }
 0xf1a   :  { %v6677_v31 = vsel %vm1910_vm13, 1.0, %v5548_v0  ;;  %vm7902_vm13 = vmmov %vm7882_vm3 }
 0xf1b   :  { %v2002_v58 = vmul.f32 %v6677_v31, %v1505_v1 }
 0xf1d   :  { %v2068_v56 = vsel %vm7901_vm12, %v2002_v58, 0.0  ;;  %vm1435_vm12 = vcmp.le.f32.partialorder %v6421_v11, 4.0 }
 0xf25   :  { %1961 = vrot.lane.b32.xlu1 %v1505_v1, %s5558_s12 }
 0xf49   :  { %2030 = vadd.xlane.f32.xlu1 %v2029_v36 }
 0xf4d   :  { %2012 = vadd.xlane.f32.xlu1 %v2011_v20 }
 0xf51   :  { %2072 = vadd.xlane.f32.xlu1 %v2071_v47 }
 0xf52   :  { %v1946_v57 = vpop.permute.xlu0 %1945 }
 0xf53   :  { %v1998_v2 = vmul.f32 %v6677_v31, %v1946_v57 }
 0xf55   :  { %2048 = vadd.xlane.f32.xlu1 %v2047_v37  ;;  %v2056_v61 = vsel %vm7900_vm7, %v1998_v2, 0.0 }
 0xf64   :  { %v2028_v27 = vpop.xlane.xlu1 %2027 }
 0xf65   :  { %5387 = vrcp.f32 %v2028_v27 }
 0xf68   :  { %v6655_v17 = vpop.xlane.xlu1 %2024 }
 0xf6c   :  { %v1976_v8 = vpop.permute.xlu1 %1975 }
 0xf6d   :  { %v2009_v19 = vmul.f32 %v6621_v62, %v1976_v8 }
 0xf6f   :  { %v2089_v25 = vsel %vm7894_vm14, %v2009_v19, 0.0  ;;  %vm7898_vm14 = vmmov %vm7882_vm3  ;;  %v5388_v37 = vpop.eup %5387 }
 0xf70   :  { %2090 = vadd.xlane.f32.xlu1 %v2089_v25  ;;  %v1944_v3 = vpop.permute.xlu1 %1943  ;;  %v2038_v41 = vsel %vm7898_vm14, %v1992_v42, 0.0  ;;  %vm7903_vm14 = vmmov %vm7882_vm3 }
 0xf71   :  { %v1997_v40 = vmul.f32 %v6621_v62, %v1944_v3  ;;  %v1986_v62 = vmul.f32 %v6677_v31, %v6497_v26  ;;  %v1990_v26 = vmul.f32 %v6677_v31, %v1930_v38 }
 0xf73   :  { %v2053_v16 = vsel %vm7882_vm3, %v1997_v40, 0.0  ;;  %v2020_v23 = vsel %vm7882_vm3, %v1986_v62, 0.0  ;;  %v2032_v10 = vsel %vm7902_vm13, %v1990_v26, 0.0  ;;  %vm1431_vm3 = vcmp.ge.f32.partialorder %v6421_v11, -4.0 }
 0xf74   :  { %2087 = vadd.xlane.f32.xlu1 %v2086_v55  ;;  %2054 = vadd.xlane.f32.xlu0 %v2053_v16  ;;  %vm1439_vm13 = vmand %vm1431_vm3, %vm1435_vm12  ;;  %vm1434_vm12 = vcmp.le.f32.partialorder %v6210_v5, 4.0 }
 0xf78   :  { %2084 = vadd.xlane.f32.xlu1 %v2083_v39 }
 0xf7c   :  { %2042 = vadd.xlane.f32.xlu1 %v2041_v32 }
 0xf80   :  { %2039 = vadd.xlane.f32.xlu1 %v2038_v41 }
 0xf84   :  { %2036 = vadd.xlane.f32.xlu1 %v2035_v22 }
 0xf88   :  { %2021 = vadd.xlane.f32.xlu1 %v2020_v23 }
 0xf8a   :  { %1977 = vrot.lane.b32.xlu0 %v6607_v6, %s5558_s12 }
 0xf8c   :  { %2057 = vadd.xlane.f32.xlu1 %v2056_v61  ;;  %v2016_v6 = vpop.xlane.xlu0 %2015 }
 0xf8d   :  { %v2096_v38 = vsub.f32 %v4370_v15, %v2016_v6 }
 0xf8f   :  { %v2102_v8 = vmul.f32 %v5388_v37, %v2096_v38 }
 0xf90   :  { %2069 = vadd.xlane.f32.xlu1 %v2068_v56  ;;  %v6693_v34 = vpop.xlane.xlu0 %2066 }
 0xf91   :  { %v2108_v19 = vsub.f32 1.0, %v2102_v8 }
 0xf93   :  { %v2112_v45 = vmul.f32 %v2108_v19, %v2102_v8 }
 0xf94   :  { %v2079_v1 = vpop.xlane.xlu0 %2078 }
 0xf95   :  { %v2137_v42 = vadd.f32 %v2079_v1, %v6693_v34 }
 0xf98   :  { %v2064_v20 = vpop.xlane.xlu0 %2063 }
 0xf99   :  { %v2124_v2 = vmul.f32 %v2112_v45, %v2064_v20 }
 0xf9c   :  { %v2076_v49 = vpop.xlane.xlu0 %2075 }
 0xf9d   :  { %v2136_v53 = vadd.f32 %v2076_v49, %v2064_v20 }
 0xfa0   :  { %v6695_v59 = vpop.xlane.xlu0 %2060 }
 0xfa1   :  { %v2019_v9 = vpop.xlane.xlu1 %2018 }
 0xfa2   :  { %v2097_v43 = vsub.f32 %v4371_v7, %v2019_v9 }
 0xfa4   :  { %v2052_v33 = vpop.xlane.xlu0 %2051 }
 0xfa5   :  { %v1962_v46 = vpop.permute.xlu1 %1961  ;;  %v2140_v35 = vmul.f32 2.0, %v2052_v33  ;;  %v2116_v44 = vmul.f32 %v2102_v8, %v2052_v33 }
 0xfa6   :  { %v2006_v18 = vmul.f32 %v6677_v31, %v1962_v46 }
 0xfa7   :  { %v2144_v3 = vsub.f32 %v2136_v53, %v2140_v35  ;;  %v2120_v57 = vmul.f32 %v2116_v44, %v2102_v8 }
 0xfa8   :  { %v2080_v36 = vsel %vm7903_vm14, %v2006_v18, 0.0  ;;  %vm1432_vm14 = vcmp.ge.f32.partialorder %v6409_v48, -4.0 }
 0xfa9   :  { %2033 = vadd.xlane.f32.xlu0 %v2032_v10  ;;  %2081 = vadd.xlane.f32.xlu1 %v2080_v36  ;;  %v2148_v40 = vmul.f32 %v2144_v3, %v2112_v45  ;;  %v2128_v46 = vadd.f32 %v2124_v2, %v2120_v57  ;;  %v1994_v36 = vmul.f32 %v6677_v31, %v6576_v60 }
 0xfab   :  { %v2152_v28 = vadd.f32 %v2148_v40, %v2052_v33  ;;  %v2044_v33 = vsel %vm7900_vm7, %v1994_v36, 0.0  ;;  %vm1430_vm7 = vcmp.ge.f32.partialorder %v6210_v5, -4.0 }
 0xfd6   :  { %v2031_v51 = vpop.xlane.xlu1 %2030 }
 0xfd7   :  { %5389 = vrcp.f32 %v2031_v51 }
 0xfd8   :  { %5391 = vrcp.f32 %v6655_v17 }
 0xfd9   :  { %5393 = vrcp.f32 %v2152_v28 }
 0xfda   :  { %v2013_v47 = vpop.xlane.xlu1 %2012 }
 0xfdb   :  { %v2095_v15 = vsub.f32 %v4369_v50, %v2013_v47 }
 0xfde   :  { %v2073_v25 = vpop.xlane.xlu1 %2072 }
 0xfdf   :  { %v2135_v22 = vadd.f32 %v2073_v25, %v6695_v59 }
 0xfe1   :  { %v5390_v27 = vpop.eup %5389 }
 0xfe2   :  { %v2049_v30 = vpop.xlane.xlu1 %2048  ;;  %v2104_v55 = vmul.f32 %v5390_v27, %v2097_v43  ;;  %v5392_v16 = vpop.eup %5391 }
 0xfe3   :  { %v2100_v17 = vmul.f32 %v5392_v16, %v2095_v15  ;;  %v2139_v21 = vmul.f32 2.0, %v2049_v30  ;;  %v5394_v38 = vpop.eup %5393 }
 0xfe4   :  { %v2109_v32 = vsub.f32 1.0, %v2104_v55 }
 0xfe5   :  { %v2107_v62 = vsub.f32 1.0, %v2100_v17  ;;  %v2143_v50 = vsub.f32 %v2135_v22, %v2139_v21  ;;  %v2115_v35 = vmul.f32 %v2100_v17, %v2049_v30 }
 0xfe6   :  { %v2113_v23 = vmul.f32 %v2109_v32, %v2104_v55 }
 0xfe7   :  { %v2111_v9 = vmul.f32 %v2107_v62, %v2100_v17  ;;  %v2119_v3 = vmul.f32 %v2115_v35, %v2100_v17 }
 0xfe8   :  { %v2125_v60 = vmul.f32 %v2113_v23, %v6693_v34 }
 0xfe9   :  { %v2147_v6 = vmul.f32 %v2143_v50, %v2111_v9  ;;  %v2123_v45 = vmul.f32 %v2111_v9, %v6695_v59  ;;  %v4388_v59 = vld [vmem:[%s7809_s1 + $0x8] sm:$0xf] }
 0xfea   :  { %4855 = vmatpush3.msk.msra.mxu1 %vm84_vm0, %v4388_v59 }
 0xfeb   :  { %v2151_v37 = vadd.f32 %v2147_v6, %v2049_v30  ;;  %v2127_v43 = vadd.f32 %v2123_v45, %v2119_v3  ;;  %5132 = vmatprep.subr.bf16.mxu1 %v5550_v4  ;;  %v4400_v3 = vld [vmem:[%s7811_s3 + $0x138] sm:$0xff] }
 0xffd   :  { %v2091_v39 = vpop.xlane.xlu1 %2090 }
0x1001   :  { %v2055_v41 = vpop.xlane.xlu0 %2054  ;;  %v2088_v24 = vpop.xlane.xlu1 %2087 }
0x1002   :  { %v2141_v7 = vmul.f32 2.0, %v2055_v41  ;;  %v2117_v10 = vmul.f32 %v2104_v55, %v2055_v41  ;;  %v2132_v49 = vmul.f32 %v2128_v46, %v2088_v24 }
0x1004   :  { %v2145_v61 = vsub.f32 %v2137_v42, %v2141_v7  ;;  %v2121_v47 = vmul.f32 %v2117_v10, %v2104_v55  ;;  %v2158_v8 = vmul.f32 %v5394_v38, %v2132_v49  ;;  %v4393_v49 = vld [vmem:[%s7811_s3 + $0x100] sm:$0xff] }
0x1005   :  { %v1978_v58 = vpop.permute.xlu0 %1977  ;;  %v2085_v56 = vpop.xlane.xlu1 %2084 }
0x1006   :  { %v2149_v26 = vmul.f32 %v2145_v61, %v2113_v23  ;;  %v2010_v18 = vmul.f32 %v6677_v31, %v1978_v58  ;;  %v2129_v53 = vadd.f32 %v2125_v60, %v2121_v47  ;;  %v2131_v30 = vmul.f32 %v2127_v43, %v2085_v56 }
0x1008   :  { %v2153_v1 = vadd.f32 %v2149_v26, %v2055_v41  ;;  %v2092_v51 = vsel %vm7904_vm15, %v2010_v18, 0.0  ;;  %v2133_v27 = vmul.f32 %v2129_v53, %v2091_v39  ;;  %vm1436_vm15 = vcmp.le.f32.partialorder %v6409_v48, 4.0 }
0x1009   :  { %2093 = vadd.xlane.f32.xlu1 %v2092_v51  ;;  %v2043_v20 = vpop.xlane.xlu1 %2042  ;;  %vm1440_vm3 = vmand %vm1432_vm14, %vm1436_vm15  ;;  %vm1433_vm14 = vcmp.ge.f32.partialorder %v6434_v52, -4.0  ;;  %vm1437_vm15 = vcmp.le.f32.partialorder %v6434_v52, 4.0  ;;  %v4394_v51 = vld [vmem:[%s7811_s3 + $0x108] sm:$0xff] }
0x100a   :  { %5395 = vrcp.f32 %v2153_v1  ;;  %v5133_v47 = vpack.c.bf16 %v4394_v51, %v4393_v49  ;;  %v4410_v51 = vld [vmem:[%s7814_s4 + $0x2] ss:$0 sm:$0xff] }
0x100b   :  { %5397 = vrcp.f32 %v2151_v37 }
0x100d   :  { %2045 = vadd.xlane.f32.xlu1 %v2044_v33  ;;  %v2040_v31 = vpop.xlane.xlu1 %2039 }
0x100e   :  { %v2164_v19 = vadd.f32 %v2158_v8, %v2040_v31  ;;  %v4396_v8 = vld [vmem:[%s7811_s3 + $0x118] sm:$0xff]  ;;  %v4397_v31 = vld [vmem:[%s7811_s3 + $0x120] sm:$0xff] }
0x1010   :  { %v2168_v25 = vsel %vm1439_vm13, %v2164_v19, %v6421_v11  ;;  %vm1438_vm13 = vmand %vm1430_vm7, %vm1434_vm12  ;;  %vm7905_vm7 = vcmask 31744   ;;  %v4398_v19 = vld [vmem:[%s7811_s3 + $0x128] sm:$0xff]  ;;  %vm7906_vm12 = vcmask 162896  }
0x1011   :  { %2176 = vrot.lane.b32.xlu0 %v2168_v25, %s5563_s16  ;;  %v2037_v16 = vpop.xlane.xlu1 %2036  ;;  %v5139_v53 = vpack.c.bf16 %v4398_v19, %v4397_v31  ;;  %v4399_v25 = vld [vmem:[%s7811_s3 + $0x130] sm:$0xff] }
0x1012   :  { %v5142_v45 = vpack.c.bf16 %v4400_v3, %v4399_v25 }
0x1014   :  { %v5396_v40 = vpop.eup %5395 }
0x1015   :  { %v2160_v15 = vmul.f32 %v5396_v40, %v2133_v27  ;;  %v5398_v34 = vpop.eup %5397  ;;  %v2022_v17 = vpop.xlane.xlu1 %2021  ;;  %v4401_v27 = vld [vmem:[%s7811_s3 + $0x140] sm:$0xff]  ;;  %v4402_v40 = vld [vmem:[%s7811_s3 + $0x148] sm:$0xff] }
0x1016   :  { %v2156_v28 = vmul.f32 %v5398_v34, %v2131_v30  ;;  %v2098_v42 = vsub.f32 %v4372_v29, %v2022_v17  ;;  %v5145_v43 = vpack.c.bf16 %v4402_v40, %v4401_v27  ;;  %v4404_v30 = vld [vmem:[%s7811_s3 + $0x158] sm:$0xff]  ;;  %v4405_v34 = vld [vmem:[%s7811_s3 + $0x160] sm:$0xff]  ;;  %v4413_v17 = vld [vmem:[%s7812_s5 + $0x110] sm:$0xff] }
0x1017   :  { %v2165_v55 = vadd.f32 %v2160_v15, %v2043_v20  ;;  %v4403_v15 = vld [vmem:[%s7811_s3 + $0x150] sm:$0xff] }
0x1018   :  { %v2163_v11 = vadd.f32 %v2156_v28, %v2037_v16  ;;  %v4406_v16 = vld [vmem:[%s7811_s3 + $0x168] sm:$0xff] }
0x1019   :  { %v2169_v44 = vsel %vm1440_vm3, %v2165_v55, %v6409_v48  ;;  %v2058_v21 = vpop.xlane.xlu1 %2057  ;;  %vm1441_vm3 = vmand %vm1433_vm14, %vm1437_vm15  ;;  %v5148_v55 = vpack.c.bf16 %v4404_v30, %v4403_v15  ;;  %v5151_v28 = vpack.c.bf16 %v4406_v16, %v4405_v34 }
0x101a   :  { %v2167_v39 = vsel %vm1438_vm13, %v2163_v11, %v6210_v5  ;;  %v2142_v2 = vmul.f32 2.0, %v2058_v21  ;;  %v4407_v11 = vld [vmem:[%s7811_s3 + $0x170] sm:$0xff]  ;;  %vm7907_vm13 = vmmov %vm7906_vm12 }
0x101b   :  { %vm7908_vm14 = vmmov %vm7906_vm12 }
0x101c   :  { %vm7909_vm15 = vmmov %vm7906_vm12 }
0x101d   :  { %v2070_v41 = vpop.xlane.xlu1 %2069 }
0x101e   :  { %2172 = vrot.lane.b32.xlu1 %v2169_v44, %s5562_s15  ;;  %v4408_v44 = vld [vmem:[%s7811_s3 + $0x178] sm:$0xff] }
0x101f   :  { %v5154_v59 = vpack.c.bf16 %v4408_v44, %v4407_v11 }
0x1022   :  { %2180 = vrot.lane.b32.xlu1 %v2167_v39, %s5564_s21  ;;  %v4411_v39 = vld [vmem:[%s7812_s5 + $0x100] sm:$0xff] }
0x1036   :  { %v2034_v48 = vpop.xlane.xlu0 %2033  ;;  %v2082_v22 = vpop.xlane.xlu1 %2081 }
0x1037   :  { %5399 = vrcp.f32 %v2034_v48  ;;  %v2138_v7 = vadd.f32 %v2082_v22, %v2070_v41  ;;  %v4412_v48 = vld [vmem:[%s7812_s5 + $0x108] sm:$0xff] }
0x1039   :  { %v2146_v5 = vsub.f32 %v2138_v7, %v2142_v2  ;;  %v4418_v7 = vld [vmem:[%s7812_s5 + $0x138] sm:$0xff]  ;;  %v4419_v2 = vld [vmem:[%s7812_s5 + $0x140] sm:$0xff] }
0x1041   :  { %v5400_v32 = vpop.eup %5399 }
0x1042   :  { %v2106_v24 = vmul.f32 %v5400_v32, %v2098_v42  ;;  %v4414_v32 = vld [vmem:[%s7812_s5 + $0x118] sm:$0xff] }
0x1043   :  { %v5160_v42 = vpack.c.bf16 %v4414_v32, %v4413_v17 }
0x1044   :  { %v2110_v62 = vsub.f32 1.0, %v2106_v24  ;;  %v2118_v61 = vmul.f32 %v2106_v24, %v2058_v21 }
0x1046   :  { %v2114_v57 = vmul.f32 %v2110_v62, %v2106_v24  ;;  %v2122_v56 = vmul.f32 %v2118_v61, %v2106_v24  ;;  %v4416_v24 = vld [vmem:[%s7812_s5 + $0x128] sm:$0xff]  ;;  %v4417_v62 = vld [vmem:[%s7812_s5 + $0x130] sm:$0xff]  ;;  %v4422_v61 = vld [vmem:[%s7812_s5 + $0x158] sm:$0xff] }
0x1048   :  { %v2150_v50 = vmul.f32 %v2146_v5, %v2114_v57  ;;  %v2126_v58 = vmul.f32 %v2114_v57, %v2070_v41  ;;  %v4415_v41 = vld [vmem:[%s7812_s5 + $0x120] sm:$0xff]  ;;  %v5166_v57 = vpack.c.bf16 %v4418_v7, %v4417_v62  ;;  %v4420_v5 = vld [vmem:[%s7812_s5 + $0x148] sm:$0xff] }
0x1049   :  { %v5163_v22 = vpack.c.bf16 %v4416_v24, %v4415_v41 }
0x104a   :  { %v2154_v23 = vadd.f32 %v2150_v50, %v2058_v21  ;;  %v2130_v9 = vadd.f32 %v2126_v58, %v2122_v56  ;;  %v5157_v21 = vpack.c.bf16 %v4412_v48, %v4411_v39  ;;  %v5169_v50 = vpack.c.bf16 %v4420_v5, %v4419_v2  ;;  %v4423_v56 = vld [vmem:[%s7812_s5 + $0x160] sm:$0xff] }
0x104c   :  { %5401 = vrcp.f32 %v2154_v23  ;;  %5158 = vmatpush3.bf16.msra.mxu0 %v5157_v21  ;;  %v4421_v23 = vld [vmem:[%s7812_s5 + $0x150] sm:$0xff] }
0x104d   :  { %5159 = vmatprep.subr.bf16.mxu0 %v5550_v4  ;;  %v5172_v58 = vpack.c.bf16 %v4422_v61, %v4421_v23 }
0x1050   :  { %5161 = vmatpush3.bf16.msra.mxu0 %v5160_v42 }
0x1051   :  { %5162 = vmatprep.subr.bf16.mxu0 %v5550_v4 }
0x1054   :  { %5164 = vmatpush3.bf16.msra.mxu0 %v5163_v22 }
0x1055   :  { %5165 = vmatprep.subr.bf16.mxu0 %v5550_v4 }
0x1056   :  { %v5402_v18 = vpop.eup %5401 }
0x1058   :  { %5167 = vmatpush3.bf16.msra.mxu0 %v5166_v57 }
0x1059   :  { %5168 = vmatprep.subr.bf16.mxu0 %v5550_v4 }
0x105c   :  { %5170 = vmatpush3.bf16.msra.mxu0 %v5169_v50 }
0x105d   :  { %5171 = vmatprep.subr.bf16.mxu0 %v5550_v4 }
0x1060   :  { %5173 = vmatpush3.bf16.msra.mxu0 %v5172_v58 }
0x1061   :  { %5174 = vmatprep.subr.bf16.mxu0 %v5550_v4 }
0x1083   :  { %v2177_v38 = vpop.permute.xlu0 %2176 }
0x1096   :  { %v2094_v26 = vpop.xlane.xlu1 %2093 }
0x1097   :  { %v2134_v46 = vmul.f32 %v2130_v9, %v2094_v26  ;;  %v4424_v9 = vld [vmem:[%s7812_s5 + $0x168] sm:$0xff] }
0x1098   :  { %v5175_v26 = vpack.c.bf16 %v4424_v9, %v4423_v56 }
0x1099   :  { %v2162_v10 = vmul.f32 %v5402_v18, %v2134_v46  ;;  %v4390_v46 = vld [vmem:[%s7813_s2 + $0x2] ss:$0 sm:$0xff] }
0x109a   :  { %v2046_v29 = vpop.xlane.xlu1 %2045  ;;  %5176 = vmatpush3.bf16.msra.mxu0 %v5175_v26 }
0x109b   :  { %v2166_v36 = vadd.f32 %v2162_v10, %v2046_v29  ;;  %5177 = vmatprep.subr.bf16.mxu0 %v5550_v4 }
0x109d   :  { %v2170_v6 = vsel %vm1441_vm3, %v2166_v36, %v6434_v52  ;;  %v4395_v52 = vld [vmem:[%s7811_s3 + $0x110] sm:$0xff]  ;;  %vm7910_vm3 = vcmask 80896  }
0x109e   :  { %v2173_v1 = vpop.permute.xlu1 %2172  ;;  %v5136_v60 = vpack.c.bf16 %v4396_v8, %v4395_v52 }
0x109f   :  { %v2183_v20 = vsel %vm397_vm9, %v2170_v6, %v2173_v1  ;;  %v4425_v6 = vld [vmem:[%s7812_s5 + $0x170] sm:$0xff]  ;;  %v4426_v1 = vld [vmem:[%s7812_s5 + $0x178] sm:$0xff] }
0x10a0   :  { %v2184_v37 = vsel %vm1129_vm10, %v2183_v20, %v2177_v38  ;;  %v5178_v49 = vpack.c.bf16 %v4426_v1, %v4425_v6 }
0x10a2   :  { %v2181_v33 = vpop.permute.xlu1 %2180  ;;  %5179 = vmatpush3.bf16.msra.mxu0 %v5178_v49 }
0x10a3   :  { %v6750_v35 = vsel %vm1131_vm11, %v2184_v37, %v2181_v33  ;;  %4941 = vmatprep.subr.mxu0 %v5548_v0  ;;  %v4428_v33 = vld [vmem:[%s7815_s6 + $0x2] ss:$0 sm:$0xff] }
0x10a4   :  { %4857 = vmatmul.mubr.msk.f32.vlgmr.msra.gmra.mrb[8].mxu1 %vm7905_vm7, %v6750_v35  ;;  %vm7911_vm7 = vmmov %vm7910_vm3 }
0x10a5   :  { %5134 = vmatpush3.bf16.msra.mxu1 %v5133_v47  ;;  %4891 = vmatprep.mubr.msk.f32.mxu1 %vm7829_vm8, %v5548_v0 }
0x10a6   :  { %5135 = vmatprep.subr.bf16.mxu1 %v5550_v4 }
0x10a9   :  { %5137 = vmatpush3.bf16.msra.mxu1 %v5136_v60 }
0x10aa   :  { %5138 = vmatprep.subr.bf16.mxu1 %v5550_v4 }
0x10ad   :  { %5140 = vmatpush3.bf16.msra.mxu1 %v5139_v53 }
0x10ae   :  { %5141 = vmatprep.subr.bf16.mxu1 %v5550_v4 }
0x10b1   :  { %5143 = vmatpush3.bf16.msra.mxu1 %v5142_v45 }
0x10b2   :  { %5144 = vmatprep.subr.bf16.mxu1 %v5550_v4 }
0x10b5   :  { %5146 = vmatpush3.bf16.msra.mxu1 %v5145_v43 }
0x10b6   :  { %5147 = vmatprep.subr.bf16.mxu1 %v5550_v4 }
0x10b9   :  { %5149 = vmatpush3.bf16.msra.mxu1 %v5148_v55 }
0x10ba   :  { %5150 = vmatprep.subr.bf16.mxu1 %v5550_v4 }
0x10bd   :  { %5152 = vmatpush3.bf16.msra.mxu1 %v5151_v28 }
0x10be   :  { %5153 = vmatprep.subr.bf16.mxu1 %v5550_v4 }
0x10c1   :  { %5155 = vmatpush3.bf16.msra.mxu1 %v5154_v59 }
0x10c2   :  { %5181 = vmatprep.subr.msk.bf16.mxu1 %vm5838_vm4, %v5559_v13 }
0x1177   :  { %v2268_v18 = vpop.f32.mrb[8].mxu1 }
0x1178   :  { %v2269_v10 = vadd.f32 %v4390_v46, %v2268_v18  ;;  %v4858_v29 = vpop.f32.mrb[9].mxu1 }
0x117a   :  { %v2272_v36 = vmax.f32 %v2269_v10, 0.0 }
0x117c   :  { %4892 = vmatmul.mubr.f32.vlgmr.msra.gmra.mrb[10].mxu1 %v2272_v36 }
0x117d   :  { %5183 = vmatpush3.bf16.msk.msra.mxu1 %vm5838_vm4, %v5559_v13 }
0x117e   :  { %4933 = vmatprep.subr.msk.mxu1 %vm84_vm0, %v5851_v14 }
0x1181   :  { %4934 = vmatpush3.msk.msra.mxu1 %vm84_vm0, %v5851_v14 }
0x1182   :  { %5208 = vmatprep.subr.bf16.mxu1 %v5550_v4 }
0x124f   :  { %v2364_v20 = vpop.f32.mrb[10].mxu1 }
0x1250   :  { %v2365_v38 = vadd.f32 %v4410_v51, %v2364_v20  ;;  %v4893_v47 = vpop.f32.mrb[11].mxu1 }
0x1252   :  { %v2368_v37 = vmax.f32 %v2365_v38, 0.0 }
0x1254   :  { %4927 = vmatmul.mubr.f32.vlgmr.msra.gmra.mrb[12].mxu0 %v2368_v37 }
0x1255   :  { %4943 = vmatprep.mubr.msk.f32.mxu0 %vm7829_vm8, %v5548_v0 }
0x1327   :  { %v2460_v52 = vpop.f32.mrb[12].mxu0 }
0x1328   :  { %v6877_v8 = vadd.f32 %v4428_v33, %v2460_v52  ;;  %v4928_v60 = vpop.f32.mrb[13].mxu0 }
0x132a   :  { %2471 = vrot.lane.b32.xlu0 %v6877_v8, %s5551_s29  ;;  %2465 = vrot.lane.b32.xlu1 %v6877_v8, %s5552_s30  ;;  %v2611_v31 = vsel %vm7906_vm12, %v6877_v8, -inf  ;;  %vm7912_vm12 = vmmov %vm7910_vm3 }
0x132b   :  { %v2559_v15 = vsel %vm7912_vm12, %v6877_v8, -inf  ;;  %vm7917_vm12 = vmmov %vm7910_vm3 }
0x132e   :  { %2468 = vrot.lane.b32.xlu1 %v6877_v8, %s5553_s8 }
0x1352   :  { %2612 = vmax.xlane.f32.xlu1 %v2611_v31 }
0x139c   :  { %v6887_v19 = vpop.permute.xlu0 %2471  ;;  %v6889_v53 = vpop.permute.xlu1 %2465 }
0x139d   :  { %v2614_v25 = vsel %vm7907_vm13, %v6889_v53, -inf  ;;  %v2620_v3 = vsel %vm7908_vm14, %v6887_v19, -inf  ;;  %v2562_v40 = vsel %vm7910_vm3, %v6889_v53, -inf  ;;  %v2568_v43 = vsel %vm7911_vm7, %v6887_v19, -inf  ;;  %vm7913_vm13 = vmmov %vm7910_vm3 }
0x139e   :  { %2615 = vmax.xlane.f32.xlu0 %v2614_v25  ;;  %2621 = vmax.xlane.f32.xlu1 %v2620_v3  ;;  %vm7914_vm14 = vmmov %vm7910_vm3 }
0x139f   :  { %vm7916_vm7 = vmmov %vm7910_vm3 }
0x13a0   :  { %v6895_v45 = vpop.permute.xlu1 %2468 }
0x13a1   :  { %v2617_v27 = vsel %vm7909_vm15, %v6895_v45, -inf  ;;  %v2565_v30 = vsel %vm7913_vm13, %v6895_v45, -inf  ;;  %vm7915_vm15 = vmmov %vm7910_vm3 }
0x13a2   :  { %2618 = vmax.xlane.f32.xlu0 %v2617_v27  ;;  %2563 = vmax.xlane.f32.xlu1 %v2562_v40  ;;  %vm7918_vm13 = vmmov %vm7910_vm3 }
0x13a6   :  { %2569 = vmax.xlane.f32.xlu1 %v2568_v43  ;;  %2560 = vmax.xlane.f32.xlu0 %v2559_v15 }
0x13aa   :  { %2566 = vmax.xlane.f32.xlu0 %v2565_v30 }
0x13df   :  { %v2613_v55 = vpop.xlane.xlu1 %2612 }
0x13e0   :  { %v2623_v34 = vsub.f32 %v6877_v8, %v2613_v55 }
0x13e2   :  { %v2627_v16 = vmul.f32 1.442695, %v2623_v34 }
0x13e4   :  { %5403 = vpow2.f32 %v2627_v16 }
0x13ee   :  { %v6908_v28 = vpop.eup %5403 }
0x13ef   :  { %2639 = vrot.lane.b32.xlu0 %v6908_v28, %s5554_s9 }
0x142b   :  { %v2616_v11 = vpop.xlane.xlu0 %2615  ;;  %v2622_v44 = vpop.xlane.xlu1 %2621 }
0x142c   :  { %v2624_v59 = vsub.f32 %v6889_v53, %v2616_v11  ;;  %v2626_v39 = vsub.f32 %v6887_v19, %v2622_v44 }
0x142e   :  { %v2629_v48 = vmul.f32 1.442695, %v2624_v59  ;;  %v2633_v17 = vmul.f32 1.442695, %v2626_v39 }
0x142f   :  { %v2619_v21 = vpop.xlane.xlu0 %2618  ;;  %v2564_v57 = vpop.xlane.xlu1 %2563 }
0x1430   :  { %5405 = vpow2.f32 %v2629_v48  ;;  %v2625_v32 = vsub.f32 %v6895_v45, %v2619_v21  ;;  %v2572_v2 = vsub.f32 %v6889_v53, %v2564_v57 }
0x1431   :  { %5407 = vpow2.f32 %v2633_v17  ;;  %v4429_v17 = vclamps-f32 %v6750_v35, 4.0 }
0x1432   :  { %v2631_v42 = vmul.f32 1.442695, %v2625_v32  ;;  %v2577_v23 = vmul.f32 1.442695, %v2572_v2 }
0x1433   :  { %v2561_v62 = vpop.xlane.xlu0 %2560  ;;  %v2570_v58 = vpop.xlane.xlu1 %2569 }
0x1434   :  { %5409 = vpow2.f32 %v2631_v42  ;;  %v2571_v7 = vsub.f32 %v6877_v8, %v2561_v62  ;;  %v2574_v56 = vsub.f32 %v6887_v19, %v2570_v58 }
0x1436   :  { %v2575_v5 = vmul.f32 1.442695, %v2571_v7  ;;  %v2581_v26 = vmul.f32 1.442695, %v2574_v56 }
0x1437   :  { %v2567_v50 = vpop.xlane.xlu0 %2566 }
0x1438   :  { %5411 = vpow2.f32 %v2575_v5  ;;  %v2573_v61 = vsub.f32 %v6895_v45, %v2567_v50 }
0x1439   :  { %5413 = vpow2.f32 %v2577_v23 }
0x143a   :  { %v6915_v41 = vpop.eup %5405  ;;  %v2579_v9 = vmul.f32 1.442695, %v2573_v61 }
0x143b   :  { %v6917_v24 = vpop.eup %5407  ;;  %2641 = vrot.lane.b32.xlu1 %v6915_v41, %s5554_s9 }
0x143c   :  { %2645 = vrot.lane.b32.xlu0 %v6917_v24, %s5554_s9  ;;  %5415 = vpow2.f32 %v2579_v9 }
0x143d   :  { %5417 = vpow2.f32 %v2581_v26 }
0x143e   :  { %v6923_v22 = vpop.eup %5409 }
0x143f   :  { %2643 = vrot.lane.b32.xlu1 %v6923_v22, %s5554_s9 }
0x1442   :  { %v5412_v46 = vpop.eup %5411 }
0x1443   :  { %v2583_v10 = vsel %vm7914_vm14, %v5412_v46, 0.0  ;;  %v5414_v36 = vpop.eup %5413  ;;  %vm7919_vm14 = vmmov %vm7910_vm3 }
0x1444   :  { %v2586_v6 = vsel %vm7910_vm3, %v5414_v36, 0.0 }
0x1446   :  { %v5416_v1 = vpop.eup %5415 }
0x1447   :  { %v2589_v49 = vsel %vm7916_vm7, %v5416_v1, 0.0  ;;  %v6935_v51 = vpop.eup %5417  ;;  %vm7921_vm7 = vmmov %vm7910_vm3 }
0x1448   :  { %v2592_v20 = vsel %vm7917_vm12, %v6935_v51, 0.0  ;;  %vm7922_vm12 = vmmov %vm7910_vm3 }
0x1461   :  { %v2640_v18 = vpop.permute.xlu0 %2639 }
0x1462   :  { %v2651_v29 = vsel %vm7915_vm15, %v2640_v18, 0.0  ;;  %vm7920_vm15 = vmmov %vm7910_vm3 }
0x1463   :  { %2584 = vadd.xlane.f32.xlu1 %v2583_v10  ;;  %2652 = vadd.xlane.f32.xlu0 %v2651_v29 }
0x1467   :  { %2587 = vadd.xlane.f32.xlu0 %v2586_v6 }
0x146b   :  { %2590 = vadd.xlane.f32.xlu0 %v2589_v49 }
0x146f   :  { %2593 = vadd.xlane.f32.xlu0 %v2592_v20 }
0x1485   :  { %2477 = vrot.lane.b32.xlu0 %v6750_v35, %s5556_s10 }
0x1489   :  { %2480 = vrot.lane.b32.xlu0 %v6750_v35, %s5557_s11 }
0x14ad   :  { %v2642_v38 = vpop.permute.xlu1 %2641 }
0x14ae   :  { %v2654_v47 = vsel %vm7918_vm13, %v2642_v38, 0.0  ;;  %v2646_v52 = vpop.permute.xlu0 %2645  ;;  %vm7923_vm13 = vmmov %vm7910_vm3 }
0x14af   :  { %2655 = vadd.xlane.f32.xlu1 %v2654_v47  ;;  %v2660_v60 = vsel %vm7920_vm15, %v2646_v52, 0.0  ;;  %vm7925_vm15 = vmmov %vm7910_vm3 }
0x14b1   :  { %v2644_v37 = vpop.permute.xlu1 %2643 }
0x14b2   :  { %v2657_v33 = vsel %vm7919_vm14, %v2644_v37, 0.0  ;;  %vm7924_vm14 = vmmov %vm7910_vm3 }
0x14b3   :  { %2658 = vadd.xlane.f32.xlu1 %v2657_v33 }
0x14b7   :  { %2661 = vadd.xlane.f32.xlu1 %v2660_v60 }
0x14c8   :  { %2474 = vrot.lane.b32.xlu1 %v6750_v35, %s5558_s12 }
0x14f0   :  { %v2585_v31 = vpop.xlane.xlu1 %2584  ;;  %v2653_v25 = vpop.xlane.xlu0 %2652 }
0x14f1   :  { %5419 = vrcp.f32 %v2585_v31 }
0x14f2   :  { %5421 = vrcp.f32 %v2653_v25 }
0x14f4   :  { %v2588_v3 = vpop.xlane.xlu0 %2587 }
0x14f5   :  { %5423 = vrcp.f32 %v2588_v3 }
0x14f8   :  { %v2591_v27 = vpop.xlane.xlu0 %2590 }
0x14f9   :  { %5425 = vrcp.f32 %v2591_v27 }
0x14fb   :  { %v5420_v40 = vpop.eup %5419 }
0x14fc   :  { %v5422_v43 = vpop.eup %5421  ;;  %v2594_v15 = vpop.xlane.xlu0 %2593  ;;  %v2596_v30 = vmul.f32 %v5420_v40, %v5412_v46 }
0x14fd   :  { %v2664_v55 = vmul.f32 %v5422_v43, %v6908_v28 }
0x14fe   :  { %v2603_v34 = vmul.f32 0.99, %v2596_v30 }
0x14ff   :  { %v2671_v16 = vmul.f32 0.99, %v2664_v55  ;;  %v5424_v21 = vpop.eup %5423 }
0x1500   :  { %v6949_v11 = vpop.permute.xlu0 %2477  ;;  %v2607_v44 = vadd.f32 0.001, %v2603_v34  ;;  %v2598_v42 = vmul.f32 %v5424_v21, %v5414_v36 }
0x1501   :  { %v2675_v59 = vadd.f32 0.001, %v2671_v16  ;;  %v4431_v39 = vclamps-f32 %v6949_v11, 4.0 }
0x1502   :  { %v2604_v2 = vmul.f32 0.99, %v2598_v42 }
0x1503   :  { %v2679_v48 = vsel %vm7910_vm3, %v2607_v44, %v2675_v59  ;;  %2888 = vperm.xlu1 %5257, %v4431_v39   ;;  %v5426_v7 = vpop.eup %5425 }
0x1504   :  { %4935 = vmatprep.mubr.msk.f32.mxu1 %vm568_vm1, %v2679_v48  ;;  %v2600_v23 = vmul.f32 %v5426_v7, %v5416_v1  ;;  %v2608_v9 = vadd.f32 0.001, %v2604_v2  ;;  %v6974_v38 = vpop.permute.xlu0 %2480 }
0x1506   :  { %v2605_v46 = vmul.f32 0.99, %v2600_v23 }
0x1507   :  { %2878 = vperm.xlu1 %5257, %v4429_v17  }
0x1508   :  { %v2609_v6 = vadd.f32 0.001, %v2605_v46 }
0x150b   :  { %2505 = vrot.lane.b32.xlu1 %v6889_v53, %s5560_s13 }
0x153c   :  { %v2656_v28 = vpop.xlane.xlu1 %2655 }
0x153d   :  { %5427 = vrcp.f32 %v2656_v28 }
0x153e   :  { %5429 = vrcp.f32 %v2594_v15 }
0x1540   :  { %v2659_v32 = vpop.xlane.xlu1 %2658 }
0x1541   :  { %5431 = vrcp.f32 %v2659_v32 }
0x1544   :  { %v2662_v62 = vpop.xlane.xlu1 %2661 }
0x1545   :  { %5433 = vrcp.f32 %v2662_v62 }
0x1547   :  { %v5428_v57 = vpop.eup %5427 }
0x1548   :  { %v6961_v5 = vpop.permute.xlu1 %2474  ;;  %v2666_v50 = vmul.f32 %v5428_v57, %v6915_v41  ;;  %v5430_v53 = vpop.eup %5429 }
0x1549   :  { %v4430_v61 = vclamps-f32 %v6961_v5, 4.0  ;;  %v2602_v10 = vmul.f32 %v5430_v53, %v6935_v51 }
0x154a   :  { %v2672_v58 = vmul.f32 0.99, %v2666_v50 }
0x154b   :  { %v5432_v56 = vpop.eup %5431  ;;  %2883 = vperm.xlu0 %5258, %v4430_v61   ;;  %v2606_v49 = vmul.f32 0.99, %v2602_v10 }
0x154c   :  { %v2676_v26 = vadd.f32 0.001, %v2672_v58  ;;  %v2668_v18 = vmul.f32 %v5432_v56, %v6923_v22 }
0x154d   :  { %v2610_v51 = vadd.f32 0.001, %v2606_v49 }
0x154e   :  { %v2680_v29 = vsel %vm7921_vm7, %v2608_v9, %v2676_v26  ;;  %v2673_v36 = vmul.f32 0.99, %v2668_v18 }
0x154f   :  { %v5434_v41 = vpop.eup %5433  ;;  %2507 = vrot.lane.b32.xlu0 %v6895_v45, %s5560_s13  ;;  %4936 = vmatmul.mubr.msk.f32.vlgmr.msra.gmra.mrb[12].mxu1 %vm568_vm1, %v2680_v29  ;;  %v4432_v45 = vclamps-f32 %v6974_v38, 4.0 }
0x1550   :  { %v2677_v1 = vadd.f32 0.001, %v2673_v36  ;;  %v2670_v20 = vmul.f32 %v5434_v41, %v6917_v24 }
0x1552   :  { %v2681_v22 = vsel %vm7922_vm12, %v2609_v6, %v2677_v1  ;;  %v2674_v47 = vmul.f32 0.99, %v2670_v20 }
0x1553   :  { %2503 = vrot.lane.b32.xlu0 %v6877_v8, %s5560_s13  ;;  %4938 = vmatprep.mubr.msk.f32.mxu1 %vm568_vm1, %v2681_v22 }
0x1554   :  { %v2678_v37 = vadd.f32 0.001, %v2674_v47 }
0x1556   :  { %v2682_v33 = vsel %vm7923_vm13, %v2610_v51, %v2678_v37 }
0x1557   :  { %4939 = vmatmul.mubr.msk.f32.gmra.mrb[14].mxu1 %vm568_vm1, %v2682_v33  ;;  %2893 = vperm.xlu0 %5258, %v4432_v45  }
0x1558   :  { %5013 = vmatprep.mubr.msk.f32.mxu1 %vm7829_vm8, %v5548_v0 }
0x155b   :  { %2509 = vrot.lane.b32.xlu0 %v6887_v19, %s5560_s13 }
0x1582   :  { %v6989_v8 = vpop.permute.xlu1 %2888 }
0x1586   :  { %v6991_v24 = vpop.permute.xlu1 %2878 }
0x158a   :  { %v2506_v52 = vpop.permute.xlu1 %2505 }
0x158b   :  { %v2516_v60 = vsel %vm397_vm9, 0.5397424, %v2506_v52 }
0x158c   :  { %v2520_v31 = vsel %vm7924_vm14, %v2516_v60, 0.5397424 }
0x158d   :  { %v2528_v25 = vmin.f32 %v2520_v31, 20.0  ;;  %vm2524_vm12 = vcmp.gt.f32.partialorder %v2520_v31, 20.0 }
0x158f   :  { %v2533_v27 = vmul.f32 1.442695, %v2528_v25 }
0x1591   :  { %5435 = vpow2.f32 %v2533_v27 }
0x159b   :  { %v5436_v48 = vpop.eup %5435 }
0x159c   :  { %v2540_v28 = vadd.f32 1.0, %v5436_v48 }
0x15ca   :  { %v6995_v3 = vpop.permute.xlu0 %2883 }
0x15ce   :  { %v2508_v40 = vpop.permute.xlu0 %2507 }
0x15cf   :  { %v2517_v43 = vsel %vm397_vm9, 0.5397424, %v2508_v40 }
0x15d0   :  { %v2521_v15 = vsel %vm7925_vm15, %v2517_v43, 0.5397424 }
0x15d1   :  { %v2529_v19 = vmin.f32 %v2521_v15, 20.0  ;;  %vm2525_vm7 = vcmp.gt.f32.partialorder %v2521_v15, 20.0 }
0x15d2   :  { %v2504_v30 = vpop.permute.xlu0 %2503 }
0x15d3   :  { %v2535_v55 = vmul.f32 1.442695, %v2529_v19  ;;  %v2515_v34 = vsel %vm397_vm9, 0.5397424, %v2504_v30 }
0x15d4   :  { %v2519_v16 = vsel %vm7910_vm3, %v2515_v34, 0.5397424 }
0x15d5   :  { %5437 = vpow2.f32 %v2535_v55  ;;  %v2527_v44 = vmin.f32 %v2519_v16, 20.0  ;;  %vm2523_vm13 = vcmp.gt.f32.partialorder %v2519_v16, 20.0 }
0x15d7   :  { %v2531_v59 = vmul.f32 1.442695, %v2527_v44 }
0x15d9   :  { %5439 = vpow2.f32 %v2531_v59 }
0x15da   :  { %5441 = vlog2.f32 %v2540_v28 }
0x15df   :  { %v5438_v21 = vpop.eup %5437 }
0x15e0   :  { %v2541_v32 = vadd.f32 1.0, %v5438_v21 }
0x15e2   :  { %5443 = vlog2.f32 %v2541_v32 }
0x15e3   :  { %v5440_v42 = vpop.eup %5439 }
0x15e4   :  { %v2539_v62 = vadd.f32 1.0, %v5440_v42  ;;  %v5442_v7 = vpop.eup %5441 }
0x15e5   :  { %v2546_v2 = vmul.f32 0.6931472, %v5442_v7 }
0x15e6   :  { %5445 = vlog2.f32 %v2539_v62 }
0x15e7   :  { %v2552_v56 = vsel %vm2524_vm12, %v2520_v31, %v2546_v2 }
0x15e8   :  { %v7005_v26 = vadd.f32 0.001, %v2552_v56 }
0x15ec   :  { %v5444_v57 = vpop.eup %5443 }
0x15ed   :  { %v2548_v50 = vmul.f32 0.6931472, %v5444_v57 }
0x15ef   :  { %v2553_v23 = vsel %vm2525_vm7, %v2521_v15, %v2548_v50 }
0x15f0   :  { %v5446_v53 = vpop.eup %5445  ;;  %v7001_v58 = vadd.f32 0.001, %v2553_v23 }
0x15f1   :  { %v2544_v9 = vmul.f32 0.6931472, %v5446_v53 }
0x15f2   :  { %3012 = vrot.lane.b32.xlu0 %v7001_v58, %s5558_s12 }
0x15f3   :  { %v2551_v46 = vsel %vm2523_vm13, %v2519_v16, %v2544_v9  ;;  %vm7926_vm13 = vcmask 80896  }
0x15f4   :  { %v7009_v18 = vadd.f32 0.001, %v2551_v46  ;;  %v2894_v46 = vpop.permute.xlu0 %2893 }
0x15f6   :  { %3010 = vrot.lane.b32.xlu0 %v7005_v26, %s5558_s12 }
0x15fa   :  { %3008 = vrot.lane.b32.xlu0 %v7009_v18, %s5558_s12 }
0x1622   :  { %v4937_v10 = vpop.f32.mrb[12].mxu1 }
0x1623   :  { %v2781_v29 = vmul.f32 8.0, %v4937_v10  ;;  %v2761_v36 = vpop.f32.mrb[13].mxu1 }
0x1624   :  { %v2780_v41 = vmul.f32 8.0, %v2761_v36 }
0x1625   :  { %v2785_v6 = vadd.f32 -4.0, %v2781_v29 }
0x1626   :  { %v2784_v1 = vadd.f32 -4.0, %v2780_v41 }
0x1627   :  { %v2789_v49 = vsel %vm678_vm5, 4.0, %v2785_v6  ;;  %2802 = vrot.lane.b32.xlu0 %v2785_v6, %s5561_s14 }
0x1628   :  { %v2788_v20 = vsel %vm678_vm5, 4.0, %v2784_v1  ;;  %2800 = vrot.lane.b32.xlu1 %v2784_v1, %s5561_s14  ;;  %v7021_v22 = vsel %vm677_vm2, -4.0, %v2789_v49 }
0x1629   :  { %v7025_v51 = vsel %vm677_vm2, -4.0, %v2788_v20  ;;  %v2869_v15 = vadd.f32 1e-06, %v7021_v22 }
0x162a   :  { %v4940_v47 = vpop.f32.mrb[14].mxu1  ;;  %v2868_v16 = vadd.f32 1e-06, %v7025_v51 }
0x162b   :  { %v2783_v37 = vmul.f32 8.0, %v4940_v47  ;;  %2826 = vrot.lane.b32.xlu0 %v7021_v22, %s5562_s15  ;;  %v2771_v33 = vpop.f32.mrb[15].mxu1  ;;  %v2873_v19 = vsel %vm678_vm5, %v2869_v15, %v7021_v22 }
0x162c   :  { %v2782_v52 = vmul.f32 8.0, %v2771_v33  ;;  %2824 = vrot.lane.b32.xlu1 %v7025_v51, %s5562_s15  ;;  %vm2897_vm14 = vcmp.ge.f32.partialorder %v6995_v3, %v2873_v19  ;;  %v2872_v59 = vsel %vm678_vm5, %v2868_v16, %v7025_v51 }
0x162d   :  { %v2787_v60 = vadd.f32 -4.0, %v2783_v37  ;;  %v2901_v30 = vsel %vm2897_vm14, 1, %v5555_v54  ;;  %vm2896_vm15 = vcmp.ge.f32.partialorder %v6991_v24, %v2872_v59  ;;  %vm7927_vm14 = vmmov %vm7926_vm13 }
0x162e   :  { %v2786_v31 = vadd.f32 -4.0, %v2782_v52  ;;  %v2917_v55 = vsel %vm7822_vm6, %v2901_v30, 0  ;;  %v2900_v28 = vsel %vm2896_vm15, 1, %v5555_v54 }
0x162f   :  { %2806 = vrot.lane.b32.xlu0 %v2787_v60, %s5561_s14  ;;  %v2791_v25 = vsel %vm678_vm5, 4.0, %v2787_v60  ;;  %v2919_v34 = vshrl.u32 %v2917_v55, 16  ;;  %v2918_v3 = vand.u32 65535, %v2917_v55  ;;  %v2904_v32 = vsel %vm7822_vm6, %v2900_v28, 0 }
0x1630   :  { %2804 = vrot.lane.b32.xlu1 %v2786_v31, %s5561_s14  ;;  %v7037_v27 = vsel %vm677_vm2, -4.0, %v2791_v25  ;;  %v2790_v40 = vsel %vm678_vm5, 4.0, %v2786_v31  ;;  %v2906_v62 = vshrl.u32 %v2904_v32, 16  ;;  %v2905_v24 = vand.u32 65535, %v2904_v32 }
0x1631   :  { %v7045_v43 = vsel %vm677_vm2, -4.0, %v2790_v40  ;;  %v2921_v44 = vcvt.s32.f32 %v2919_v34  ;;  %v2920_v42 = vcvt.s32.f32 %v2918_v3 }
0x1632   :  { %v2870_v48 = vadd.f32 1e-06, %v7045_v43  ;;  %v2908_v57 = vcvt.s32.f32 %v2906_v62  ;;  %v2907_v50 = vcvt.s32.f32 %v2905_v24 }
0x1634   :  { %2830 = vrot.lane.b32.xlu1 %v7037_v27, %s5562_s15  ;;  %v2874_v21 = vsel %vm678_vm5, %v2870_v48, %v7045_v43 }
0x1635   :  { %vm2898_vm3 = vcmp.ge.f32.partialorder %v6989_v8, %v2874_v21  ;;  %v7070_v8 = vpop.permute.xlu0 %2509 }
0x1636   :  { %v2902_v7 = vsel %vm2898_vm3, 1, %v5555_v54 }
0x1637   :  { %v2930_v2 = vsel %vm7822_vm6, %v2902_v7, 0 }
0x1638   :  { %2828 = vrot.lane.b32.xlu1 %v7045_v43, %s5562_s15  ;;  %v2932_v23 = vshrl.u32 %v2930_v2, 16  ;;  %v2931_v56 = vand.u32 65535, %v2930_v2 }
0x163a   :  { %v2934_v53 = vcvt.s32.f32 %v2932_v23  ;;  %v2933_v9 = vcvt.s32.f32 %v2931_v56 }
0x164e   :  { %2924 = vadd.xlane.f32.xlu0 %v2921_v44  ;;  %v2871_v44 = vadd.f32 1e-06, %v7037_v27 }
0x1650   :  { %v2875_v59 = vsel %vm678_vm5, %v2871_v44, %v7037_v27 }
0x1651   :  { %vm2899_vm7 = vcmp.ge.f32.partialorder %v2894_v46, %v2875_v59 }
0x1652   :  { %v2903_v48 = vsel %vm2899_vm7, 1, %v5555_v54  ;;  %vm7928_vm7 = vmmov %vm7926_vm13 }
0x1653   :  { %v2943_v28 = vsel %vm7822_vm6, %v2903_v48, 0  ;;  %vm2483_vm6 = vcmp.ge.f32.partialorder %v6750_v35, -4.0 }
0x1654   :  { %v2944_v3 = vand.u32 65535, %v2943_v28  ;;  %v2945_v21 = vshrl.u32 %v2943_v28, 16 }
0x1656   :  { %v2946_v32 = vcvt.s32.f32 %v2944_v3 }
0x165c   :  { %2922 = vadd.xlane.f32.xlu1 %v2920_v42  ;;  %v2947_v42 = vcvt.s32.f32 %v2945_v21 }
0x1660   :  { %2911 = vadd.xlane.f32.xlu1 %v2908_v57 }
0x1664   :  { %2909 = vadd.xlane.f32.xlu1 %v2907_v50  ;;  %v7072_v10 = vpop.permute.xlu0 %3012 }
0x1668   :  { %2937 = vadd.xlane.f32.xlu1 %v2934_v53  ;;  %v7074_v29 = vpop.permute.xlu0 %3010 }
0x166c   :  { %2935 = vadd.xlane.f32.xlu1 %v2933_v9  ;;  %v7076_v36 = vpop.permute.xlu0 %3008 }
0x1699   :  { %v2803_v41 = vpop.permute.xlu0 %2802 }
0x169a   :  { %v2813_v6 = vsel %vm678_vm5, 4.0, %v2803_v41  ;;  %v2801_v1 = vpop.permute.xlu1 %2800 }
0x169b   :  { %v7082_v49 = vsel %vm677_vm2, -4.0, %v2813_v6  ;;  %v2812_v20 = vsel %vm678_vm5, 4.0, %v2801_v1 }
0x169c   :  { %v7088_v47 = vsel %vm677_vm2, -4.0, %v2812_v20  ;;  %2846 = vrot.lane.b32.xlu0 %v7082_v49, %s5562_s15 }
0x169d   :  { %v2827_v37 = vpop.permute.xlu0 %2826  ;;  %2844 = vrot.lane.b32.xlu1 %v7088_v47, %s5562_s15 }
0x169e   :  { %v2837_v33 = vsub.f32 %v7021_v22, %v2827_v37  ;;  %v2825_v52 = vpop.permute.xlu1 %2824 }
0x169f   :  { %v2836_v31 = vsub.f32 %v7025_v51, %v2825_v52 }
0x16a0   :  { %2978 = vrot.lane.b32.xlu0 %v2837_v33, %s5558_s12  ;;  %5447 = vrcp.f32 %v2837_v33 }
0x16a1   :  { %v2807_v60 = vpop.permute.xlu0 %2806  ;;  %5449 = vrcp.f32 %v2836_v31 }
0x16a2   :  { %v2805_v25 = vpop.permute.xlu1 %2804  ;;  %v2815_v15 = vsel %vm678_vm5, 4.0, %v2807_v60 }
0x16a3   :  { %v2814_v40 = vsel %vm678_vm5, 4.0, %v2805_v25  ;;  %v7110_v55 = vsel %vm677_vm2, -4.0, %v2815_v15 }
0x16a4   :  { %v7103_v19 = vsel %vm677_vm2, -4.0, %v2814_v40  ;;  %2976 = vrot.lane.b32.xlu0 %v2836_v31, %s5558_s12 }
0x16a5   :  { %2848 = vrot.lane.b32.xlu1 %v7103_v19, %s5562_s15 }
0x16a6   :  { %v2831_v30 = vpop.permute.xlu1 %2830 }
0x16a7   :  { %v2839_v62 = vsub.f32 %v7037_v27, %v2831_v30 }
0x16a8   :  { %2850 = vrot.lane.b32.xlu0 %v7110_v55, %s5562_s15 }
0x16a9   :  { %5451 = vrcp.f32 %v2839_v62 }
0x16aa   :  { %v2829_v34 = vpop.permute.xlu1 %2828 }
0x16ab   :  { %v7115_v16 = vsub.f32 %v7045_v43, %v2829_v34 }
0x16ad   :  { %2980 = vrot.lane.b32.xlu0 %v7115_v16, %s5558_s12 }
0x16c9   :  { %2948 = vadd.xlane.f32.xlu1 %v2946_v32  ;;  %v2518_v32 = vsel %vm397_vm9, 0.5397424, %v7070_v8 }
0x16cc   :  { %2950 = vadd.xlane.f32.xlu0 %v2947_v42 }
0x16db   :  { %v2925_v20 = vpop.xlane.xlu0 %2924 }
0x16dc   :  { %v2927_v28 = vcvt.f32.s32 %v2925_v20 }
0x16de   :  { %v2928_v21 = vshll.u32 %v2927_v28, 16 }
0x16e2   :  { %2982 = vrot.lane.b32.xlu0 %v2839_v62, %s5558_s12  ;;  %v2522_v62 = vsel %vm7927_vm14, %v2518_v32, 0.5397424  ;;  %vm7931_vm14 = vmmov %vm7928_vm7 }
0x16e9   :  { %v2923_v7 = vpop.xlane.xlu1 %2922 }
0x16ea   :  { %v2926_v3 = vcvt.f32.s32 %v2923_v7 }
0x16ec   :  { %v2929_v42 = vadd.s32 %v2928_v21, %v2926_v3 }
0x16ed   :  { %v2912_v57 = vpop.xlane.xlu1 %2911 }
0x16f1   :  { %v2910_v24 = vpop.xlane.xlu1 %2909 }
0x16f5   :  { %v2938_v2 = vpop.xlane.xlu1 %2937 }
0x16f6   :  { %v2940_v50 = vcvt.f32.s32 %v2938_v2  ;;  %v4441_v2 = vadd.s32 4294967295, %v2929_v42 }
0x16f8   :  { %v2941_v53 = vshll.u32 %v2940_v50, 16  ;;  %v2914_v50 = vcvt.f32.s32 %v2912_v57  ;;  %vm2961_vm15 = vcmp.eq.s32.totalorder %v5827_v63, %v4441_v2 }
0x16f9   :  { %v2936_v23 = vpop.xlane.xlu1 %2935 }
0x16fa   :  { %v2939_v56 = vcvt.f32.s32 %v2936_v23  ;;  %v2530_v23 = vmin.f32 %v2522_v62, 20.0 }
0x16fc   :  { %v2942_v9 = vadd.s32 %v2941_v53, %v2939_v56  ;;  %v2913_v53 = vcvt.f32.s32 %v2910_v24  ;;  %v2915_v56 = vshll.u32 %v2914_v50, 16 }
0x16fe   :  { %v4442_v46 = vadd.s32 4294967295, %v2942_v9  ;;  %v2537_v9 = vmul.f32 1.442695, %v2530_v23 }
0x1700   :  { %vm2962_vm12 = vcmp.eq.s32.totalorder %v5827_v63, %v4442_v46  ;;  %v2916_v46 = vadd.s32 %v2915_v56, %v2913_v53  ;;  %5453 = vpow2.f32 %v2537_v9 }
0x1701   :  { %v7129_v41 = vsel %vm2962_vm12, 1.0, %v5548_v0  ;;  %vm7929_vm12 = vmmov %vm7928_vm7 }
0x1702   :  { %v3038_v6 = vmul.f32 %v7129_v41, %v7045_v43  ;;  %v5448_v43 = vpop.eup %5447  ;;  %v4440_v7 = vadd.s32 4294967295, %v2916_v46  ;;  %v3054_v24 = vmul.f32 %v7129_v41, %v7001_v58 }
0x1703   :  { %v5450_v33 = vpop.eup %5449 }
0x1704   :  { %v3070_v1 = vsel %vm7926_vm13, %v3038_v6, 0.0  ;;  %v5452_v31 = vpop.eup %5451  ;;  %v7150_v6 = vsel %vm2961_vm15, 1.0, %v5548_v0  ;;  %vm2960_vm3 = vcmp.eq.s32.totalorder %v5827_v63, %v4440_v7  ;;  %vm7930_vm13 = vmmov %vm7928_vm7 }
0x1705   :  { %3071 = vadd.xlane.f32.xlu1 %v3070_v1  ;;  %v3037_v8 = vmul.f32 %v7150_v6, %v7021_v22  ;;  %v7160_v20 = vsel %vm2960_vm3, 1.0, %v5548_v0  ;;  %v3058_v22 = vmul.f32 %v7129_v41, %v7072_v10  ;;  %vm7932_vm15 = vmmov %vm7928_vm7  ;;  %v3057_v21 = vmul.f32 %v7150_v6, %v7074_v29 }
0x1706   :  { %vm7933_vm3 = vmmov %vm7928_vm7  ;;  %v3052_v42 = vmul.f32 %v7160_v20, %v7009_v18 }
0x1707   :  { %v3067_v57 = vsel %vm7928_vm7, %v3037_v8, 0.0  ;;  %vm2526_vm7 = vcmp.gt.f32.partialorder %v2522_v62, 20.0 }
0x170e   :  { %v2847_v37 = vpop.permute.xlu0 %2846 }
0x170f   :  { %v2857_v52 = vsub.f32 %v7082_v49, %v2847_v37  ;;  %v2845_v60 = vpop.permute.xlu1 %2844 }
0x1710   :  { %v2856_v40 = vsub.f32 %v7088_v47, %v2845_v60 }
0x1711   :  { %3026 = vrot.lane.b32.xlu0 %v2857_v52, %s5558_s12  ;;  %v2863_v30 = vmul.f32 %v5448_v43, %v2857_v52  ;;  %v3118_v52 = vsel %vm7929_vm12, %v3054_v24, 0.0  ;;  %v3130_v43 = vsel %vm7931_vm14, %v3058_v22, 0.0  ;;  %vm7934_vm12 = vmmov %vm7933_vm3 }
0x1712   :  { %v2979_v25 = vpop.permute.xlu0 %2978  ;;  %v2861_v59 = vmul.f32 %v5450_v33, %v2856_v40  ;;  %vm7936_vm14 = vmmov %vm7933_vm3 }
0x1713   :  { %v3041_v1 = vmul.f32 %v7150_v6, %v2979_v25  ;;  %v3112_v50 = vsel %vm7936_vm14, %v3052_v42, 0.0  ;;  %vm7941_vm14 = vmmov %vm7933_vm3 }
0x1715   :  { %v3079_v60 = vsel %vm7930_vm13, %v3041_v1, 0.0  ;;  %vm7935_vm13 = vmmov %vm7933_vm3  ;;  %v3044_v1 = vmul.f32 %v7160_v20, %v7088_v47 }
0x1716   :  { %v2977_v15 = vpop.permute.xlu0 %2976  ;;  %3024 = vrot.lane.b32.xlu1 %v2856_v40, %s5558_s12  ;;  %v5454_v40 = vpop.eup %5453  ;;  %v3127_v32 = vsel %vm7935_vm13, %v3057_v21, 0.0  ;;  %vm7940_vm13 = vmmov %vm7933_vm3 }
0x1717   :  { %v3040_v37 = vmul.f32 %v7160_v20, %v2977_v15  ;;  %v2542_v25 = vadd.f32 1.0, %v5454_v40  ;;  %v2849_v10 = vpop.permute.xlu1 %2848 }
0x1718   :  { %v2858_v33 = vsub.f32 %v7103_v19, %v2849_v10 }
0x1719   :  { %v3076_v58 = vsel %vm7932_vm15, %v3040_v37, 0.0  ;;  %5455 = vlog2.f32 %v2542_v25  ;;  %vm7937_vm15 = vmmov %vm7933_vm3  ;;  %v3056_v25 = vmul.f32 %v7160_v20, %v7076_v36 }
0x171a   :  { %v2851_v34 = vpop.permute.xlu0 %2850  ;;  %2994 = vrot.lane.b32.xlu1 %v2863_v30, %s5558_s12  ;;  %v3053_v30 = vmul.f32 %v7150_v6, %v7005_v26  ;;  %5457 = vrcp.f32 %v7115_v16  ;;  %v3036_v16 = vmul.f32 %v7160_v20, %v7025_v51 }
0x171b   :  { %v7140_v44 = vsub.f32 %v7110_v55, %v2851_v34 }
0x171c   :  { %v3115_v15 = vsel %vm7933_vm3, %v3053_v30, 0.0  ;;  %v3064_v3 = vsel %vm7934_vm12, %v3036_v16, 0.0  ;;  %vm7939_vm12 = vmmov %vm7933_vm3  ;;  %v3124_v30 = vsel %vm7941_vm14, %v3056_v25, 0.0 }
0x171d   :  { %v2867_v48 = vmul.f32 %v5452_v31, %v7140_v44  ;;  %vm7945_vm14 = vmmov %vm7933_vm3 }
0x171e   :  { %2992 = vrot.lane.b32.xlu1 %v2861_v59, %s5558_s12 }
0x171f   :  { %2998 = vrot.lane.b32.xlu0 %v2867_v48, %s5558_s12 }
0x1723   :  { %v5456_v34 = vpop.eup %5455 }
0x1724   :  { %v2550_v31 = vmul.f32 0.6931472, %v5456_v34  ;;  %v5458_v59 = vpop.eup %5457 }
0x1725   :  { %v2865_v48 = vmul.f32 %v5458_v59, %v2858_v33 }
0x1726   :  { %v2554_v28 = vsel %vm2526_vm7, %v2522_v62, %v2550_v31  ;;  %v2981_v62 = vpop.permute.xlu0 %2980  ;;  %vm7938_vm7 = vmmov %vm7933_vm3 }
0x1727   :  { %v7176_v26 = vadd.f32 0.001, %v2554_v28  ;;  %v3042_v2 = vmul.f32 %v7129_v41, %v2981_v62 }
0x1729   :  { %v3082_v51 = vsel %vm7937_vm15, %v3042_v2, 0.0  ;;  %vm7942_vm15 = vmmov %vm7933_vm3 }
0x173e   :  { %3068 = vadd.xlane.f32.xlu0 %v3067_v57  ;;  %v3088_v57 = vsel %vm7939_vm12, %v3044_v1, 0.0 }
0x1742   :  { %3119 = vadd.xlane.f32.xlu0 %v3118_v52  ;;  %3080 = vadd.xlane.f32.xlu1 %v3079_v60 }
0x1746   :  { %3131 = vadd.xlane.f32.xlu0 %v3130_v43  ;;  %3077 = vadd.xlane.f32.xlu1 %v3076_v58 }
0x174a   :  { %3116 = vadd.xlane.f32.xlu0 %v3115_v15 }
0x1756   :  { %v2949_v23 = vpop.xlane.xlu1 %2948 }
0x1757   :  { %3028 = vrot.lane.b32.xlu1 %v2858_v33, %s5558_s12  ;;  %v2952_v34 = vcvt.f32.s32 %v2949_v23 }
0x1759   :  { %v2951_v60 = vpop.xlane.xlu0 %2950 }
0x175a   :  { %v2953_v47 = vcvt.f32.s32 %v2951_v60 }
0x175b   :  { %2996 = vrot.lane.b32.xlu1 %v2865_v48, %s5558_s12 }
0x175c   :  { %v2954_v10 = vshll.u32 %v2953_v47, 16 }
0x175d   :  { %v2983_v43 = vpop.permute.xlu0 %2982 }
0x175e   :  { %v2955_v59 = vadd.s32 %v2954_v10, %v2952_v34 }
0x175f   :  { %3014 = vrot.lane.b32.xlu1 %v7176_v26, %s5558_s12 }
0x1760   :  { %v4443_v28 = vadd.s32 4294967295, %v2955_v59 }
0x1762   :  { %vm2963_vm12 = vcmp.eq.s32.totalorder %v5827_v63, %v4443_v28 }
0x1763   :  { %v4447_v42 = vsel %vm2963_vm12, 1.0, %v5548_v0  ;;  %vm7948_vm12 = vmmov %vm7933_vm3 }
0x1783   :  { %3065 = vadd.xlane.f32.xlu1 %v3064_v3  ;;  %v3027_v15 = vpop.permute.xlu0 %3026  ;;  %v3046_v3 = vmul.f32 %v7129_v41, %v7103_v19 }
0x1784   :  { %v3061_v33 = vmul.f32 %v7150_v6, %v3027_v15 }
0x1786   :  { %v3139_v36 = vsel %vm7933_vm3, %v3061_v33, 0.0 }
0x1787   :  { %3128 = vadd.xlane.f32.xlu1 %v3127_v32  ;;  %v3045_v32 = vmul.f32 %v7150_v6, %v7082_v49  ;;  %v3055_v49 = vmul.f32 %v4447_v42, %v7176_v26  ;;  %v3047_v26 = vmul.f32 %v4447_v42, %v7110_v55 }
0x1789   :  { %v3091_v62 = vsel %vm7945_vm14, %v3045_v32, 0.0  ;;  %vm7950_vm14 = vmmov %vm7933_vm3 }
0x178b   :  { %3113 = vadd.xlane.f32.xlu1 %v3112_v50  ;;  %v3039_v50 = vmul.f32 %v4447_v42, %v7037_v27 }
0x178d   :  { %v3073_v23 = vsel %vm7933_vm3, %v3039_v50, 0.0 }
0x178f   :  { %3083 = vadd.xlane.f32.xlu1 %v3082_v51 }
0x1791   :  { %v2999_v19 = vpop.permute.xlu0 %2998 }
0x1792   :  { %v7191_v53 = vpop.xlane.xlu1 %3071 }
0x1793   :  { %v3150_v55 = vsub.f32 %v4431_v39, %v7191_v53 }
0x1796   :  { %v3025_v29 = vpop.permute.xlu1 %3024 }
0x1797   :  { %v3060_v48 = vmul.f32 %v7160_v20, %v3025_v29 }
0x179a   :  { %v2995_v56 = vpop.permute.xlu1 %2994 }
0x179b   :  { %v3049_v9 = vmul.f32 %v7150_v6, %v2995_v56  ;;  %v3121_v56 = vsel %vm7948_vm12, %v3055_v49, 0.0 }
0x179d   :  { %v3103_v46 = vsel %vm7933_vm3, %v3049_v9, 0.0 }
0x179e   :  { %3104 = vadd.xlane.f32.xlu0 %v3103_v46  ;;  %v2993_v18 = vpop.permute.xlu1 %2992 }
0x179f   :  { %v3048_v7 = vmul.f32 %v7160_v20, %v2993_v18  ;;  %v3043_v20 = vmul.f32 %v4447_v42, %v2983_v43 }
0x17a0   :  { %3030 = vrot.lane.b32.xlu1 %v7140_v44, %s5558_s12 }
0x17a1   :  { %v3100_v8 = vsel %vm7938_vm7, %v3048_v7, 0.0  ;;  %vm7943_vm7 = vmmov %vm7933_vm3 }
0x17a2   :  { %3101 = vadd.xlane.f32.xlu0 %v3100_v8  ;;  %v3136_v16 = vsel %vm7943_vm7, %v3060_v48, 0.0  ;;  %vm7947_vm7 = vmmov %vm7933_vm3 }
0x17c4   :  { %3089 = vadd.xlane.f32.xlu1 %v3088_v57 }
0x17cb   :  { %v3069_v60 = vpop.xlane.xlu0 %3068 }
0x17cf   :  { %v7202_v24 = vpop.xlane.xlu1 %3080 }
0x17d0   :  { %5459 = vrcp.f32 %v7202_v24 }
0x17d3   :  { %v7204_v37 = vpop.xlane.xlu1 %3077 }
0x17d7   :  { %v3029_v52 = vpop.permute.xlu1 %3028 }
0x17d8   :  { %v3062_v58 = vmul.f32 %v7129_v41, %v3029_v52 }
0x17da   :  { %v3142_v31 = vsel %vm7942_vm15, %v3062_v58, 0.0  ;;  %vm7946_vm15 = vmmov %vm7933_vm3  ;;  %v5460_v43 = vpop.eup %5459  ;;  %v3149_v58 = vsub.f32 %v4430_v61, %v3069_v60 }
0x17db   :  { %v2997_v22 = vpop.permute.xlu1 %2996  ;;  %v3085_v2 = vsel %vm7946_vm15, %v3043_v20, 0.0  ;;  %vm7951_vm15 = vmmov %vm7933_vm3 }
0x17dc   :  { %v3050_v40 = vmul.f32 %v7129_v41, %v2997_v22  ;;  %v3051_v41 = vmul.f32 %v4447_v42, %v2999_v19  ;;  %v3097_v52 = vsel %vm7951_vm15, %v3047_v26, 0.0  ;;  %v3120_v22 = vpop.xlane.xlu0 %3119 }
0x17de   :  { %v3106_v44 = vsel %vm7940_vm13, %v3050_v40, 0.0  ;;  %vm7944_vm13 = vmmov %vm7933_vm3  ;;  %v3109_v51 = vsel %vm7947_vm7, %v3051_v41, 0.0  ;;  %vm2489_vm7 = vcmp.le.f32.partialorder %v6949_v11, 4.0 }
0x17df   :  { %3107 = vadd.xlane.f32.xlu0 %v3106_v44  ;;  %v3094_v21 = vsel %vm7944_vm13, %v3046_v3, 0.0  ;;  %v3015_v6 = vpop.permute.xlu1 %3014  ;;  %vm7949_vm13 = vmmov %vm7933_vm3  ;;  %vm2485_vm3 = vcmp.ge.f32.partialorder %v6949_v11, -4.0 }
0x17e0   :  { %v3059_v29 = vmul.f32 %v4447_v42, %v3015_v6  ;;  %v3132_v40 = vpop.xlane.xlu0 %3131  ;;  %vm2493_vm12 = vmand %vm2485_vm3, %vm2489_vm7  ;;  %vm2487_vm3 = vcmp.le.f32.partialorder %v6750_v35, 4.0 }
0x17e1   :  { %vm2491_vm7 = vmand %vm2483_vm6, %vm2487_vm3  ;;  %vm2486_vm6 = vcmp.ge.f32.partialorder %v6974_v38, -4.0 }
0x17e2   :  { %v3133_v9 = vsel %vm7949_vm13, %v3059_v29, 0.0  ;;  %vm2484_vm13 = vcmp.ge.f32.partialorder %v6961_v5, -4.0 }
0x17e3   :  { %3125 = vadd.xlane.f32.xlu0 %v3124_v30  ;;  %v3155_v30 = vmul.f32 %v5460_v43, %v3149_v58 }
0x17e4   :  { %v3117_v44 = vpop.xlane.xlu0 %3116 }
0x17e7   :  { %3143 = vadd.xlane.f32.xlu0 %v3142_v31  ;;  %v3161_v31 = vsub.f32 1.0, %v3155_v30 }
0x17e9   :  { %v3165_v3 = vmul.f32 %v3161_v31, %v3155_v30 }
0x17eb   :  { %3140 = vadd.xlane.f32.xlu0 %v3139_v36 }
0x17ef   :  { %3137 = vadd.xlane.f32.xlu0 %v3136_v16  ;;  %v3190_v16 = vadd.f32 %v3132_v40, %v3120_v22 }
0x17f3   :  { %3095 = vadd.xlane.f32.xlu0 %v3094_v21 }
0x17f7   :  { %3092 = vadd.xlane.f32.xlu0 %v3091_v62 }
0x17fb   :  { %3086 = vadd.xlane.f32.xlu0 %v3085_v2 }
0x17ff   :  { %3074 = vadd.xlane.f32.xlu0 %v3073_v23 }
0x1803   :  { %3110 = vadd.xlane.f32.xlu0 %v3109_v51 }
0x1807   :  { %3122 = vadd.xlane.f32.xlu0 %v3121_v56 }
0x180b   :  { %3134 = vadd.xlane.f32.xlu0 %v3133_v9 }
0x1810   :  { %v3066_v27 = vpop.xlane.xlu1 %3065 }
0x1811   :  { %v3148_v15 = vsub.f32 %v4429_v17, %v3066_v27 }
0x1814   :  { %v3129_v46 = vpop.xlane.xlu1 %3128 }
0x1818   :  { %v7232_v18 = vpop.xlane.xlu1 %3113 }
0x181c   :  { %v3084_v7 = vpop.xlane.xlu1 %3083 }
0x181d   :  { %5461 = vrcp.f32 %v3084_v7 }
0x181e   :  { %5463 = vrcp.f32 %v7204_v37  ;;  %v3189_v37 = vadd.f32 %v3129_v46, %v3117_v44 }
0x1820   :  { %v3031_v8 = vpop.permute.xlu1 %3030 }
0x1821   :  { %v3063_v1 = vmul.f32 %v4447_v42, %v3031_v8  ;;  %v3177_v8 = vmul.f32 %v3165_v3, %v3117_v44 }
0x1823   :  { %v3145_v57 = vsel %vm7950_vm14, %v3063_v1, 0.0  ;;  %v4448_v1 = vld [vmem:[%s7809_s1 + $0xc] sm:$0xf]  ;;  %vm2488_vm14 = vcmp.le.f32.partialorder %v6961_v5, 4.0 }
0x1824   :  { %3146 = vadd.xlane.f32.xlu0 %v3145_v57  ;;  %4942 = vmatpush3.msk.msra.mxu0 %vm84_vm0, %v4448_v1  ;;  %vm2492_vm15 = vmand %vm2484_vm13, %vm2488_vm14  ;;  %vm7952_vm14 = vcmask 31744  }
0x1825   :  { %5184 = vmatprep.subr.bf16.mxu0 %v5550_v4 }
0x1827   :  { %v5462_v47 = vpop.eup %5461 }
0x1828   :  { %3098 = vadd.xlane.f32.xlu0 %v3097_v52  ;;  %v3157_v10 = vmul.f32 %v5462_v47, %v3150_v55  ;;  %v5464_v33 = vpop.eup %5463 }
0x1829   :  { %v3153_v59 = vmul.f32 %v5464_v33, %v3148_v15 }
0x182a   :  { %v3162_v48 = vsub.f32 1.0, %v3157_v10 }
0x182b   :  { %v3105_v25 = vpop.xlane.xlu0 %3104  ;;  %v3160_v21 = vsub.f32 1.0, %v3153_v59 }
0x182c   :  { %v3193_v24 = vmul.f32 2.0, %v3105_v25  ;;  %v3166_v32 = vmul.f32 %v3162_v48, %v3157_v10  ;;  %v3169_v49 = vmul.f32 %v3155_v30, %v3105_v25 }
0x182d   :  { %v3164_v2 = vmul.f32 %v3160_v21, %v3153_v59 }
0x182e   :  { %v3197_v36 = vsub.f32 %v3189_v37, %v3193_v24  ;;  %v3173_v46 = vmul.f32 %v3169_v49, %v3155_v30  ;;  %v3178_v7 = vmul.f32 %v3166_v32, %v3120_v22 }
0x182f   :  { %v3102_v34 = vpop.xlane.xlu0 %3101  ;;  %v3176_v40 = vmul.f32 %v3164_v2, %v7232_v18 }
0x1830   :  { %v3201_v53 = vmul.f32 %v3197_v36, %v3165_v3  ;;  %v3192_v17 = vmul.f32 2.0, %v3102_v34  ;;  %v3168_v56 = vmul.f32 %v3153_v59, %v3102_v34  ;;  %v3181_v60 = vadd.f32 %v3177_v8, %v3173_v46  ;;  %v4454_v46 = vld [vmem:[%s7811_s3 + $0x188] sm:$0xff] }
0x1832   :  { %v3205_v41 = vadd.f32 %v3201_v53, %v3105_v25  ;;  %v3172_v52 = vmul.f32 %v3168_v56, %v3153_v59 }
0x1834   :  { %v3180_v58 = vadd.f32 %v3176_v40, %v3172_v52  ;;  %v4455_v52 = vld [vmem:[%s7811_s3 + $0x190] sm:$0xff] }
0x1851   :  { %v3090_v37 = vpop.xlane.xlu1 %3089 }
0x186c   :  { %v3108_v28 = vpop.xlane.xlu0 %3107 }
0x186d   :  { %v3194_v61 = vmul.f32 2.0, %v3108_v28  ;;  %v3170_v23 = vmul.f32 %v3157_v10, %v3108_v28 }
0x186f   :  { %v3198_v39 = vsub.f32 %v3190_v16, %v3194_v61  ;;  %v3174_v9 = vmul.f32 %v3170_v23, %v3157_v10 }
0x1870   :  { %v3126_v42 = vpop.xlane.xlu0 %3125 }
0x1871   :  { %v3202_v20 = vmul.f32 %v3198_v39, %v3166_v32  ;;  %v3188_v62 = vadd.f32 %v3126_v42, %v7232_v18  ;;  %v3182_v57 = vadd.f32 %v3178_v7, %v3174_v9 }
0x1873   :  { %v3206_v50 = vadd.f32 %v3202_v20, %v3108_v28  ;;  %v3196_v19 = vsub.f32 %v3188_v62, %v3192_v17 }
0x1874   :  { %v3144_v51 = vpop.xlane.xlu0 %3143 }
0x1875   :  { %5465 = vrcp.f32 %v3206_v50  ;;  %v3200_v6 = vmul.f32 %v3196_v19, %v3164_v2  ;;  %v3186_v25 = vmul.f32 %v3182_v57, %v3144_v51 }
0x1876   :  { %5467 = vrcp.f32 %v3205_v41 }
0x1877   :  { %v3204_v29 = vadd.f32 %v3200_v6, %v3102_v34 }
0x1878   :  { %v3141_v27 = vpop.xlane.xlu0 %3140 }
0x1879   :  { %5469 = vrcp.f32 %v3204_v29  ;;  %v3185_v47 = vmul.f32 %v3181_v60, %v3141_v27  ;;  %v4453_v27 = vld [vmem:[%s7811_s3 + $0x180] sm:$0xff]  ;;  %v4456_v60 = vld [vmem:[%s7811_s3 + $0x198] sm:$0xff] }
0x187a   :  { %v5185_v1 = vpack.c.bf16 %v4454_v46, %v4453_v27  ;;  %v4470_v27 = vld [vmem:[%s7814_s4 + $0x3] ss:$0 sm:$0xff] }
0x187c   :  { %v3138_v26 = vpop.xlane.xlu0 %3137 }
0x187d   :  { %v3184_v30 = vmul.f32 %v3180_v58, %v3138_v26  ;;  %v4459_v58 = vld [vmem:[%s7811_s3 + $0x1b0] sm:$0xff] }
0x187f   :  { %v5466_v43 = vpop.eup %5465 }
0x1880   :  { %v3096_v22 = vpop.xlane.xlu0 %3095  ;;  %v3213_v44 = vmul.f32 %v5466_v43, %v3186_v25  ;;  %v5468_v55 = vpop.eup %5467  ;;  %v4457_v25 = vld [vmem:[%s7811_s3 + $0x1a0] sm:$0xff]  ;;  %v4458_v43 = vld [vmem:[%s7811_s3 + $0x1a8] sm:$0xff] }
0x1881   :  { %v3211_v24 = vmul.f32 %v5468_v55, %v3185_v47  ;;  %v5191_v47 = vpack.c.bf16 %v4458_v43, %v4457_v25  ;;  %v4461_v55 = vld [vmem:[%s7811_s3 + $0x1c0] sm:$0xff] }
0x1882   :  { %v3218_v15 = vadd.f32 %v3213_v44, %v3096_v22  ;;  %v4460_v22 = vld [vmem:[%s7811_s3 + $0x1b8] sm:$0xff] }
0x1883   :  { %v5470_v10 = vpop.eup %5469  ;;  %v5194_v44 = vpack.c.bf16 %v4460_v22, %v4459_v58 }
0x1884   :  { %v3209_v18 = vmul.f32 %v5470_v10, %v3184_v30  ;;  %v3093_v34 = vpop.xlane.xlu0 %3092  ;;  %v3222_v33 = vsel %vm2493_vm12, %v3218_v15, %v6949_v11  ;;  %vm2490_vm12 = vcmp.le.f32.partialorder %v6974_v38, 4.0  ;;  %v4462_v30 = vld [vmem:[%s7811_s3 + $0x1c8] sm:$0xff]  ;;  %v4463_v10 = vld [vmem:[%s7811_s3 + $0x1d0] sm:$0xff] }
0x1885   :  { %v3217_v31 = vadd.f32 %v3211_v24, %v3093_v34  ;;  %3225 = vrot.lane.b32.xlu0 %v3222_v33, %s5562_s15  ;;  %vm2494_vm13 = vmand %vm2486_vm6, %vm2490_vm12  ;;  %v5197_v15 = vpack.c.bf16 %v4462_v30, %v4461_v55  ;;  %v4464_v24 = vld [vmem:[%s7811_s3 + $0x1d8] sm:$0xff]  ;;  %v4465_v34 = vld [vmem:[%s7811_s3 + $0x1e0] sm:$0xff] }
0x1886   :  { %v3216_v59 = vadd.f32 %v3209_v18, %v3090_v37  ;;  %v5200_v18 = vpack.c.bf16 %v4464_v24, %v4463_v10  ;;  %v4466_v33 = vld [vmem:[%s7811_s3 + $0x1e8] sm:$0xff]  ;;  %v4467_v37 = vld [vmem:[%s7811_s3 + $0x1f0] sm:$0xff] }
0x1887   :  { %v3221_v48 = vsel %vm2492_vm15, %v3217_v31, %v6961_v5  ;;  %v5203_v31 = vpack.c.bf16 %v4466_v33, %v4465_v34 }
0x1888   :  { %3229 = vrot.lane.b32.xlu1 %v3221_v48, %s5563_s16  ;;  %v3220_v36 = vsel %vm2491_vm7, %v3216_v59, %v6750_v35  ;;  %v3087_v11 = vpop.xlane.xlu0 %3086  ;;  %v4468_v59 = vld [vmem:[%s7811_s3 + $0x1f8] sm:$0xff] }
0x1889   :  { %5471 = vrcp.f32 %v3087_v11  ;;  %v5206_v48 = vpack.c.bf16 %v4468_v59, %v4467_v37  ;;  %v4472_v11 = vld [vmem:[%s7812_s5 + $0x188] sm:$0xff] }
0x188c   :  { %3233 = vrot.lane.b32.xlu1 %v3220_v36, %s5564_s21  ;;  %v3075_v28 = vpop.xlane.xlu0 %3074  ;;  %v4471_v36 = vld [vmem:[%s7812_s5 + $0x180] sm:$0xff] }
0x188d   :  { %v3151_v5 = vsub.f32 %v4432_v45, %v3075_v28  ;;  %v4473_v28 = vld [vmem:[%s7812_s5 + $0x190] sm:$0xff] }
0x1890   :  { %v3111_v16 = vpop.xlane.xlu0 %3110 }
0x1891   :  { %v3195_v42 = vmul.f32 2.0, %v3111_v16 }
0x1893   :  { %v5472_v3 = vpop.eup %5471 }
0x1894   :  { %v3123_v61 = vpop.xlane.xlu0 %3122  ;;  %v3159_v32 = vmul.f32 %v5472_v3, %v3151_v5  ;;  %v4475_v5 = vld [vmem:[%s7812_s5 + $0x1a0] sm:$0xff] }
0x1896   :  { %v3163_v53 = vsub.f32 1.0, %v3159_v32  ;;  %v3171_v2 = vmul.f32 %v3159_v32, %v3111_v16 }
0x1898   :  { %v3135_v21 = vpop.xlane.xlu0 %3134  ;;  %v3167_v17 = vmul.f32 %v3163_v53, %v3159_v32  ;;  %v3175_v19 = vmul.f32 %v3171_v2, %v3159_v32  ;;  %v4478_v53 = vld [vmem:[%s7812_s5 + $0x1b8] sm:$0xff] }
0x1899   :  { %v3191_v39 = vadd.f32 %v3135_v21, %v3123_v61  ;;  %v4476_v21 = vld [vmem:[%s7812_s5 + $0x1a8] sm:$0xff]  ;;  %v4482_v2 = vld [vmem:[%s7812_s5 + $0x1d8] sm:$0xff] }
0x189a   :  { %v3179_v50 = vmul.f32 %v3167_v17, %v3123_v61  ;;  %v4474_v61 = vld [vmem:[%s7812_s5 + $0x198] sm:$0xff]  ;;  %v5215_v32 = vpack.c.bf16 %v4476_v21, %v4475_v5 }
0x189b   :  { %v3199_v20 = vsub.f32 %v3191_v39, %v3195_v42  ;;  %v5212_v3 = vpack.c.bf16 %v4474_v61, %v4473_v28  ;;  %v4477_v39 = vld [vmem:[%s7812_s5 + $0x1b0] sm:$0xff] }
0x189c   :  { %v3183_v23 = vadd.f32 %v3179_v50, %v3175_v19  ;;  %v5218_v42 = vpack.c.bf16 %v4478_v53, %v4477_v39  ;;  %v4483_v19 = vld [vmem:[%s7812_s5 + $0x1e0] sm:$0xff] }
0x189d   :  { %v3203_v62 = vmul.f32 %v3199_v20, %v3167_v17  ;;  %v4479_v20 = vld [vmem:[%s7812_s5 + $0x1c0] sm:$0xff]  ;;  %v4480_v17 = vld [vmem:[%s7812_s5 + $0x1c8] sm:$0xff] }
0x189f   :  { %v3207_v35 = vadd.f32 %v3203_v62, %v3111_v16  ;;  %v5209_v16 = vpack.c.bf16 %v4472_v11, %v4471_v36  ;;  %v5221_v62 = vpack.c.bf16 %v4480_v17, %v4479_v20 }
0x18a1   :  { %5473 = vrcp.f32 %v3207_v35  ;;  %5210 = vmatpush3.bf16.msra.mxu1 %v5209_v16  ;;  %v4481_v35 = vld [vmem:[%s7812_s5 + $0x1d0] sm:$0xff] }
0x18a2   :  { %5211 = vmatprep.subr.bf16.mxu1 %v5550_v4  ;;  %v5224_v50 = vpack.c.bf16 %v4482_v2, %v4481_v35 }
0x18a5   :  { %5213 = vmatpush3.bf16.msra.mxu1 %v5212_v3 }
0x18a6   :  { %5214 = vmatprep.subr.bf16.mxu1 %v5550_v4 }
0x18a9   :  { %5216 = vmatpush3.bf16.msra.mxu1 %v5215_v32 }
0x18aa   :  { %5217 = vmatprep.subr.bf16.mxu1 %v5550_v4 }
0x18ab   :  { %v5474_v49 = vpop.eup %5473 }
0x18ad   :  { %5219 = vmatpush3.bf16.msra.mxu1 %v5218_v42 }
0x18ae   :  { %5220 = vmatprep.subr.bf16.mxu1 %v5550_v4 }
0x18b1   :  { %v3147_v41 = vpop.xlane.xlu0 %3146  ;;  %5222 = vmatpush3.bf16.msra.mxu1 %v5221_v62 }
0x18b2   :  { %v3187_v51 = vmul.f32 %v3183_v23, %v3147_v41  ;;  %5223 = vmatprep.subr.bf16.mxu1 %v5550_v4  ;;  %v4484_v41 = vld [vmem:[%s7812_s5 + $0x1e8] sm:$0xff] }
0x18b3   :  { %v5227_v23 = vpack.c.bf16 %v4484_v41, %v4483_v19 }
0x18b4   :  { %v3215_v6 = vmul.f32 %v5474_v49, %v3187_v51  ;;  %v4450_v51 = vld [vmem:[%s7813_s2 + $0x3] ss:$0 sm:$0xff] }
0x18b5   :  { %v3099_v29 = vpop.xlane.xlu0 %3098  ;;  %5225 = vmatpush3.bf16.msra.mxu1 %v5224_v50 }
0x18b6   :  { %v3219_v45 = vadd.f32 %v3215_v6, %v3099_v29  ;;  %5226 = vmatprep.subr.bf16.mxu1 %v5550_v4 }
0x18b8   :  { %v3223_v7 = vsel %vm2494_vm13, %v3219_v45, %v6974_v38  ;;  %v5188_v38 = vpack.c.bf16 %v4456_v60, %v4455_v52 }
0x18b9   :  { %5228 = vmatpush3.bf16.msra.mxu1 %v5227_v23 }
0x18ba   :  { %5229 = vmatprep.subr.bf16.mxu1 %v5550_v4 }
0x18f7   :  { %v3226_v56 = vpop.permute.xlu0 %3225 }
0x18f8   :  { %v3236_v8 = vsel %vm397_vm9, %v3223_v7, %v3226_v56  ;;  %v4486_v56 = vld [vmem:[%s7812_s5 + $0x1f8] sm:$0xff] }
0x18fa   :  { %v3230_v9 = vpop.permute.xlu1 %3229 }
0x18fb   :  { %v3237_v57 = vsel %vm1129_vm10, %v3236_v8, %v3230_v9 }
0x18fe   :  { %v3234_v26 = vpop.permute.xlu1 %3233 }
0x18ff   :  { %v7285_v40 = vsel %vm1131_vm11, %v3237_v57, %v3234_v26  ;;  %v4488_v57 = vld [vmem:[%s7815_s6 + $0x3] ss:$0 sm:$0xff] }
0x1900   :  { %4944 = vmatmul.mubr.msk.f32.vlgmr.msra.gmra.mrb[14].mxu0 %vm7952_vm14, %v7285_v40 }
0x1901   :  { %5186 = vmatpush3.bf16.msra.mxu0 %v5185_v1  ;;  %4978 = vmatprep.mubr.msk.f32.mxu0 %vm7829_vm8, %v5548_v0 }
0x1902   :  { %5187 = vmatprep.subr.bf16.mxu0 %v5550_v4 }
0x1905   :  { %5189 = vmatpush3.bf16.msra.mxu0 %v5188_v38 }
0x1906   :  { %5190 = vmatprep.subr.bf16.mxu0 %v5550_v4 }
0x1909   :  { %5192 = vmatpush3.bf16.msra.mxu0 %v5191_v47 }
0x190a   :  { %5193 = vmatprep.subr.bf16.mxu0 %v5550_v4 }
0x190d   :  { %5195 = vmatpush3.bf16.msra.mxu0 %v5194_v44 }
0x190e   :  { %5196 = vmatprep.subr.bf16.mxu0 %v5550_v4 }
0x1911   :  { %5198 = vmatpush3.bf16.msra.mxu0 %v5197_v15 }
0x1912   :  { %5199 = vmatprep.subr.bf16.mxu0 %v5550_v4 }
0x1915   :  { %5201 = vmatpush3.bf16.msra.mxu0 %v5200_v18 }
0x1916   :  { %5202 = vmatprep.subr.bf16.mxu0 %v5550_v4 }
0x1919   :  { %5204 = vmatpush3.bf16.msra.mxu0 %v5203_v31 }
0x191a   :  { %5205 = vmatprep.subr.bf16.mxu0 %v5550_v4  ;;  %v4485_v4 = vld [vmem:[%s7812_s5 + $0x1f0] sm:$0xff] }
0x191b   :  { %v5230_v9 = vpack.c.bf16 %v4486_v56, %v4485_v4 }
0x191d   :  { %5207 = vmatpush3.bf16.msra.mxu0 %v5206_v48  ;;  %5231 = vmatpush3.bf16.msra.mxu1 %v5230_v9 }
0x191e   :  { %5233 = vmatprep.subr.msk.bf16.mxu0 %vm5838_vm4, %v5559_v13  ;;  %5236 = vmatprep.subr.msk.bf16.mxu1 %vm5838_vm4, %v5559_v13 }
0x19d3   :  { %v3321_v49 = vpop.f32.mrb[14].mxu0 }
0x19d4   :  { %v3322_v6 = vadd.f32 %v4450_v51, %v3321_v49  ;;  %v4945_v29 = vpop.f32.mrb[15].mxu0 }
0x19d6   :  { %v3325_v45 = vmax.f32 %v3322_v6, 0.0 }
0x19d8   :  { %4979 = vmatmul.mubr.f32.vlgmr.msra.gmra.mrb[16].mxu0 %v3325_v45 }
0x19d9   :  { %5235 = vmatpush3.bf16.msk.msra.mxu0 %vm5838_vm4, %v5559_v13 }
0x19da   :  { %5020 = vmatprep.subr.msk.mxu0 %vm84_vm0, %v5851_v14 }
0x19dd   :  { %5021 = vmatpush3.msk.msra.mxu0 %vm84_vm0, %v5851_v14 }
0x1aab   :  { %v3417_v46 = vpop.f32.mrb[16].mxu0 }
0x1aac   :  { %v3418_v7 = vadd.f32 %v4470_v27, %v3417_v46  ;;  %v4980_v8 = vpop.f32.mrb[17].mxu0 }
0x1aae   :  { %v3421_v1 = vmax.f32 %v3418_v7, 0.0 }
0x1ab0   :  { %5014 = vmatmul.mubr.f32.vlgmr.msra.gmra.mrb[16].mxu1 %v3421_v1 }
0x1ab1   :  { %5238 = vmatpush3.bf16.msk.msra.mxu1 %vm5838_vm4, %v5559_v13  ;;  %vm7953_vm4 = vcmask 162896  }
0x1ab2   :  { %5237 = vmatprep.subr.msk.mxu1 %vm84_vm0, %v5851_v14  ;;  %vm7955_vm8 = vmmov %vm7953_vm4 }
0x1ab3   :  { %vm7957_vm3 = vmmov %vm7953_vm4 }
0x1ab4   :  { %vm7958_vm7 = vmmov %vm7957_vm3 }
0x1ab5   :  { %5239 = vmatpush3.msk.msra.mxu1 %vm84_vm0, %v5851_v14  ;;  %vm7954_vm0 = vcmask 80896  }
0x1ab6   :  { %vm7956_vm15 = vmmov %vm7954_vm0 }
0x1ab7   :  { %vm7959_vm6 = vmmov %vm7954_vm0 }
0x1ab8   :  { %vm7960_vm12 = vmmov %vm7954_vm0 }
0x1ab9   :  { %vm7961_vm13 = vmmov %vm7954_vm0 }
0x1aba   :  { %vm7962_vm14 = vmmov %vm7954_vm0 }
0x1b83   :  { %v3513_v26 = vpop.f32.mrb[16].mxu1 }
0x1b84   :  { %v7418_v52 = vadd.f32 %v4488_v57, %v3513_v26  ;;  %v5015_v60 = vpop.f32.mrb[17].mxu1 }
0x1b86   :  { %3518 = vrot.lane.b32.xlu1 %v7418_v52, %s5552_s30  ;;  %3521 = vrot.lane.b32.xlu0 %v7418_v52, %s5553_s8  ;;  %v3664_v12 = vsel %vm7953_vm4, %v7418_v52, -inf  ;;  %v3612_v13 = vsel %vm7954_vm0, %v7418_v52, -inf  ;;  %vm7963_vm4 = vmmov %vm7954_vm0 }
0x1b8a   :  { %3524 = vrot.lane.b32.xlu0 %v7418_v52, %s5551_s29 }
0x1baa   :  { %3665 = vmax.xlane.f32.xlu1 %v3664_v12 }
0x1bae   :  { %3613 = vmax.xlane.f32.xlu1 %v3612_v13 }
0x1bf8   :  { %v7430_v14 = vpop.permute.xlu1 %3518  ;;  %v7432_v38 = vpop.permute.xlu0 %3521 }
0x1bf9   :  { %v3670_v25 = vsel %vm7955_vm8, %v7432_v38, -inf  ;;  %v3615_v43 = vsel %vm7956_vm15, %v7430_v14, -inf  ;;  %v3667_v47 = vsel %vm7957_vm3, %v7430_v14, -inf  ;;  %v3618_v44 = vsel %vm7959_vm6, %v7432_v38, -inf  ;;  %vm7964_vm8 = vmmov %vm7954_vm0 }
0x1bfa   :  { %3671 = vmax.xlane.f32.xlu0 %v3670_v25  ;;  %3616 = vmax.xlane.f32.xlu1 %v3615_v43  ;;  %vm7965_vm15 = vmmov %vm7954_vm0 }
0x1bfb   :  { %vm7966_vm3 = vmmov %vm7954_vm0 }
0x1bfc   :  { %v7440_v58 = vpop.permute.xlu0 %3524  ;;  %vm7968_vm6 = vmmov %vm7954_vm0 }
0x1bfd   :  { %v3673_v22 = vsel %vm7958_vm7, %v7440_v58, -inf  ;;  %v3621_v55 = vsel %vm7960_vm12, %v7440_v58, -inf  ;;  %vm7967_vm7 = vmmov %vm7954_vm0 }
0x1bfe   :  { %3668 = vmax.xlane.f32.xlu0 %v3667_v47  ;;  %vm7969_vm12 = vmmov %vm7954_vm0 }
0x1c02   :  { %3674 = vmax.xlane.f32.xlu0 %v3673_v22 }
0x1c06   :  { %3619 = vmax.xlane.f32.xlu0 %v3618_v44 }
0x1c0a   :  { %3622 = vmax.xlane.f32.xlu0 %v3621_v55 }
0x1c37   :  { %v3666_v30 = vpop.xlane.xlu1 %3665 }
0x1c38   :  { %v3676_v15 = vsub.f32 %v7418_v52, %v3666_v30 }
0x1c3a   :  { %v3680_v10 = vmul.f32 1.442695, %v3676_v15 }
0x1c3b   :  { %v3614_v53 = vpop.xlane.xlu1 %3613 }
0x1c3c   :  { %5475 = vpow2.f32 %v3680_v10  ;;  %v3624_v42 = vsub.f32 %v7418_v52, %v3614_v53 }
0x1c3e   :  { %v3628_v62 = vmul.f32 1.442695, %v3624_v42 }
0x1c46   :  { %v7449_v24 = vpop.eup %5475 }
0x1c47   :  { %3692 = vrot.lane.b32.xlu1 %v7449_v24, %s5554_s9 }
0x1c87   :  { %v3672_v18 = vpop.xlane.xlu0 %3671  ;;  %v3617_v17 = vpop.xlane.xlu1 %3616 }
0x1c88   :  { %v3678_v34 = vsub.f32 %v7432_v38, %v3672_v18  ;;  %v3625_v35 = vsub.f32 %v7430_v14, %v3617_v17 }
0x1c8a   :  { %v3684_v33 = vmul.f32 1.442695, %v3678_v34  ;;  %v3630_v50 = vmul.f32 1.442695, %v3625_v35 }
0x1c8b   :  { %v3669_v31 = vpop.xlane.xlu0 %3668 }
0x1c8c   :  { %5477 = vpow2.f32 %v3684_v33  ;;  %v3677_v37 = vsub.f32 %v7430_v14, %v3669_v31 }
0x1c8e   :  { %v3682_v59 = vmul.f32 1.442695, %v3677_v37 }
0x1c8f   :  { %v3675_v48 = vpop.xlane.xlu0 %3674 }
0x1c90   :  { %5479 = vpow2.f32 %v3682_v59  ;;  %v3679_v36 = vsub.f32 %v7440_v58, %v3675_v48 }
0x1c92   :  { %v3686_v11 = vmul.f32 1.442695, %v3679_v36 }
0x1c93   :  { %v3620_v61 = vpop.xlane.xlu0 %3619 }
0x1c94   :  { %5481 = vpow2.f32 %v3686_v11  ;;  %v3626_v5 = vsub.f32 %v7432_v38, %v3620_v61 }
0x1c96   :  { %v7456_v28 = vpop.eup %5477  ;;  %v3632_v21 = vmul.f32 1.442695, %v3626_v5 }
0x1c97   :  { %3696 = vrot.lane.b32.xlu0 %v7456_v28, %s5554_s9  ;;  %v3623_v32 = vpop.xlane.xlu0 %3622 }
0x1c98   :  { %5483 = vpow2.f32 %v3632_v21  ;;  %v3627_v39 = vsub.f32 %v7440_v58, %v3623_v32 }
0x1c9a   :  { %v7460_v16 = vpop.eup %5479  ;;  %v3634_v20 = vmul.f32 1.442695, %v3627_v39 }
0x1c9b   :  { %3694 = vrot.lane.b32.xlu1 %v7460_v16, %s5554_s9 }
0x1c9c   :  { %5485 = vpow2.f32 %v3634_v20 }
0x1c9d   :  { %5487 = vpow2.f32 %v3628_v62 }
0x1c9e   :  { %v7464_v3 = vpop.eup %5481  ;;  %5489 = vpow2.f32 %v3630_v50 }
0x1c9f   :  { %3698 = vrot.lane.b32.xlu1 %v7464_v3, %s5554_s9 }
0x1ca2   :  { %v5484_v2 = vpop.eup %5483 }
0x1ca3   :  { %v3642_v19 = vsel %vm7961_vm13, %v5484_v2, 0.0  ;;  %vm7970_vm13 = vmmov %vm7954_vm0 }
0x1ca6   :  { %v7474_v51 = vpop.eup %5485 }
0x1ca7   :  { %v3645_v49 = vsel %vm7963_vm4, %v7474_v51, 0.0  ;;  %v5488_v6 = vpop.eup %5487  ;;  %vm7972_vm4 = vmmov %vm7954_vm0 }
0x1ca8   :  { %v3636_v29 = vsel %vm7954_vm0, %v5488_v6, 0.0  ;;  %v5490_v45 = vpop.eup %5489 }
0x1ca9   :  { %v3639_v4 = vsel %vm7964_vm8, %v5490_v45, 0.0 }
0x1cb6   :  { %3643 = vadd.xlane.f32.xlu0 %v3642_v19 }
0x1cb9   :  { %v3693_v41 = vpop.permute.xlu1 %3692 }
0x1cba   :  { %v3704_v23 = vsel %vm7962_vm14, %v3693_v41, 0.0  ;;  %vm7971_vm14 = vmmov %vm7954_vm0 }
0x1cbb   :  { %3705 = vadd.xlane.f32.xlu0 %v3704_v23 }
0x1cbf   :  { %3646 = vadd.xlane.f32.xlu0 %v3645_v49 }
0x1cc3   :  { %3637 = vadd.xlane.f32.xlu1 %v3636_v29 }
0x1cc7   :  { %3640 = vadd.xlane.f32.xlu1 %v3639_v4 }
0x1d09   :  { %v3697_v56 = vpop.permute.xlu0 %3696 }
0x1d0a   :  { %v3710_v9 = vsel %vm7965_vm15, %v3697_v56, 0.0 }
0x1d0b   :  { %3711 = vadd.xlane.f32.xlu0 %v3710_v9 }
0x1d0d   :  { %v3695_v27 = vpop.permute.xlu1 %3694 }
0x1d0e   :  { %v3707_v46 = vsel %vm7966_vm3, %v3695_v27, 0.0 }
0x1d0f   :  { %3708 = vadd.xlane.f32.xlu1 %v3707_v46 }
0x1d11   :  { %v3699_v7 = vpop.permute.xlu1 %3698 }
0x1d12   :  { %v3713_v8 = vsel %vm7967_vm7, %v3699_v7, 0.0 }
0x1d13   :  { %3714 = vadd.xlane.f32.xlu0 %v3713_v8 }
0x1d20   :  { %3527 = vrot.lane.b32.xlu1 %v7285_v40, %s5558_s12 }
0x1d24   :  { %3533 = vrot.lane.b32.xlu1 %v7285_v40, %s5557_s11 }
0x1d29   :  { %3530 = vrot.lane.b32.xlu0 %v7285_v40, %s5556_s10 }
0x1d43   :  { %v3644_v1 = vpop.xlane.xlu0 %3643 }
0x1d48   :  { %v3706_v57 = vpop.xlane.xlu0 %3705 }
0x1d49   :  { %5491 = vrcp.f32 %v3706_v57 }
0x1d4c   :  { %v3647_v30 = vpop.xlane.xlu0 %3646 }
0x1d50   :  { %v3638_v26 = vpop.xlane.xlu1 %3637 }
0x1d51   :  { %5493 = vrcp.f32 %v3638_v26 }
0x1d52   :  { %5495 = vrcp.f32 %v3644_v1 }
0x1d53   :  { %v5492_v60 = vpop.eup %5491 }
0x1d54   :  { %v3717_v12 = vmul.f32 %v5492_v60, %v7449_v24  ;;  %v3641_v15 = vpop.xlane.xlu1 %3640 }
0x1d55   :  { %5497 = vrcp.f32 %v3641_v15 }
0x1d56   :  { %v3724_v43 = vmul.f32 0.99, %v3717_v12 }
0x1d58   :  { %v3728_v44 = vadd.f32 0.001, %v3724_v43 }
0x1d5b   :  { %v5494_v13 = vpop.eup %5493 }
0x1d5c   :  { %v3649_v25 = vmul.f32 %v5494_v13, %v5488_v6  ;;  %v5496_v18 = vpop.eup %5495 }
0x1d5d   :  { %v3653_v24 = vmul.f32 %v5496_v18, %v5484_v2 }
0x1d5e   :  { %v3656_v47 = vmul.f32 0.99, %v3649_v25 }
0x1d5f   :  { %v5498_v37 = vpop.eup %5497  ;;  %v3658_v36 = vmul.f32 0.99, %v3653_v24 }
0x1d60   :  { %v3660_v22 = vadd.f32 0.001, %v3656_v47  ;;  %v3651_v21 = vmul.f32 %v5498_v37, %v5490_v45 }
0x1d61   :  { %v3662_v17 = vadd.f32 0.001, %v3658_v36 }
0x1d62   :  { %v3732_v55 = vsel %vm7968_vm6, %v3660_v22, %v3728_v44  ;;  %v3657_v35 = vmul.f32 0.99, %v3651_v21  ;;  %vm7974_vm6 = vcmask 89088  }
0x1d63   :  { %5022 = vmatprep.mubr.msk.f32.mxu0 %vm568_vm1, %v3732_v55 }
0x1d64   :  { %v3661_v23 = vadd.f32 0.001, %v3657_v35 }
0x1d98   :  { %v3712_v10 = vpop.xlane.xlu0 %3711 }
0x1d99   :  { %5499 = vrcp.f32 %v3712_v10 }
0x1d9a   :  { %5501 = vrcp.f32 %v3647_v30 }
0x1d9c   :  { %v3709_v34 = vpop.xlane.xlu1 %3708 }
0x1d9d   :  { %5503 = vrcp.f32 %v3709_v34 }
0x1da0   :  { %v3715_v33 = vpop.xlane.xlu0 %3714  ;;  %v7492_v31 = vpop.permute.xlu1 %3527 }
0x1da1   :  { %5505 = vrcp.f32 %v3715_v33  ;;  %v4490_v59 = vclamps-f32 %v7492_v31, 4.0 }
0x1da3   :  { %v5500_v48 = vpop.eup %5499  ;;  %3936 = vperm.xlu1 %5257, %v4490_v59  }
0x1da4   :  { %v7497_v11 = vpop.permute.xlu0 %3530  ;;  %v7499_v61 = vpop.permute.xlu1 %3533  ;;  %v3721_v5 = vmul.f32 %v5500_v48, %v7456_v28 }
0x1da5   :  { %v5502_v32 = vpop.eup %5501  ;;  %v4491_v39 = vclamps-f32 %v7497_v11, 4.0  ;;  %v4492_v53 = vclamps-f32 %v7499_v61, 4.0 }
0x1da6   :  { %v3726_v42 = vmul.f32 0.99, %v3721_v5  ;;  %v3655_v28 = vmul.f32 %v5502_v32, %v7474_v51 }
0x1da7   :  { %v5504_v20 = vpop.eup %5503  ;;  %3941 = vperm.xlu0 %5258, %v4491_v39   ;;  %3946 = vperm.xlu1 %5257, %v4492_v53  }
0x1da8   :  { %v3730_v62 = vadd.f32 0.001, %v3726_v42  ;;  %v3719_v2 = vmul.f32 %v5504_v20, %v7460_v16  ;;  %v3659_v6 = vmul.f32 0.99, %v3655_v28 }
0x1daa   :  { %v3734_v50 = vsel %vm7969_vm12, %v3662_v17, %v3730_v62  ;;  %v3725_v19 = vmul.f32 0.99, %v3719_v2  ;;  %v3663_v45 = vadd.f32 0.001, %v3659_v6 }
0x1dab   :  { %v5506_v41 = vpop.eup %5505  ;;  %5025 = vmatprep.mubr.msk.f32.mxu1 %vm568_vm1, %v3734_v50  ;;  %3558 = vrot.lane.b32.xlu0 %v7430_v14, %s5560_s13  ;;  %v4489_v14 = vclamps-f32 %v7285_v40, 4.0 }
0x1dac   :  { %3560 = vrot.lane.b32.xlu1 %v7432_v38, %s5560_s13  ;;  %v3729_v49 = vadd.f32 0.001, %v3725_v19  ;;  %v3723_v29 = vmul.f32 %v5506_v41, %v7464_v3 }
0x1dae   :  { %v3733_v16 = vsel %vm7970_vm13, %v3661_v23, %v3729_v49  ;;  %v3727_v51 = vmul.f32 0.99, %v3723_v29  ;;  %vm7975_vm13 = vmmov %vm7974_vm6 }
0x1daf   :  { %3562 = vrot.lane.b32.xlu0 %v7440_v58, %s5560_s13  ;;  %5023 = vmatmul.mubr.msk.f32.vlgmr.msra.gmra.mrb[18].mxu0 %vm568_vm1, %v3733_v16 }
0x1db0   :  { %v3731_v4 = vadd.f32 0.001, %v3727_v51 }
0x1db2   :  { %v3735_v56 = vsel %vm7971_vm14, %v3663_v45, %v3731_v4 }
0x1db3   :  { %5026 = vmatmul.mubr.msk.f32.vlgmr.msra.gmra.mrb[18].mxu1 %vm568_vm1, %v3735_v56  ;;  %3931 = vperm.xlu0 %5258, %v4489_v14   ;;  %vm7973_vm1 = vmmov %vm7954_vm0 }
0x1db7   :  { %3556 = vrot.lane.b32.xlu0 %v7418_v52, %s5560_s13 }
0x1e22   :  { %v7528_v38 = vpop.permute.xlu1 %3936 }
0x1e26   :  { %v7530_v3 = vpop.permute.xlu0 %3941  ;;  %v7532_v58 = vpop.permute.xlu1 %3946 }
0x1e2a   :  { %v3559_v9 = vpop.permute.xlu0 %3558  ;;  %v3561_v46 = vpop.permute.xlu1 %3560 }
0x1e2b   :  { %v3569_v27 = vsel %vm397_vm9, 0.5397424, %v3559_v9  ;;  %v3570_v8 = vsel %vm397_vm9, 0.5397424, %v3561_v46 }
0x1e2c   :  { %v3573_v7 = vsel %vm7972_vm4, %v3569_v27, 0.5397424  ;;  %v3574_v57 = vsel %vm7973_vm1, %v3570_v8, 0.5397424  ;;  %vm7976_vm4 = vmmov %vm7974_vm6 }
0x1e2d   :  { %v3581_v1 = vmin.f32 %v3573_v7, 20.0  ;;  %v3582_v26 = vmin.f32 %v3574_v57, 20.0  ;;  %vm3577_vm8 = vcmp.gt.f32.partialorder %v3573_v7, 20.0  ;;  %vm3578_vm15 = vcmp.gt.f32.partialorder %v3574_v57, 20.0 }
0x1e2e   :  { %v3563_v60 = vpop.permute.xlu0 %3562 }
0x1e2f   :  { %v3586_v52 = vmul.f32 1.442695, %v3581_v1  ;;  %v3571_v12 = vsel %vm397_vm9, 0.5397424, %v3563_v60  ;;  %v3588_v13 = vmul.f32 1.442695, %v3582_v26 }
0x1e30   :  { %v3575_v25 = vsel %vm7954_vm0, %v3571_v12, 0.5397424  ;;  %vm7977_vm0 = vmmov %vm7976_vm4 }
0x1e31   :  { %5507 = vpow2.f32 %v3586_v52  ;;  %v3583_v43 = vmin.f32 %v3575_v25, 20.0  ;;  %vm3579_vm3 = vcmp.gt.f32.partialorder %v3575_v25, 20.0 }
0x1e32   :  { %5509 = vpow2.f32 %v3588_v13 }
0x1e33   :  { %v3590_v47 = vmul.f32 1.442695, %v3583_v43 }
0x1e35   :  { %5511 = vpow2.f32 %v3590_v47 }
0x1e3b   :  { %v5508_v22 = vpop.eup %5507 }
0x1e3c   :  { %v5510_v44 = vpop.eup %5509  ;;  %v3593_v55 = vadd.f32 1.0, %v5508_v22 }
0x1e3d   :  { %v3594_v30 = vadd.f32 1.0, %v5510_v44 }
0x1e3e   :  { %5513 = vlog2.f32 %v3593_v55 }
0x1e3f   :  { %v5512_v15 = vpop.eup %5511  ;;  %5515 = vlog2.f32 %v3594_v30 }
0x1e40   :  { %v3595_v10 = vadd.f32 1.0, %v5512_v15 }
0x1e42   :  { %5517 = vlog2.f32 %v3595_v10 }
0x1e48   :  { %v5514_v18 = vpop.eup %5513 }
0x1e49   :  { %v5516_v34 = vpop.eup %5515  ;;  %v3599_v24 = vmul.f32 0.6931472, %v5514_v18 }
0x1e4a   :  { %v3601_v33 = vmul.f32 0.6931472, %v5516_v34 }
0x1e4b   :  { %v3605_v37 = vsel %vm3577_vm8, %v3573_v7, %v3599_v24  ;;  %vm7978_vm8 = vcmask 80896  }
0x1e4c   :  { %v5518_v48 = vpop.eup %5517  ;;  %v7540_v36 = vadd.f32 0.001, %v3605_v37  ;;  %v3606_v5 = vsel %vm3578_vm15, %v3574_v57, %v3601_v33  ;;  %vm7979_vm15 = vmmov %vm7978_vm8 }
0x1e4d   :  { %v3603_v21 = vmul.f32 0.6931472, %v5518_v48  ;;  %v7544_v32 = vadd.f32 0.001, %v3606_v5 }
0x1e4e   :  { %4063 = vrot.lane.b32.xlu0 %v7540_v36, %s5558_s12 }
0x1e4f   :  { %v3607_v42 = vsel %vm3579_vm3, %v3575_v25, %v3603_v21  ;;  %vm7980_vm3 = vmmov %vm7978_vm8 }
0x1e50   :  { %v7548_v20 = vadd.f32 0.001, %v3607_v42 }
0x1e52   :  { %4065 = vrot.lane.b32.xlu0 %v7544_v32, %s5558_s12 }
0x1e56   :  { %4067 = vrot.lane.b32.xlu0 %v7548_v20, %s5558_s12 }
0x1e82   :  { %v5024_v17 = vpop.f32.mrb[18].mxu0 }
0x1e83   :  { %v3834_v62 = vmul.f32 8.0, %v5024_v17  ;;  %v3814_v35 = vpop.f32.mrb[19].mxu0 }
0x1e84   :  { %v3833_v23 = vmul.f32 8.0, %v3814_v35 }
0x1e85   :  { %v3838_v2 = vadd.f32 -4.0, %v3834_v62 }
0x1e86   :  { %v5027_v28 = vpop.f32.mrb[18].mxu1  ;;  %v3837_v16 = vadd.f32 -4.0, %v3833_v23 }
0x1e87   :  { %v3836_v50 = vmul.f32 8.0, %v5027_v28  ;;  %v3824_v19 = vpop.f32.mrb[19].mxu1  ;;  %3855 = vrot.lane.b32.xlu1 %v3838_v2, %s5561_s14  ;;  %v3842_v29 = vsel %vm678_vm5, 4.0, %v3838_v2 }
0x1e88   :  { %v3835_v41 = vmul.f32 8.0, %v3824_v19  ;;  %v7559_v51 = vsel %vm677_vm2, -4.0, %v3842_v29  ;;  %v3841_v27 = vsel %vm678_vm5, 4.0, %v3837_v16 }
0x1e89   :  { %v3840_v49 = vadd.f32 -4.0, %v3836_v50  ;;  %v7584_v46 = vsel %vm677_vm2, -4.0, %v3841_v27  ;;  %v3922_v1 = vadd.f32 1e-06, %v7559_v51 }
0x1e8a   :  { %v3839_v6 = vadd.f32 -4.0, %v3835_v41  ;;  %v3921_v29 = vadd.f32 1e-06, %v7584_v46 }
0x1e8b   :  { %3859 = vrot.lane.b32.xlu0 %v3840_v49, %s5561_s14  ;;  %v3844_v4 = vsel %vm678_vm5, 4.0, %v3840_v49  ;;  %v3926_v60 = vsel %vm678_vm5, %v3922_v1, %v7559_v51 }
0x1e8c   :  { %3857 = vrot.lane.b32.xlu1 %v3839_v6, %s5561_s14  ;;  %v3843_v45 = vsel %vm678_vm5, 4.0, %v3839_v6  ;;  %v7574_v9 = vsel %vm677_vm2, -4.0, %v3844_v4  ;;  %vm3950_vm12 = vcmp.ge.f32.partialorder %v7528_v38, %v3926_v60 }
0x1e8d   :  { %v7570_v56 = vsel %vm677_vm2, -4.0, %v3843_v45  ;;  %v3924_v12 = vadd.f32 1e-06, %v7574_v9  ;;  %v3954_v25 = vsel %vm3950_vm12, 1, %v5555_v54  ;;  %vm7982_vm12 = vmmov %vm7980_vm3 }
0x1e8e   :  { %v3923_v7 = vadd.f32 1e-06, %v7570_v56  ;;  %v3970_v43 = vsel %vm7975_vm13, %v3954_v25, 0  ;;  %vm7983_vm13 = vmmov %vm7980_vm3 }
0x1e8f   :  { %3853 = vrot.lane.b32.xlu0 %v3837_v16, %s5561_s14  ;;  %v3972_v47 = vshrl.u32 %v3970_v43, 16  ;;  %v3971_v55 = vand.u32 65535, %v3970_v43  ;;  %v3925_v16 = vsel %vm678_vm5, %v3921_v29, %v7584_v46 }
0x1e90   :  { %3879 = vrot.lane.b32.xlu1 %v7559_v51, %s5562_s15  ;;  %v3927_v8 = vsel %vm678_vm5, %v3923_v7, %v7570_v56 }
0x1e91   :  { %vm3951_vm7 = vcmp.ge.f32.partialorder %v7530_v3, %v3927_v8  ;;  %v3928_v3 = vsel %vm678_vm5, %v3924_v12, %v7574_v9  ;;  %v3974_v44 = vcvt.s32.f32 %v3972_v47  ;;  %v3973_v30 = vcvt.s32.f32 %v3971_v55 }
0x1e92   :  { %v3955_v57 = vsel %vm3951_vm7, 1, %v5555_v54  ;;  %vm3952_vm14 = vcmp.ge.f32.partialorder %v7532_v58, %v3928_v3  ;;  %v3932_v58 = vpop.permute.xlu0 %3931 }
0x1e93   :  { %3881 = vrot.lane.b32.xlu0 %v7570_v56, %s5562_s15  ;;  %v3983_v26 = vsel %vm7974_vm6, %v3955_v57, 0  ;;  %v3956_v22 = vsel %vm3952_vm14, 1, %v5555_v54  ;;  %vm3949_vm1 = vcmp.ge.f32.partialorder %v3932_v58, %v3925_v16  ;;  %vm7981_vm6 = vmmov %vm7980_vm3 }
0x1e94   :  { %3883 = vrot.lane.b32.xlu1 %v7574_v9, %s5562_s15  ;;  %v3985_v52 = vshrl.u32 %v3983_v26, 16  ;;  %v3996_v38 = vsel %vm7976_vm4, %v3956_v22, 0  ;;  %v3984_v24 = vand.u32 65535, %v3983_v26  ;;  %v3953_v45 = vsel %vm3949_vm1, 1, %v5555_v54  ;;  %vm7984_vm14 = vmmov %vm7980_vm3 }
0x1e95   :  { %v3998_v15 = vshrl.u32 %v3996_v38, 16  ;;  %v3997_v18 = vand.u32 65535, %v3996_v38  ;;  %v3957_v4 = vsel %vm7977_vm0, %v3953_v45, 0  ;;  %vm7985_vm4 = vmmov %vm7980_vm3 }
0x1e96   :  { %v3987_v13 = vcvt.s32.f32 %v3985_v52  ;;  %v3986_v33 = vcvt.s32.f32 %v3984_v24  ;;  %v7609_v37 = vpop.permute.xlu0 %3556  ;;  %v3958_v27 = vand.u32 65535, %v3957_v4  ;;  %v3959_v7 = vshrl.u32 %v3957_v4, 16  ;;  %vm7986_vm1 = vmmov %vm7980_vm3 }
0x1e97   :  { %v4000_v10 = vcvt.s32.f32 %v3998_v15  ;;  %v3999_v34 = vcvt.s32.f32 %v3997_v18  ;;  %vm7987_vm0 = vmmov %vm7986_vm1 }
0x1e98   :  { %3877 = vrot.lane.b32.xlu1 %v7584_v46, %s5562_s15  ;;  %v3960_v8 = vcvt.s32.f32 %v3958_v27  ;;  %v3961_v1 = vcvt.s32.f32 %v3959_v7 }
0x1eb2   :  { %3990 = vadd.xlane.f32.xlu0 %v3987_v13 }
0x1ebc   :  { %3977 = vadd.xlane.f32.xlu1 %v3974_v44 }
0x1ec0   :  { %3975 = vadd.xlane.f32.xlu1 %v3973_v30  ;;  %v7611_v48 = vpop.permute.xlu0 %4063 }
0x1ec4   :  { %4003 = vadd.xlane.f32.xlu1 %v4000_v10  ;;  %v7613_v5 = vpop.permute.xlu0 %4065 }
0x1ec8   :  { %4001 = vadd.xlane.f32.xlu1 %v3999_v34  ;;  %v7615_v21 = vpop.permute.xlu0 %4067 }
0x1ecc   :  { %3988 = vadd.xlane.f32.xlu1 %v3986_v33 }
0x1ef9   :  { %v3856_v42 = vpop.permute.xlu1 %3855 }
0x1efa   :  { %v3866_v17 = vsel %vm678_vm5, 4.0, %v3856_v42 }
0x1efb   :  { %v7621_v62 = vsel %vm677_vm2, -4.0, %v3866_v17 }
0x1efc   :  { %3899 = vrot.lane.b32.xlu1 %v7621_v62, %s5562_s15 }
0x1efd   :  { %v3860_v35 = vpop.permute.xlu0 %3859 }
0x1efe   :  { %v3868_v2 = vsel %vm678_vm5, 4.0, %v3860_v35  ;;  %v3858_v50 = vpop.permute.xlu1 %3857 }
0x1eff   :  { %v7629_v28 = vsel %vm677_vm2, -4.0, %v3868_v2  ;;  %v3867_v49 = vsel %vm678_vm5, 4.0, %v3858_v50 }
0x1f00   :  { %3903 = vrot.lane.b32.xlu1 %v7629_v28, %s5562_s15  ;;  %v7645_v6 = vsel %vm677_vm2, -4.0, %v3867_v49 }
0x1f01   :  { %v3854_v19 = vpop.permute.xlu0 %3853 }
0x1f02   :  { %v3865_v41 = vsel %vm678_vm5, 4.0, %v3854_v19  ;;  %v3880_v57 = vpop.permute.xlu1 %3879 }
0x1f03   :  { %v7637_v23 = vsel %vm677_vm2, -4.0, %v3865_v41  ;;  %v3890_v60 = vsub.f32 %v7559_v51, %v3880_v57 }
0x1f04   :  { %3897 = vrot.lane.b32.xlu0 %v7637_v23, %s5562_s15 }
0x1f05   :  { %v3882_v13 = vpop.permute.xlu0 %3881  ;;  %5519 = vrcp.f32 %v3890_v60 }
0x1f06   :  { %v3884_v26 = vpop.permute.xlu1 %3883  ;;  %v7662_v25 = vsub.f32 %v7570_v56, %v3882_v13 }
0x1f07   :  { %v3892_v52 = vsub.f32 %v7574_v9, %v3884_v26 }
0x1f08   :  { %3901 = vrot.lane.b32.xlu0 %v7645_v6, %s5562_s15 }
0x1f09   :  { %5521 = vrcp.f32 %v3892_v52 }
0x1f0a   :  { %v3878_v12 = vpop.permute.xlu1 %3877 }
0x1f0b   :  { %v3889_v54 = vsub.f32 %v7584_v46, %v3878_v12 }
0x1f0d   :  { %5523 = vrcp.f32 %v3889_v54 }
0x1f0e   :  { %5525 = vrcp.f32 %v7662_v25 }
0x1f0f   :  { %v5520_v58 = vpop.eup %5519 }
0x1f13   :  { %v5522_v35 = vpop.eup %5521 }
0x1f17   :  { %v5524_v49 = vpop.eup %5523 }
0x1f24   :  { %3962 = vadd.xlane.f32.xlu1 %v3960_v8 }
0x1f27   :  { %3964 = vadd.xlane.f32.xlu0 %v3961_v1 }
0x1f3d   :  { %4031 = vrot.lane.b32.xlu0 %v3890_v60, %s5558_s12 }
0x1f3f   :  { %v3991_v34 = vpop.xlane.xlu0 %3990 }
0x1f40   :  { %v3993_v16 = vcvt.f32.s32 %v3991_v34 }
0x1f41   :  { %4035 = vrot.lane.b32.xlu0 %v3892_v52, %s5558_s12 }
0x1f42   :  { %v3994_v4 = vshll.u32 %v3993_v16, 16 }
0x1f45   :  { %4029 = vrot.lane.b32.xlu0 %v3889_v54, %s5558_s12 }
0x1f49   :  { %v3978_v3 = vpop.xlane.xlu1 %3977  ;;  %4033 = vrot.lane.b32.xlu0 %v7662_v25, %s5558_s12 }
0x1f4a   :  { %v3980_v27 = vcvt.f32.s32 %v3978_v3 }
0x1f4c   :  { %v3981_v1 = vshll.u32 %v3980_v27, 16 }
0x1f4d   :  { %v3976_v43 = vpop.xlane.xlu1 %3975 }
0x1f4e   :  { %v3979_v7 = vcvt.f32.s32 %v3976_v43 }
0x1f50   :  { %v3982_v57 = vadd.s32 %v3981_v1, %v3979_v7 }
0x1f51   :  { %v4004_v47 = vpop.xlane.xlu1 %4003 }
0x1f52   :  { %v4006_v22 = vcvt.f32.s32 %v4004_v47  ;;  %v4501_v60 = vadd.s32 4294967295, %v3982_v57 }
0x1f54   :  { %v4007_v55 = vshll.u32 %v4006_v22, 16  ;;  %vm4014_vm2 = vcmp.eq.s32.totalorder %v5827_v63, %v4501_v60 }
0x1f55   :  { %v4002_v44 = vpop.xlane.xlu1 %4001  ;;  %v7687_v54 = vsel %vm4014_vm2, 1.0, %v5548_v0  ;;  %vm7988_vm2 = vmmov %vm7987_vm0 }
0x1f56   :  { %v4005_v38 = vcvt.f32.s32 %v4002_v44  ;;  %v4106_v3 = vmul.f32 %v7687_v54, %v7540_v36  ;;  %v4110_v47 = vmul.f32 %v7687_v54, %v7611_v48 }
0x1f58   :  { %v4008_v30 = vadd.s32 %v4007_v55, %v4005_v38  ;;  %v4168_v43 = vsel %vm7979_vm15, %v4106_v3, 0.0  ;;  %v4180_v44 = vsel %vm7980_vm3, %v4110_v47, 0.0  ;;  %vm7990_vm15 = vmmov %vm7987_vm0 }
0x1f59   :  { %v3989_v15 = vpop.xlane.xlu1 %3988  ;;  %vm7991_vm3 = vmmov %vm7987_vm0 }
0x1f5a   :  { %v3992_v45 = vcvt.f32.s32 %v3989_v15  ;;  %v4503_v22 = vadd.s32 4294967295, %v4008_v30 }
0x1f5c   :  { %v3995_v8 = vadd.s32 %v3994_v4, %v3992_v45  ;;  %vm4016_vm7 = vcmp.eq.s32.totalorder %v5827_v63, %v4503_v22 }
0x1f5d   :  { %v7703_v38 = vsel %vm4016_vm7, 1.0, %v5548_v0  ;;  %vm7992_vm7 = vmmov %vm7987_vm0 }
0x1f5e   :  { %v4502_v26 = vadd.s32 4294967295, %v3995_v8  ;;  %v4108_v30 = vmul.f32 %v7703_v38, %v7548_v20  ;;  %v4092_v22 = vmul.f32 %v7703_v38, %v7574_v9 }
0x1f60   :  { %vm4015_vm5 = vcmp.eq.s32.totalorder %v5827_v63, %v4502_v26 }
0x1f61   :  { %v7681_v52 = vsel %vm4015_vm5, 1.0, %v5548_v0 }
0x1f62   :  { %v4091_v12 = vmul.f32 %v7681_v52, %v7570_v56  ;;  %v4107_v56 = vmul.f32 %v7681_v52, %v7544_v32  ;;  %v4111_v36 = vmul.f32 %v7681_v52, %v7613_v5  ;;  %v4174_v32 = vsel %vm7983_vm13, %v4108_v30, 0.0  ;;  %vm7995_vm13 = vmmov %vm7987_vm0 }
0x1f64   :  { %v4123_v13 = vsel %vm7978_vm8, %v4091_v12, 0.0  ;;  %v4171_v55 = vsel %vm7981_vm6, %v4107_v56, 0.0  ;;  %v4183_v48 = vsel %vm7982_vm12, %v4111_v36, 0.0  ;;  %vm7989_vm8 = vmmov %vm7987_vm0  ;;  %v4112_v56 = vmul.f32 %v7703_v38, %v7615_v21 }
0x1f65   :  { %vm7993_vm6 = vmmov %vm7987_vm0 }
0x1f66   :  { %vm7994_vm12 = vmmov %vm7987_vm0 }
0x1f6e   :  { %v3900_v10 = vpop.permute.xlu1 %3899 }
0x1f6f   :  { %v3910_v18 = vsub.f32 %v7621_v62, %v3900_v10 }
0x1f71   :  { %4079 = vrot.lane.b32.xlu1 %v3910_v18, %s5558_s12  ;;  %v3916_v17 = vmul.f32 %v5520_v58, %v3910_v18 }
0x1f72   :  { %v3904_v24 = vpop.permute.xlu1 %3903 }
0x1f73   :  { %v3912_v33 = vsub.f32 %v7629_v28, %v3904_v24 }
0x1f75   :  { %4083 = vrot.lane.b32.xlu1 %v3912_v33, %s5558_s12  ;;  %v3920_v50 = vmul.f32 %v5522_v35, %v3912_v33  ;;  %v3568_v35 = vsel %vm397_vm9, 0.5397424, %v7609_v37 }
0x1f76   :  { %v3898_v42 = vpop.permute.xlu0 %3897 }
0x1f77   :  { %v7672_v19 = vsub.f32 %v7637_v23, %v3898_v42 }
0x1f79   :  { %4047 = vrot.lane.b32.xlu1 %v3916_v17, %s5558_s12  ;;  %v3914_v29 = vmul.f32 %v5524_v49, %v7672_v19  ;;  %v5526_v17 = vpop.eup %5525 }
0x1f7a   :  { %v3902_v2 = vpop.permute.xlu0 %3901 }
0x1f7b   :  { %v3911_v41 = vsub.f32 %v7645_v6, %v3902_v2  ;;  %v3572_v2 = vsel %vm7985_vm4, %v3568_v35, 0.5397424  ;;  %v4100_v35 = vmul.f32 %v7703_v38, %v7629_v28 }
0x1f7c   :  { %vm3576_vm5 = vcmp.gt.f32.partialorder %v3572_v2, 20.0 }
0x1f7d   :  { %4081 = vrot.lane.b32.xlu0 %v3911_v41, %s5558_s12  ;;  %4051 = vrot.lane.b32.xlu1 %v3920_v50, %s5558_s12  ;;  %v3918_v20 = vmul.f32 %v5526_v17, %v3911_v41  ;;  %v3580_v50 = vmin.f32 %v3572_v2, 20.0  ;;  %v4090_v41 = vmul.f32 %v7687_v54, %v7559_v51 }
0x1f7f   :  { %v3584_v49 = vmul.f32 1.442695, %v3580_v50  ;;  %v4120_v7 = vsel %vm7987_vm0, %v4090_v41, 0.0 }
0x1f81   :  { %4045 = vrot.lane.b32.xlu0 %v3914_v29, %s5558_s12  ;;  %5527 = vpow2.f32 %v3584_v49 }
0x1f8b   :  { %v5528_v16 = vpop.eup %5527 }
0x1f8c   :  { %v3592_v4 = vadd.f32 1.0, %v5528_v16 }
0x1f8e   :  { %5529 = vlog2.f32 %v3592_v4 }
0x1f98   :  { %v5530_v8 = vpop.eup %5529 }
0x1f99   :  { %v3597_v1 = vmul.f32 0.6931472, %v5530_v8 }
0x1f9b   :  { %v3604_v57 = vsel %vm3576_vm5, %v3572_v2, %v3597_v1  ;;  %vm7998_vm5 = vmmov %vm7987_vm0 }
0x1f9c   :  { %v3608_v26 = vadd.f32 0.001, %v3604_v57 }
0x1fa0   :  { %4124 = vadd.xlane.f32.xlu0 %v4123_v13 }
0x1fa4   :  { %4169 = vadd.xlane.f32.xlu0 %v4168_v43 }
0x1fa8   :  { %4181 = vadd.xlane.f32.xlu0 %v4180_v44  ;;  %v4126_v44 = vsel %vm7990_vm15, %v4092_v22, 0.0  ;;  %vm8001_vm15 = vmmov %vm7987_vm0 }
0x1fac   :  { %4172 = vadd.xlane.f32.xlu0 %v4171_v55 }
0x1fb0   :  { %4184 = vadd.xlane.f32.xlu0 %v4183_v48  ;;  %v4186_v48 = vsel %vm7991_vm3, %v4112_v56, 0.0  ;;  %vm8002_vm3 = vmmov %vm7987_vm0 }
0x1fb1   :  { %v3963_v15 = vpop.xlane.xlu1 %3962 }
0x1fb2   :  { %v3966_v34 = vcvt.f32.s32 %v3963_v15 }
0x1fb4   :  { %4175 = vadd.xlane.f32.xlu0 %v4174_v32  ;;  %v3965_v10 = vpop.xlane.xlu0 %3964 }
0x1fb5   :  { %v3967_v18 = vcvt.f32.s32 %v3965_v10 }
0x1fb7   :  { %v3968_v24 = vshll.u32 %v3967_v18, 16 }
0x1fb8   :  { %v4032_v33 = vpop.permute.xlu0 %4031 }
0x1fb9   :  { %v3969_v5 = vadd.s32 %v3968_v24, %v3966_v34  ;;  %v4094_v58 = vmul.f32 %v7687_v54, %v4032_v33  ;;  %v4098_v24 = vmul.f32 %v7687_v54, %v7621_v62 }
0x1fbb   :  { %v4132_v42 = vsel %vm7984_vm14, %v4094_v58, 0.0  ;;  %v4500_v33 = vadd.s32 4294967295, %v3969_v5  ;;  %vm7996_vm14 = vmmov %vm7987_vm0 }
0x1fbc   :  { %4133 = vadd.xlane.f32.xlu1 %v4132_v42  ;;  %v4036_v60 = vpop.permute.xlu0 %4035  ;;  %v4144_v58 = vsel %vm7996_vm14, %v4098_v24, 0.0  ;;  %v4099_v42 = vmul.f32 %v7681_v52, %v7645_v6  ;;  %vm3542_vm14 = vcmp.le.f32.partialorder %v7497_v11, 4.0 }
0x1fbd   :  { %v4096_v13 = vmul.f32 %v7703_v38, %v4036_v60  ;;  %vm4013_vm4 = vcmp.eq.s32.totalorder %v5827_v63, %v4500_v33 }
0x1fbe   :  { %v7750_v2 = vsel %vm4013_vm4, 1.0, %v5548_v0  ;;  %vm3537_vm4 = vcmp.ge.f32.partialorder %v7492_v31, -4.0 }
0x1fbf   :  { %v4138_v43 = vsel %vm7988_vm2, %v4096_v13, 0.0  ;;  %v4089_v5 = vmul.f32 %v7750_v2, %v7584_v46  ;;  %vm7999_vm2 = vmmov %vm7987_vm0 }
0x1fc0   :  { %v4030_v12 = vpop.permute.xlu0 %4029 }
0x1fc1   :  { %v4117_v28 = vsel %vm7999_vm2, %v4089_v5, 0.0  ;;  %vm3539_vm2 = vcmp.ge.f32.partialorder %v7499_v61, -4.0 }
0x1fc4   :  { %v4034_v3 = vpop.permute.xlu0 %4033 }
0x1fc5   :  { %v4095_v51 = vmul.f32 %v7681_v52, %v4034_v3 }
0x1fc7   :  { %v4135_v47 = vsel %vm7989_vm8, %v4095_v51, 0.0  ;;  %vm8000_vm8 = vmmov %vm7987_vm0 }
0x1fcd   :  { %4049 = vrot.lane.b32.xlu1 %v3918_v20, %s5558_s12 }
0x1fe3   :  { %v4080_v29 = vpop.permute.xlu1 %4079 }
0x1fe4   :  { %v4114_v30 = vmul.f32 %v7687_v54, %v4080_v29 }
0x1fe6   :  { %v4192_v10 = vsel %vm7993_vm6, %v4114_v30, 0.0  ;;  %vm8004_vm6 = vmmov %vm7987_vm0 }
0x1fe7   :  { %v4084_v45 = vpop.permute.xlu1 %4083 }
0x1fe8   :  { %v4116_v21 = vmul.f32 %v7703_v38, %v4084_v45  ;;  %v4093_v45 = vmul.f32 %v7750_v2, %v4030_v12 }
0x1fea   :  { %v4198_v34 = vsel %vm7995_vm13, %v4116_v21, 0.0  ;;  %v4129_v41 = vsel %vm8002_vm3, %v4093_v45, 0.0  ;;  %vm3538_vm13 = vcmp.ge.f32.partialorder %v7497_v11, -4.0  ;;  %vm3536_vm3 = vcmp.ge.f32.partialorder %v7285_v40, -4.0 }
0x1feb   :  { %v4048_v27 = vpop.permute.xlu1 %4047 }
0x1fec   :  { %v4102_v25 = vmul.f32 %v7687_v54, %v4048_v27  ;;  %v4150_v54 = vsel %vm7987_vm0, %v4100_v35, 0.0 }
0x1fee   :  { %v4156_v37 = vsel %vm7986_vm1, %v4102_v25, 0.0  ;;  %vm7997_vm1 = vmmov %vm7987_vm0 }
0x1fef   :  { %4157 = vadd.xlane.f32.xlu0 %v4156_v37  ;;  %v4052_v55 = vpop.permute.xlu1 %4051  ;;  %v4082_v15 = vpop.permute.xlu0 %4081  ;;  %v4147_v20 = vsel %vm7997_vm1, %v4099_v42, 0.0  ;;  %vm3546_vm1 = vmand %vm3538_vm13, %vm3542_vm14 }
0x1ff0   :  { %v4104_v36 = vmul.f32 %v7703_v38, %v4052_v55  ;;  %v4115_v9 = vmul.f32 %v7681_v52, %v4082_v15  ;;  %v4105_v38 = vmul.f32 %v7750_v2, %v3608_v26 }
0x1ff1   :  { %4121 = vadd.xlane.f32.xlu1 %v4120_v7 }
0x1ff2   :  { %v4162_v32 = vsel %vm7992_vm7, %v4104_v36, 0.0  ;;  %v4195_v18 = vsel %vm7994_vm12, %v4115_v9, 0.0  ;;  %v4165_v29 = vsel %vm8001_vm15, %v4105_v38, 0.0  ;;  %vm8003_vm7 = vmmov %vm7987_vm0  ;;  %v4097_v38 = vmul.f32 %v7750_v2, %v7637_v23 }
0x1ff3   :  { %v4046_v6 = vpop.permute.xlu0 %4045  ;;  %vm8005_vm12 = vmmov %vm7987_vm0  ;;  %vm3541_vm0 = vcmp.le.f32.partialorder %v7492_v31, 4.0 }
0x1ff4   :  { %v4101_v49 = vmul.f32 %v7750_v2, %v4046_v6 }
0x1ff6   :  { %v4153_v0 = vsel %vm8000_vm8, %v4101_v49, 0.0  ;;  %vm3543_vm8 = vcmp.le.f32.partialorder %v7499_v61, 4.0 }
0x1ff7   :  { %vm3547_vm15 = vmand %vm3539_vm2, %vm3543_vm8 }
0x2002   :  { %4061 = vrot.lane.b32.xlu1 %v3608_v26, %s5558_s12 }
0x2026   :  { %4139 = vadd.xlane.f32.xlu1 %v4138_v43 }
0x202a   :  { %4136 = vadd.xlane.f32.xlu1 %v4135_v47 }
0x202e   :  { %4127 = vadd.xlane.f32.xlu1 %v4126_v44 }
0x2032   :  { %4187 = vadd.xlane.f32.xlu1 %v4186_v48 }
0x2036   :  { %4163 = vadd.xlane.f32.xlu1 %v4162_v32 }
0x203a   :  { %4193 = vadd.xlane.f32.xlu1 %v4192_v10 }
0x203e   :  { %4196 = vadd.xlane.f32.xlu1 %v4195_v18 }
0x2042   :  { %4199 = vadd.xlane.f32.xlu1 %v4198_v34 }
0x2046   :  { %4145 = vadd.xlane.f32.xlu1 %v4144_v58 }
0x2049   :  { %v4134_v17 = vpop.xlane.xlu1 %4133 }
0x204a   :  { %4148 = vadd.xlane.f32.xlu1 %v4147_v20  ;;  %5531 = vrcp.f32 %v4134_v17 }
0x204d   :  { %v4050_v62 = vpop.permute.xlu1 %4049 }
0x204e   :  { %v4103_v50 = vmul.f32 %v7681_v52, %v4050_v62  ;;  %4151 = vadd.xlane.f32.xlu1 %v4150_v54 }
0x2050   :  { %v4159_v63 = vsel %vm7998_vm5, %v4103_v50, 0.0  ;;  %vm3545_vm5 = vmand %vm3537_vm4, %vm3541_vm0 }
0x2051   :  { %4160 = vadd.xlane.f32.xlu0 %v4159_v63 }
0x2052   :  { %4118 = vadd.xlane.f32.xlu1 %v4117_v28 }
0x2054   :  { %v5532_v16 = vpop.eup %5531 }
0x2056   :  { %4154 = vadd.xlane.f32.xlu1 %v4153_v0 }
0x205a   :  { %4166 = vadd.xlane.f32.xlu1 %v4165_v29 }
0x2067   :  { %4077 = vrot.lane.b32.xlu0 %v7672_v19, %s5558_s12  ;;  %v4125_v19 = vpop.xlane.xlu0 %4124 }
0x2068   :  { %v4203_v22 = vsub.f32 %v4491_v39, %v4125_v19 }
0x206b   :  { %v4170_v8 = vpop.xlane.xlu0 %4169 }
0x206f   :  { %v4182_v57 = vpop.xlane.xlu0 %4181 }
0x2070   :  { %v4242_v15 = vadd.f32 %v4182_v57, %v4170_v8 }
0x2073   :  { %v4173_v26 = vpop.xlane.xlu0 %4172 }
0x2077   :  { %v4185_v12 = vpop.xlane.xlu0 %4184 }
0x207b   :  { %v4176_v3 = vpop.xlane.xlu0 %4175 }
0x207e   :  { %v4122_v46 = vpop.xlane.xlu1 %4121 }
0x207f   :  { %v4202_v52 = vsub.f32 %v4490_v59, %v4122_v46  ;;  %v4158_v44 = vpop.xlane.xlu0 %4157 }
0x2080   :  { %v4246_v30 = vmul.f32 2.0, %v4158_v44 }
0x2081   :  { %v7767_v4 = vmul.f32 %v5532_v16, %v4202_v52  ;;  %v4141_v16 = vsel %vm8005_vm12, %v4097_v38, 0.0  ;;  %vm8006_vm12 = vcmask 31744  }
0x2082   :  { %v4062_v27 = vpop.permute.xlu1 %4061  ;;  %v4250_v24 = vsub.f32 %v4242_v15, %v4246_v30 }
0x2083   :  { %v4109_v25 = vmul.f32 %v7750_v2, %v4062_v27  ;;  %v4214_v55 = vsub.f32 1.0, %v7767_v4  ;;  %v4222_v46 = vmul.f32 %v7767_v4, %v4158_v44 }
0x2085   :  { %v4177_v37 = vsel %vm8003_vm7, %v4109_v25, 0.0  ;;  %v4218_v21 = vmul.f32 %v4214_v55, %v7767_v4  ;;  %vm3540_vm7 = vcmp.le.f32.partialorder %v7285_v40, 4.0 }
0x2086   :  { %4130 = vadd.xlane.f32.xlu0 %v4129_v41  ;;  %4178 = vadd.xlane.f32.xlu1 %v4177_v37  ;;  %v4226_v37 = vmul.f32 %v4222_v46, %v7767_v4 }
0x2087   :  { %v4254_v17 = vmul.f32 %v4250_v24, %v4218_v21  ;;  %v4230_v45 = vmul.f32 %v4218_v21, %v4170_v8 }
0x2089   :  { %v4258_v63 = vadd.f32 %v4254_v17, %v4158_v44 }
0x20b3   :  { %v4140_v7 = vpop.xlane.xlu1 %4139 }
0x20b4   :  { %5533 = vrcp.f32 %v4140_v7  ;;  %v4234_v7 = vadd.f32 %v4230_v45, %v4226_v37 }
0x20b7   :  { %v4137_v1 = vpop.xlane.xlu1 %4136 }
0x20b8   :  { %5535 = vrcp.f32 %v4137_v1 }
0x20bb   :  { %v4128_v59 = vpop.xlane.xlu1 %4127 }
0x20bc   :  { %v4204_v43 = vsub.f32 %v4492_v53, %v4128_v59  ;;  %v4243_v53 = vadd.f32 %v4185_v12, %v4173_v26 }
0x20be   :  { %v5534_v51 = vpop.eup %5533 }
0x20bf   :  { %v4188_v60 = vpop.xlane.xlu1 %4187  ;;  %v4212_v56 = vmul.f32 %v5534_v51, %v4204_v43 }
0x20c0   :  { %v4244_v9 = vadd.f32 %v4188_v60, %v4176_v3 }
0x20c1   :  { %v4216_v10 = vsub.f32 1.0, %v4212_v56 }
0x20c2   :  { %v5536_v47 = vpop.eup %5535 }
0x20c3   :  { %v4164_v13 = vpop.xlane.xlu1 %4163  ;;  %v4210_v48 = vmul.f32 %v5536_v47, %v4203_v22  ;;  %v4220_v42 = vmul.f32 %v4216_v10, %v4212_v56 }
0x20c4   :  { %v4248_v32 = vmul.f32 2.0, %v4164_v13  ;;  %v4224_v41 = vmul.f32 %v4212_v56, %v4164_v13 }
0x20c5   :  { %v4215_v18 = vsub.f32 1.0, %v4210_v48  ;;  %v4232_v1 = vmul.f32 %v4220_v42, %v4176_v3 }
0x20c6   :  { %v4252_v33 = vsub.f32 %v4244_v9, %v4248_v32 }
0x20c7   :  { %v4194_v36 = vpop.xlane.xlu1 %4193  ;;  %v4219_v20 = vmul.f32 %v4215_v18, %v4210_v48 }
0x20c8   :  { %v4256_v54 = vmul.f32 %v4252_v33, %v4220_v42  ;;  %v4238_v23 = vmul.f32 %v4234_v7, %v4194_v36 }
0x20c9   :  { %v4231_v27 = vmul.f32 %v4219_v20, %v4173_v26 }
0x20ca   :  { %v4260_v29 = vadd.f32 %v4256_v54, %v4164_v13 }
0x20cb   :  { %v4197_v58 = vpop.xlane.xlu1 %4196 }
0x20cf   :  { %v4200_v49 = vpop.xlane.xlu1 %4199 }
0x20d3   :  { %v4146_v25 = vpop.xlane.xlu1 %4145 }
0x20d7   :  { %v4149_v60 = vpop.xlane.xlu1 %4148 }
0x20db   :  { %v4152_v22 = vpop.xlane.xlu1 %4151 }
0x20de   :  { %v4161_v34 = vpop.xlane.xlu0 %4160 }
0x20df   :  { %v4247_v39 = vmul.f32 2.0, %v4161_v34  ;;  %v4223_v50 = vmul.f32 %v4210_v48, %v4161_v34 }
0x20e1   :  { %v4251_v35 = vsub.f32 %v4243_v53, %v4247_v39  ;;  %v4227_v52 = vmul.f32 %v4223_v50, %v4210_v48  ;;  %v4119_v48 = vpop.xlane.xlu1 %4118 }
0x20e2   :  { %v4078_v62 = vpop.permute.xlu0 %4077  ;;  %v4201_v15 = vsub.f32 %v4489_v14, %v4119_v48 }
0x20e3   :  { %v4255_v5 = vmul.f32 %v4251_v35, %v4219_v20  ;;  %v4113_v6 = vmul.f32 %v7750_v2, %v4078_v62  ;;  %v4235_v19 = vadd.f32 %v4231_v27, %v4227_v52  ;;  %v4228_v2 = vmul.f32 %v4224_v41, %v4212_v56 }
0x20e5   :  { %v4259_v28 = vadd.f32 %v4255_v5, %v4161_v34  ;;  %v4189_v0 = vsel %vm8004_vm6, %v4113_v6, 0.0  ;;  %v4239_v57 = vmul.f32 %v4235_v19, %v4197_v58  ;;  %v4236_v12 = vadd.f32 %v4232_v1, %v4228_v2  ;;  %v4155_v30 = vpop.xlane.xlu1 %4154  ;;  %vm3544_vm6 = vmand %vm3536_vm3, %vm3540_vm7 }
0x20e6   :  { %4190 = vadd.xlane.f32.xlu1 %v4189_v0  ;;  %v4245_v34 = vmul.f32 2.0, %v4155_v30 }
0x20e7   :  { %5537 = vrcp.f32 %v4259_v28  ;;  %v4240_v4 = vmul.f32 %v4236_v12, %v4200_v49 }
0x20e8   :  { %5539 = vrcp.f32 %v4258_v63 }
0x20e9   :  { %5541 = vrcp.f32 %v4260_v29  ;;  %v4167_v9 = vpop.xlane.xlu1 %4166 }
0x20ea   :  { %4142 = vadd.xlane.f32.xlu1 %v4141_v16 }
0x20f1   :  { %v5538_v59 = vpop.eup %5537 }
0x20f2   :  { %v4266_v8 = vmul.f32 %v5538_v59, %v4239_v57  ;;  %v5540_v26 = vpop.eup %5539 }
0x20f3   :  { %v4264_v51 = vmul.f32 %v5540_v26, %v4238_v23  ;;  %v5542_v13 = vpop.eup %5541 }
0x20f4   :  { %v4271_v43 = vadd.f32 %v4266_v8, %v4149_v60  ;;  %v4268_v44 = vmul.f32 %v5542_v13, %v4240_v4 }
0x20f5   :  { %v4270_v3 = vadd.f32 %v4264_v51, %v4146_v25 }
0x20f6   :  { %v4275_v47 = vsel %vm3546_vm1, %v4271_v43, %v7497_v11  ;;  %v4272_v56 = vadd.f32 %v4268_v44, %v4152_v22 }
0x20f7   :  { %4282 = vrot.lane.b32.xlu0 %v4275_v47, %s5563_s16  ;;  %v4274_v55 = vsel %vm3545_vm5, %v4270_v3, %v7492_v31 }
0x20f8   :  { %v4276_v36 = vsel %vm3547_vm15, %v4272_v56, %v7499_v61 }
0x20fb   :  { %4278 = vrot.lane.b32.xlu1 %v4274_v55, %s5562_s15 }
0x20ff   :  { %4286 = vrot.lane.b32.xlu1 %v4276_v36, %s5564_s21 }
0x2113   :  { %v4131_v11 = vpop.xlane.xlu0 %4130  ;;  %v4179_v21 = vpop.xlane.xlu1 %4178 }
0x2114   :  { %5543 = vrcp.f32 %v4131_v11  ;;  %v4241_v31 = vadd.f32 %v4179_v21, %v4167_v9 }
0x2116   :  { %v4249_v24 = vsub.f32 %v4241_v31, %v4245_v34 }
0x211e   :  { %v5544_v32 = vpop.eup %5543 }
0x211f   :  { %v4206_v10 = vmul.f32 %v5544_v32, %v4201_v15 }
0x2121   :  { %v4213_v18 = vsub.f32 1.0, %v4206_v10  ;;  %v4221_v58 = vmul.f32 %v4206_v10, %v4155_v30 }
0x2123   :  { %v4217_v53 = vmul.f32 %v4213_v18, %v4206_v10  ;;  %v4225_v42 = vmul.f32 %v4221_v58, %v4206_v10 }
0x2125   :  { %v4253_v33 = vmul.f32 %v4249_v24, %v4217_v53  ;;  %v4229_v39 = vmul.f32 %v4217_v53, %v4167_v9 }
0x2127   :  { %v4257_v61 = vadd.f32 %v4253_v33, %v4155_v30  ;;  %v4233_v17 = vadd.f32 %v4229_v39, %v4225_v42 }
0x2129   :  { %5545 = vrcp.f32 %v4257_v61 }
0x2133   :  { %v5546_v62 = vpop.eup %5545 }
0x2169   :  { %v4283_v49 = vpop.permute.xlu0 %4282 }
0x2173   :  { %v4191_v20 = vpop.xlane.xlu1 %4190 }
0x2174   :  { %v4237_v35 = vmul.f32 %v4233_v17, %v4191_v20 }
0x2176   :  { %v4262_v54 = vmul.f32 %v5546_v62, %v4237_v35 }
0x2177   :  { %v4143_v14 = vpop.xlane.xlu1 %4142 }
0x2178   :  { %v4269_v5 = vadd.f32 %v4262_v54, %v4143_v14 }
0x217a   :  { %v4273_v6 = vsel %vm3544_vm6, %v4269_v5, %v7285_v40 }
0x217b   :  { %v4279_v50 = vpop.permute.xlu1 %4278 }
0x217c   :  { %v4289_v63 = vsel %vm397_vm9, %v4273_v6, %v4279_v50 }
0x217d   :  { %v4290_v28 = vsel %vm1129_vm10, %v4289_v63, %v4283_v49 }
0x217f   :  { %v4287_v0 = vpop.permute.xlu1 %4286 }
0x2180   :  { %v4291_v38 = vsel %vm1131_vm11, %v4290_v28, %v4287_v0 }
0x2181   :  { %4292 = vst.msk [vmem:[%s7816_s7] sm:$0xff] %vm8006_vm12, %v4291_v38 }

</bundles_post_ra>
